<compile_context>
chip_gen: v6e
topology: v6e:2x2x1
jax: 0.10.0
libtpu: 0.0.40
codegen_flags: <defaults>
</compile_context>

<pallas_src>
import functools
import math

import jax
import jax.numpy as jnp
from jax.experimental import pallas as pl
from jax.experimental.pallas import tpu as pltpu

LN_EPS = 1e-5  # PyTorch layer_norm_eps default


# ----------------------------- in-kernel helpers -----------------------------

def _layer_norm(x, g, b):
    mu = jnp.mean(x, axis=-1, keepdims=True)
    xc = x - mu
    var = jnp.mean(xc * xc, axis=-1, keepdims=True)
    return xc * jax.lax.rsqrt(var + LN_EPS) * g + b


def _mm(x, w):
    """Dense matmul; activations cast to the (possibly bf16) weight dtype, f32 accumulate."""
    return jnp.dot(x.astype(w.dtype), w, preferred_element_type=jnp.float32)


def _mha(q, k, v, wo, B, Sq, Sk, H, Dh):
    """Multi-head attention on flat (B*Sq, E) queries and (B*Sk, E) keys/values.

    Heads are batched into a single leading dot_general batch dim (two batched matmul
    issues instead of 2*H tiny ones), and the head merge is fused with the per-head
    output projection wo (H, Dh, E) -- batched matmul + sum over heads -- so no lane
    re-concatenation is needed. The 1/sqrt(Dh) query scale is pre-folded into the
    projection weights. Only the per-batch-element score/softmax stays separated
    (static Python loop over the small batch tile).
    """
    outs = []
    for b in range(B):
        qs, ks = slice(b * Sq, (b + 1) * Sq), slice(b * Sk, (b + 1) * Sk)
        q3 = jnp.stack([q[qs, h * Dh:(h + 1) * Dh] for h in range(H)], axis=0)  # (H,Sq,Dh)
        k3 = jnp.stack([k[ks, h * Dh:(h + 1) * Dh] for h in range(H)], axis=0)  # (H,Sk,Dh)
        v3 = jnp.stack([v[ks, h * Dh:(h + 1) * Dh] for h in range(H)], axis=0)  # (H,Sk,Dh)
        s = jnp.einsum("hqd,hkd->hqk", q3, k3, preferred_element_type=jnp.float32)
        s = s - jnp.max(s, axis=-1, keepdims=True)
        p = jnp.exp(s)
        # approx reciprocal (EUP slot): tiny deviation from exact PyTorch division.
        p = p * pl.reciprocal(jnp.sum(p, axis=-1, keepdims=True), approx=True)
        o3 = jnp.einsum("hqk,hkd->hqd", p, v3, preferred_element_type=jnp.float32)
        # fused head-merge + output projection: sum_h (Sq,Dh)_h @ (Dh,E)_h
        ob = jnp.einsum("hqd,hde->hqe", o3.astype(wo.dtype), wo,
                        preferred_element_type=jnp.float32)
        outs.append(jnp.sum(ob, axis=0))                                        # (Sq, E)
    return jnp.concatenate(outs, axis=0) if B > 1 else outs[0]                  # (B*Sq, E)


# ----------------------------- fused model kernel -----------------------------

def _model_kernel(x_ref,
                  enc_g_ref, enc_b_ref,
                  sa_wqkv_ref, sa_bqkv_ref, sa_wo_ref, sa_bo_ref,
                  ca_wq_ref, ca_bq_ref, ca_wkv_ref, ca_bkv_ref, ca_wo_ref, ca_bo_ref,
                  ff1_w_ref, ff1_b_ref, ff2_w_ref, ff2_b_ref,
                  ln1_g_ref, ln1_b_ref, ln2_g_ref, ln2_b_ref, ln3_g_ref, ln3_b_ref,
                  dec_g_ref, dec_b_ref, cls_w_ref, cls_b_ref,
                  out_ref, *, depth, B, S, H, Dh):
    E = H * Dh
    x = x_ref[...]                                       # (B*S, E) flat batch tile

    # encoder with 0 layers: memory = encoder-final LayerNorm(src)
    mem = _layer_norm(x, enc_g_ref[...], enc_b_ref[...])

    # hoisted cross-attention K/V for ALL layers: one wide lane-dense matmul
    kv_all = _mm(mem, ca_wkv_ref[...]) + ca_bkv_ref[...]  # (B*S, depth*2E)

    for i in range(depth):                               # decoder layers (post-norm, relu FF)
        # ---- self-attention (fused QKV matmul, q-scale pre-folded) + residual + LN1 ----
        qkv = _mm(x, sa_wqkv_ref[i]) + sa_bqkv_ref[i]
        sa = _mha(qkv[:, :E], qkv[:, E:2 * E], qkv[:, 2 * E:], sa_wo_ref[i], B, S, S, H, Dh)
        x = _layer_norm(x + sa + sa_bo_ref[i], ln1_g_ref[i], ln1_b_ref[i])

        # ---- cross-attention on memory (K/V pre-computed once above) + residual + LN2 ----
        qc = _mm(x, ca_wq_ref[i]) + ca_bq_ref[i]
        kv = kv_all[:, i * 2 * E:(i + 1) * 2 * E]
        ca = _mha(qc, kv[:, :E], kv[:, E:], ca_wo_ref[i], B, S, S, H, Dh)
        x = _layer_norm(x + ca + ca_bo_ref[i], ln2_g_ref[i], ln2_b_ref[i])

        # ---- feed-forward (relu) + residual + LN3 ----
        hmid = jnp.maximum(_mm(x, ff1_w_ref[i]) + ff1_b_ref[i], 0.0)
        ff = _mm(hmid, ff2_w_ref[i]) + ff2_b_ref[i]
        x = _layer_norm(x + ff, ln3_g_ref[i], ln3_b_ref[i])

    # ---- decoder-final LayerNorm + classifier (lane-padded, unmasked stores) ----
    x = _layer_norm(x, dec_g_ref[...], dec_b_ref[...])
    out_ref[...] = _mm(x, cls_w_ref[...]) + cls_b_ref[...]


# ----------------------------- jitted forward -----------------------------

_WEIGHT_ORDER = ("enc_g", "enc_b",
                 "sa_wqkv", "sa_bqkv", "sa_wo", "sa_bo",
                 "ca_wq", "ca_bq", "ca_wkv", "ca_bkv", "ca_wo", "ca_bo",
                 "ff1_w", "ff1_b", "ff2_w", "ff2_b",
                 "ln1_g", "ln1_b", "ln2_g", "ln2_b", "ln3_g", "ln3_b",
                 "dec_g", "dec_b", "cls_w", "cls_b")


def _const_index(n, *, nd):
    return (0,) * nd


def _pick_batch_tile(N, S, target_rows):
    """Largest divisor of N whose flattened row count fits the target MXU tile."""
    if S % 8 != 0:        # multi-tile blocks need sublane-aligned rows;
        return N          # fall back to a single whole-batch tile (block == full array).
    best = 1
    for d in range(1, N + 1):
        if N % d == 0 and d * S <= max(target_rows, S):
            best = d
    return best


@functools.partial(jax.jit, static_argnames=("nhead", "num_labels", "target_rows"))
def convex_hull_forward(kp, X, *, nhead, num_labels, target_rows=256):
    """X: (S, N) int32 token indices -> logits (S, N, num_labels).

    target_rows: flattened matmul-M rows per grid step (256 for the v6e/v7x 256x256
    MXU; use 128 on v5e).
    """
    S, N = X.shape
    E = kp["embed"].shape[1]
    depth = kp["sa_wqkv"].shape[0]
    Lp = kp["cls_w"].shape[1]
    Dh = E // nhead
    dff = kp["ff1_w"].shape[-1]

    # Embedding gather with transposed indices -> already batch-major; no (S,N,E)
    # activation transpose. Flat (N*S, E) slab so the kernel needs no in-kernel reshape.
    xf = jnp.take(kp["embed"], X.T, axis=0).reshape(N * S, E)

    b_tile = _pick_batch_tile(N, S, target_rows)
    m_tile = b_tile * S
    n_tiles = N // b_tile

    weights = [kp[k] for k in _WEIGHT_ORDER]
    in_specs = [pl.BlockSpec((m_tile, E), lambda n: (n, 0))]
    in_specs += [pl.BlockSpec(w.shape, functools.partial(_const_index, nd=w.ndim))
                 for w in weights]

    # Explicit VMEM budget: double-buffered weights + activation/output/FF blocks + headroom.
    weight_bytes = sum(int(w.size) * w.dtype.itemsize for w in weights)
    act_bytes = (m_tile * E + m_tile * Lp + m_tile * dff) * 4
    vmem_limit = int(min(2 * (weight_bytes + act_bytes) + (16 << 20), 64 << 20))

    out = pl.pallas_call(
        functools.partial(_model_kernel, depth=depth, B=b_tile, S=S, H=nhead, Dh=Dh),
        out_shape=jax.ShapeDtypeStruct((N * S, Lp), jnp.float32),
        grid=(n_tiles,),
        in_specs=in_specs,
        out_specs=pl.BlockSpec((m_tile, Lp), lambda n: (n, 0)),
        compiler_params=pltpu.CompilerParams(
            dimension_semantics=("parallel",),
            vmem_limit_bytes=vmem_limit),
    )(xf, *weights)

    # Slice off the lane padding BEFORE transposing; return PyTorch's (S, N, labels).
    out = out.reshape(N, S, Lp)[:, :, :num_labels]
    return jnp.transpose(out, (1, 0, 2))


# ----------------------------- parameters -----------------------------

def init_params(key, n_vocab, hidden_dim, depth, num_labels, dff=2048):
    """PyTorch-layout parameters (weights as (Nout, K), biases 1-D)."""
    keys = iter(jax.random.split(key, 8 + depth * 16))

    def nrm(shape, scale=0.02):
        return (scale * jax.random.normal(next(keys), shape)).astype(jnp.float32)

    ones = lambda: jnp.ones((hidden_dim,), jnp.float32)
    zeros = lambda: jnp.zeros((hidden_dim,), jnp.float32)

    def attn_params():
        return dict(in_w=nrm((3 * hidden_dim, hidden_dim)),
                    in_b=nrm((3 * hidden_dim,)),
                    out_w=nrm((hidden_dim, hidden_dim)),
                    out_b=nrm((hidden_dim,)))

    layers = []
    for _ in range(depth):
        layers.append(dict(
            self_attn=attn_params(),
            cross_attn=attn_params(),
            ff1_w=nrm((dff, hidden_dim)), ff1_b=nrm((dff,)),
            ff2_w=nrm((hidden_dim, dff)), ff2_b=nrm((hidden_dim,)),
            ln1_g=ones(), ln1_b=zeros(),
            ln2_g=ones(), ln2_b=zeros(),
            ln3_g=ones(), ln3_b=zeros(),
        ))

    return dict(
        embed=nrm((n_vocab, hidden_dim), 1.0),
        enc_ln_g=ones(), enc_ln_b=zeros(),
        layers=layers,
        dec_ln_g=ones(), dec_ln_b=zeros(),
        cls_w=nrm((num_labels, hidden_dim)), cls_b=nrm((num_labels,)),
    )


def prepare_params(params, nhead, num_labels, matmul_dtype=jnp.float32):
    """One-time kernel layout prep:
      * weights transposed to (K, Nout), per-layer stacked along a leading depth axis,
      * QKV fused into one (E, 3E) projection; 1/sqrt(Dh) query scale folded into the
        Q weights/biases (self- and cross-attention),
      * cross-attention K/V weights of ALL layers concatenated into one wide (E, depth*2E)
        projection (hoisted out of the depth loop in the kernel),
      * attention output projections reshaped to per-head (H, Dh, E) so the head merge
        fuses into a batched matmul + sum (no lane re-pack in-kernel),
      * classifier output padded to a lane-dense multiple of 128,
      * matmul weights optionally cast to bf16 (f32 accumulate in-kernel; relaxed
        numerics vs. the f32 PyTorch reference) — biases / LayerNorm params stay f32.
    """
    E = params["embed"].shape[1]
    Dh = E // nhead
    scale = 1.0 / math.sqrt(Dh)
    layers = params["layers"]
    depth = len(layers)
    wd = matmul_dtype

    def stack(fn):
        return jnp.stack([fn(lp) for lp in layers], axis=0)

    def head_wo(out_w):            # (E, E) -> (H, Dh, E): per-head rows of out_w.T
        return out_w.T.reshape(nhead, Dh, E)

    def fold_q_scale(w_or_b):      # scale the Q rows of a PyTorch-layout in_proj tensor
        return jnp.concatenate([w_or_b[:E] * scale, w_or_b[E:]], axis=0)

    kp = dict(
        embed=params["embed"],
        enc_g=params["enc_ln_g"].reshape(1, E), enc_b=params["enc_ln_b"].reshape(1, E),
        dec_g=params["dec_ln_g"].reshape(1, E), dec_b=params["dec_ln_b"].reshape(1, E),
        # self-attention: fused QKV projection (Q pre-scaled), pre-transposed
        sa_wqkv=stack(lambda lp: fold_q_scale(lp["self_attn"]["in_w"]).T).astype(wd),   # (d,E,3E)
        sa_bqkv=stack(lambda lp: fold_q_scale(lp["self_attn"]["in_b"]).reshape(1, 3 * E)),
        sa_wo=stack(lambda lp: head_wo(lp["self_attn"]["out_w"])).astype(wd),           # (d,H,Dh,E)
        sa_bo=stack(lambda lp: lp["self_attn"]["out_b"].reshape(1, E)),
        # cross-attention: separate (pre-scaled) Q projection; hoisted all-layer KV below
        ca_wq=stack(lambda lp: (lp["cross_attn"]["in_w"][:E] * scale).T).astype(wd),    # (d,E,E)
        ca_bq=stack(lambda lp: (lp["cross_attn"]["in_b"][:E] * scale).reshape(1, E)),
        ca_wo=stack(lambda lp: head_wo(lp["cross_attn"]["out_w"])).astype(wd),          # (d,H,Dh,E)
        ca_bo=stack(lambda lp: lp["cross_attn"]["out_b"].reshape(1, E)),
        # feed-forward
        ff1_w=stack(lambda lp: lp["ff1_w"].T).astype(wd),                               # (d,E,dff)
        ff1_b=stack(lambda lp: lp["ff1_b"].reshape(1, -1)),
        ff2_w=stack(lambda lp: lp["ff2_w"].T).astype(wd),                               # (d,dff,E)
        ff2_b=stack(lambda lp: lp["ff2_b"].reshape(1, E)),
        # layer norms
        ln1_g=stack(lambda lp: lp["ln1_g"].reshape(1, E)),
        ln1_b=stack(lambda lp: lp["ln1_b"].reshape(1, E)),
        ln2_g=stack(lambda lp: lp["ln2_g"].reshape(1, E)),
        ln2_b=stack(lambda lp: lp["ln2_b"].reshape(1, E)),
        ln3_g=stack(lambda lp: lp["ln3_g"].reshape(1, E)),
        ln3_b=stack(lambda lp: lp["ln3_b"].reshape(1, E)),
    )
    # hoisted cross-attention K/V: all layers concatenated along the output (lane) dim
    kp["ca_wkv"] = jnp.concatenate(
        [lp["cross_attn"]["in_w"][E:].T for lp in layers], axis=1).astype(wd)           # (E, d*2E)
    kp["ca_bkv"] = jnp.concatenate(
        [lp["cross_attn"]["in_b"][E:] for lp in layers], axis=0).reshape(1, depth * 2 * E)
    # classifier, lane-padded to a multiple of 128 for unmasked stores
    Lp = ((num_labels + 127) // 128) * 128
    kp["cls_w"] = jnp.zeros((E, Lp), wd).at[:, :num_labels].set(params["cls_w"].T.astype(wd))
    kp["cls_b"] = jnp.zeros((1, Lp), jnp.float32).at[:, :num_labels].set(
        params["cls_b"].reshape(1, -1))
    return kp


# ----------------------------- main -----------------------------

if __name__ == "__main__":
    class Args:
        n_vocab = 16
        hidden_dim = 32
        width = 4       # nhead
        depth = 2
        num_labels = 8

    args = Args()

    key = jax.random.PRNGKey(0)
    pkey, xkey = jax.random.split(key)
    params = init_params(pkey, args.n_vocab, args.hidden_dim, args.depth, args.num_labels)
    # matmul_dtype=jnp.bfloat16 gives ~2-4x MXU throughput at relaxed numerics; keep f32
    # here to match the PyTorch reference.
    kparams = prepare_params(params, args.width, args.num_labels, matmul_dtype=jnp.float32)

    S, N = 8, 2  # (seq, batch) — nn.Transformer is seq-first by default
    X = jax.random.randint(xkey, (S, N), 0, args.n_vocab, dtype=jnp.int32)

    pred = convex_hull_forward(kparams, X, nhead=args.width, num_labels=args.num_labels)
    pred = jax.block_until_ready(pred)
    assert pred.shape == (S, N, args.num_labels), pred.shape
    assert bool(jnp.all(jnp.isfinite(pred)))
    print("KERNEL_OK")
</pallas_src>

<mosaic_0001>
module attributes {stable_mosaic.version = 11 : i64} {
  func.func @_model_kernel(%arg0: i32, %arg1: memref<16x32xf32, #tpu.memory_space<vmem>>, %arg2: memref<1x32xf32, #tpu.memory_space<vmem>>, %arg3: memref<1x32xf32, #tpu.memory_space<vmem>>, %arg4: memref<2x32x96xf32, #tpu.memory_space<vmem>>, %arg5: memref<2x1x96xf32, #tpu.memory_space<vmem>>, %arg6: memref<2x4x8x32xf32, #tpu.memory_space<vmem>>, %arg7: memref<2x1x32xf32, #tpu.memory_space<vmem>>, %arg8: memref<2x32x32xf32, #tpu.memory_space<vmem>>, %arg9: memref<2x1x32xf32, #tpu.memory_space<vmem>>, %arg10: memref<32x128xf32, #tpu.memory_space<vmem>>, %arg11: memref<1x128xf32, #tpu.memory_space<vmem>>, %arg12: memref<2x4x8x32xf32, #tpu.memory_space<vmem>>, %arg13: memref<2x1x32xf32, #tpu.memory_space<vmem>>, %arg14: memref<2x32x2048xf32, #tpu.memory_space<vmem>>, %arg15: memref<2x1x2048xf32, #tpu.memory_space<vmem>>, %arg16: memref<2x2048x32xf32, #tpu.memory_space<vmem>>, %arg17: memref<2x1x32xf32, #tpu.memory_space<vmem>>, %arg18: memref<2x1x32xf32, #tpu.memory_space<vmem>>, %arg19: memref<2x1x32xf32, #tpu.memory_space<vmem>>, %arg20: memref<2x1x32xf32, #tpu.memory_space<vmem>>, %arg21: memref<2x1x32xf32, #tpu.memory_space<vmem>>, %arg22: memref<2x1x32xf32, #tpu.memory_space<vmem>>, %arg23: memref<2x1x32xf32, #tpu.memory_space<vmem>>, %arg24: memref<1x32xf32, #tpu.memory_space<vmem>>, %arg25: memref<1x32xf32, #tpu.memory_space<vmem>>, %arg26: memref<32x128xf32, #tpu.memory_space<vmem>>, %arg27: memref<1x128xf32, #tpu.memory_space<vmem>>, %arg28: memref<16x128xf32, #tpu.memory_space<vmem>>) attributes {dimension_semantics = [#tpu.dimension_semantics<parallel>], iteration_bounds = array<i64: 1>, scalar_prefetch = 0 : i64, scratch_operands = 0 : i64, tpu.core_type = #tpu.core_type<tc>, window_params = [{transform_indices = @transform_0, window_bounds = array<i64: 16, 32>}, {pipeline_mode = #tpu.pipeline_mode<synchronous>, transform_indices = @transform_1, window_bounds = array<i64: 1, 32>}, {pipeline_mode = #tpu.pipeline_mode<synchronous>, transform_indices = @transform_2, window_bounds = array<i64: 1, 32>}, {pipeline_mode = #tpu.pipeline_mode<synchronous>, transform_indices = @transform_3, window_bounds = array<i64: 2, 32, 96>}, {pipeline_mode = #tpu.pipeline_mode<synchronous>, transform_indices = @transform_4, window_bounds = array<i64: 2, 1, 96>}, {pipeline_mode = #tpu.pipeline_mode<synchronous>, transform_indices = @transform_5, window_bounds = array<i64: 2, 4, 8, 32>}, {pipeline_mode = #tpu.pipeline_mode<synchronous>, transform_indices = @transform_6, window_bounds = array<i64: 2, 1, 32>}, {pipeline_mode = #tpu.pipeline_mode<synchronous>, transform_indices = @transform_7, window_bounds = array<i64: 2, 32, 32>}, {pipeline_mode = #tpu.pipeline_mode<synchronous>, transform_indices = @transform_8, window_bounds = array<i64: 2, 1, 32>}, {pipeline_mode = #tpu.pipeline_mode<synchronous>, transform_indices = @transform_9, window_bounds = array<i64: 32, 128>}, {pipeline_mode = #tpu.pipeline_mode<synchronous>, transform_indices = @transform_10, window_bounds = array<i64: 1, 128>}, {pipeline_mode = #tpu.pipeline_mode<synchronous>, transform_indices = @transform_11, window_bounds = array<i64: 2, 4, 8, 32>}, {pipeline_mode = #tpu.pipeline_mode<synchronous>, transform_indices = @transform_12, window_bounds = array<i64: 2, 1, 32>}, {pipeline_mode = #tpu.pipeline_mode<synchronous>, transform_indices = @transform_13, window_bounds = array<i64: 2, 32, 2048>}, {pipeline_mode = #tpu.pipeline_mode<synchronous>, transform_indices = @transform_14, window_bounds = array<i64: 2, 1, 2048>}, {pipeline_mode = #tpu.pipeline_mode<synchronous>, transform_indices = @transform_15, window_bounds = array<i64: 2, 2048, 32>}, {pipeline_mode = #tpu.pipeline_mode<synchronous>, transform_indices = @transform_16, window_bounds = array<i64: 2, 1, 32>}, {pipeline_mode = #tpu.pipeline_mode<synchronous>, transform_indices = @transform_17, window_bounds = array<i64: 2, 1, 32>}, {pipeline_mode = #tpu.pipeline_mode<synchronous>, transform_indices = @transform_18, window_bounds = array<i64: 2, 1, 32>}, {pipeline_mode = #tpu.pipeline_mode<synchronous>, transform_indices = @transform_19, window_bounds = array<i64: 2, 1, 32>}, {pipeline_mode = #tpu.pipeline_mode<synchronous>, transform_indices = @transform_20, window_bounds = array<i64: 2, 1, 32>}, {pipeline_mode = #tpu.pipeline_mode<synchronous>, transform_indices = @transform_21, window_bounds = array<i64: 2, 1, 32>}, {pipeline_mode = #tpu.pipeline_mode<synchronous>, transform_indices = @transform_22, window_bounds = array<i64: 2, 1, 32>}, {pipeline_mode = #tpu.pipeline_mode<synchronous>, transform_indices = @transform_23, window_bounds = array<i64: 1, 32>}, {pipeline_mode = #tpu.pipeline_mode<synchronous>, transform_indices = @transform_24, window_bounds = array<i64: 1, 32>}, {pipeline_mode = #tpu.pipeline_mode<synchronous>, transform_indices = @transform_25, window_bounds = array<i64: 32, 128>}, {pipeline_mode = #tpu.pipeline_mode<synchronous>, transform_indices = @transform_26, window_bounds = array<i64: 1, 128>}, {transform_indices = @transform_27, window_bounds = array<i64: 16, 128>}]} {
    %c0 = arith.constant 0 : index
    %c0_0 = arith.constant 0 : index
    %0 = vector.load %arg1[%c0, %c0_0] : memref<16x32xf32, #tpu.memory_space<vmem>>, vector<16x32xf32>
    %c0_1 = arith.constant 0 : index
    %c0_2 = arith.constant 0 : index
    %1 = vector.load %arg2[%c0_1, %c0_2] : memref<1x32xf32, #tpu.memory_space<vmem>>, vector<1x32xf32>
    %c0_3 = arith.constant 0 : index
    %c0_4 = arith.constant 0 : index
    %2 = vector.load %arg3[%c0_3, %c0_4] : memref<1x32xf32, #tpu.memory_space<vmem>>, vector<1x32xf32>
    %cst = arith.constant dense<0.000000e+00> : vector<16xf32>
    %3 = vector.multi_reduction <add>, %0, %cst [1] : vector<16x32xf32> to vector<16xf32>
    %4 = vector.shape_cast %3 : vector<16xf32> to vector<16x1xf32>
    %cst_5 = arith.constant 3.200000e+01 : f32
    %5 = vector.broadcast %cst_5 : f32 to vector<16x1xf32>
    %6 = arith.divf %4, %5 : vector<16x1xf32>
    %7 = vector.broadcast %6 : vector<16x1xf32> to vector<16x32xf32>
    %8 = arith.subf %0, %7 : vector<16x32xf32>
    %9 = arith.mulf %8, %8 : vector<16x32xf32>
    %cst_6 = arith.constant dense<0.000000e+00> : vector<16xf32>
    %10 = vector.multi_reduction <add>, %9, %cst_6 [1] : vector<16x32xf32> to vector<16xf32>
    %11 = vector.shape_cast %10 : vector<16xf32> to vector<16x1xf32>
    %cst_7 = arith.constant 3.200000e+01 : f32
    %12 = vector.broadcast %cst_7 : f32 to vector<16x1xf32>
    %13 = arith.divf %11, %12 : vector<16x1xf32>
    %cst_8 = arith.constant 9.99999974E-6 : f32
    %14 = vector.broadcast %cst_8 : f32 to vector<16x1xf32>
    %15 = arith.addf %13, %14 : vector<16x1xf32>
    %16 = math.rsqrt %15 : vector<16x1xf32>
    %17 = vector.broadcast %16 : vector<16x1xf32> to vector<16x32xf32>
    %18 = arith.mulf %8, %17 : vector<16x32xf32>
    %19 = vector.broadcast %1 : vector<1x32xf32> to vector<16x32xf32>
    %20 = arith.mulf %18, %19 : vector<16x32xf32>
    %21 = vector.broadcast %2 : vector<1x32xf32> to vector<16x32xf32>
    %22 = arith.addf %20, %21 : vector<16x32xf32>
    %c0_9 = arith.constant 0 : index
    %c0_10 = arith.constant 0 : index
    %23 = vector.load %arg10[%c0_9, %c0_10] : memref<32x128xf32, #tpu.memory_space<vmem>>, vector<32x128xf32>
    %cst_11 = arith.constant dense<0.000000e+00> : vector<16x128xf32>
    %24 = tpu.matmul %22, %23, %cst_11 {dimension_numbers = #tpu.dot_dimension_numbers<[1], [0], [0], [1], [0, 0, 1, 1], [], []>} : vector<16x32xf32>, vector<32x128xf32>, vector<16x128xf32> -> vector<16x128xf32>
    %c0_12 = arith.constant 0 : index
    %c0_13 = arith.constant 0 : index
    %25 = vector.load %arg11[%c0_12, %c0_13] : memref<1x128xf32, #tpu.memory_space<vmem>>, vector<1x128xf32>
    %26 = vector.broadcast %25 : vector<1x128xf32> to vector<16x128xf32>
    %27 = arith.addf %24, %26 : vector<16x128xf32>
    %c0_14 = arith.constant 0 : index
    %c0_15 = arith.constant 0 : index
    %c0_16 = arith.constant 0 : index
    %28 = vector.load %arg4[%c0_14, %c0_15, %c0_16] : memref<2x32x96xf32, #tpu.memory_space<vmem>>, vector<1x32x96xf32>
    %29 = vector.shape_cast %28 : vector<1x32x96xf32> to vector<32x96xf32>
    %cst_17 = arith.constant dense<0.000000e+00> : vector<16x96xf32>
    %30 = tpu.matmul %0, %29, %cst_17 {dimension_numbers = #tpu.dot_dimension_numbers<[1], [0], [0], [1], [0, 0, 1, 1], [], []>} : vector<16x32xf32>, vector<32x96xf32>, vector<16x96xf32> -> vector<16x96xf32>
    %c0_18 = arith.constant 0 : index
    %c0_19 = arith.constant 0 : index
    %c0_20 = arith.constant 0 : index
    %31 = vector.load %arg5[%c0_18, %c0_19, %c0_20] : memref<2x1x96xf32, #tpu.memory_space<vmem>>, vector<1x1x96xf32>
    %32 = vector.shape_cast %31 : vector<1x1x96xf32> to vector<1x96xf32>
    %33 = vector.broadcast %32 : vector<1x96xf32> to vector<16x96xf32>
    %34 = arith.addf %30, %33 : vector<16x96xf32>
    %35 = vector.extract_strided_slice %34 {offsets = [0, 0], sizes = [16, 32], strides = [1, 1]} : vector<16x96xf32> to vector<16x32xf32>
    %36 = vector.extract_strided_slice %34 {offsets = [0, 32], sizes = [16, 32], strides = [1, 1]} : vector<16x96xf32> to vector<16x32xf32>
    %37 = vector.extract_strided_slice %34 {offsets = [0, 64], sizes = [16, 32], strides = [1, 1]} : vector<16x96xf32> to vector<16x32xf32>
    %c0_21 = arith.constant 0 : index
    %c0_22 = arith.constant 0 : index
    %c0_23 = arith.constant 0 : index
    %c0_24 = arith.constant 0 : index
    %38 = vector.load %arg6[%c0_21, %c0_22, %c0_23, %c0_24] : memref<2x4x8x32xf32, #tpu.memory_space<vmem>>, vector<1x4x8x32xf32>
    %39 = vector.shape_cast %38 : vector<1x4x8x32xf32> to vector<4x8x32xf32>
    %40 = vector.extract_strided_slice %35 {offsets = [0, 0], sizes = [8, 8], strides = [1, 1]} : vector<16x32xf32> to vector<8x8xf32>
    %41 = vector.extract_strided_slice %35 {offsets = [0, 8], sizes = [8, 8], strides = [1, 1]} : vector<16x32xf32> to vector<8x8xf32>
    %42 = vector.extract_strided_slice %35 {offsets = [0, 16], sizes = [8, 8], strides = [1, 1]} : vector<16x32xf32> to vector<8x8xf32>
    %43 = vector.extract_strided_slice %35 {offsets = [0, 24], sizes = [8, 8], strides = [1, 1]} : vector<16x32xf32> to vector<8x8xf32>
    %44 = vector.shape_cast %40 : vector<8x8xf32> to vector<1x8x8xf32>
    %45 = vector.shape_cast %41 : vector<8x8xf32> to vector<1x8x8xf32>
    %46 = vector.shape_cast %42 : vector<8x8xf32> to vector<1x8x8xf32>
    %47 = vector.shape_cast %43 : vector<8x8xf32> to vector<1x8x8xf32>
    %48 = tpu.concatenate %44, %45, %46, %47 in 0 : vector<1x8x8xf32>, vector<1x8x8xf32>, vector<1x8x8xf32>, vector<1x8x8xf32> -> vector<4x8x8xf32>
    %49 = vector.extract_strided_slice %36 {offsets = [0, 0], sizes = [8, 8], strides = [1, 1]} : vector<16x32xf32> to vector<8x8xf32>
    %50 = vector.extract_strided_slice %36 {offsets = [0, 8], sizes = [8, 8], strides = [1, 1]} : vector<16x32xf32> to vector<8x8xf32>
    %51 = vector.extract_strided_slice %36 {offsets = [0, 16], sizes = [8, 8], strides = [1, 1]} : vector<16x32xf32> to vector<8x8xf32>
    %52 = vector.extract_strided_slice %36 {offsets = [0, 24], sizes = [8, 8], strides = [1, 1]} : vector<16x32xf32> to vector<8x8xf32>
    %53 = vector.shape_cast %49 : vector<8x8xf32> to vector<1x8x8xf32>
    %54 = vector.shape_cast %50 : vector<8x8xf32> to vector<1x8x8xf32>
    %55 = vector.shape_cast %51 : vector<8x8xf32> to vector<1x8x8xf32>
    %56 = vector.shape_cast %52 : vector<8x8xf32> to vector<1x8x8xf32>
    %57 = tpu.concatenate %53, %54, %55, %56 in 0 : vector<1x8x8xf32>, vector<1x8x8xf32>, vector<1x8x8xf32>, vector<1x8x8xf32> -> vector<4x8x8xf32>
    %58 = vector.extract_strided_slice %37 {offsets = [0, 0], sizes = [8, 8], strides = [1, 1]} : vector<16x32xf32> to vector<8x8xf32>
    %59 = vector.extract_strided_slice %37 {offsets = [0, 8], sizes = [8, 8], strides = [1, 1]} : vector<16x32xf32> to vector<8x8xf32>
    %60 = vector.extract_strided_slice %37 {offsets = [0, 16], sizes = [8, 8], strides = [1, 1]} : vector<16x32xf32> to vector<8x8xf32>
    %61 = vector.extract_strided_slice %37 {offsets = [0, 24], sizes = [8, 8], strides = [1, 1]} : vector<16x32xf32> to vector<8x8xf32>
    %62 = vector.shape_cast %58 : vector<8x8xf32> to vector<1x8x8xf32>
    %63 = vector.shape_cast %59 : vector<8x8xf32> to vector<1x8x8xf32>
    %64 = vector.shape_cast %60 : vector<8x8xf32> to vector<1x8x8xf32>
    %65 = vector.shape_cast %61 : vector<8x8xf32> to vector<1x8x8xf32>
    %66 = tpu.concatenate %62, %63, %64, %65 in 0 : vector<1x8x8xf32>, vector<1x8x8xf32>, vector<1x8x8xf32>, vector<1x8x8xf32> -> vector<4x8x8xf32>
    "tpu.trace_start"() <{level = 10 : i32, message = "hqd,hkd->hqk"}> : () -> ()
    %cst_25 = arith.constant dense<0.000000e+00> : vector<4x8x8xf32>
    %67 = tpu.matmul %48, %57, %cst_25 {dimension_numbers = #tpu.dot_dimension_numbers<[2], [2], [1], [1], [0, 0, 0, 1, 1, 1], [0], [0]>} : vector<4x8x8xf32>, vector<4x8x8xf32>, vector<4x8x8xf32> -> vector<4x8x8xf32>
    "tpu.trace_stop"() : () -> ()
    %cst_26 = arith.constant dense<0xFF800000> : vector<4x8xf32>
    %68 = vector.multi_reduction <maximumf>, %67, %cst_26 [2] : vector<4x8x8xf32> to vector<4x8xf32>
    %69 = vector.shape_cast %68 : vector<4x8xf32> to vector<4x8x1xf32>
    %70 = vector.broadcast %69 : vector<4x8x1xf32> to vector<4x8x8xf32>
    %71 = arith.subf %67, %70 : vector<4x8x8xf32>
    %72 = math.exp %71 : vector<4x8x8xf32>
    %cst_27 = arith.constant dense<0.000000e+00> : vector<4x8xf32>
    %73 = vector.multi_reduction <add>, %72, %cst_27 [2] : vector<4x8x8xf32> to vector<4x8xf32>
    %74 = vector.shape_cast %73 : vector<4x8xf32> to vector<4x8x1xf32>
    %75 = tpu.reciprocal %74 {approx = true} : vector<4x8x1xf32> -> vector<4x8x1xf32>
    %76 = vector.broadcast %75 : vector<4x8x1xf32> to vector<4x8x8xf32>
    %77 = arith.mulf %72, %76 : vector<4x8x8xf32>
    "tpu.trace_start"() <{level = 10 : i32, message = "hqk,hkd->hqd"}> : () -> ()
    %cst_28 = arith.constant dense<0.000000e+00> : vector<4x8x8xf32>
    %78 = tpu.matmul %77, %66, %cst_28 {dimension_numbers = #tpu.dot_dimension_numbers<[2], [1], [1], [2], [0, 0, 0, 1, 1, 2], [0], [0]>} : vector<4x8x8xf32>, vector<4x8x8xf32>, vector<4x8x8xf32> -> vector<4x8x8xf32>
    "tpu.trace_stop"() : () -> ()
    "tpu.trace_start"() <{level = 10 : i32, message = "hqd,hde->hqe"}> : () -> ()
    %cst_29 = arith.constant dense<0.000000e+00> : vector<4x8x32xf32>
    %79 = tpu.matmul %78, %39, %cst_29 {dimension_numbers = #tpu.dot_dimension_numbers<[2], [1], [1], [2], [0, 0, 0, 1, 1, 2], [0], [0]>} : vector<4x8x8xf32>, vector<4x8x32xf32>, vector<4x8x32xf32> -> vector<4x8x32xf32>
    "tpu.trace_stop"() : () -> ()
    %cst_30 = arith.constant dense<0.000000e+00> : vector<8x32xf32>
    %80 = vector.multi_reduction <add>, %79, %cst_30 [0] : vector<4x8x32xf32> to vector<8x32xf32>
    %81 = vector.extract_strided_slice %35 {offsets = [8, 0], sizes = [8, 8], strides = [1, 1]} : vector<16x32xf32> to vector<8x8xf32>
    %82 = vector.extract_strided_slice %35 {offsets = [8, 8], sizes = [8, 8], strides = [1, 1]} : vector<16x32xf32> to vector<8x8xf32>
    %83 = vector.extract_strided_slice %35 {offsets = [8, 16], sizes = [8, 8], strides = [1, 1]} : vector<16x32xf32> to vector<8x8xf32>
    %84 = vector.extract_strided_slice %35 {offsets = [8, 24], sizes = [8, 8], strides = [1, 1]} : vector<16x32xf32> to vector<8x8xf32>
    %85 = vector.shape_cast %81 : vector<8x8xf32> to vector<1x8x8xf32>
    %86 = vector.shape_cast %82 : vector<8x8xf32> to vector<1x8x8xf32>
    %87 = vector.shape_cast %83 : vector<8x8xf32> to vector<1x8x8xf32>
    %88 = vector.shape_cast %84 : vector<8x8xf32> to vector<1x8x8xf32>
    %89 = tpu.concatenate %85, %86, %87, %88 in 0 : vector<1x8x8xf32>, vector<1x8x8xf32>, vector<1x8x8xf32>, vector<1x8x8xf32> -> vector<4x8x8xf32>
    %90 = vector.extract_strided_slice %36 {offsets = [8, 0], sizes = [8, 8], strides = [1, 1]} : vector<16x32xf32> to vector<8x8xf32>
    %91 = vector.extract_strided_slice %36 {offsets = [8, 8], sizes = [8, 8], strides = [1, 1]} : vector<16x32xf32> to vector<8x8xf32>
    %92 = vector.extract_strided_slice %36 {offsets = [8, 16], sizes = [8, 8], strides = [1, 1]} : vector<16x32xf32> to vector<8x8xf32>
    %93 = vector.extract_strided_slice %36 {offsets = [8, 24], sizes = [8, 8], strides = [1, 1]} : vector<16x32xf32> to vector<8x8xf32>
    %94 = vector.shape_cast %90 : vector<8x8xf32> to vector<1x8x8xf32>
    %95 = vector.shape_cast %91 : vector<8x8xf32> to vector<1x8x8xf32>
    %96 = vector.shape_cast %92 : vector<8x8xf32> to vector<1x8x8xf32>
    %97 = vector.shape_cast %93 : vector<8x8xf32> to vector<1x8x8xf32>
    %98 = tpu.concatenate %94, %95, %96, %97 in 0 : vector<1x8x8xf32>, vector<1x8x8xf32>, vector<1x8x8xf32>, vector<1x8x8xf32> -> vector<4x8x8xf32>
    %99 = vector.extract_strided_slice %37 {offsets = [8, 0], sizes = [8, 8], strides = [1, 1]} : vector<16x32xf32> to vector<8x8xf32>
    %100 = vector.extract_strided_slice %37 {offsets = [8, 8], sizes = [8, 8], strides = [1, 1]} : vector<16x32xf32> to vector<8x8xf32>
    %101 = vector.extract_strided_slice %37 {offsets = [8, 16], sizes = [8, 8], strides = [1, 1]} : vector<16x32xf32> to vector<8x8xf32>
    %102 = vector.extract_strided_slice %37 {offsets = [8, 24], sizes = [8, 8], strides = [1, 1]} : vector<16x32xf32> to vector<8x8xf32>
    %103 = vector.shape_cast %99 : vector<8x8xf32> to vector<1x8x8xf32>
    %104 = vector.shape_cast %100 : vector<8x8xf32> to vector<1x8x8xf32>
    %105 = vector.shape_cast %101 : vector<8x8xf32> to vector<1x8x8xf32>
    %106 = vector.shape_cast %102 : vector<8x8xf32> to vector<1x8x8xf32>
    %107 = tpu.concatenate %103, %104, %105, %106 in 0 : vector<1x8x8xf32>, vector<1x8x8xf32>, vector<1x8x8xf32>, vector<1x8x8xf32> -> vector<4x8x8xf32>
    "tpu.trace_start"() <{level = 10 : i32, message = "hqd,hkd->hqk"}> : () -> ()
    %cst_31 = arith.constant dense<0.000000e+00> : vector<4x8x8xf32>
    %108 = tpu.matmul %89, %98, %cst_31 {dimension_numbers = #tpu.dot_dimension_numbers<[2], [2], [1], [1], [0, 0, 0, 1, 1, 1], [0], [0]>} : vector<4x8x8xf32>, vector<4x8x8xf32>, vector<4x8x8xf32> -> vector<4x8x8xf32>
    "tpu.trace_stop"() : () -> ()
    %cst_32 = arith.constant dense<0xFF800000> : vector<4x8xf32>
    %109 = vector.multi_reduction <maximumf>, %108, %cst_32 [2] : vector<4x8x8xf32> to vector<4x8xf32>
    %110 = vector.shape_cast %109 : vector<4x8xf32> to vector<4x8x1xf32>
    %111 = vector.broadcast %110 : vector<4x8x1xf32> to vector<4x8x8xf32>
    %112 = arith.subf %108, %111 : vector<4x8x8xf32>
    %113 = math.exp %112 : vector<4x8x8xf32>
    %cst_33 = arith.constant dense<0.000000e+00> : vector<4x8xf32>
    %114 = vector.multi_reduction <add>, %113, %cst_33 [2] : vector<4x8x8xf32> to vector<4x8xf32>
    %115 = vector.shape_cast %114 : vector<4x8xf32> to vector<4x8x1xf32>
    %116 = tpu.reciprocal %115 {approx = true} : vector<4x8x1xf32> -> vector<4x8x1xf32>
    %117 = vector.broadcast %116 : vector<4x8x1xf32> to vector<4x8x8xf32>
    %118 = arith.mulf %113, %117 : vector<4x8x8xf32>
    "tpu.trace_start"() <{level = 10 : i32, message = "hqk,hkd->hqd"}> : () -> ()
    %cst_34 = arith.constant dense<0.000000e+00> : vector<4x8x8xf32>
    %119 = tpu.matmul %118, %107, %cst_34 {dimension_numbers = #tpu.dot_dimension_numbers<[2], [1], [1], [2], [0, 0, 0, 1, 1, 2], [0], [0]>} : vector<4x8x8xf32>, vector<4x8x8xf32>, vector<4x8x8xf32> -> vector<4x8x8xf32>
    "tpu.trace_stop"() : () -> ()
    "tpu.trace_start"() <{level = 10 : i32, message = "hqd,hde->hqe"}> : () -> ()
    %cst_35 = arith.constant dense<0.000000e+00> : vector<4x8x32xf32>
    %120 = tpu.matmul %119, %39, %cst_35 {dimension_numbers = #tpu.dot_dimension_numbers<[2], [1], [1], [2], [0, 0, 0, 1, 1, 2], [0], [0]>} : vector<4x8x8xf32>, vector<4x8x32xf32>, vector<4x8x32xf32> -> vector<4x8x32xf32>
    "tpu.trace_stop"() : () -> ()
    %cst_36 = arith.constant dense<0.000000e+00> : vector<8x32xf32>
    %121 = vector.multi_reduction <add>, %120, %cst_36 [0] : vector<4x8x32xf32> to vector<8x32xf32>
    %122 = tpu.concatenate %80, %121 in 0 : vector<8x32xf32>, vector<8x32xf32> -> vector<16x32xf32>
    %123 = arith.addf %0, %122 : vector<16x32xf32>
    %c0_37 = arith.constant 0 : index
    %c0_38 = arith.constant 0 : index
    %c0_39 = arith.constant 0 : index
    %124 = vector.load %arg7[%c0_37, %c0_38, %c0_39] : memref<2x1x32xf32, #tpu.memory_space<vmem>>, vector<1x1x32xf32>
    %125 = vector.shape_cast %124 : vector<1x1x32xf32> to vector<1x32xf32>
    %126 = vector.broadcast %125 : vector<1x32xf32> to vector<16x32xf32>
    %127 = arith.addf %123, %126 : vector<16x32xf32>
    %c0_40 = arith.constant 0 : index
    %c0_41 = arith.constant 0 : index
    %c0_42 = arith.constant 0 : index
    %128 = vector.load %arg18[%c0_40, %c0_41, %c0_42] : memref<2x1x32xf32, #tpu.memory_space<vmem>>, vector<1x1x32xf32>
    %129 = vector.shape_cast %128 : vector<1x1x32xf32> to vector<1x32xf32>
    %c0_43 = arith.constant 0 : index
    %c0_44 = arith.constant 0 : index
    %c0_45 = arith.constant 0 : index
    %130 = vector.load %arg19[%c0_43, %c0_44, %c0_45] : memref<2x1x32xf32, #tpu.memory_space<vmem>>, vector<1x1x32xf32>
    %131 = vector.shape_cast %130 : vector<1x1x32xf32> to vector<1x32xf32>
    %cst_46 = arith.constant dense<0.000000e+00> : vector<16xf32>
    %132 = vector.multi_reduction <add>, %127, %cst_46 [1] : vector<16x32xf32> to vector<16xf32>
    %133 = vector.shape_cast %132 : vector<16xf32> to vector<16x1xf32>
    %cst_47 = arith.constant 3.200000e+01 : f32
    %134 = vector.broadcast %cst_47 : f32 to vector<16x1xf32>
    %135 = arith.divf %133, %134 : vector<16x1xf32>
    %136 = vector.broadcast %135 : vector<16x1xf32> to vector<16x32xf32>
    %137 = arith.subf %127, %136 : vector<16x32xf32>
    %138 = arith.mulf %137, %137 : vector<16x32xf32>
    %cst_48 = arith.constant dense<0.000000e+00> : vector<16xf32>
    %139 = vector.multi_reduction <add>, %138, %cst_48 [1] : vector<16x32xf32> to vector<16xf32>
    %140 = vector.shape_cast %139 : vector<16xf32> to vector<16x1xf32>
    %cst_49 = arith.constant 3.200000e+01 : f32
    %141 = vector.broadcast %cst_49 : f32 to vector<16x1xf32>
    %142 = arith.divf %140, %141 : vector<16x1xf32>
    %cst_50 = arith.constant 9.99999974E-6 : f32
    %143 = vector.broadcast %cst_50 : f32 to vector<16x1xf32>
    %144 = arith.addf %142, %143 : vector<16x1xf32>
    %145 = math.rsqrt %144 : vector<16x1xf32>
    %146 = vector.broadcast %145 : vector<16x1xf32> to vector<16x32xf32>
    %147 = arith.mulf %137, %146 : vector<16x32xf32>
    %148 = vector.broadcast %129 : vector<1x32xf32> to vector<16x32xf32>
    %149 = arith.mulf %147, %148 : vector<16x32xf32>
    %150 = vector.broadcast %131 : vector<1x32xf32> to vector<16x32xf32>
    %151 = arith.addf %149, %150 : vector<16x32xf32>
    %c0_51 = arith.constant 0 : index
    %c0_52 = arith.constant 0 : index
    %c0_53 = arith.constant 0 : index
    %152 = vector.load %arg8[%c0_51, %c0_52, %c0_53] : memref<2x32x32xf32, #tpu.memory_space<vmem>>, vector<1x32x32xf32>
    %153 = vector.shape_cast %152 : vector<1x32x32xf32> to vector<32x32xf32>
    %cst_54 = arith.constant dense<0.000000e+00> : vector<16x32xf32>
    %154 = tpu.matmul %151, %153, %cst_54 {dimension_numbers = #tpu.dot_dimension_numbers<[1], [0], [0], [1], [0, 0, 1, 1], [], []>} : vector<16x32xf32>, vector<32x32xf32>, vector<16x32xf32> -> vector<16x32xf32>
    %c0_55 = arith.constant 0 : index
    %c0_56 = arith.constant 0 : index
    %c0_57 = arith.constant 0 : index
    %155 = vector.load %arg9[%c0_55, %c0_56, %c0_57] : memref<2x1x32xf32, #tpu.memory_space<vmem>>, vector<1x1x32xf32>
    %156 = vector.shape_cast %155 : vector<1x1x32xf32> to vector<1x32xf32>
    %157 = vector.broadcast %156 : vector<1x32xf32> to vector<16x32xf32>
    %158 = arith.addf %154, %157 : vector<16x32xf32>
    %159 = vector.extract_strided_slice %27 {offsets = [0, 0], sizes = [16, 64], strides = [1, 1]} : vector<16x128xf32> to vector<16x64xf32>
    %160 = vector.extract_strided_slice %159 {offsets = [0, 0], sizes = [16, 32], strides = [1, 1]} : vector<16x64xf32> to vector<16x32xf32>
    %161 = vector.extract_strided_slice %159 {offsets = [0, 32], sizes = [16, 32], strides = [1, 1]} : vector<16x64xf32> to vector<16x32xf32>
    %c0_58 = arith.constant 0 : index
    %c0_59 = arith.constant 0 : index
    %c0_60 = arith.constant 0 : index
    %c0_61 = arith.constant 0 : index
    %162 = vector.load %arg12[%c0_58, %c0_59, %c0_60, %c0_61] : memref<2x4x8x32xf32, #tpu.memory_space<vmem>>, vector<1x4x8x32xf32>
    %163 = vector.shape_cast %162 : vector<1x4x8x32xf32> to vector<4x8x32xf32>
    %164 = vector.extract_strided_slice %158 {offsets = [0, 0], sizes = [8, 8], strides = [1, 1]} : vector<16x32xf32> to vector<8x8xf32>
    %165 = vector.extract_strided_slice %158 {offsets = [0, 8], sizes = [8, 8], strides = [1, 1]} : vector<16x32xf32> to vector<8x8xf32>
    %166 = vector.extract_strided_slice %158 {offsets = [0, 16], sizes = [8, 8], strides = [1, 1]} : vector<16x32xf32> to vector<8x8xf32>
    %167 = vector.extract_strided_slice %158 {offsets = [0, 24], sizes = [8, 8], strides = [1, 1]} : vector<16x32xf32> to vector<8x8xf32>
    %168 = vector.shape_cast %164 : vector<8x8xf32> to vector<1x8x8xf32>
    %169 = vector.shape_cast %165 : vector<8x8xf32> to vector<1x8x8xf32>
    %170 = vector.shape_cast %166 : vector<8x8xf32> to vector<1x8x8xf32>
    %171 = vector.shape_cast %167 : vector<8x8xf32> to vector<1x8x8xf32>
    %172 = tpu.concatenate %168, %169, %170, %171 in 0 : vector<1x8x8xf32>, vector<1x8x8xf32>, vector<1x8x8xf32>, vector<1x8x8xf32> -> vector<4x8x8xf32>
    %173 = vector.extract_strided_slice %160 {offsets = [0, 0], sizes = [8, 8], strides = [1, 1]} : vector<16x32xf32> to vector<8x8xf32>
    %174 = vector.extract_strided_slice %160 {offsets = [0, 8], sizes = [8, 8], strides = [1, 1]} : vector<16x32xf32> to vector<8x8xf32>
    %175 = vector.extract_strided_slice %160 {offsets = [0, 16], sizes = [8, 8], strides = [1, 1]} : vector<16x32xf32> to vector<8x8xf32>
    %176 = vector.extract_strided_slice %160 {offsets = [0, 24], sizes = [8, 8], strides = [1, 1]} : vector<16x32xf32> to vector<8x8xf32>
    %177 = vector.shape_cast %173 : vector<8x8xf32> to vector<1x8x8xf32>
    %178 = vector.shape_cast %174 : vector<8x8xf32> to vector<1x8x8xf32>
    %179 = vector.shape_cast %175 : vector<8x8xf32> to vector<1x8x8xf32>
    %180 = vector.shape_cast %176 : vector<8x8xf32> to vector<1x8x8xf32>
    %181 = tpu.concatenate %177, %178, %179, %180 in 0 : vector<1x8x8xf32>, vector<1x8x8xf32>, vector<1x8x8xf32>, vector<1x8x8xf32> -> vector<4x8x8xf32>
    %182 = vector.extract_strided_slice %161 {offsets = [0, 0], sizes = [8, 8], strides = [1, 1]} : vector<16x32xf32> to vector<8x8xf32>
    %183 = vector.extract_strided_slice %161 {offsets = [0, 8], sizes = [8, 8], strides = [1, 1]} : vector<16x32xf32> to vector<8x8xf32>
    %184 = vector.extract_strided_slice %161 {offsets = [0, 16], sizes = [8, 8], strides = [1, 1]} : vector<16x32xf32> to vector<8x8xf32>
    %185 = vector.extract_strided_slice %161 {offsets = [0, 24], sizes = [8, 8], strides = [1, 1]} : vector<16x32xf32> to vector<8x8xf32>
    %186 = vector.shape_cast %182 : vector<8x8xf32> to vector<1x8x8xf32>
    %187 = vector.shape_cast %183 : vector<8x8xf32> to vector<1x8x8xf32>
    %188 = vector.shape_cast %184 : vector<8x8xf32> to vector<1x8x8xf32>
    %189 = vector.shape_cast %185 : vector<8x8xf32> to vector<1x8x8xf32>
    %190 = tpu.concatenate %186, %187, %188, %189 in 0 : vector<1x8x8xf32>, vector<1x8x8xf32>, vector<1x8x8xf32>, vector<1x8x8xf32> -> vector<4x8x8xf32>
    "tpu.trace_start"() <{level = 10 : i32, message = "hqd,hkd->hqk"}> : () -> ()
    %cst_62 = arith.constant dense<0.000000e+00> : vector<4x8x8xf32>
    %191 = tpu.matmul %172, %181, %cst_62 {dimension_numbers = #tpu.dot_dimension_numbers<[2], [2], [1], [1], [0, 0, 0, 1, 1, 1], [0], [0]>} : vector<4x8x8xf32>, vector<4x8x8xf32>, vector<4x8x8xf32> -> vector<4x8x8xf32>
    "tpu.trace_stop"() : () -> ()
    %cst_63 = arith.constant dense<0xFF800000> : vector<4x8xf32>
    %192 = vector.multi_reduction <maximumf>, %191, %cst_63 [2] : vector<4x8x8xf32> to vector<4x8xf32>
    %193 = vector.shape_cast %192 : vector<4x8xf32> to vector<4x8x1xf32>
    %194 = vector.broadcast %193 : vector<4x8x1xf32> to vector<4x8x8xf32>
    %195 = arith.subf %191, %194 : vector<4x8x8xf32>
    %196 = math.exp %195 : vector<4x8x8xf32>
    %cst_64 = arith.constant dense<0.000000e+00> : vector<4x8xf32>
    %197 = vector.multi_reduction <add>, %196, %cst_64 [2] : vector<4x8x8xf32> to vector<4x8xf32>
    %198 = vector.shape_cast %197 : vector<4x8xf32> to vector<4x8x1xf32>
    %199 = tpu.reciprocal %198 {approx = true} : vector<4x8x1xf32> -> vector<4x8x1xf32>
    %200 = vector.broadcast %199 : vector<4x8x1xf32> to vector<4x8x8xf32>
    %201 = arith.mulf %196, %200 : vector<4x8x8xf32>
    "tpu.trace_start"() <{level = 10 : i32, message = "hqk,hkd->hqd"}> : () -> ()
    %cst_65 = arith.constant dense<0.000000e+00> : vector<4x8x8xf32>
    %202 = tpu.matmul %201, %190, %cst_65 {dimension_numbers = #tpu.dot_dimension_numbers<[2], [1], [1], [2], [0, 0, 0, 1, 1, 2], [0], [0]>} : vector<4x8x8xf32>, vector<4x8x8xf32>, vector<4x8x8xf32> -> vector<4x8x8xf32>
    "tpu.trace_stop"() : () -> ()
    "tpu.trace_start"() <{level = 10 : i32, message = "hqd,hde->hqe"}> : () -> ()
    %cst_66 = arith.constant dense<0.000000e+00> : vector<4x8x32xf32>
    %203 = tpu.matmul %202, %163, %cst_66 {dimension_numbers = #tpu.dot_dimension_numbers<[2], [1], [1], [2], [0, 0, 0, 1, 1, 2], [0], [0]>} : vector<4x8x8xf32>, vector<4x8x32xf32>, vector<4x8x32xf32> -> vector<4x8x32xf32>
    "tpu.trace_stop"() : () -> ()
    %cst_67 = arith.constant dense<0.000000e+00> : vector<8x32xf32>
    %204 = vector.multi_reduction <add>, %203, %cst_67 [0] : vector<4x8x32xf32> to vector<8x32xf32>
    %205 = vector.extract_strided_slice %158 {offsets = [8, 0], sizes = [8, 8], strides = [1, 1]} : vector<16x32xf32> to vector<8x8xf32>
    %206 = vector.extract_strided_slice %158 {offsets = [8, 8], sizes = [8, 8], strides = [1, 1]} : vector<16x32xf32> to vector<8x8xf32>
    %207 = vector.extract_strided_slice %158 {offsets = [8, 16], sizes = [8, 8], strides = [1, 1]} : vector<16x32xf32> to vector<8x8xf32>
    %208 = vector.extract_strided_slice %158 {offsets = [8, 24], sizes = [8, 8], strides = [1, 1]} : vector<16x32xf32> to vector<8x8xf32>
    %209 = vector.shape_cast %205 : vector<8x8xf32> to vector<1x8x8xf32>
    %210 = vector.shape_cast %206 : vector<8x8xf32> to vector<1x8x8xf32>
    %211 = vector.shape_cast %207 : vector<8x8xf32> to vector<1x8x8xf32>
    %212 = vector.shape_cast %208 : vector<8x8xf32> to vector<1x8x8xf32>
    %213 = tpu.concatenate %209, %210, %211, %212 in 0 : vector<1x8x8xf32>, vector<1x8x8xf32>, vector<1x8x8xf32>, vector<1x8x8xf32> -> vector<4x8x8xf32>
    %214 = vector.extract_strided_slice %160 {offsets = [8, 0], sizes = [8, 8], strides = [1, 1]} : vector<16x32xf32> to vector<8x8xf32>
    %215 = vector.extract_strided_slice %160 {offsets = [8, 8], sizes = [8, 8], strides = [1, 1]} : vector<16x32xf32> to vector<8x8xf32>
    %216 = vector.extract_strided_slice %160 {offsets = [8, 16], sizes = [8, 8], strides = [1, 1]} : vector<16x32xf32> to vector<8x8xf32>
    %217 = vector.extract_strided_slice %160 {offsets = [8, 24], sizes = [8, 8], strides = [1, 1]} : vector<16x32xf32> to vector<8x8xf32>
    %218 = vector.shape_cast %214 : vector<8x8xf32> to vector<1x8x8xf32>
    %219 = vector.shape_cast %215 : vector<8x8xf32> to vector<1x8x8xf32>
    %220 = vector.shape_cast %216 : vector<8x8xf32> to vector<1x8x8xf32>
    %221 = vector.shape_cast %217 : vector<8x8xf32> to vector<1x8x8xf32>
    %222 = tpu.concatenate %218, %219, %220, %221 in 0 : vector<1x8x8xf32>, vector<1x8x8xf32>, vector<1x8x8xf32>, vector<1x8x8xf32> -> vector<4x8x8xf32>
    %223 = vector.extract_strided_slice %161 {offsets = [8, 0], sizes = [8, 8], strides = [1, 1]} : vector<16x32xf32> to vector<8x8xf32>
    %224 = vector.extract_strided_slice %161 {offsets = [8, 8], sizes = [8, 8], strides = [1, 1]} : vector<16x32xf32> to vector<8x8xf32>
    %225 = vector.extract_strided_slice %161 {offsets = [8, 16], sizes = [8, 8], strides = [1, 1]} : vector<16x32xf32> to vector<8x8xf32>
    %226 = vector.extract_strided_slice %161 {offsets = [8, 24], sizes = [8, 8], strides = [1, 1]} : vector<16x32xf32> to vector<8x8xf32>
    %227 = vector.shape_cast %223 : vector<8x8xf32> to vector<1x8x8xf32>
    %228 = vector.shape_cast %224 : vector<8x8xf32> to vector<1x8x8xf32>
    %229 = vector.shape_cast %225 : vector<8x8xf32> to vector<1x8x8xf32>
    %230 = vector.shape_cast %226 : vector<8x8xf32> to vector<1x8x8xf32>
    %231 = tpu.concatenate %227, %228, %229, %230 in 0 : vector<1x8x8xf32>, vector<1x8x8xf32>, vector<1x8x8xf32>, vector<1x8x8xf32> -> vector<4x8x8xf32>
    "tpu.trace_start"() <{level = 10 : i32, message = "hqd,hkd->hqk"}> : () -> ()
    %cst_68 = arith.constant dense<0.000000e+00> : vector<4x8x8xf32>
    %232 = tpu.matmul %213, %222, %cst_68 {dimension_numbers = #tpu.dot_dimension_numbers<[2], [2], [1], [1], [0, 0, 0, 1, 1, 1], [0], [0]>} : vector<4x8x8xf32>, vector<4x8x8xf32>, vector<4x8x8xf32> -> vector<4x8x8xf32>
    "tpu.trace_stop"() : () -> ()
    %cst_69 = arith.constant dense<0xFF800000> : vector<4x8xf32>
    %233 = vector.multi_reduction <maximumf>, %232, %cst_69 [2] : vector<4x8x8xf32> to vector<4x8xf32>
    %234 = vector.shape_cast %233 : vector<4x8xf32> to vector<4x8x1xf32>
    %235 = vector.broadcast %234 : vector<4x8x1xf32> to vector<4x8x8xf32>
    %236 = arith.subf %232, %235 : vector<4x8x8xf32>
    %237 = math.exp %236 : vector<4x8x8xf32>
    %cst_70 = arith.constant dense<0.000000e+00> : vector<4x8xf32>
    %238 = vector.multi_reduction <add>, %237, %cst_70 [2] : vector<4x8x8xf32> to vector<4x8xf32>
    %239 = vector.shape_cast %238 : vector<4x8xf32> to vector<4x8x1xf32>
    %240 = tpu.reciprocal %239 {approx = true} : vector<4x8x1xf32> -> vector<4x8x1xf32>
    %241 = vector.broadcast %240 : vector<4x8x1xf32> to vector<4x8x8xf32>
    %242 = arith.mulf %237, %241 : vector<4x8x8xf32>
    "tpu.trace_start"() <{level = 10 : i32, message = "hqk,hkd->hqd"}> : () -> ()
    %cst_71 = arith.constant dense<0.000000e+00> : vector<4x8x8xf32>
    %243 = tpu.matmul %242, %231, %cst_71 {dimension_numbers = #tpu.dot_dimension_numbers<[2], [1], [1], [2], [0, 0, 0, 1, 1, 2], [0], [0]>} : vector<4x8x8xf32>, vector<4x8x8xf32>, vector<4x8x8xf32> -> vector<4x8x8xf32>
    "tpu.trace_stop"() : () -> ()
    "tpu.trace_start"() <{level = 10 : i32, message = "hqd,hde->hqe"}> : () -> ()
    %cst_72 = arith.constant dense<0.000000e+00> : vector<4x8x32xf32>
    %244 = tpu.matmul %243, %163, %cst_72 {dimension_numbers = #tpu.dot_dimension_numbers<[2], [1], [1], [2], [0, 0, 0, 1, 1, 2], [0], [0]>} : vector<4x8x8xf32>, vector<4x8x32xf32>, vector<4x8x32xf32> -> vector<4x8x32xf32>
    "tpu.trace_stop"() : () -> ()
    %cst_73 = arith.constant dense<0.000000e+00> : vector<8x32xf32>
    %245 = vector.multi_reduction <add>, %244, %cst_73 [0] : vector<4x8x32xf32> to vector<8x32xf32>
    %246 = tpu.concatenate %204, %245 in 0 : vector<8x32xf32>, vector<8x32xf32> -> vector<16x32xf32>
    %247 = arith.addf %151, %246 : vector<16x32xf32>
    %c0_74 = arith.constant 0 : index
    %c0_75 = arith.constant 0 : index
    %c0_76 = arith.constant 0 : index
    %248 = vector.load %arg13[%c0_74, %c0_75, %c0_76] : memref<2x1x32xf32, #tpu.memory_space<vmem>>, vector<1x1x32xf32>
    %249 = vector.shape_cast %248 : vector<1x1x32xf32> to vector<1x32xf32>
    %250 = vector.broadcast %249 : vector<1x32xf32> to vector<16x32xf32>
    %251 = arith.addf %247, %250 : vector<16x32xf32>
    %c0_77 = arith.constant 0 : index
    %c0_78 = arith.constant 0 : index
    %c0_79 = arith.constant 0 : index
    %252 = vector.load %arg20[%c0_77, %c0_78, %c0_79] : memref<2x1x32xf32, #tpu.memory_space<vmem>>, vector<1x1x32xf32>
    %253 = vector.shape_cast %252 : vector<1x1x32xf32> to vector<1x32xf32>
    %c0_80 = arith.constant 0 : index
    %c0_81 = arith.constant 0 : index
    %c0_82 = arith.constant 0 : index
    %254 = vector.load %arg21[%c0_80, %c0_81, %c0_82] : memref<2x1x32xf32, #tpu.memory_space<vmem>>, vector<1x1x32xf32>
    %255 = vector.shape_cast %254 : vector<1x1x32xf32> to vector<1x32xf32>
    %cst_83 = arith.constant dense<0.000000e+00> : vector<16xf32>
    %256 = vector.multi_reduction <add>, %251, %cst_83 [1] : vector<16x32xf32> to vector<16xf32>
    %257 = vector.shape_cast %256 : vector<16xf32> to vector<16x1xf32>
    %cst_84 = arith.constant 3.200000e+01 : f32
    %258 = vector.broadcast %cst_84 : f32 to vector<16x1xf32>
    %259 = arith.divf %257, %258 : vector<16x1xf32>
    %260 = vector.broadcast %259 : vector<16x1xf32> to vector<16x32xf32>
    %261 = arith.subf %251, %260 : vector<16x32xf32>
    %262 = arith.mulf %261, %261 : vector<16x32xf32>
    %cst_85 = arith.constant dense<0.000000e+00> : vector<16xf32>
    %263 = vector.multi_reduction <add>, %262, %cst_85 [1] : vector<16x32xf32> to vector<16xf32>
    %264 = vector.shape_cast %263 : vector<16xf32> to vector<16x1xf32>
    %cst_86 = arith.constant 3.200000e+01 : f32
    %265 = vector.broadcast %cst_86 : f32 to vector<16x1xf32>
    %266 = arith.divf %264, %265 : vector<16x1xf32>
    %cst_87 = arith.constant 9.99999974E-6 : f32
    %267 = vector.broadcast %cst_87 : f32 to vector<16x1xf32>
    %268 = arith.addf %266, %267 : vector<16x1xf32>
    %269 = math.rsqrt %268 : vector<16x1xf32>
    %270 = vector.broadcast %269 : vector<16x1xf32> to vector<16x32xf32>
    %271 = arith.mulf %261, %270 : vector<16x32xf32>
    %272 = vector.broadcast %253 : vector<1x32xf32> to vector<16x32xf32>
    %273 = arith.mulf %271, %272 : vector<16x32xf32>
    %274 = vector.broadcast %255 : vector<1x32xf32> to vector<16x32xf32>
    %275 = arith.addf %273, %274 : vector<16x32xf32>
    %c0_88 = arith.constant 0 : index
    %c0_89 = arith.constant 0 : index
    %c0_90 = arith.constant 0 : index
    %276 = vector.load %arg14[%c0_88, %c0_89, %c0_90] : memref<2x32x2048xf32, #tpu.memory_space<vmem>>, vector<1x32x2048xf32>
    %277 = vector.shape_cast %276 : vector<1x32x2048xf32> to vector<32x2048xf32>
    %cst_91 = arith.constant dense<0.000000e+00> : vector<16x2048xf32>
    %278 = tpu.matmul %275, %277, %cst_91 {dimension_numbers = #tpu.dot_dimension_numbers<[1], [0], [0], [1], [0, 0, 1, 1], [], []>} : vector<16x32xf32>, vector<32x2048xf32>, vector<16x2048xf32> -> vector<16x2048xf32>
    %c0_92 = arith.constant 0 : index
    %c0_93 = arith.constant 0 : index
    %c0_94 = arith.constant 0 : index
    %279 = vector.load %arg15[%c0_92, %c0_93, %c0_94] : memref<2x1x2048xf32, #tpu.memory_space<vmem>>, vector<1x1x2048xf32>
    %280 = vector.shape_cast %279 : vector<1x1x2048xf32> to vector<1x2048xf32>
    %281 = vector.broadcast %280 : vector<1x2048xf32> to vector<16x2048xf32>
    %282 = arith.addf %278, %281 : vector<16x2048xf32>
    %cst_95 = arith.constant 0.000000e+00 : f32
    %283 = vector.broadcast %cst_95 : f32 to vector<16x2048xf32>
    %284 = arith.maximumf %282, %283 : vector<16x2048xf32>
    %c0_96 = arith.constant 0 : index
    %c0_97 = arith.constant 0 : index
    %c0_98 = arith.constant 0 : index
    %285 = vector.load %arg16[%c0_96, %c0_97, %c0_98] : memref<2x2048x32xf32, #tpu.memory_space<vmem>>, vector<1x2048x32xf32>
    %286 = vector.shape_cast %285 : vector<1x2048x32xf32> to vector<2048x32xf32>
    %cst_99 = arith.constant dense<0.000000e+00> : vector<16x32xf32>
    %287 = tpu.matmul %284, %286, %cst_99 {dimension_numbers = #tpu.dot_dimension_numbers<[1], [0], [0], [1], [0, 0, 1, 1], [], []>} : vector<16x2048xf32>, vector<2048x32xf32>, vector<16x32xf32> -> vector<16x32xf32>
    %c0_100 = arith.constant 0 : index
    %c0_101 = arith.constant 0 : index
    %c0_102 = arith.constant 0 : index
    %288 = vector.load %arg17[%c0_100, %c0_101, %c0_102] : memref<2x1x32xf32, #tpu.memory_space<vmem>>, vector<1x1x32xf32>
    %289 = vector.shape_cast %288 : vector<1x1x32xf32> to vector<1x32xf32>
    %290 = vector.broadcast %289 : vector<1x32xf32> to vector<16x32xf32>
    %291 = arith.addf %287, %290 : vector<16x32xf32>
    %292 = arith.addf %275, %291 : vector<16x32xf32>
    %c0_103 = arith.constant 0 : index
    %c0_104 = arith.constant 0 : index
    %c0_105 = arith.constant 0 : index
    %293 = vector.load %arg22[%c0_103, %c0_104, %c0_105] : memref<2x1x32xf32, #tpu.memory_space<vmem>>, vector<1x1x32xf32>
    %294 = vector.shape_cast %293 : vector<1x1x32xf32> to vector<1x32xf32>
    %c0_106 = arith.constant 0 : index
    %c0_107 = arith.constant 0 : index
    %c0_108 = arith.constant 0 : index
    %295 = vector.load %arg23[%c0_106, %c0_107, %c0_108] : memref<2x1x32xf32, #tpu.memory_space<vmem>>, vector<1x1x32xf32>
    %296 = vector.shape_cast %295 : vector<1x1x32xf32> to vector<1x32xf32>
    %cst_109 = arith.constant dense<0.000000e+00> : vector<16xf32>
    %297 = vector.multi_reduction <add>, %292, %cst_109 [1] : vector<16x32xf32> to vector<16xf32>
    %298 = vector.shape_cast %297 : vector<16xf32> to vector<16x1xf32>
    %cst_110 = arith.constant 3.200000e+01 : f32
    %299 = vector.broadcast %cst_110 : f32 to vector<16x1xf32>
    %300 = arith.divf %298, %299 : vector<16x1xf32>
    %301 = vector.broadcast %300 : vector<16x1xf32> to vector<16x32xf32>
    %302 = arith.subf %292, %301 : vector<16x32xf32>
    %303 = arith.mulf %302, %302 : vector<16x32xf32>
    %cst_111 = arith.constant dense<0.000000e+00> : vector<16xf32>
    %304 = vector.multi_reduction <add>, %303, %cst_111 [1] : vector<16x32xf32> to vector<16xf32>
    %305 = vector.shape_cast %304 : vector<16xf32> to vector<16x1xf32>
    %cst_112 = arith.constant 3.200000e+01 : f32
    %306 = vector.broadcast %cst_112 : f32 to vector<16x1xf32>
    %307 = arith.divf %305, %306 : vector<16x1xf32>
    %cst_113 = arith.constant 9.99999974E-6 : f32
    %308 = vector.broadcast %cst_113 : f32 to vector<16x1xf32>
    %309 = arith.addf %307, %308 : vector<16x1xf32>
    %310 = math.rsqrt %309 : vector<16x1xf32>
    %311 = vector.broadcast %310 : vector<16x1xf32> to vector<16x32xf32>
    %312 = arith.mulf %302, %311 : vector<16x32xf32>
    %313 = vector.broadcast %294 : vector<1x32xf32> to vector<16x32xf32>
    %314 = arith.mulf %312, %313 : vector<16x32xf32>
    %315 = vector.broadcast %296 : vector<1x32xf32> to vector<16x32xf32>
    %316 = arith.addf %314, %315 : vector<16x32xf32>
    %c1 = arith.constant 1 : index
    %c0_114 = arith.constant 0 : index
    %c0_115 = arith.constant 0 : index
    %317 = vector.load %arg4[%c1, %c0_114, %c0_115] : memref<2x32x96xf32, #tpu.memory_space<vmem>>, vector<1x32x96xf32>
    %318 = vector.shape_cast %317 : vector<1x32x96xf32> to vector<32x96xf32>
    %cst_116 = arith.constant dense<0.000000e+00> : vector<16x96xf32>
    %319 = tpu.matmul %316, %318, %cst_116 {dimension_numbers = #tpu.dot_dimension_numbers<[1], [0], [0], [1], [0, 0, 1, 1], [], []>} : vector<16x32xf32>, vector<32x96xf32>, vector<16x96xf32> -> vector<16x96xf32>
    %c1_117 = arith.constant 1 : index
    %c0_118 = arith.constant 0 : index
    %c0_119 = arith.constant 0 : index
    %320 = vector.load %arg5[%c1_117, %c0_118, %c0_119] : memref<2x1x96xf32, #tpu.memory_space<vmem>>, vector<1x1x96xf32>
    %321 = vector.shape_cast %320 : vector<1x1x96xf32> to vector<1x96xf32>
    %322 = vector.broadcast %321 : vector<1x96xf32> to vector<16x96xf32>
    %323 = arith.addf %319, %322 : vector<16x96xf32>
    %324 = vector.extract_strided_slice %323 {offsets = [0, 0], sizes = [16, 32], strides = [1, 1]} : vector<16x96xf32> to vector<16x32xf32>
    %325 = vector.extract_strided_slice %323 {offsets = [0, 32], sizes = [16, 32], strides = [1, 1]} : vector<16x96xf32> to vector<16x32xf32>
    %326 = vector.extract_strided_slice %323 {offsets = [0, 64], sizes = [16, 32], strides = [1, 1]} : vector<16x96xf32> to vector<16x32xf32>
    %c1_120 = arith.constant 1 : index
    %c0_121 = arith.constant 0 : index
    %c0_122 = arith.constant 0 : index
    %c0_123 = arith.constant 0 : index
    %327 = vector.load %arg6[%c1_120, %c0_121, %c0_122, %c0_123] : memref<2x4x8x32xf32, #tpu.memory_space<vmem>>, vector<1x4x8x32xf32>
    %328 = vector.shape_cast %327 : vector<1x4x8x32xf32> to vector<4x8x32xf32>
    %329 = vector.extract_strided_slice %324 {offsets = [0, 0], sizes = [8, 8], strides = [1, 1]} : vector<16x32xf32> to vector<8x8xf32>
    %330 = vector.extract_strided_slice %324 {offsets = [0, 8], sizes = [8, 8], strides = [1, 1]} : vector<16x32xf32> to vector<8x8xf32>
    %331 = vector.extract_strided_slice %324 {offsets = [0, 16], sizes = [8, 8], strides = [1, 1]} : vector<16x32xf32> to vector<8x8xf32>
    %332 = vector.extract_strided_slice %324 {offsets = [0, 24], sizes = [8, 8], strides = [1, 1]} : vector<16x32xf32> to vector<8x8xf32>
    %333 = vector.shape_cast %329 : vector<8x8xf32> to vector<1x8x8xf32>
    %334 = vector.shape_cast %330 : vector<8x8xf32> to vector<1x8x8xf32>
    %335 = vector.shape_cast %331 : vector<8x8xf32> to vector<1x8x8xf32>
    %336 = vector.shape_cast %332 : vector<8x8xf32> to vector<1x8x8xf32>
    %337 = tpu.concatenate %333, %334, %335, %336 in 0 : vector<1x8x8xf32>, vector<1x8x8xf32>, vector<1x8x8xf32>, vector<1x8x8xf32> -> vector<4x8x8xf32>
    %338 = vector.extract_strided_slice %325 {offsets = [0, 0], sizes = [8, 8], strides = [1, 1]} : vector<16x32xf32> to vector<8x8xf32>
    %339 = vector.extract_strided_slice %325 {offsets = [0, 8], sizes = [8, 8], strides = [1, 1]} : vector<16x32xf32> to vector<8x8xf32>
    %340 = vector.extract_strided_slice %325 {offsets = [0, 16], sizes = [8, 8], strides = [1, 1]} : vector<16x32xf32> to vector<8x8xf32>
    %341 = vector.extract_strided_slice %325 {offsets = [0, 24], sizes = [8, 8], strides = [1, 1]} : vector<16x32xf32> to vector<8x8xf32>
    %342 = vector.shape_cast %338 : vector<8x8xf32> to vector<1x8x8xf32>
    %343 = vector.shape_cast %339 : vector<8x8xf32> to vector<1x8x8xf32>
    %344 = vector.shape_cast %340 : vector<8x8xf32> to vector<1x8x8xf32>
    %345 = vector.shape_cast %341 : vector<8x8xf32> to vector<1x8x8xf32>
    %346 = tpu.concatenate %342, %343, %344, %345 in 0 : vector<1x8x8xf32>, vector<1x8x8xf32>, vector<1x8x8xf32>, vector<1x8x8xf32> -> vector<4x8x8xf32>
    %347 = vector.extract_strided_slice %326 {offsets = [0, 0], sizes = [8, 8], strides = [1, 1]} : vector<16x32xf32> to vector<8x8xf32>
    %348 = vector.extract_strided_slice %326 {offsets = [0, 8], sizes = [8, 8], strides = [1, 1]} : vector<16x32xf32> to vector<8x8xf32>
    %349 = vector.extract_strided_slice %326 {offsets = [0, 16], sizes = [8, 8], strides = [1, 1]} : vector<16x32xf32> to vector<8x8xf32>
    %350 = vector.extract_strided_slice %326 {offsets = [0, 24], sizes = [8, 8], strides = [1, 1]} : vector<16x32xf32> to vector<8x8xf32>
    %351 = vector.shape_cast %347 : vector<8x8xf32> to vector<1x8x8xf32>
    %352 = vector.shape_cast %348 : vector<8x8xf32> to vector<1x8x8xf32>
    %353 = vector.shape_cast %349 : vector<8x8xf32> to vector<1x8x8xf32>
    %354 = vector.shape_cast %350 : vector<8x8xf32> to vector<1x8x8xf32>
    %355 = tpu.concatenate %351, %352, %353, %354 in 0 : vector<1x8x8xf32>, vector<1x8x8xf32>, vector<1x8x8xf32>, vector<1x8x8xf32> -> vector<4x8x8xf32>
    "tpu.trace_start"() <{level = 10 : i32, message = "hqd,hkd->hqk"}> : () -> ()
    %cst_124 = arith.constant dense<0.000000e+00> : vector<4x8x8xf32>
    %356 = tpu.matmul %337, %346, %cst_124 {dimension_numbers = #tpu.dot_dimension_numbers<[2], [2], [1], [1], [0, 0, 0, 1, 1, 1], [0], [0]>} : vector<4x8x8xf32>, vector<4x8x8xf32>, vector<4x8x8xf32> -> vector<4x8x8xf32>
    "tpu.trace_stop"() : () -> ()
    %cst_125 = arith.constant dense<0xFF800000> : vector<4x8xf32>
    %357 = vector.multi_reduction <maximumf>, %356, %cst_125 [2] : vector<4x8x8xf32> to vector<4x8xf32>
    %358 = vector.shape_cast %357 : vector<4x8xf32> to vector<4x8x1xf32>
    %359 = vector.broadcast %358 : vector<4x8x1xf32> to vector<4x8x8xf32>
    %360 = arith.subf %356, %359 : vector<4x8x8xf32>
    %361 = math.exp %360 : vector<4x8x8xf32>
    %cst_126 = arith.constant dense<0.000000e+00> : vector<4x8xf32>
    %362 = vector.multi_reduction <add>, %361, %cst_126 [2] : vector<4x8x8xf32> to vector<4x8xf32>
    %363 = vector.shape_cast %362 : vector<4x8xf32> to vector<4x8x1xf32>
    %364 = tpu.reciprocal %363 {approx = true} : vector<4x8x1xf32> -> vector<4x8x1xf32>
    %365 = vector.broadcast %364 : vector<4x8x1xf32> to vector<4x8x8xf32>
    %366 = arith.mulf %361, %365 : vector<4x8x8xf32>
    "tpu.trace_start"() <{level = 10 : i32, message = "hqk,hkd->hqd"}> : () -> ()
    %cst_127 = arith.constant dense<0.000000e+00> : vector<4x8x8xf32>
    %367 = tpu.matmul %366, %355, %cst_127 {dimension_numbers = #tpu.dot_dimension_numbers<[2], [1], [1], [2], [0, 0, 0, 1, 1, 2], [0], [0]>} : vector<4x8x8xf32>, vector<4x8x8xf32>, vector<4x8x8xf32> -> vector<4x8x8xf32>
    "tpu.trace_stop"() : () -> ()
    "tpu.trace_start"() <{level = 10 : i32, message = "hqd,hde->hqe"}> : () -> ()
    %cst_128 = arith.constant dense<0.000000e+00> : vector<4x8x32xf32>
    %368 = tpu.matmul %367, %328, %cst_128 {dimension_numbers = #tpu.dot_dimension_numbers<[2], [1], [1], [2], [0, 0, 0, 1, 1, 2], [0], [0]>} : vector<4x8x8xf32>, vector<4x8x32xf32>, vector<4x8x32xf32> -> vector<4x8x32xf32>
    "tpu.trace_stop"() : () -> ()
    %cst_129 = arith.constant dense<0.000000e+00> : vector<8x32xf32>
    %369 = vector.multi_reduction <add>, %368, %cst_129 [0] : vector<4x8x32xf32> to vector<8x32xf32>
    %370 = vector.extract_strided_slice %324 {offsets = [8, 0], sizes = [8, 8], strides = [1, 1]} : vector<16x32xf32> to vector<8x8xf32>
    %371 = vector.extract_strided_slice %324 {offsets = [8, 8], sizes = [8, 8], strides = [1, 1]} : vector<16x32xf32> to vector<8x8xf32>
    %372 = vector.extract_strided_slice %324 {offsets = [8, 16], sizes = [8, 8], strides = [1, 1]} : vector<16x32xf32> to vector<8x8xf32>
    %373 = vector.extract_strided_slice %324 {offsets = [8, 24], sizes = [8, 8], strides = [1, 1]} : vector<16x32xf32> to vector<8x8xf32>
    %374 = vector.shape_cast %370 : vector<8x8xf32> to vector<1x8x8xf32>
    %375 = vector.shape_cast %371 : vector<8x8xf32> to vector<1x8x8xf32>
    %376 = vector.shape_cast %372 : vector<8x8xf32> to vector<1x8x8xf32>
    %377 = vector.shape_cast %373 : vector<8x8xf32> to vector<1x8x8xf32>
    %378 = tpu.concatenate %374, %375, %376, %377 in 0 : vector<1x8x8xf32>, vector<1x8x8xf32>, vector<1x8x8xf32>, vector<1x8x8xf32> -> vector<4x8x8xf32>
    %379 = vector.extract_strided_slice %325 {offsets = [8, 0], sizes = [8, 8], strides = [1, 1]} : vector<16x32xf32> to vector<8x8xf32>
    %380 = vector.extract_strided_slice %325 {offsets = [8, 8], sizes = [8, 8], strides = [1, 1]} : vector<16x32xf32> to vector<8x8xf32>
    %381 = vector.extract_strided_slice %325 {offsets = [8, 16], sizes = [8, 8], strides = [1, 1]} : vector<16x32xf32> to vector<8x8xf32>
    %382 = vector.extract_strided_slice %325 {offsets = [8, 24], sizes = [8, 8], strides = [1, 1]} : vector<16x32xf32> to vector<8x8xf32>
    %383 = vector.shape_cast %379 : vector<8x8xf32> to vector<1x8x8xf32>
    %384 = vector.shape_cast %380 : vector<8x8xf32> to vector<1x8x8xf32>
    %385 = vector.shape_cast %381 : vector<8x8xf32> to vector<1x8x8xf32>
    %386 = vector.shape_cast %382 : vector<8x8xf32> to vector<1x8x8xf32>
    %387 = tpu.concatenate %383, %384, %385, %386 in 0 : vector<1x8x8xf32>, vector<1x8x8xf32>, vector<1x8x8xf32>, vector<1x8x8xf32> -> vector<4x8x8xf32>
    %388 = vector.extract_strided_slice %326 {offsets = [8, 0], sizes = [8, 8], strides = [1, 1]} : vector<16x32xf32> to vector<8x8xf32>
    %389 = vector.extract_strided_slice %326 {offsets = [8, 8], sizes = [8, 8], strides = [1, 1]} : vector<16x32xf32> to vector<8x8xf32>
    %390 = vector.extract_strided_slice %326 {offsets = [8, 16], sizes = [8, 8], strides = [1, 1]} : vector<16x32xf32> to vector<8x8xf32>
    %391 = vector.extract_strided_slice %326 {offsets = [8, 24], sizes = [8, 8], strides = [1, 1]} : vector<16x32xf32> to vector<8x8xf32>
    %392 = vector.shape_cast %388 : vector<8x8xf32> to vector<1x8x8xf32>
    %393 = vector.shape_cast %389 : vector<8x8xf32> to vector<1x8x8xf32>
    %394 = vector.shape_cast %390 : vector<8x8xf32> to vector<1x8x8xf32>
    %395 = vector.shape_cast %391 : vector<8x8xf32> to vector<1x8x8xf32>
    %396 = tpu.concatenate %392, %393, %394, %395 in 0 : vector<1x8x8xf32>, vector<1x8x8xf32>, vector<1x8x8xf32>, vector<1x8x8xf32> -> vector<4x8x8xf32>
    "tpu.trace_start"() <{level = 10 : i32, message = "hqd,hkd->hqk"}> : () -> ()
    %cst_130 = arith.constant dense<0.000000e+00> : vector<4x8x8xf32>
    %397 = tpu.matmul %378, %387, %cst_130 {dimension_numbers = #tpu.dot_dimension_numbers<[2], [2], [1], [1], [0, 0, 0, 1, 1, 1], [0], [0]>} : vector<4x8x8xf32>, vector<4x8x8xf32>, vector<4x8x8xf32> -> vector<4x8x8xf32>
    "tpu.trace_stop"() : () -> ()
    %cst_131 = arith.constant dense<0xFF800000> : vector<4x8xf32>
    %398 = vector.multi_reduction <maximumf>, %397, %cst_131 [2] : vector<4x8x8xf32> to vector<4x8xf32>
    %399 = vector.shape_cast %398 : vector<4x8xf32> to vector<4x8x1xf32>
    %400 = vector.broadcast %399 : vector<4x8x1xf32> to vector<4x8x8xf32>
    %401 = arith.subf %397, %400 : vector<4x8x8xf32>
    %402 = math.exp %401 : vector<4x8x8xf32>
    %cst_132 = arith.constant dense<0.000000e+00> : vector<4x8xf32>
    %403 = vector.multi_reduction <add>, %402, %cst_132 [2] : vector<4x8x8xf32> to vector<4x8xf32>
    %404 = vector.shape_cast %403 : vector<4x8xf32> to vector<4x8x1xf32>
    %405 = tpu.reciprocal %404 {approx = true} : vector<4x8x1xf32> -> vector<4x8x1xf32>
    %406 = vector.broadcast %405 : vector<4x8x1xf32> to vector<4x8x8xf32>
    %407 = arith.mulf %402, %406 : vector<4x8x8xf32>
    "tpu.trace_start"() <{level = 10 : i32, message = "hqk,hkd->hqd"}> : () -> ()
    %cst_133 = arith.constant dense<0.000000e+00> : vector<4x8x8xf32>
    %408 = tpu.matmul %407, %396, %cst_133 {dimension_numbers = #tpu.dot_dimension_numbers<[2], [1], [1], [2], [0, 0, 0, 1, 1, 2], [0], [0]>} : vector<4x8x8xf32>, vector<4x8x8xf32>, vector<4x8x8xf32> -> vector<4x8x8xf32>
    "tpu.trace_stop"() : () -> ()
    "tpu.trace_start"() <{level = 10 : i32, message = "hqd,hde->hqe"}> : () -> ()
    %cst_134 = arith.constant dense<0.000000e+00> : vector<4x8x32xf32>
    %409 = tpu.matmul %408, %328, %cst_134 {dimension_numbers = #tpu.dot_dimension_numbers<[2], [1], [1], [2], [0, 0, 0, 1, 1, 2], [0], [0]>} : vector<4x8x8xf32>, vector<4x8x32xf32>, vector<4x8x32xf32> -> vector<4x8x32xf32>
    "tpu.trace_stop"() : () -> ()
    %cst_135 = arith.constant dense<0.000000e+00> : vector<8x32xf32>
    %410 = vector.multi_reduction <add>, %409, %cst_135 [0] : vector<4x8x32xf32> to vector<8x32xf32>
    %411 = tpu.concatenate %369, %410 in 0 : vector<8x32xf32>, vector<8x32xf32> -> vector<16x32xf32>
    %412 = arith.addf %316, %411 : vector<16x32xf32>
    %c1_136 = arith.constant 1 : index
    %c0_137 = arith.constant 0 : index
    %c0_138 = arith.constant 0 : index
    %413 = vector.load %arg7[%c1_136, %c0_137, %c0_138] : memref<2x1x32xf32, #tpu.memory_space<vmem>>, vector<1x1x32xf32>
    %414 = vector.shape_cast %413 : vector<1x1x32xf32> to vector<1x32xf32>
    %415 = vector.broadcast %414 : vector<1x32xf32> to vector<16x32xf32>
    %416 = arith.addf %412, %415 : vector<16x32xf32>
    %c1_139 = arith.constant 1 : index
    %c0_140 = arith.constant 0 : index
    %c0_141 = arith.constant 0 : index
    %417 = vector.load %arg18[%c1_139, %c0_140, %c0_141] : memref<2x1x32xf32, #tpu.memory_space<vmem>>, vector<1x1x32xf32>
    %418 = vector.shape_cast %417 : vector<1x1x32xf32> to vector<1x32xf32>
    %c1_142 = arith.constant 1 : index
    %c0_143 = arith.constant 0 : index
    %c0_144 = arith.constant 0 : index
    %419 = vector.load %arg19[%c1_142, %c0_143, %c0_144] : memref<2x1x32xf32, #tpu.memory_space<vmem>>, vector<1x1x32xf32>
    %420 = vector.shape_cast %419 : vector<1x1x32xf32> to vector<1x32xf32>
    %cst_145 = arith.constant dense<0.000000e+00> : vector<16xf32>
    %421 = vector.multi_reduction <add>, %416, %cst_145 [1] : vector<16x32xf32> to vector<16xf32>
    %422 = vector.shape_cast %421 : vector<16xf32> to vector<16x1xf32>
    %cst_146 = arith.constant 3.200000e+01 : f32
    %423 = vector.broadcast %cst_146 : f32 to vector<16x1xf32>
    %424 = arith.divf %422, %423 : vector<16x1xf32>
    %425 = vector.broadcast %424 : vector<16x1xf32> to vector<16x32xf32>
    %426 = arith.subf %416, %425 : vector<16x32xf32>
    %427 = arith.mulf %426, %426 : vector<16x32xf32>
    %cst_147 = arith.constant dense<0.000000e+00> : vector<16xf32>
    %428 = vector.multi_reduction <add>, %427, %cst_147 [1] : vector<16x32xf32> to vector<16xf32>
    %429 = vector.shape_cast %428 : vector<16xf32> to vector<16x1xf32>
    %cst_148 = arith.constant 3.200000e+01 : f32
    %430 = vector.broadcast %cst_148 : f32 to vector<16x1xf32>
    %431 = arith.divf %429, %430 : vector<16x1xf32>
    %cst_149 = arith.constant 9.99999974E-6 : f32
    %432 = vector.broadcast %cst_149 : f32 to vector<16x1xf32>
    %433 = arith.addf %431, %432 : vector<16x1xf32>
    %434 = math.rsqrt %433 : vector<16x1xf32>
    %435 = vector.broadcast %434 : vector<16x1xf32> to vector<16x32xf32>
    %436 = arith.mulf %426, %435 : vector<16x32xf32>
    %437 = vector.broadcast %418 : vector<1x32xf32> to vector<16x32xf32>
    %438 = arith.mulf %436, %437 : vector<16x32xf32>
    %439 = vector.broadcast %420 : vector<1x32xf32> to vector<16x32xf32>
    %440 = arith.addf %438, %439 : vector<16x32xf32>
    %c1_150 = arith.constant 1 : index
    %c0_151 = arith.constant 0 : index
    %c0_152 = arith.constant 0 : index
    %441 = vector.load %arg8[%c1_150, %c0_151, %c0_152] : memref<2x32x32xf32, #tpu.memory_space<vmem>>, vector<1x32x32xf32>
    %442 = vector.shape_cast %441 : vector<1x32x32xf32> to vector<32x32xf32>
    %cst_153 = arith.constant dense<0.000000e+00> : vector<16x32xf32>
    %443 = tpu.matmul %440, %442, %cst_153 {dimension_numbers = #tpu.dot_dimension_numbers<[1], [0], [0], [1], [0, 0, 1, 1], [], []>} : vector<16x32xf32>, vector<32x32xf32>, vector<16x32xf32> -> vector<16x32xf32>
    %c1_154 = arith.constant 1 : index
    %c0_155 = arith.constant 0 : index
    %c0_156 = arith.constant 0 : index
    %444 = vector.load %arg9[%c1_154, %c0_155, %c0_156] : memref<2x1x32xf32, #tpu.memory_space<vmem>>, vector<1x1x32xf32>
    %445 = vector.shape_cast %444 : vector<1x1x32xf32> to vector<1x32xf32>
    %446 = vector.broadcast %445 : vector<1x32xf32> to vector<16x32xf32>
    %447 = arith.addf %443, %446 : vector<16x32xf32>
    %448 = vector.extract_strided_slice %27 {offsets = [0, 64], sizes = [16, 64], strides = [1, 1]} : vector<16x128xf32> to vector<16x64xf32>
    %449 = vector.extract_strided_slice %448 {offsets = [0, 0], sizes = [16, 32], strides = [1, 1]} : vector<16x64xf32> to vector<16x32xf32>
    %450 = vector.extract_strided_slice %448 {offsets = [0, 32], sizes = [16, 32], strides = [1, 1]} : vector<16x64xf32> to vector<16x32xf32>
    %c1_157 = arith.constant 1 : index
    %c0_158 = arith.constant 0 : index
    %c0_159 = arith.constant 0 : index
    %c0_160 = arith.constant 0 : index
    %451 = vector.load %arg12[%c1_157, %c0_158, %c0_159, %c0_160] : memref<2x4x8x32xf32, #tpu.memory_space<vmem>>, vector<1x4x8x32xf32>
    %452 = vector.shape_cast %451 : vector<1x4x8x32xf32> to vector<4x8x32xf32>
    %453 = vector.extract_strided_slice %447 {offsets = [0, 0], sizes = [8, 8], strides = [1, 1]} : vector<16x32xf32> to vector<8x8xf32>
    %454 = vector.extract_strided_slice %447 {offsets = [0, 8], sizes = [8, 8], strides = [1, 1]} : vector<16x32xf32> to vector<8x8xf32>
    %455 = vector.extract_strided_slice %447 {offsets = [0, 16], sizes = [8, 8], strides = [1, 1]} : vector<16x32xf32> to vector<8x8xf32>
    %456 = vector.extract_strided_slice %447 {offsets = [0, 24], sizes = [8, 8], strides = [1, 1]} : vector<16x32xf32> to vector<8x8xf32>
    %457 = vector.shape_cast %453 : vector<8x8xf32> to vector<1x8x8xf32>
    %458 = vector.shape_cast %454 : vector<8x8xf32> to vector<1x8x8xf32>
    %459 = vector.shape_cast %455 : vector<8x8xf32> to vector<1x8x8xf32>
    %460 = vector.shape_cast %456 : vector<8x8xf32> to vector<1x8x8xf32>
    %461 = tpu.concatenate %457, %458, %459, %460 in 0 : vector<1x8x8xf32>, vector<1x8x8xf32>, vector<1x8x8xf32>, vector<1x8x8xf32> -> vector<4x8x8xf32>
    %462 = vector.extract_strided_slice %449 {offsets = [0, 0], sizes = [8, 8], strides = [1, 1]} : vector<16x32xf32> to vector<8x8xf32>
    %463 = vector.extract_strided_slice %449 {offsets = [0, 8], sizes = [8, 8], strides = [1, 1]} : vector<16x32xf32> to vector<8x8xf32>
    %464 = vector.extract_strided_slice %449 {offsets = [0, 16], sizes = [8, 8], strides = [1, 1]} : vector<16x32xf32> to vector<8x8xf32>
    %465 = vector.extract_strided_slice %449 {offsets = [0, 24], sizes = [8, 8], strides = [1, 1]} : vector<16x32xf32> to vector<8x8xf32>
    %466 = vector.shape_cast %462 : vector<8x8xf32> to vector<1x8x8xf32>
    %467 = vector.shape_cast %463 : vector<8x8xf32> to vector<1x8x8xf32>
    %468 = vector.shape_cast %464 : vector<8x8xf32> to vector<1x8x8xf32>
    %469 = vector.shape_cast %465 : vector<8x8xf32> to vector<1x8x8xf32>
    %470 = tpu.concatenate %466, %467, %468, %469 in 0 : vector<1x8x8xf32>, vector<1x8x8xf32>, vector<1x8x8xf32>, vector<1x8x8xf32> -> vector<4x8x8xf32>
    %471 = vector.extract_strided_slice %450 {offsets = [0, 0], sizes = [8, 8], strides = [1, 1]} : vector<16x32xf32> to vector<8x8xf32>
    %472 = vector.extract_strided_slice %450 {offsets = [0, 8], sizes = [8, 8], strides = [1, 1]} : vector<16x32xf32> to vector<8x8xf32>
    %473 = vector.extract_strided_slice %450 {offsets = [0, 16], sizes = [8, 8], strides = [1, 1]} : vector<16x32xf32> to vector<8x8xf32>
    %474 = vector.extract_strided_slice %450 {offsets = [0, 24], sizes = [8, 8], strides = [1, 1]} : vector<16x32xf32> to vector<8x8xf32>
    %475 = vector.shape_cast %471 : vector<8x8xf32> to vector<1x8x8xf32>
    %476 = vector.shape_cast %472 : vector<8x8xf32> to vector<1x8x8xf32>
    %477 = vector.shape_cast %473 : vector<8x8xf32> to vector<1x8x8xf32>
    %478 = vector.shape_cast %474 : vector<8x8xf32> to vector<1x8x8xf32>
    %479 = tpu.concatenate %475, %476, %477, %478 in 0 : vector<1x8x8xf32>, vector<1x8x8xf32>, vector<1x8x8xf32>, vector<1x8x8xf32> -> vector<4x8x8xf32>
    "tpu.trace_start"() <{level = 10 : i32, message = "hqd,hkd->hqk"}> : () -> ()
    %cst_161 = arith.constant dense<0.000000e+00> : vector<4x8x8xf32>
    %480 = tpu.matmul %461, %470, %cst_161 {dimension_numbers = #tpu.dot_dimension_numbers<[2], [2], [1], [1], [0, 0, 0, 1, 1, 1], [0], [0]>} : vector<4x8x8xf32>, vector<4x8x8xf32>, vector<4x8x8xf32> -> vector<4x8x8xf32>
    "tpu.trace_stop"() : () -> ()
    %cst_162 = arith.constant dense<0xFF800000> : vector<4x8xf32>
    %481 = vector.multi_reduction <maximumf>, %480, %cst_162 [2] : vector<4x8x8xf32> to vector<4x8xf32>
    %482 = vector.shape_cast %481 : vector<4x8xf32> to vector<4x8x1xf32>
    %483 = vector.broadcast %482 : vector<4x8x1xf32> to vector<4x8x8xf32>
    %484 = arith.subf %480, %483 : vector<4x8x8xf32>
    %485 = math.exp %484 : vector<4x8x8xf32>
    %cst_163 = arith.constant dense<0.000000e+00> : vector<4x8xf32>
    %486 = vector.multi_reduction <add>, %485, %cst_163 [2] : vector<4x8x8xf32> to vector<4x8xf32>
    %487 = vector.shape_cast %486 : vector<4x8xf32> to vector<4x8x1xf32>
    %488 = tpu.reciprocal %487 {approx = true} : vector<4x8x1xf32> -> vector<4x8x1xf32>
    %489 = vector.broadcast %488 : vector<4x8x1xf32> to vector<4x8x8xf32>
    %490 = arith.mulf %485, %489 : vector<4x8x8xf32>
    "tpu.trace_start"() <{level = 10 : i32, message = "hqk,hkd->hqd"}> : () -> ()
    %cst_164 = arith.constant dense<0.000000e+00> : vector<4x8x8xf32>
    %491 = tpu.matmul %490, %479, %cst_164 {dimension_numbers = #tpu.dot_dimension_numbers<[2], [1], [1], [2], [0, 0, 0, 1, 1, 2], [0], [0]>} : vector<4x8x8xf32>, vector<4x8x8xf32>, vector<4x8x8xf32> -> vector<4x8x8xf32>
    "tpu.trace_stop"() : () -> ()
    "tpu.trace_start"() <{level = 10 : i32, message = "hqd,hde->hqe"}> : () -> ()
    %cst_165 = arith.constant dense<0.000000e+00> : vector<4x8x32xf32>
    %492 = tpu.matmul %491, %452, %cst_165 {dimension_numbers = #tpu.dot_dimension_numbers<[2], [1], [1], [2], [0, 0, 0, 1, 1, 2], [0], [0]>} : vector<4x8x8xf32>, vector<4x8x32xf32>, vector<4x8x32xf32> -> vector<4x8x32xf32>
    "tpu.trace_stop"() : () -> ()
    %cst_166 = arith.constant dense<0.000000e+00> : vector<8x32xf32>
    %493 = vector.multi_reduction <add>, %492, %cst_166 [0] : vector<4x8x32xf32> to vector<8x32xf32>
    %494 = vector.extract_strided_slice %447 {offsets = [8, 0], sizes = [8, 8], strides = [1, 1]} : vector<16x32xf32> to vector<8x8xf32>
    %495 = vector.extract_strided_slice %447 {offsets = [8, 8], sizes = [8, 8], strides = [1, 1]} : vector<16x32xf32> to vector<8x8xf32>
    %496 = vector.extract_strided_slice %447 {offsets = [8, 16], sizes = [8, 8], strides = [1, 1]} : vector<16x32xf32> to vector<8x8xf32>
    %497 = vector.extract_strided_slice %447 {offsets = [8, 24], sizes = [8, 8], strides = [1, 1]} : vector<16x32xf32> to vector<8x8xf32>
    %498 = vector.shape_cast %494 : vector<8x8xf32> to vector<1x8x8xf32>
    %499 = vector.shape_cast %495 : vector<8x8xf32> to vector<1x8x8xf32>
    %500 = vector.shape_cast %496 : vector<8x8xf32> to vector<1x8x8xf32>
    %501 = vector.shape_cast %497 : vector<8x8xf32> to vector<1x8x8xf32>
    %502 = tpu.concatenate %498, %499, %500, %501 in 0 : vector<1x8x8xf32>, vector<1x8x8xf32>, vector<1x8x8xf32>, vector<1x8x8xf32> -> vector<4x8x8xf32>
    %503 = vector.extract_strided_slice %449 {offsets = [8, 0], sizes = [8, 8], strides = [1, 1]} : vector<16x32xf32> to vector<8x8xf32>
    %504 = vector.extract_strided_slice %449 {offsets = [8, 8], sizes = [8, 8], strides = [1, 1]} : vector<16x32xf32> to vector<8x8xf32>
    %505 = vector.extract_strided_slice %449 {offsets = [8, 16], sizes = [8, 8], strides = [1, 1]} : vector<16x32xf32> to vector<8x8xf32>
    %506 = vector.extract_strided_slice %449 {offsets = [8, 24], sizes = [8, 8], strides = [1, 1]} : vector<16x32xf32> to vector<8x8xf32>
    %507 = vector.shape_cast %503 : vector<8x8xf32> to vector<1x8x8xf32>
    %508 = vector.shape_cast %504 : vector<8x8xf32> to vector<1x8x8xf32>
    %509 = vector.shape_cast %505 : vector<8x8xf32> to vector<1x8x8xf32>
    %510 = vector.shape_cast %506 : vector<8x8xf32> to vector<1x8x8xf32>
    %511 = tpu.concatenate %507, %508, %509, %510 in 0 : vector<1x8x8xf32>, vector<1x8x8xf32>, vector<1x8x8xf32>, vector<1x8x8xf32> -> vector<4x8x8xf32>
    %512 = vector.extract_strided_slice %450 {offsets = [8, 0], sizes = [8, 8], strides = [1, 1]} : vector<16x32xf32> to vector<8x8xf32>
    %513 = vector.extract_strided_slice %450 {offsets = [8, 8], sizes = [8, 8], strides = [1, 1]} : vector<16x32xf32> to vector<8x8xf32>
    %514 = vector.extract_strided_slice %450 {offsets = [8, 16], sizes = [8, 8], strides = [1, 1]} : vector<16x32xf32> to vector<8x8xf32>
    %515 = vector.extract_strided_slice %450 {offsets = [8, 24], sizes = [8, 8], strides = [1, 1]} : vector<16x32xf32> to vector<8x8xf32>
    %516 = vector.shape_cast %512 : vector<8x8xf32> to vector<1x8x8xf32>
    %517 = vector.shape_cast %513 : vector<8x8xf32> to vector<1x8x8xf32>
    %518 = vector.shape_cast %514 : vector<8x8xf32> to vector<1x8x8xf32>
    %519 = vector.shape_cast %515 : vector<8x8xf32> to vector<1x8x8xf32>
    %520 = tpu.concatenate %516, %517, %518, %519 in 0 : vector<1x8x8xf32>, vector<1x8x8xf32>, vector<1x8x8xf32>, vector<1x8x8xf32> -> vector<4x8x8xf32>
    "tpu.trace_start"() <{level = 10 : i32, message = "hqd,hkd->hqk"}> : () -> ()
    %cst_167 = arith.constant dense<0.000000e+00> : vector<4x8x8xf32>
    %521 = tpu.matmul %502, %511, %cst_167 {dimension_numbers = #tpu.dot_dimension_numbers<[2], [2], [1], [1], [0, 0, 0, 1, 1, 1], [0], [0]>} : vector<4x8x8xf32>, vector<4x8x8xf32>, vector<4x8x8xf32> -> vector<4x8x8xf32>
    "tpu.trace_stop"() : () -> ()
    %cst_168 = arith.constant dense<0xFF800000> : vector<4x8xf32>
    %522 = vector.multi_reduction <maximumf>, %521, %cst_168 [2] : vector<4x8x8xf32> to vector<4x8xf32>
    %523 = vector.shape_cast %522 : vector<4x8xf32> to vector<4x8x1xf32>
    %524 = vector.broadcast %523 : vector<4x8x1xf32> to vector<4x8x8xf32>
    %525 = arith.subf %521, %524 : vector<4x8x8xf32>
    %526 = math.exp %525 : vector<4x8x8xf32>
    %cst_169 = arith.constant dense<0.000000e+00> : vector<4x8xf32>
    %527 = vector.multi_reduction <add>, %526, %cst_169 [2] : vector<4x8x8xf32> to vector<4x8xf32>
    %528 = vector.shape_cast %527 : vector<4x8xf32> to vector<4x8x1xf32>
    %529 = tpu.reciprocal %528 {approx = true} : vector<4x8x1xf32> -> vector<4x8x1xf32>
    %530 = vector.broadcast %529 : vector<4x8x1xf32> to vector<4x8x8xf32>
    %531 = arith.mulf %526, %530 : vector<4x8x8xf32>
    "tpu.trace_start"() <{level = 10 : i32, message = "hqk,hkd->hqd"}> : () -> ()
    %cst_170 = arith.constant dense<0.000000e+00> : vector<4x8x8xf32>
    %532 = tpu.matmul %531, %520, %cst_170 {dimension_numbers = #tpu.dot_dimension_numbers<[2], [1], [1], [2], [0, 0, 0, 1, 1, 2], [0], [0]>} : vector<4x8x8xf32>, vector<4x8x8xf32>, vector<4x8x8xf32> -> vector<4x8x8xf32>
    "tpu.trace_stop"() : () -> ()
    "tpu.trace_start"() <{level = 10 : i32, message = "hqd,hde->hqe"}> : () -> ()
    %cst_171 = arith.constant dense<0.000000e+00> : vector<4x8x32xf32>
    %533 = tpu.matmul %532, %452, %cst_171 {dimension_numbers = #tpu.dot_dimension_numbers<[2], [1], [1], [2], [0, 0, 0, 1, 1, 2], [0], [0]>} : vector<4x8x8xf32>, vector<4x8x32xf32>, vector<4x8x32xf32> -> vector<4x8x32xf32>
    "tpu.trace_stop"() : () -> ()
    %cst_172 = arith.constant dense<0.000000e+00> : vector<8x32xf32>
    %534 = vector.multi_reduction <add>, %533, %cst_172 [0] : vector<4x8x32xf32> to vector<8x32xf32>
    %535 = tpu.concatenate %493, %534 in 0 : vector<8x32xf32>, vector<8x32xf32> -> vector<16x32xf32>
    %536 = arith.addf %440, %535 : vector<16x32xf32>
    %c1_173 = arith.constant 1 : index
    %c0_174 = arith.constant 0 : index
    %c0_175 = arith.constant 0 : index
    %537 = vector.load %arg13[%c1_173, %c0_174, %c0_175] : memref<2x1x32xf32, #tpu.memory_space<vmem>>, vector<1x1x32xf32>
    %538 = vector.shape_cast %537 : vector<1x1x32xf32> to vector<1x32xf32>
    %539 = vector.broadcast %538 : vector<1x32xf32> to vector<16x32xf32>
    %540 = arith.addf %536, %539 : vector<16x32xf32>
    %c1_176 = arith.constant 1 : index
    %c0_177 = arith.constant 0 : index
    %c0_178 = arith.constant 0 : index
    %541 = vector.load %arg20[%c1_176, %c0_177, %c0_178] : memref<2x1x32xf32, #tpu.memory_space<vmem>>, vector<1x1x32xf32>
    %542 = vector.shape_cast %541 : vector<1x1x32xf32> to vector<1x32xf32>
    %c1_179 = arith.constant 1 : index
    %c0_180 = arith.constant 0 : index
    %c0_181 = arith.constant 0 : index
    %543 = vector.load %arg21[%c1_179, %c0_180, %c0_181] : memref<2x1x32xf32, #tpu.memory_space<vmem>>, vector<1x1x32xf32>
    %544 = vector.shape_cast %543 : vector<1x1x32xf32> to vector<1x32xf32>
    %cst_182 = arith.constant dense<0.000000e+00> : vector<16xf32>
    %545 = vector.multi_reduction <add>, %540, %cst_182 [1] : vector<16x32xf32> to vector<16xf32>
    %546 = vector.shape_cast %545 : vector<16xf32> to vector<16x1xf32>
    %cst_183 = arith.constant 3.200000e+01 : f32
    %547 = vector.broadcast %cst_183 : f32 to vector<16x1xf32>
    %548 = arith.divf %546, %547 : vector<16x1xf32>
    %549 = vector.broadcast %548 : vector<16x1xf32> to vector<16x32xf32>
    %550 = arith.subf %540, %549 : vector<16x32xf32>
    %551 = arith.mulf %550, %550 : vector<16x32xf32>
    %cst_184 = arith.constant dense<0.000000e+00> : vector<16xf32>
    %552 = vector.multi_reduction <add>, %551, %cst_184 [1] : vector<16x32xf32> to vector<16xf32>
    %553 = vector.shape_cast %552 : vector<16xf32> to vector<16x1xf32>
    %cst_185 = arith.constant 3.200000e+01 : f32
    %554 = vector.broadcast %cst_185 : f32 to vector<16x1xf32>
    %555 = arith.divf %553, %554 : vector<16x1xf32>
    %cst_186 = arith.constant 9.99999974E-6 : f32
    %556 = vector.broadcast %cst_186 : f32 to vector<16x1xf32>
    %557 = arith.addf %555, %556 : vector<16x1xf32>
    %558 = math.rsqrt %557 : vector<16x1xf32>
    %559 = vector.broadcast %558 : vector<16x1xf32> to vector<16x32xf32>
    %560 = arith.mulf %550, %559 : vector<16x32xf32>
    %561 = vector.broadcast %542 : vector<1x32xf32> to vector<16x32xf32>
    %562 = arith.mulf %560, %561 : vector<16x32xf32>
    %563 = vector.broadcast %544 : vector<1x32xf32> to vector<16x32xf32>
    %564 = arith.addf %562, %563 : vector<16x32xf32>
    %c1_187 = arith.constant 1 : index
    %c0_188 = arith.constant 0 : index
    %c0_189 = arith.constant 0 : index
    %565 = vector.load %arg14[%c1_187, %c0_188, %c0_189] : memref<2x32x2048xf32, #tpu.memory_space<vmem>>, vector<1x32x2048xf32>
    %566 = vector.shape_cast %565 : vector<1x32x2048xf32> to vector<32x2048xf32>
    %cst_190 = arith.constant dense<0.000000e+00> : vector<16x2048xf32>
    %567 = tpu.matmul %564, %566, %cst_190 {dimension_numbers = #tpu.dot_dimension_numbers<[1], [0], [0], [1], [0, 0, 1, 1], [], []>} : vector<16x32xf32>, vector<32x2048xf32>, vector<16x2048xf32> -> vector<16x2048xf32>
    %c1_191 = arith.constant 1 : index
    %c0_192 = arith.constant 0 : index
    %c0_193 = arith.constant 0 : index
    %568 = vector.load %arg15[%c1_191, %c0_192, %c0_193] : memref<2x1x2048xf32, #tpu.memory_space<vmem>>, vector<1x1x2048xf32>
    %569 = vector.shape_cast %568 : vector<1x1x2048xf32> to vector<1x2048xf32>
    %570 = vector.broadcast %569 : vector<1x2048xf32> to vector<16x2048xf32>
    %571 = arith.addf %567, %570 : vector<16x2048xf32>
    %cst_194 = arith.constant 0.000000e+00 : f32
    %572 = vector.broadcast %cst_194 : f32 to vector<16x2048xf32>
    %573 = arith.maximumf %571, %572 : vector<16x2048xf32>
    %c1_195 = arith.constant 1 : index
    %c0_196 = arith.constant 0 : index
    %c0_197 = arith.constant 0 : index
    %574 = vector.load %arg16[%c1_195, %c0_196, %c0_197] : memref<2x2048x32xf32, #tpu.memory_space<vmem>>, vector<1x2048x32xf32>
    %575 = vector.shape_cast %574 : vector<1x2048x32xf32> to vector<2048x32xf32>
    %cst_198 = arith.constant dense<0.000000e+00> : vector<16x32xf32>
    %576 = tpu.matmul %573, %575, %cst_198 {dimension_numbers = #tpu.dot_dimension_numbers<[1], [0], [0], [1], [0, 0, 1, 1], [], []>} : vector<16x2048xf32>, vector<2048x32xf32>, vector<16x32xf32> -> vector<16x32xf32>
    %c1_199 = arith.constant 1 : index
    %c0_200 = arith.constant 0 : index
    %c0_201 = arith.constant 0 : index
    %577 = vector.load %arg17[%c1_199, %c0_200, %c0_201] : memref<2x1x32xf32, #tpu.memory_space<vmem>>, vector<1x1x32xf32>
    %578 = vector.shape_cast %577 : vector<1x1x32xf32> to vector<1x32xf32>
    %579 = vector.broadcast %578 : vector<1x32xf32> to vector<16x32xf32>
    %580 = arith.addf %576, %579 : vector<16x32xf32>
    %581 = arith.addf %564, %580 : vector<16x32xf32>
    %c1_202 = arith.constant 1 : index
    %c0_203 = arith.constant 0 : index
    %c0_204 = arith.constant 0 : index
    %582 = vector.load %arg22[%c1_202, %c0_203, %c0_204] : memref<2x1x32xf32, #tpu.memory_space<vmem>>, vector<1x1x32xf32>
    %583 = vector.shape_cast %582 : vector<1x1x32xf32> to vector<1x32xf32>
    %c1_205 = arith.constant 1 : index
    %c0_206 = arith.constant 0 : index
    %c0_207 = arith.constant 0 : index
    %584 = vector.load %arg23[%c1_205, %c0_206, %c0_207] : memref<2x1x32xf32, #tpu.memory_space<vmem>>, vector<1x1x32xf32>
    %585 = vector.shape_cast %584 : vector<1x1x32xf32> to vector<1x32xf32>
    %cst_208 = arith.constant dense<0.000000e+00> : vector<16xf32>
    %586 = vector.multi_reduction <add>, %581, %cst_208 [1] : vector<16x32xf32> to vector<16xf32>
    %587 = vector.shape_cast %586 : vector<16xf32> to vector<16x1xf32>
    %cst_209 = arith.constant 3.200000e+01 : f32
    %588 = vector.broadcast %cst_209 : f32 to vector<16x1xf32>
    %589 = arith.divf %587, %588 : vector<16x1xf32>
    %590 = vector.broadcast %589 : vector<16x1xf32> to vector<16x32xf32>
    %591 = arith.subf %581, %590 : vector<16x32xf32>
    %592 = arith.mulf %591, %591 : vector<16x32xf32>
    %cst_210 = arith.constant dense<0.000000e+00> : vector<16xf32>
    %593 = vector.multi_reduction <add>, %592, %cst_210 [1] : vector<16x32xf32> to vector<16xf32>
    %594 = vector.shape_cast %593 : vector<16xf32> to vector<16x1xf32>
    %cst_211 = arith.constant 3.200000e+01 : f32
    %595 = vector.broadcast %cst_211 : f32 to vector<16x1xf32>
    %596 = arith.divf %594, %595 : vector<16x1xf32>
    %cst_212 = arith.constant 9.99999974E-6 : f32
    %597 = vector.broadcast %cst_212 : f32 to vector<16x1xf32>
    %598 = arith.addf %596, %597 : vector<16x1xf32>
    %599 = math.rsqrt %598 : vector<16x1xf32>
    %600 = vector.broadcast %599 : vector<16x1xf32> to vector<16x32xf32>
    %601 = arith.mulf %591, %600 : vector<16x32xf32>
    %602 = vector.broadcast %583 : vector<1x32xf32> to vector<16x32xf32>
    %603 = arith.mulf %601, %602 : vector<16x32xf32>
    %604 = vector.broadcast %585 : vector<1x32xf32> to vector<16x32xf32>
    %605 = arith.addf %603, %604 : vector<16x32xf32>
    %c0_213 = arith.constant 0 : index
    %c0_214 = arith.constant 0 : index
    %606 = vector.load %arg24[%c0_213, %c0_214] : memref<1x32xf32, #tpu.memory_space<vmem>>, vector<1x32xf32>
    %c0_215 = arith.constant 0 : index
    %c0_216 = arith.constant 0 : index
    %607 = vector.load %arg25[%c0_215, %c0_216] : memref<1x32xf32, #tpu.memory_space<vmem>>, vector<1x32xf32>
    %cst_217 = arith.constant dense<0.000000e+00> : vector<16xf32>
    %608 = vector.multi_reduction <add>, %605, %cst_217 [1] : vector<16x32xf32> to vector<16xf32>
    %609 = vector.shape_cast %608 : vector<16xf32> to vector<16x1xf32>
    %cst_218 = arith.constant 3.200000e+01 : f32
    %610 = vector.broadcast %cst_218 : f32 to vector<16x1xf32>
    %611 = arith.divf %609, %610 : vector<16x1xf32>
    %612 = vector.broadcast %611 : vector<16x1xf32> to vector<16x32xf32>
    %613 = arith.subf %605, %612 : vector<16x32xf32>
    %614 = arith.mulf %613, %613 : vector<16x32xf32>
    %cst_219 = arith.constant dense<0.000000e+00> : vector<16xf32>
    %615 = vector.multi_reduction <add>, %614, %cst_219 [1] : vector<16x32xf32> to vector<16xf32>
    %616 = vector.shape_cast %615 : vector<16xf32> to vector<16x1xf32>
    %cst_220 = arith.constant 3.200000e+01 : f32
    %617 = vector.broadcast %cst_220 : f32 to vector<16x1xf32>
    %618 = arith.divf %616, %617 : vector<16x1xf32>
    %cst_221 = arith.constant 9.99999974E-6 : f32
    %619 = vector.broadcast %cst_221 : f32 to vector<16x1xf32>
    %620 = arith.addf %618, %619 : vector<16x1xf32>
    %621 = math.rsqrt %620 : vector<16x1xf32>
    %622 = vector.broadcast %621 : vector<16x1xf32> to vector<16x32xf32>
    %623 = arith.mulf %613, %622 : vector<16x32xf32>
    %624 = vector.broadcast %606 : vector<1x32xf32> to vector<16x32xf32>
    %625 = arith.mulf %623, %624 : vector<16x32xf32>
    %626 = vector.broadcast %607 : vector<1x32xf32> to vector<16x32xf32>
    %627 = arith.addf %625, %626 : vector<16x32xf32>
    %c0_222 = arith.constant 0 : index
    %c0_223 = arith.constant 0 : index
    %628 = vector.load %arg26[%c0_222, %c0_223] : memref<32x128xf32, #tpu.memory_space<vmem>>, vector<32x128xf32>
    %cst_224 = arith.constant dense<0.000000e+00> : vector<16x128xf32>
    %629 = tpu.matmul %627, %628, %cst_224 {dimension_numbers = #tpu.dot_dimension_numbers<[1], [0], [0], [1], [0, 0, 1, 1], [], []>} : vector<16x32xf32>, vector<32x128xf32>, vector<16x128xf32> -> vector<16x128xf32>
    %c0_225 = arith.constant 0 : index
    %c0_226 = arith.constant 0 : index
    %630 = vector.load %arg27[%c0_225, %c0_226] : memref<1x128xf32, #tpu.memory_space<vmem>>, vector<1x128xf32>
    %631 = vector.broadcast %630 : vector<1x128xf32> to vector<16x128xf32>
    %632 = arith.addf %629, %631 : vector<16x128xf32>
    %c0_227 = arith.constant 0 : index
    %c0_228 = arith.constant 0 : index
    %633 = vector.load %arg28[%c0_227, %c0_228] : memref<16x128xf32, #tpu.memory_space<vmem>>, vector<16x128xf32>
    tpu.vector_store %arg28[%c0_227, %c0_228], %632 {strides = array<i32>} : memref<16x128xf32, #tpu.memory_space<vmem>>, vector<16x128xf32>,
    return
  }
  func.func @transform_0(%arg0: i32) -> (i32, i32) {
    %c0_i32 = arith.constant 0 : i32
    %c0_i32_0 = arith.constant 0 : i32
    return %arg0, %c0_i32 : i32, i32
  }
  func.func @transform_1(%arg0: i32) -> (i32, i32) {
    %c0_i32 = arith.constant 0 : i32
    %c0_i32_0 = arith.constant 0 : i32
    %c0_i32_1 = arith.constant 0 : i32
    return %c0_i32, %c0_i32_0 : i32, i32
  }
  func.func @transform_2(%arg0: i32) -> (i32, i32) {
    %c0_i32 = arith.constant 0 : i32
    %c0_i32_0 = arith.constant 0 : i32
    %c0_i32_1 = arith.constant 0 : i32
    return %c0_i32, %c0_i32_0 : i32, i32
  }
  func.func @transform_3(%arg0: i32) -> (i32, i32, i32) {
    %c0_i32 = arith.constant 0 : i32
    %c0_i32_0 = arith.constant 0 : i32
    %c0_i32_1 = arith.constant 0 : i32
    %c0_i32_2 = arith.constant 0 : i32
    return %c0_i32, %c0_i32_0, %c0_i32_1 : i32, i32, i32
  }
  func.func @transform_4(%arg0: i32) -> (i32, i32, i32) {
    %c0_i32 = arith.constant 0 : i32
    %c0_i32_0 = arith.constant 0 : i32
    %c0_i32_1 = arith.constant 0 : i32
    %c0_i32_2 = arith.constant 0 : i32
    return %c0_i32, %c0_i32_0, %c0_i32_1 : i32, i32, i32
  }
  func.func @transform_5(%arg0: i32) -> (i32, i32, i32, i32) {
    %c0_i32 = arith.constant 0 : i32
    %c0_i32_0 = arith.constant 0 : i32
    %c0_i32_1 = arith.constant 0 : i32
    %c0_i32_2 = arith.constant 0 : i32
    %c0_i32_3 = arith.constant 0 : i32
    return %c0_i32, %c0_i32_0, %c0_i32_1, %c0_i32_2 : i32, i32, i32, i32
  }
  func.func @transform_6(%arg0: i32) -> (i32, i32, i32) {
    %c0_i32 = arith.constant 0 : i32
    %c0_i32_0 = arith.constant 0 : i32
    %c0_i32_1 = arith.constant 0 : i32
    %c0_i32_2 = arith.constant 0 : i32
    return %c0_i32, %c0_i32_0, %c0_i32_1 : i32, i32, i32
  }
  func.func @transform_7(%arg0: i32) -> (i32, i32, i32) {
    %c0_i32 = arith.constant 0 : i32
    %c0_i32_0 = arith.constant 0 : i32
    %c0_i32_1 = arith.constant 0 : i32
    %c0_i32_2 = arith.constant 0 : i32
    return %c0_i32, %c0_i32_0, %c0_i32_1 : i32, i32, i32
  }
  func.func @transform_8(%arg0: i32) -> (i32, i32, i32) {
    %c0_i32 = arith.constant 0 : i32
    %c0_i32_0 = arith.constant 0 : i32
    %c0_i32_1 = arith.constant 0 : i32
    %c0_i32_2 = arith.constant 0 : i32
    return %c0_i32, %c0_i32_0, %c0_i32_1 : i32, i32, i32
  }
  func.func @transform_9(%arg0: i32) -> (i32, i32) {
    %c0_i32 = arith.constant 0 : i32
    %c0_i32_0 = arith.constant 0 : i32
    %c0_i32_1 = arith.constant 0 : i32
    return %c0_i32, %c0_i32_0 : i32, i32
  }
  func.func @transform_10(%arg0: i32) -> (i32, i32) {
    %c0_i32 = arith.constant 0 : i32
    %c0_i32_0 = arith.constant 0 : i32
    %c0_i32_1 = arith.constant 0 : i32
    return %c0_i32, %c0_i32_0 : i32, i32
  }
  func.func @transform_11(%arg0: i32) -> (i32, i32, i32, i32) {
    %c0_i32 = arith.constant 0 : i32
    %c0_i32_0 = arith.constant 0 : i32
    %c0_i32_1 = arith.constant 0 : i32
    %c0_i32_2 = arith.constant 0 : i32
    %c0_i32_3 = arith.constant 0 : i32
    return %c0_i32, %c0_i32_0, %c0_i32_1, %c0_i32_2 : i32, i32, i32, i32
  }
  func.func @transform_12(%arg0: i32) -> (i32, i32, i32) {
    %c0_i32 = arith.constant 0 : i32
    %c0_i32_0 = arith.constant 0 : i32
    %c0_i32_1 = arith.constant 0 : i32
    %c0_i32_2 = arith.constant 0 : i32
    return %c0_i32, %c0_i32_0, %c0_i32_1 : i32, i32, i32
  }
  func.func @transform_13(%arg0: i32) -> (i32, i32, i32) {
    %c0_i32 = arith.constant 0 : i32
    %c0_i32_0 = arith.constant 0 : i32
    %c0_i32_1 = arith.constant 0 : i32
    %c0_i32_2 = arith.constant 0 : i32
    return %c0_i32, %c0_i32_0, %c0_i32_1 : i32, i32, i32
  }
  func.func @transform_14(%arg0: i32) -> (i32, i32, i32) {
    %c0_i32 = arith.constant 0 : i32
    %c0_i32_0 = arith.constant 0 : i32
    %c0_i32_1 = arith.constant 0 : i32
    %c0_i32_2 = arith.constant 0 : i32
    return %c0_i32, %c0_i32_0, %c0_i32_1 : i32, i32, i32
  }
  func.func @transform_15(%arg0: i32) -> (i32, i32, i32) {
    %c0_i32 = arith.constant 0 : i32
    %c0_i32_0 = arith.constant 0 : i32
    %c0_i32_1 = arith.constant 0 : i32
    %c0_i32_2 = arith.constant 0 : i32
    return %c0_i32, %c0_i32_0, %c0_i32_1 : i32, i32, i32
  }
  func.func @transform_16(%arg0: i32) -> (i32, i32, i32) {
    %c0_i32 = arith.constant 0 : i32
    %c0_i32_0 = arith.constant 0 : i32
    %c0_i32_1 = arith.constant 0 : i32
    %c0_i32_2 = arith.constant 0 : i32
    return %c0_i32, %c0_i32_0, %c0_i32_1 : i32, i32, i32
  }
  func.func @transform_17(%arg0: i32) -> (i32, i32, i32) {
    %c0_i32 = arith.constant 0 : i32
    %c0_i32_0 = arith.constant 0 : i32
    %c0_i32_1 = arith.constant 0 : i32
    %c0_i32_2 = arith.constant 0 : i32
    return %c0_i32, %c0_i32_0, %c0_i32_1 : i32, i32, i32
  }
  func.func @transform_18(%arg0: i32) -> (i32, i32, i32) {
    %c0_i32 = arith.constant 0 : i32
    %c0_i32_0 = arith.constant 0 : i32
    %c0_i32_1 = arith.constant 0 : i32
    %c0_i32_2 = arith.constant 0 : i32
    return %c0_i32, %c0_i32_0, %c0_i32_1 : i32, i32, i32
  }
  func.func @transform_19(%arg0: i32) -> (i32, i32, i32) {
    %c0_i32 = arith.constant 0 : i32
    %c0_i32_0 = arith.constant 0 : i32
    %c0_i32_1 = arith.constant 0 : i32
    %c0_i32_2 = arith.constant 0 : i32
    return %c0_i32, %c0_i32_0, %c0_i32_1 : i32, i32, i32
  }
  func.func @transform_20(%arg0: i32) -> (i32, i32, i32) {
    %c0_i32 = arith.constant 0 : i32
    %c0_i32_0 = arith.constant 0 : i32
    %c0_i32_1 = arith.constant 0 : i32
    %c0_i32_2 = arith.constant 0 : i32
    return %c0_i32, %c0_i32_0, %c0_i32_1 : i32, i32, i32
  }
  func.func @transform_21(%arg0: i32) -> (i32, i32, i32) {
    %c0_i32 = arith.constant 0 : i32
    %c0_i32_0 = arith.constant 0 : i32
    %c0_i32_1 = arith.constant 0 : i32
    %c0_i32_2 = arith.constant 0 : i32
    return %c0_i32, %c0_i32_0, %c0_i32_1 : i32, i32, i32
  }
  func.func @transform_22(%arg0: i32) -> (i32, i32, i32) {
    %c0_i32 = arith.constant 0 : i32
    %c0_i32_0 = arith.constant 0 : i32
    %c0_i32_1 = arith.constant 0 : i32
    %c0_i32_2 = arith.constant 0 : i32
    return %c0_i32, %c0_i32_0, %c0_i32_1 : i32, i32, i32
  }
  func.func @transform_23(%arg0: i32) -> (i32, i32) {
    %c0_i32 = arith.constant 0 : i32
    %c0_i32_0 = arith.constant 0 : i32
    %c0_i32_1 = arith.constant 0 : i32
    return %c0_i32, %c0_i32_0 : i32, i32
  }
  func.func @transform_24(%arg0: i32) -> (i32, i32) {
    %c0_i32 = arith.constant 0 : i32
    %c0_i32_0 = arith.constant 0 : i32
    %c0_i32_1 = arith.constant 0 : i32
    return %c0_i32, %c0_i32_0 : i32, i32
  }
  func.func @transform_25(%arg0: i32) -> (i32, i32) {
    %c0_i32 = arith.constant 0 : i32
    %c0_i32_0 = arith.constant 0 : i32
    %c0_i32_1 = arith.constant 0 : i32
    return %c0_i32, %c0_i32_0 : i32, i32
  }
  func.func @transform_26(%arg0: i32) -> (i32, i32) {
    %c0_i32 = arith.constant 0 : i32
    %c0_i32_0 = arith.constant 0 : i32
    %c0_i32_1 = arith.constant 0 : i32
    return %c0_i32, %c0_i32_0 : i32, i32
  }
  func.func @transform_27(%arg0: i32) -> (i32, i32) {
    %c0_i32 = arith.constant 0 : i32
    %c0_i32_0 = arith.constant 0 : i32
    return %arg0, %c0_i32 : i32, i32
  }
}

</mosaic_0001>

<bundles_post_ra>
// kernel: convex_hull_forward.1
= control target key start
LH: loop header
LB: loop body
LE: loop exit
PB: predicated region body
PF: predicated region fallthrough
CT: control target
= control target key end

     0   :  { %vm90_vm0 = vcmask 261120   ;;  %s17742_s30 = smov 120   ;;  %v14178_v27 = vmov 0.0   ;;  %vm14179_vm1 = vmmov 0   ;;  %vm331_vm2 = vcmask 64512   ;;  %s17738_s28 = smov 64   ;;  %s17701_s3 = inlined_call_operand.vmem [shape: f32[2,32,96], index: 3, kind: input, shape index: {}]   ;;  %s17702_s0 = inlined_call_operand.vmem [shape: f32[16,32], index: 0, kind: input, shape index: {}]   ;;  %s17703_s4 = inlined_call_operand.vmem [shape: f32[2,1,96], index: 4, kind: input, shape index: {}]   ;;  %s17704_s9 = inlined_call_operand.vmem [shape: f32[32,128], index: 9, kind: input, shape index: {}]   ;;  %s17705_s1 = inlined_call_operand.vmem [shape: f32[1,32], index: 1, kind: input, shape index: {}]   ;;  %s17706_s2 = inlined_call_operand.vmem [shape: f32[1,32], index: 2, kind: input, shape index: {}]   ;;  %s17707_s10 = inlined_call_operand.vmem [shape: f32[1,128], index: 10, kind: input, shape index: {}]   ;;  %s17708_s5 = inlined_call_operand.vmem [shape: f32[2,4,8,32], index: 5, kind: input, shape index: {}]   ;;  %s17709_s6 = inlined_call_operand.vmem [shape: f32[2,1,32], index: 6, kind: input, shape index: {}]   ;;  %s17710_s17 = inlined_call_operand.vmem [shape: f32[2,1,32], index: 17, kind: input, shape index: {}]   ;;  %s17711_s18 = inlined_call_operand.vmem [shape: f32[2,1,32], index: 18, kind: input, shape index: {}]   ;;  %s17712_s7 = inlined_call_operand.vmem [shape: f32[2,32,32], index: 7, kind: input, shape index: {}]   ;;  %s17713_s8 = inlined_call_operand.vmem [shape: f32[2,1,32], index: 8, kind: input, shape index: {}]   ;;  %s17714_s11 = inlined_call_operand.vmem [shape: f32[2,4,8,32], index: 11, kind: input, shape index: {}]   ;;  %s17715_s12 = inlined_call_operand.vmem [shape: f32[2,1,32], index: 12, kind: input, shape index: {}]   ;;  %s17716_s13 = inlined_call_operand.vmem [shape: f32[2,32,2048], index: 13, kind: input, shape index: {}]   ;;  %s17717_s19 = inlined_call_operand.vmem [shape: f32[2,1,32], index: 19, kind: input, shape index: {}]   ;;  %s17718_s20 = inlined_call_operand.vmem [shape: f32[2,1,32], index: 20, kind: input, shape index: {}]   ;;  %s17719_s15 = inlined_call_operand.vmem [shape: f32[2,2048,32], index: 15, kind: input, shape index: {}]   ;;  %s17720_s14 = inlined_call_operand.vmem [shape: f32[2,1,2048], index: 14, kind: input, shape index: {}]   ;;  %s17721_s16 = inlined_call_operand.vmem [shape: f32[2,1,32], index: 16, kind: input, shape index: {}]   ;;  %s17722_s21 = inlined_call_operand.vmem [shape: f32[2,1,32], index: 21, kind: input, shape index: {}]   ;;  %s17723_s22 = inlined_call_operand.vmem [shape: f32[2,1,32], index: 22, kind: input, shape index: {}]   ;;  %s17724_s25 = inlined_call_operand.vmem [shape: f32[32,128], index: 25, kind: input, shape index: {}]   ;;  %s17725_s23 = inlined_call_operand.vmem [shape: f32[1,32], index: 23, kind: input, shape index: {}]   ;;  %s17726_s24 = inlined_call_operand.vmem [shape: f32[1,32], index: 24, kind: input, shape index: {}]   ;;  %s17727_s26 = inlined_call_operand.vmem [shape: f32[1,128], index: 26, kind: input, shape index: {}]   ;;  %s17728_s27 = inlined_call_operand.vmem [shape: f32[16,128], index: 27, kind: output, shape index: {}]  }
   0x1   :  { %17751 = sst [smem:[#allocation2_spill]] %s17701_s3 }
   0x2   :  { %17752 = sst [smem:[#allocation3_spill]] %s17702_s0 }
   0x3   :  { %17753 = sst [smem:[#allocation4_spill]] %s17703_s4 }
   0x4   :  { %17754 = sst [smem:[#allocation5_spill]] %s17704_s9 }
   0x5   :  { %17755 = sst [smem:[#allocation6_spill]] %s17705_s1 }
   0x6   :  { %17756 = sst [smem:[#allocation7_spill]] %s17706_s2  ;;  %s17746_s2 = smov 112  }
   0x7   :  { %17757 = sst [smem:[#allocation8_spill]] %s17707_s10  ;;  %s17740_s10 = smov 96  }
   0x8   :  { %17758 = sst [smem:[#allocation9_spill]] %s17708_s5  ;;  %s17784_s5 = smov 96  }
   0x9   :  { %17759 = sst [smem:[#allocation10_spill]] %s17709_s6 }
   0xa   :  { %17760 = sst [smem:[#allocation11_spill]] %s17710_s17  ;;  %s17744_s17 = smov 104  }
   0xb   :  { %17761 = sst [smem:[#allocation12_spill]] %s17711_s18 }
   0xc   :  { %17762 = sst [smem:[#allocation13_spill]] %s17712_s7 }
   0xd   :  { %17763 = sst [smem:[#allocation14_spill]] %s17715_s12 }
   0xe   :  { %17764 = sst [smem:[#allocation15_spill]] %s17724_s25 }
   0xf   :  { %17765 = sst [smem:[#allocation16_spill]] %s17725_s23 }
  0x10   :  { %17766 = sst [smem:[#allocation17_spill]] %s17726_s24 }
  0x11   :  { %17767 = sst [smem:[#allocation18_spill]] %s17727_s26 }
  0x12   :  { %17768 = sst [smem:[#allocation19_spill]] %s17728_s27  ;;  %s17781_s27 = smov 112  }
  0x13   :  { %s17769_s6 = sld [smem:[#allocation2_spill]] }
  0x14   :  { %s17770_s0 = sld [smem:[#allocation3_spill]] }
  0x15   :  { %s17771_s4 = sld [smem:[#allocation4_spill]] }
  0x16   :  { %s17772_s18 = sld [smem:[#allocation5_spill]] }
  0x17   :  { %s17774_s7 = sld [smem:[#allocation7_spill]] }
  0x18   :  { %s17775_s9 = sld [smem:[#allocation8_spill]] }
  0x19   :  { %v229_v0 = vld [vmem:[%s17769_s6 + $0x18] sm:$0xff]  ;;  %v228_v1 = vld [vmem:[%s17769_s6 + $0x10] sm:$0xff]  ;;  %v227_v3 = vld [vmem:[%s17769_s6 + $0x8] sm:$0xff]  ;;  %s17776_s29 = sld [smem:[#allocation9_spill]] }
  0x1a   :  { %13471 = vmatprep.subr.mxu1 %v229_v0  ;;  %v14331_v2 = vld [vmem:[%s17770_s0] sm:$0xff]  ;;  %v14343_v5 = vld [vmem:[%s17770_s0 + $0x8] sm:$0xff]  ;;  %s17779_s3 = sld [smem:[#allocation13_spill]]  ;;  %s17782_s0 = smov 104  }
  0x1b   :  { %13472 = vmatpush3.msra.mxu1 %v229_v0  ;;  %13479 = vmatprep.mubr.msk.f32.mxu1 %vm90_vm0, %v14331_v2  ;;  %v91_v4 = vsel %vm90_vm0, %v14331_v2, 0.0  ;;  %v226_v6 = vld [vmem:[%s17769_s6] sm:$0xff]  ;;  %v94_v7 = vsel %vm90_vm0, %v14343_v5, 0.0  ;;  %s17788_s24 = sld [smem:[#allocation16_spill]] }
  0x1c   :  { %13473 = vmatprep.subr.mxu1 %v228_v1  ;;  %92 = vadd.xlane.f32.xlu0 %v91_v4  ;;  %v12080_v8 = vld [vmem:[%s17771_s4] ss:$0 sm:$0xff]  ;;  %v137_v23 = vld [vmem:[%s17772_s18 + $0x18] sm:$0xff]  ;;  %v136_v24 = vld [vmem:[%s17772_s18 + $0x10] sm:$0xff] }
  0x1d   :  { %13474 = vmatpush3.msra.mxu1 %v228_v1  ;;  %13460 = vmatprep.subr.mxu0 %v137_v23  ;;  %v135_v25 = vld [vmem:[%s17772_s18 + $0x8] sm:$0xff]  ;;  %v134_v26 = vld [vmem:[%s17772_s18] sm:$0xff]  ;;  %s17773_s18 = sld [smem:[#allocation6_spill]] }
  0x1e   :  { %13475 = vmatprep.subr.mxu1 %v227_v3  ;;  %13461 = vmatpush3.msra.mxu0 %v137_v23  ;;  %v12076_v43 = vld [vmem:[%s17774_s7] ss:$0 sm:$0xff]  ;;  %s17777_s7 = sld [smem:[#allocation10_spill]] }
  0x1f   :  { %13476 = vmatpush3.msra.mxu1 %v227_v3  ;;  %13462 = vmatprep.subr.mxu0 %v136_v24  ;;  %v14436_v51 = vld [vmem:[%s17775_s9] ss:$0 sm:$0xff]  ;;  %s17778_s9 = sld [smem:[#allocation11_spill]] }
  0x20   :  { %13477 = vmatprep.subr.mxu1 %v226_v6  ;;  %95 = vadd.xlane.f32.xlu0 %v94_v7 }
  0x21   :  { %13478 = vmatpush3.msra.mxu1 %v226_v6  ;;  %13463 = vmatpush3.msra.mxu0 %v136_v24 }
  0x22   :  { %13480 = vmatmul.mubr.msk.f32.vlgmr.msra.gmra.mxu1 %vm90_vm0, %v14343_v5  ;;  %13464 = vmatprep.subr.mxu0 %v135_v25 }
  0x23   :  { %13465 = vmatpush3.msra.mxu0 %v135_v25  ;;  %13487 = vmatprep.subr.mxu1 %v14178_v27  ;;  %v12075_v39 = vld [vmem:[%s17773_s18] ss:$0 sm:$0xff]  ;;  %s17783_s18 = smov 120  }
  0x24   :  { %13466 = vmatprep.subr.mxu0 %v134_v26  ;;  %13489 = vmatprep.mubr.msk.f32.mxu1 %vm14179_vm1, %v14178_v27 }
  0x25   :  { %13467 = vmatpush3.msra.mxu0 %v134_v26 }
  0x26   :  { %13482 = vmatprep.subr.mxu0 %v14178_v27 }
  0xa5   :  { %v93_v13 = vpop.xlane.xlu0 %92 }
  0xa6   :  { %v98_v18 = vmul.f32 0.03125, %v93_v13 }
  0xa8   :  { %v100_v20 = vsub.f32 %v14331_v2, %v98_v18 }
  0xa9   :  { %v96_v14 = vpop.xlane.xlu0 %95 }
  0xaa   :  { %v99_v15 = vmul.f32 0.03125, %v96_v14  ;;  %v102_v21 = vmul.f32 %v100_v20, %v100_v20 }
  0xac   :  { %v101_v16 = vsub.f32 %v14343_v5, %v99_v15  ;;  %v104_v22 = vsel %vm90_vm0, %v102_v21, 0.0 }
  0xae   :  { %v103_v17 = vmul.f32 %v101_v16, %v101_v16 }
  0xb0   :  { %v107_v19 = vsel %vm90_vm0, %v103_v17, 0.0 }
  0xe2   :  { %v13481_v9 = vpop.f32.mrf.mxu1 }
  0xe3   :  { %v14355_v10 = vadd.f32 %v13481_v9, %v12080_v8 }
  0xe4   :  { %v309_v11 = vpop.f32.mrf.mxu1 }
  0xe5   :  { %v14357_v12 = vadd.f32 %v12080_v8, %v309_v11 }
  0xe7   :  { %323 = vrot.lane.b32.xlu1 %v14357_v12, %s17742_s30  ;;  %327 = vrot.lane.b32.xlu0 %v14357_v12, %s17744_s17 }
  0xeb   :  { %325 = vrot.lane.b32.xlu1 %v14357_v12, %s17746_s2 }
 0x106   :  { %108 = vadd.xlane.f32.xlu0 %v107_v19 }
 0x10f   :  { %105 = vadd.xlane.f32.xlu1 %v104_v22 }
 0x120   :  { %329 = vrot.lane.b32.xlu1 %v14357_v12, %s17740_s10 }
 0x159   :  { %v14387_v28 = vpop.permute.xlu1 %323  ;;  %v14395_v30 = vpop.permute.xlu0 %327 }
 0x15a   :  { %406 = vrot.lane.b32.xlu0 %v14387_v28, %s17740_s10 }
 0x15d   :  { %v14391_v29 = vpop.permute.xlu1 %325 }
 0x15e   :  { %482 = vrot.lane.b32.xlu1 %v14391_v29, %s17740_s10 }
 0x162   :  { %558 = vrot.lane.b32.xlu1 %v14395_v30, %s17740_s10 }
 0x18f   :  { %v109_v31 = vpop.xlane.xlu0 %108 }
 0x190   :  { %v111_v32 = vmul.f32 0.03125, %v109_v31 }
 0x192   :  { %v113_v33 = vadd.f32 1e-05, %v111_v32 }
 0x194   :  { %14014 = vrsqrt.f32 %v113_v33 }
 0x198   :  { %v106_v34 = vpop.xlane.xlu1 %105 }
 0x199   :  { %v110_v35 = vmul.f32 0.03125, %v106_v34 }
 0x19b   :  { %v112_v36 = vadd.f32 1e-05, %v110_v35 }
 0x19c   :  { %v330_v47 = vpop.permute.xlu1 %329 }
 0x19d   :  { %14016 = vrsqrt.f32 %v112_v36 }
 0x1a1   :  { %v14015_v37 = vpop.eup %14014 }
 0x1a2   :  { %v117_v38 = vmul.f32 %v14015_v37, %v101_v16 }
 0x1a4   :  { %v125_v42 = vmul.f32 %v12075_v39, %v117_v38 }
 0x1a6   :  { %v133_v46 = vadd.f32 %v12076_v43, %v125_v42 }
 0x1aa   :  { %v14017_v40 = vpop.eup %14016 }
 0x1ab   :  { %v116_v41 = vmul.f32 %v14017_v40, %v100_v20 }
 0x1ad   :  { %v124_v44 = vmul.f32 %v12075_v39, %v116_v41 }
 0x1af   :  { %v132_v45 = vadd.f32 %v12076_v43, %v124_v44 }
 0x1b1   :  { %13468 = vmatprep.mubr.msk.f32.mxu0 %vm90_vm0, %v132_v45 }
 0x1b2   :  { %13469 = vmatmul.mubr.msk.f32.vlgmr.msra.gmra.mxu0 %vm90_vm0, %v133_v46  ;;  %v14498_v46 = vld [vmem:[%s17776_s29] sm:$0xff] }
 0x1b3   :  { %13483 = vmatpush3.xpose.msk.msra.mxu0 %vm331_vm2, %v330_v47  ;;  %13484 = vmatprep.mubr.msk.f32.mxu0 %vm14179_vm1, %v14178_v27  ;;  %v14505_v47 = vld [vmem:[%s17776_s29 + $0x8] sm:$0xff] }
 0x1b4   :  { %13492 = vmatprep.subr.mxu0 %v14178_v27 }
 0x1b6   :  { %13485 = vmatmul.mubr.msk.f32.vlgmr.msra.gmra.mxu0 %vm331_vm2, %v14357_v12 }
 0x1b7   :  { %13494 = vmatprep.mubr.msk.f32.mxu0 %vm14179_vm1, %v14178_v27 }
 0x1cc   :  { %v407_v48 = vpop.permute.xlu0 %406 }
 0x1cd   :  { %13488 = vmatpush3.xpose.msk.msra.mxu1 %vm331_vm2, %v407_v48  ;;  %v14512_v48 = vld [vmem:[%s17776_s29 + $0x10] sm:$0xff] }
 0x1ce   :  { %13497 = vmatprep.subr.mxu1 %v14178_v27 }
 0x1d0   :  { %v483_v49 = vpop.permute.xlu1 %482  ;;  %13490 = vmatmul.mubr.msk.f32.vlgmr.msra.gmra.mxu1 %vm331_vm2, %v14387_v28 }
 0x1d1   :  { %13493 = vmatpush3.xpose.msk.msra.mxu0 %vm331_vm2, %v483_v49  ;;  %13499 = vmatprep.mubr.msk.f32.mxu1 %vm14179_vm1, %v14178_v27 }
 0x1d2   :  { %13502 = vmatprep.subr.mxu0 %v14178_v27 }
 0x1d4   :  { %v559_v50 = vpop.permute.xlu1 %558  ;;  %13495 = vmatmul.mubr.msk.f32.vlgmr.msra.gmra.mxu0 %vm331_vm2, %v14391_v29 }
 0x1d5   :  { %13498 = vmatpush3.xpose.msk.msra.mxu1 %vm331_vm2, %v559_v50  ;;  %13504 = vmatprep.mubr.msk.f32.mxu0 %vm14179_vm1, %v14178_v27 }
 0x1d6   :  { %13507 = vmatprep.subr.mxu1 %v14178_v27 }
 0x1d8   :  { %13500 = vmatmul.mubr.msk.f32.vlgmr.msra.gmra.mxu1 %vm331_vm2, %v14395_v30 }
 0x1d9   :  { %13509 = vmatprep.mubr.msk.f32.mxu1 %vm14179_vm1, %v14178_v27 }
 0x272   :  { %v13470_v52 = vpop.f32.mrf.mxu0 }
 0x273   :  { %v14439_v53 = vadd.f32 %v13470_v52, %v14436_v51  ;;  %v14522_v52 = vld [vmem:[%s17776_s29 + $0x18] sm:$0xff] }
 0x274   :  { %v14441_v54 = vpop.f32.mrf.mxu0 }
 0x276   :  { %v402_v55 = vpop.f32.mrf.mxu0 }
 0x277   :  { %v634_v56 = vsel %vm331_vm2, %v402_v55, -inf }
 0x278   :  { %635 = vmax.xlane.f32.xlu1 %v634_v56  ;;  %v13486_v57 = vpop.f32.mrf.mxu0 }
 0x290   :  { %v478_v58 = vpop.f32.mrf.mxu1 }
 0x291   :  { %v637_v59 = vsel %vm331_vm2, %v478_v58, -inf }
 0x292   :  { %638 = vmax.xlane.f32.xlu0 %v637_v59  ;;  %v13491_v60 = vpop.f32.mrf.mxu1 }
 0x294   :  { %v554_v61 = vpop.f32.mrf.mxu0 }
 0x295   :  { %v640_v62 = vsel %vm331_vm2, %v554_v61, -inf }
 0x296   :  { %641 = vmax.xlane.f32.xlu1 %v640_v62  ;;  %v13496_v63 = vpop.f32.mrf.mxu0 }
 0x298   :  { %v630_v0 = vpop.f32.mrf.mxu1 }
 0x299   :  { %v643_v1 = vsel %vm331_vm2, %v630_v0, -inf }
 0x29a   :  { %644 = vmax.xlane.f32.xlu1 %v643_v1  ;;  %v13501_v3 = vpop.f32.mrf.mxu1 }
 0x2ab   :  { %678 = vrot.lane.b32.xlu1 %v14357_v12, %s17738_s28 }
 0x301   :  { %v636_v4 = vpop.xlane.xlu1 %635 }
 0x302   :  { %v646_v6 = vsub.f32 %v402_v55, %v636_v4 }
 0x304   :  { %v650_v7 = vmul.f32 1.442695, %v646_v6 }
 0x306   :  { %14018 = vpow2.f32 %v650_v7 }
 0x313   :  { %v14019_v8 = vpop.eup %14018 }
 0x314   :  { %v658_v9 = vsel %vm331_vm2, %v14019_v8, 0.0 }
 0x315   :  { %659 = vadd.xlane.f32.xlu1 %v658_v9 }
 0x31b   :  { %v639_v11 = vpop.xlane.xlu0 %638 }
 0x31c   :  { %v647_v13 = vsub.f32 %v478_v58, %v639_v11 }
 0x31e   :  { %v652_v14 = vmul.f32 1.442695, %v647_v13 }
 0x31f   :  { %v642_v15 = vpop.xlane.xlu1 %641 }
 0x320   :  { %14020 = vpow2.f32 %v652_v14  ;;  %v648_v16 = vsub.f32 %v554_v61, %v642_v15 }
 0x322   :  { %v654_v17 = vmul.f32 1.442695, %v648_v16 }
 0x323   :  { %v645_v18 = vpop.xlane.xlu1 %644 }
 0x324   :  { %14022 = vpow2.f32 %v654_v17  ;;  %v649_v19 = vsub.f32 %v630_v0, %v645_v18 }
 0x326   :  { %v656_v20 = vmul.f32 1.442695, %v649_v19 }
 0x327   :  { %v679_v12 = vpop.permute.xlu1 %678 }
 0x328   :  { %14024 = vpow2.f32 %v656_v20  ;;  %13503 = vmatpush3.msra.mxu0 %v679_v12 }
 0x329   :  { %13512 = vmatprep.subr.mxu0 %v14178_v27 }
 0x32d   :  { %v14021_v21 = vpop.eup %14020 }
 0x32e   :  { %v661_v22 = vsel %vm331_vm2, %v14021_v21, 0.0 }
 0x32f   :  { %662 = vadd.xlane.f32.xlu0 %v661_v22 }
 0x331   :  { %v14023_v23 = vpop.eup %14022 }
 0x332   :  { %v664_v24 = vsel %vm331_vm2, %v14023_v23, 0.0 }
 0x333   :  { %665 = vadd.xlane.f32.xlu1 %v664_v24 }
 0x335   :  { %v14025_v25 = vpop.eup %14024 }
 0x336   :  { %v667_v26 = vsel %vm331_vm2, %v14025_v25, 0.0 }
 0x337   :  { %668 = vadd.xlane.f32.xlu0 %v667_v26 }
 0x344   :  { %830 = vrot.lane.b32.xlu1 %v14391_v29, %s17738_s28 }
 0x348   :  { %906 = vrot.lane.b32.xlu1 %v14395_v30, %s17738_s28 }
 0x34c   :  { %1284 = vrot.lane.b32.xlu1 %v14355_v10, %s17746_s2  ;;  %s17780_s2 = sld [smem:[#allocation12_spill]] }
 0x34d   :  { %754 = vrot.lane.b32.xlu0 %v14387_v28, %s17738_s28 }
 0x350   :  { %1288 = vrot.lane.b32.xlu1 %v14355_v10, %s17740_s10 }
 0x351   :  { %1282 = vrot.lane.b32.xlu0 %v14355_v10, %s17742_s30 }
 0x355   :  { %1286 = vrot.lane.b32.xlu0 %v14355_v10, %s17744_s17 }
 0x39e   :  { %v660_v31 = vpop.xlane.xlu1 %659 }
 0x39f   :  { %14026 = vrcp.f32 %v660_v31 }
 0x3ac   :  { %v14027_v29 = vpop.eup %14026 }
 0x3ad   :  { %v674_v32 = vmul.f32 %v14027_v29, %v14019_v8 }
 0x3af   :  { %13505 = vmatmul.mubr.msk.f32.vlgmr.msra.gmra.mxu0 %vm331_vm2, %v674_v32 }
 0x3b0   :  { %13514 = vmatprep.mubr.msk.f32.mxu0 %vm14179_vm1, %v14178_v27 }
 0x3b8   :  { %v663_v30 = vpop.xlane.xlu0 %662 }
 0x3b9   :  { %14028 = vrcp.f32 %v663_v30 }
 0x3bc   :  { %v666_v28 = vpop.xlane.xlu1 %665 }
 0x3bd   :  { %14030 = vrcp.f32 %v666_v28 }
 0x3c0   :  { %v669_v33 = vpop.xlane.xlu0 %668  ;;  %v831_v34 = vpop.permute.xlu1 %830 }
 0x3c1   :  { %14032 = vrcp.f32 %v669_v33  ;;  %13513 = vmatpush3.msra.mxu0 %v831_v34 }
 0x3c2   :  { %13522 = vmatprep.subr.mxu0 %v14178_v27 }
 0x3c4   :  { %v755_v35 = vpop.permute.xlu0 %754  ;;  %v907_v36 = vpop.permute.xlu1 %906 }
 0x3c5   :  { %13508 = vmatpush3.msra.mxu1 %v755_v35 }
 0x3c6   :  { %v14029_v37 = vpop.eup %14028  ;;  %13517 = vmatprep.subr.mxu1 %v14178_v27 }
 0x3c7   :  { %v675_v38 = vmul.f32 %v14029_v37, %v14021_v21 }
 0x3c8   :  { %v14473_v39 = vpop.permute.xlu0 %1282  ;;  %v14475_v40 = vpop.permute.xlu1 %1284 }
 0x3c9   :  { %13510 = vmatmul.mubr.msk.f32.vlgmr.msra.gmra.mxu1 %vm331_vm2, %v675_v38  ;;  %1364 = vrot.lane.b32.xlu0 %v14473_v39, %s17740_s10 }
 0x3ca   :  { %v14031_v41 = vpop.eup %14030  ;;  %13518 = vmatpush3.msra.mxu1 %v907_v36  ;;  %1440 = vrot.lane.b32.xlu1 %v14475_v40, %s17740_s10 }
 0x3cb   :  { %v676_v42 = vmul.f32 %v14031_v41, %v14023_v23  ;;  %13519 = vmatprep.mubr.msk.f32.mxu1 %vm14179_vm1, %v14178_v27  ;;  %13527 = vmatprep.subr.mxu1 %v14178_v27 }
 0x3cc   :  { %v14485_v43 = vpop.permute.xlu0 %1286  ;;  %v1289_v58 = vpop.permute.xlu1 %1288 }
 0x3cd   :  { %1516 = vrot.lane.b32.xlu0 %v14485_v43, %s17740_s10  ;;  %13515 = vmatmul.mubr.msk.f32.vlgmr.msra.gmra.mxu0 %vm331_vm2, %v676_v42  ;;  %s17786_s10 = sld [smem:[#allocation14_spill]] }
 0x3ce   :  { %v14033_v44 = vpop.eup %14032  ;;  %13524 = vmatprep.mubr.msk.f32.mxu0 %vm14179_vm1, %v14178_v27  ;;  %13523 = vmatpush3.msra.mxu0 %v14498_v46 }
 0x3cf   :  { %v677_v45 = vmul.f32 %v14033_v44, %v14025_v25  ;;  %13532 = vmatprep.subr.mxu0 %v14178_v27 }
 0x3d1   :  { %13520 = vmatmul.mubr.msk.f32.vlgmr.msra.gmra.mxu1 %vm331_vm2, %v677_v45 }
 0x3d2   :  { %13529 = vmatprep.mubr.msk.f32.mxu1 %vm14179_vm1, %v14178_v27  ;;  %13528 = vmatpush3.msra.mxu1 %v14505_v47 }
 0x3d3   :  { %13537 = vmatprep.subr.mxu1 %v14178_v27 }
 0x43b   :  { %v1365_v60 = vpop.permute.xlu0 %1364 }
 0x43c   :  { %v1441_v62 = vpop.permute.xlu1 %1440 }
 0x43f   :  { %v1517_v0 = vpop.permute.xlu0 %1516 }
 0x46f   :  { %v750_v49 = vpop.f32.mrf.mxu0 }
 0x470   :  { %13525 = vmatmul.mubr.msk.f32.vlgmr.msra.gmra.mxu0 %vm331_vm2, %v750_v49 }
 0x471   :  { %v13506_v50 = vpop.f32.mrf.mxu0  ;;  %13533 = vmatpush3.msra.mxu0 %v14512_v48  ;;  %13534 = vmatprep.mubr.msk.f32.mxu0 %vm14179_vm1, %v14178_v27 }
 0x472   :  { %13542 = vmatprep.subr.mxu0 %v14178_v27 }
 0x489   :  { %v826_v55 = vpop.f32.mrf.mxu1 }
 0x48a   :  { %13530 = vmatmul.mubr.msk.f32.vlgmr.msra.gmra.mxu1 %vm331_vm2, %v826_v55 }
 0x48b   :  { %v13511_v56 = vpop.f32.mrf.mxu1  ;;  %13538 = vmatpush3.msra.mxu1 %v14522_v52  ;;  %13539 = vmatprep.mubr.msk.f32.mxu1 %vm14179_vm1, %v14178_v27 }
 0x48c   :  { %13547 = vmatprep.subr.mxu1 %v14178_v27 }
 0x48d   :  { %v902_v57 = vpop.f32.mrf.mxu0 }
 0x48e   :  { %13535 = vmatmul.mubr.msk.f32.vlgmr.msra.gmra.mxu0 %vm331_vm2, %v902_v57 }
 0x48f   :  { %13543 = vmatpush3.xpose.msk.msra.mxu0 %vm331_vm2, %v1289_v58  ;;  %v13516_v59 = vpop.f32.mrf.mxu0  ;;  %13544 = vmatprep.mubr.msk.f32.mxu0 %vm14179_vm1, %v14178_v27 }
 0x490   :  { %13552 = vmatprep.subr.mxu0 %v14178_v27 }
 0x491   :  { %v978_v61 = vpop.f32.mrf.mxu1 }
 0x492   :  { %13540 = vmatmul.mubr.msk.f32.vlgmr.msra.gmra.mxu1 %vm331_vm2, %v978_v61  ;;  %13545 = vmatmul.mubr.msk.f32.vlgmr.msra.gmra.mxu0 %vm331_vm2, %v14355_v10 }
 0x493   :  { %13548 = vmatpush3.xpose.msk.msra.mxu1 %vm331_vm2, %v1365_v60  ;;  %13553 = vmatpush3.xpose.msk.msra.mxu0 %vm331_vm2, %v1441_v62  ;;  %v13521_v63 = vpop.f32.mrf.mxu1 }
 0x494   :  { %13549 = vmatprep.mubr.msk.f32.mxu1 %vm14179_vm1, %v14178_v27  ;;  %13554 = vmatprep.mubr.msk.f32.mxu0 %vm14179_vm1, %v14178_v27  ;;  %v14585_v63 = vld [vmem:[%s17777_s7] ss:$0 sm:$0xff] }
 0x495   :  { %13557 = vmatprep.subr.mxu1 %v14178_v27  ;;  %13562 = vmatprep.subr.mxu0 %v14178_v27 }
 0x496   :  { %13550 = vmatmul.mubr.msk.f32.vlgmr.msra.gmra.mxu1 %vm331_vm2, %v14473_v39  ;;  %13555 = vmatmul.mubr.msk.f32.vlgmr.msra.gmra.mxu0 %vm331_vm2, %v14475_v40 }
 0x497   :  { %13558 = vmatpush3.xpose.msk.msra.mxu1 %vm331_vm2, %v1517_v0  ;;  %13559 = vmatprep.mubr.msk.f32.mxu1 %vm14179_vm1, %v14178_v27 }
 0x498   :  { %13567 = vmatprep.subr.mxu1 %v14178_v27  ;;  %13564 = vmatprep.mubr.msk.f32.mxu0 %vm14179_vm1, %v14178_v27 }
 0x49a   :  { %13560 = vmatmul.mubr.msk.f32.vlgmr.msra.gmra.mxu1 %vm331_vm2, %v14485_v43 }
 0x49b   :  { %13569 = vmatprep.mubr.msk.f32.mxu1 %vm14179_vm1, %v14178_v27 }
 0x530   :  { %v1051_v1 = vpop.f32.mrf.mxu0 }
 0x531   :  { %v1274_v6 = vsel %vm90_vm0, %v1051_v1, 0.0 }
 0x532   :  { %v13526_v3 = vpop.f32.mrf.mxu0 }
 0x54a   :  { %v1124_v4 = vpop.f32.mrf.mxu1 }
 0x54b   :  { %v1275_v7 = vsel %vm90_vm0, %v1124_v4, 0.0 }
 0x54c   :  { %v1276_v8 = vadd.f32 %v1275_v7, %v1274_v6  ;;  %v13531_v9 = vpop.f32.mrf.mxu1 }
 0x54e   :  { %v1197_v11 = vpop.f32.mrf.mxu0 }
 0x54f   :  { %v1277_v13 = vsel %vm90_vm0, %v1197_v11, 0.0 }
 0x550   :  { %v1278_v14 = vadd.f32 %v1277_v13, %v1276_v8  ;;  %v13536_v15 = vpop.f32.mrf.mxu0 }
 0x552   :  { %v1270_v16 = vpop.f32.mrf.mxu1  ;;  %v1360_v17 = vpop.f32.mrf.mxu0 }
 0x553   :  { %v1279_v18 = vsel %vm90_vm0, %v1270_v16, 0.0  ;;  %v1592_v19 = vsel %vm331_vm2, %v1360_v17, -inf }
 0x554   :  { %v1280_v20 = vadd.f32 %v1279_v18, %v1278_v14  ;;  %1593 = vmax.xlane.f32.xlu1 %v1592_v19  ;;  %v13541_v12 = vpop.f32.mrf.mxu1  ;;  %v13546_v21 = vpop.f32.mrf.mxu0 }
 0x556   :  { %v1436_v22 = vpop.f32.mrf.mxu1  ;;  %v1512_v23 = vpop.f32.mrf.mxu0  ;;  %v2239_v62 = vadd.f32 %v1280_v20, %v14331_v2  ;;  %v14621_v20 = vadd.f32 %v14436_v51, %v14441_v54 }
 0x557   :  { %v1595_v24 = vsel %vm331_vm2, %v1436_v22, -inf  ;;  %v1598_v29 = vsel %vm331_vm2, %v1512_v23, -inf }
 0x558   :  { %v13556_v25 = vpop.f32.mrf.mxu0  ;;  %1596 = vmax.xlane.f32.xlu0 %v1595_v24  ;;  %v13551_v26 = vpop.f32.mrf.mxu1  ;;  %v14588_v0 = vadd.f32 %v14585_v63, %v2239_v62  ;;  %v2296_v62 = vld [vmem:[%s17779_s3 + $0x10] sm:$0xff] }
 0x55a   :  { %v1588_v31 = vpop.f32.mrf.mxu1  ;;  %v2252_v1 = vsel %vm90_vm0, %v14588_v0, 0.0 }
 0x55b   :  { %v1601_v32 = vsel %vm331_vm2, %v1588_v31, -inf }
 0x55c   :  { %1599 = vmax.xlane.f32.xlu0 %v1598_v29  ;;  %1602 = vmax.xlane.f32.xlu1 %v1601_v32  ;;  %v13561_v30 = vpop.f32.mrf.mxu1 }
 0x56d   :  { %1712 = vrot.lane.b32.xlu1 %v14473_v39, %s17738_s28 }
 0x572   :  { %1636 = vrot.lane.b32.xlu0 %v14355_v10, %s17738_s28 }
 0x5dd   :  { %v1594_v28 = vpop.xlane.xlu1 %1593 }
 0x5de   :  { %v1604_v33 = vsub.f32 %v1360_v17, %v1594_v28 }
 0x5e0   :  { %v1608_v34 = vmul.f32 1.442695, %v1604_v33 }
 0x5e1   :  { %v1597_v35 = vpop.xlane.xlu0 %1596 }
 0x5e2   :  { %14034 = vpow2.f32 %v1608_v34  ;;  %v1605_v36 = vsub.f32 %v1436_v22, %v1597_v35 }
 0x5e4   :  { %v1610_v37 = vmul.f32 1.442695, %v1605_v36 }
 0x5e5   :  { %v1600_v38 = vpop.xlane.xlu0 %1599  ;;  %v1603_v41 = vpop.xlane.xlu1 %1602 }
 0x5e6   :  { %14036 = vpow2.f32 %v1610_v37  ;;  %v1606_v42 = vsub.f32 %v1512_v23, %v1600_v38  ;;  %v1607_v44 = vsub.f32 %v1588_v31, %v1603_v41 }
 0x5e8   :  { %v1612_v45 = vmul.f32 1.442695, %v1606_v42  ;;  %v1614_v49 = vmul.f32 1.442695, %v1607_v44 }
 0x5e9   :  { %v1637_v50 = vpop.permute.xlu0 %1636  ;;  %v1713_v55 = vpop.permute.xlu1 %1712 }
 0x5ea   :  { %14038 = vpow2.f32 %v1612_v45  ;;  %13563 = vmatpush3.msra.mxu0 %v1637_v50  ;;  %13568 = vmatpush3.msra.mxu1 %v1713_v55 }
 0x5eb   :  { %14040 = vpow2.f32 %v1614_v49  ;;  %13572 = vmatprep.subr.mxu0 %v14178_v27  ;;  %13577 = vmatprep.subr.mxu1 %v14178_v27 }
 0x5ef   :  { %v14035_v10 = vpop.eup %14034 }
 0x5f0   :  { %v1616_v39 = vsel %vm331_vm2, %v14035_v10, 0.0 }
 0x5f1   :  { %1617 = vadd.xlane.f32.xlu0 %v1616_v39 }
 0x5f3   :  { %v14037_v56 = vpop.eup %14036 }
 0x5f4   :  { %v1619_v57 = vsel %vm331_vm2, %v14037_v56, 0.0 }
 0x5f5   :  { %1620 = vadd.xlane.f32.xlu1 %v1619_v57 }
 0x5f7   :  { %v14039_v58 = vpop.eup %14038 }
 0x5f8   :  { %v14041_v59 = vpop.eup %14040  ;;  %v1622_v60 = vsel %vm331_vm2, %v14039_v58, 0.0 }
 0x5f9   :  { %1623 = vadd.xlane.f32.xlu0 %v1622_v60  ;;  %v1625_v61 = vsel %vm331_vm2, %v14041_v59, 0.0 }
 0x5fa   :  { %1626 = vadd.xlane.f32.xlu1 %v1625_v61  ;;  %v2297_v61 = vld [vmem:[%s17779_s3 + $0x18] sm:$0xff] }
 0x60b   :  { %1788 = vrot.lane.b32.xlu1 %v14475_v40, %s17738_s28 }
 0x60f   :  { %1864 = vrot.lane.b32.xlu0 %v14485_v43, %s17738_s28  ;;  %s17787_s28 = sld [smem:[#allocation15_spill]] }
 0x62f   :  { %2253 = vadd.xlane.f32.xlu1 %v2252_v1  ;;  %v2295_v1 = vld [vmem:[%s17779_s3 + $0x8] sm:$0xff] }
 0x67a   :  { %v1618_v3 = vpop.xlane.xlu0 %1617 }
 0x67b   :  { %14042 = vrcp.f32 %v1618_v3 }
 0x67e   :  { %v1621_v40 = vpop.xlane.xlu1 %1620 }
 0x67f   :  { %14044 = vrcp.f32 %v1621_v40  ;;  %v2294_v40 = vld [vmem:[%s17779_s3] sm:$0xff] }
 0x682   :  { %v1624_v4 = vpop.xlane.xlu0 %1623 }
 0x683   :  { %14046 = vrcp.f32 %v1624_v4  ;;  %v1627_v43 = vpop.xlane.xlu1 %1626 }
 0x684   :  { %14048 = vrcp.f32 %v1627_v43 }
 0x686   :  { %v1865_v11 = vpop.permute.xlu0 %1864 }
 0x687   :  { %v1789_v7 = vpop.permute.xlu1 %1788 }
 0x688   :  { %v14043_v2 = vpop.eup %14042 }
 0x689   :  { %v1632_v6 = vmul.f32 %v14043_v2, %v14035_v10 }
 0x68b   :  { %13565 = vmatmul.mubr.msk.f32.vlgmr.msra.gmra.mxu0 %vm331_vm2, %v1632_v6 }
 0x68c   :  { %v14045_v8 = vpop.eup %14044  ;;  %13573 = vmatpush3.msra.mxu0 %v1789_v7  ;;  %13574 = vmatprep.mubr.msk.f32.mxu0 %vm14179_vm1, %v14178_v27 }
 0x68d   :  { %v1633_v9 = vmul.f32 %v14045_v8, %v14037_v56  ;;  %13582 = vmatprep.subr.mxu0 %v14178_v27 }
 0x68f   :  { %13570 = vmatmul.mubr.msk.f32.vlgmr.msra.gmra.mxu1 %vm331_vm2, %v1633_v9 }
 0x690   :  { %v14047_v13 = vpop.eup %14046  ;;  %13578 = vmatpush3.msra.mxu1 %v1865_v11  ;;  %13579 = vmatprep.mubr.msk.f32.mxu1 %vm14179_vm1, %v14178_v27 }
 0x691   :  { %v14049_v14 = vpop.eup %14048  ;;  %v1634_v15 = vmul.f32 %v14047_v13, %v14039_v58  ;;  %13587 = vmatprep.subr.mxu1 %v14178_v27  ;;  %v12118_v13 = vld [vmem:[%s17713_s8] ss:$0 sm:$0xff] }
 0x692   :  { %v1635_v16 = vmul.f32 %v14049_v14, %v14041_v59  ;;  %v12116_v59 = vld [vmem:[%s17778_s9] ss:$0 sm:$0xff] }
 0x693   :  { %13575 = vmatmul.mubr.msk.f32.vlgmr.msra.gmra.mxu0 %vm331_vm2, %v1634_v15 }
 0x694   :  { %13580 = vmatmul.mubr.msk.f32.vlgmr.msra.gmra.mxu1 %vm331_vm2, %v1635_v16  ;;  %13583 = vmatpush3.msra.mxu0 %v14498_v46 }
 0x695   :  { %13584 = vmatprep.mubr.msk.f32.mxu0 %vm14179_vm1, %v14178_v27  ;;  %13588 = vmatpush3.msra.mxu1 %v14505_v47 }
 0x696   :  { %13589 = vmatprep.mubr.msk.f32.mxu1 %vm14179_vm1, %v14178_v27  ;;  %13592 = vmatprep.subr.mxu0 %v14178_v27 }
 0x697   :  { %13597 = vmatprep.subr.mxu1 %v14178_v27 }
 0x6b8   :  { %v2254_v24 = vpop.xlane.xlu1 %2253 }
 0x6b9   :  { %v2258_v30 = vmul.f32 0.03125, %v2254_v24 }
 0x6bb   :  { %v2260_v37 = vsub.f32 %v14588_v0, %v2258_v30 }
 0x6bd   :  { %v2262_v44 = vmul.f32 %v2260_v37, %v2260_v37 }
 0x6bf   :  { %v2264_v45 = vsel %vm90_vm0, %v2262_v44, 0.0 }
 0x74b   :  { %v1708_v17 = vpop.f32.mrf.mxu0 }
 0x74c   :  { %13585 = vmatmul.mubr.msk.f32.vlgmr.msra.gmra.mxu0 %vm331_vm2, %v1708_v17 }
 0x74d   :  { %v13566_v18 = vpop.f32.mrf.mxu0  ;;  %13593 = vmatpush3.msra.mxu0 %v14512_v48  ;;  %13594 = vmatprep.mubr.msk.f32.mxu0 %vm14179_vm1, %v14178_v27 }
 0x74e   :  { %13602 = vmatprep.subr.mxu0 %v2297_v61 }
 0x74f   :  { %v1784_v46 = vpop.f32.mrf.mxu1 }
 0x750   :  { %13590 = vmatmul.mubr.msk.f32.vlgmr.msra.gmra.mxu1 %vm331_vm2, %v1784_v46 }
 0x751   :  { %v13571_v47 = vpop.f32.mrf.mxu1  ;;  %13598 = vmatpush3.msra.mxu1 %v14522_v52  ;;  %13599 = vmatprep.mubr.msk.f32.mxu1 %vm14179_vm1, %v14178_v27 }
 0x752   :  { %13613 = vmatprep.subr.mxu1 %v14178_v27 }
 0x753   :  { %v1860_v19 = vpop.f32.mrf.mxu0 }
 0x754   :  { %v1936_v48 = vpop.f32.mrf.mxu1  ;;  %13595 = vmatmul.mubr.msk.f32.vlgmr.msra.gmra.mxu0 %vm331_vm2, %v1860_v19 }
 0x755   :  { %13600 = vmatmul.mubr.msk.f32.vlgmr.msra.gmra.mxu1 %vm331_vm2, %v1936_v48  ;;  %v13576_v12 = vpop.f32.mrf.mxu0  ;;  %13603 = vmatpush3.msra.mxu0 %v2297_v61 }
 0x756   :  { %13614 = vmatpush3.xpose.msk.msra.mxu1 %vm331_vm2, %v14621_v20  ;;  %v13581_v52 = vpop.f32.mrf.mxu1  ;;  %13615 = vmatprep.mubr.msk.f32.mxu1 %vm14179_vm1, %v14178_v27 }
 0x757   :  { %13618 = vmatprep.subr.mxu1 %v14178_v27  ;;  %13604 = vmatprep.subr.mxu0 %v2296_v62 }
 0x758   :  { %13605 = vmatpush3.msra.mxu0 %v2296_v62 }
 0x759   :  { %13606 = vmatprep.subr.mxu0 %v2295_v1 }
 0x75a   :  { %13607 = vmatpush3.msra.mxu0 %v2295_v1 }
 0x75b   :  { %13608 = vmatprep.subr.mxu0 %v2294_v40 }
 0x75c   :  { %13609 = vmatpush3.msra.mxu0 %v2294_v40 }
 0x75d   :  { %13623 = vmatprep.subr.mxu0 %v14178_v27 }
 0x80c   :  { %v2009_v21 = vpop.f32.mrf.mxu0 }
 0x80d   :  { %v2232_v25 = vsel %vm90_vm0, %v2009_v21, 0.0 }
 0x80e   :  { %v13586_v22 = vpop.f32.mrf.mxu0 }
 0x810   :  { %v2082_v23 = vpop.f32.mrf.mxu1 }
 0x811   :  { %v2233_v51 = vsel %vm90_vm0, %v2082_v23, 0.0 }
 0x812   :  { %v13591_v54 = vpop.f32.mrf.mxu1  ;;  %v2234_v26 = vadd.f32 %v2233_v51, %v2232_v25 }
 0x814   :  { %v2155_v31 = vpop.f32.mrf.mxu0 }
 0x815   :  { %v2235_v29 = vsel %vm90_vm0, %v2155_v31, 0.0  ;;  %v2228_v32 = vpop.f32.mrf.mxu1 }
 0x816   :  { %v2236_v28 = vadd.f32 %v2235_v29, %v2234_v26  ;;  %v13596_v33 = vpop.f32.mrf.mxu0  ;;  %v2237_v34 = vsel %vm90_vm0, %v2228_v32, 0.0 }
 0x817   :  { %v13601_v35 = vpop.f32.mrf.mxu1 }
 0x818   :  { %v2238_v36 = vadd.f32 %v2237_v34, %v2236_v28 }
 0x81a   :  { %v2240_v38 = vadd.f32 %v2238_v36, %v14343_v5 }
 0x81c   :  { %v2249_v41 = vadd.f32 %v14585_v63, %v2240_v38  ;;  %v12117_v63 = vld [vmem:[%s17780_s2] ss:$0 sm:$0xff] }
 0x81e   :  { %v2255_v42 = vsel %vm90_vm0, %v2249_v41, 0.0 }
 0x81f   :  { %2256 = vadd.xlane.f32.xlu0 %v2255_v42 }
 0x823   :  { %2265 = vadd.xlane.f32.xlu0 %v2264_v45 }
 0x839   :  { %2398 = vrot.lane.b32.xlu0 %v14621_v20, %s17742_s30 }
 0x83d   :  { %2402 = vrot.lane.b32.xlu0 %v14621_v20, %s17744_s17 }
 0x8a8   :  { %v2257_v49 = vpop.xlane.xlu0 %2256 }
 0x8a9   :  { %v2259_v50 = vmul.f32 0.03125, %v2257_v49 }
 0x8ab   :  { %v2261_v55 = vsub.f32 %v2249_v41, %v2259_v50 }
 0x8ac   :  { %v2266_v10 = vpop.xlane.xlu0 %2265 }
 0x8ad   :  { %v2270_v5 = vmul.f32 0.03125, %v2266_v10  ;;  %v2263_v39 = vmul.f32 %v2261_v55, %v2261_v55 }
 0x8af   :  { %v2272_v56 = vadd.f32 1e-05, %v2270_v5  ;;  %v2267_v57 = vsel %vm90_vm0, %v2263_v39, 0.0 }
 0x8b0   :  { %2268 = vadd.xlane.f32.xlu1 %v2267_v57  ;;  %v14687_v18 = vpop.permute.xlu0 %2398 }
 0x8b1   :  { %14050 = vrsqrt.f32 %v2272_v56 }
 0x8b4   :  { %v14696_v46 = vpop.permute.xlu0 %2402 }
 0x8be   :  { %v14051_v58 = vpop.eup %14050 }
 0x8bf   :  { %v2276_v60 = vmul.f32 %v14051_v58, %v2260_v37 }
 0x8c1   :  { %2400 = vrot.lane.b32.xlu1 %v14621_v20, %s17781_s27  ;;  %v2284_v0 = vmul.f32 %v12116_v59, %v2276_v60 }
 0x8c3   :  { %v14661_v3 = vadd.f32 %v12117_v63, %v2284_v0 }
 0x8c5   :  { %13610 = vmatprep.mubr.msk.f32.mxu0 %vm90_vm0, %v14661_v3 }
 0x939   :  { %v2269_v4 = vpop.xlane.xlu1 %2268 }
 0x93a   :  { %v2271_v43 = vmul.f32 0.03125, %v2269_v4 }
 0x93c   :  { %v2273_v2 = vadd.f32 1e-05, %v2271_v43 }
 0x93d   :  { %v14671_v11 = vpop.permute.xlu1 %2400 }
 0x93e   :  { %14052 = vrsqrt.f32 %v2273_v2 }
 0x94b   :  { %v14053_v6 = vpop.eup %14052 }
 0x94c   :  { %v2277_v7 = vmul.f32 %v14053_v6, %v2261_v55 }
 0x94e   :  { %v2285_v8 = vmul.f32 %v12116_v59, %v2277_v7 }
 0x950   :  { %v14669_v9 = vadd.f32 %v12117_v63, %v2285_v8  ;;  %v14750_v8 = vld [vmem:[%s17714_s11] sm:$0xff] }
 0x952   :  { %13611 = vmatmul.mubr.msk.f32.vlgmr.msra.gmra.mxu0 %vm90_vm0, %v14669_v9 }
 0x953   :  { %13624 = vmatpush3.xpose.msk.msra.mxu0 %vm331_vm2, %v14671_v11  ;;  %13625 = vmatprep.mubr.msk.f32.mxu0 %vm14179_vm1, %v14178_v27 }
 0x954   :  { %13633 = vmatprep.subr.mxu0 %v14178_v27 }
 0xa12   :  { %v13612_v14 = vpop.f32.mrf.mxu0 }
 0xa13   :  { %v14683_v15 = vadd.f32 %v13612_v14, %v12118_v13  ;;  %v14756_v14 = vld [vmem:[%s17714_s11 + $0x8] sm:$0xff] }
 0xa14   :  { %v2377_v16 = vpop.f32.mrf.mxu0 }
 0xa15   :  { %v2378_v17 = vadd.f32 %v12118_v13, %v2377_v16  ;;  %v14771_v16 = vld [vmem:[%s17714_s11 + $0x10] sm:$0xff] }
 0xa17   :  { %2395 = vrot.lane.b32.xlu0 %v2378_v17, %s17782_s0  ;;  %2391 = vrot.lane.b32.xlu1 %v2378_v17, %s17783_s18 }
 0xa18   :  { %13616 = vmatmul.mubr.msk.f32.vlgmr.msra.gmra.mxu1 %vm331_vm2, %v2378_v17 }
 0xa19   :  { %13619 = vmatpush3.xpose.msk.msra.mxu1 %vm331_vm2, %v14687_v18  ;;  %13620 = vmatprep.mubr.msk.f32.mxu1 %vm14179_vm1, %v14178_v27 }
 0xa1a   :  { %13628 = vmatprep.subr.mxu1 %v14178_v27 }
 0xa1b   :  { %2393 = vrot.lane.b32.xlu1 %v2378_v17, %s17781_s27 }
 0xa89   :  { %v2392_v47 = vpop.permute.xlu1 %2391  ;;  %v2396_v19 = vpop.permute.xlu0 %2395 }
 0xa8a   :  { %13621 = vmatmul.mubr.msk.f32.vlgmr.msra.gmra.mxu1 %vm331_vm2, %v2392_v47 }
 0xa8b   :  { %13629 = vmatpush3.xpose.msk.msra.mxu1 %vm331_vm2, %v14696_v46  ;;  %13630 = vmatprep.mubr.msk.f32.mxu1 %vm14179_vm1, %v14178_v27 }
 0xa8c   :  { %13638 = vmatprep.subr.mxu1 %v14178_v27 }
 0xa8d   :  { %v2394_v48 = vpop.permute.xlu1 %2393 }
 0xa8e   :  { %13626 = vmatmul.mubr.msk.f32.vlgmr.msra.gmra.mxu0 %vm331_vm2, %v2394_v48  ;;  %13631 = vmatmul.mubr.msk.f32.vlgmr.msra.gmra.mxu1 %vm331_vm2, %v2396_v19  ;;  %v14781_v19 = vld [vmem:[%s17714_s11 + $0x18] sm:$0xff] }
 0xa8f   :  { %13635 = vmatprep.mubr.msk.f32.mxu0 %vm14179_vm1, %v14178_v27  ;;  %13640 = vmatprep.mubr.msk.f32.mxu1 %vm14179_vm1, %v14178_v27 }
 0xad8   :  { %v2474_v12 = vpop.f32.mrf.mxu1 }
 0xad9   :  { %v2700_v52 = vsel %vm331_vm2, %v2474_v12, -inf }
 0xada   :  { %2701 = vmax.xlane.f32.xlu1 %v2700_v52  ;;  %v13617_v21 = vpop.f32.mrf.mxu1 }
 0xb4a   :  { %v2548_v22 = vpop.f32.mrf.mxu1 }
 0xb4b   :  { %v2703_v23 = vsel %vm331_vm2, %v2548_v22, -inf }
 0xb4c   :  { %2704 = vmax.xlane.f32.xlu0 %v2703_v23  ;;  %v13622_v51 = vpop.f32.mrf.mxu1 }
 0xb4e   :  { %v2622_v54 = vpop.f32.mrf.mxu0  ;;  %v2696_v24 = vpop.f32.mrf.mxu1 }
 0xb4f   :  { %v2706_v25 = vsel %vm331_vm2, %v2622_v54, -inf  ;;  %v2709_v26 = vsel %vm331_vm2, %v2696_v24, -inf }
 0xb50   :  { %v13627_v31 = vpop.f32.mrf.mxu0  ;;  %2707 = vmax.xlane.f32.xlu0 %v2706_v25  ;;  %2710 = vmax.xlane.f32.xlu1 %v2709_v26  ;;  %v13632_v29 = vpop.f32.mrf.mxu1 }
 0xb61   :  { %2820 = vrot.lane.b32.xlu1 %v14687_v18, %s17784_s5 }
 0xb63   :  { %v2702_v32 = vpop.xlane.xlu1 %2701 }
 0xb64   :  { %v2712_v30 = vsub.f32 %v2474_v12, %v2702_v32 }
 0xb66   :  { %2744 = vrot.lane.b32.xlu0 %v14621_v20, %s17784_s5  ;;  %v2716_v28 = vmul.f32 1.442695, %v2712_v30 }
 0xb68   :  { %14054 = vpow2.f32 %v2716_v28 }
 0xb75   :  { %v14055_v33 = vpop.eup %14054 }
 0xb76   :  { %v2724_v34 = vsel %vm331_vm2, %v14055_v33, 0.0 }
 0xb85   :  { %2725 = vadd.xlane.f32.xlu0 %v2724_v34 }
 0xbd5   :  { %v2705_v35 = vpop.xlane.xlu0 %2704 }
 0xbd6   :  { %v2713_v36 = vsub.f32 %v2548_v22, %v2705_v35 }
 0xbd8   :  { %v2718_v37 = vmul.f32 1.442695, %v2713_v36 }
 0xbd9   :  { %v2708_v38 = vpop.xlane.xlu0 %2707  ;;  %v2711_v41 = vpop.xlane.xlu1 %2710 }
 0xbda   :  { %14056 = vpow2.f32 %v2718_v37  ;;  %v2714_v42 = vsub.f32 %v2622_v54, %v2708_v38  ;;  %v2715_v44 = vsub.f32 %v2696_v24, %v2711_v41 }
 0xbdc   :  { %v2720_v45 = vmul.f32 1.442695, %v2714_v42  ;;  %v2722_v49 = vmul.f32 1.442695, %v2715_v44 }
 0xbdd   :  { %v2745_v50 = vpop.permute.xlu0 %2744  ;;  %v2821_v55 = vpop.permute.xlu1 %2820 }
 0xbde   :  { %14058 = vpow2.f32 %v2720_v45  ;;  %13634 = vmatpush3.msra.mxu0 %v2745_v50  ;;  %13639 = vmatpush3.msra.mxu1 %v2821_v55 }
 0xbdf   :  { %14060 = vpow2.f32 %v2722_v49  ;;  %13643 = vmatprep.subr.mxu0 %v14178_v27  ;;  %13648 = vmatprep.subr.mxu1 %v14178_v27 }
 0xbe7   :  { %v14057_v10 = vpop.eup %14056 }
 0xbe8   :  { %v2727_v5 = vsel %vm331_vm2, %v14057_v10, 0.0 }
 0xbe9   :  { %2728 = vadd.xlane.f32.xlu1 %v2727_v5 }
 0xbeb   :  { %v14059_v39 = vpop.eup %14058 }
 0xbec   :  { %v14061_v56 = vpop.eup %14060  ;;  %v2730_v57 = vsel %vm331_vm2, %v14059_v39, 0.0 }
 0xbed   :  { %2731 = vadd.xlane.f32.xlu0 %v2730_v57  ;;  %v2733_v58 = vsel %vm331_vm2, %v14061_v56, 0.0 }
 0xbee   :  { %2734 = vadd.xlane.f32.xlu1 %v2733_v58 }
 0xbff   :  { %2896 = vrot.lane.b32.xlu1 %v14671_v11, %s17784_s5 }
 0xc03   :  { %3355 = vrot.lane.b32.xlu1 %v14439_v53, %s17783_s18  ;;  %2972 = vrot.lane.b32.xlu0 %v14696_v46, %s17784_s5 }
 0xc07   :  { %3348 = vrot.lane.b32.xlu1 %v14683_v15, %s17783_s18  ;;  %3357 = vrot.lane.b32.xlu0 %v14439_v53, %s17781_s27 }
 0xc0b   :  { %3350 = vrot.lane.b32.xlu1 %v14683_v15, %s17781_s27  ;;  %3359 = vrot.lane.b32.xlu0 %v14439_v53, %s17782_s0 }
 0xc0e   :  { %v2726_v59 = vpop.xlane.xlu0 %2725 }
 0xc0f   :  { %14062 = vrcp.f32 %v2726_v59  ;;  %3352 = vrot.lane.b32.xlu0 %v14683_v15, %s17782_s0 }
 0xc1c   :  { %v14063_v60 = vpop.eup %14062 }
 0xc1d   :  { %v2740_v61 = vmul.f32 %v14063_v60, %v14055_v33 }
 0xc1f   :  { %13636 = vmatmul.mubr.msk.f32.vlgmr.msra.gmra.mxu0 %vm331_vm2, %v2740_v61 }
 0xc20   :  { %13645 = vmatprep.mubr.msk.f32.mxu0 %vm14179_vm1, %v14178_v27 }
 0xc72   :  { %v2729_v62 = vpop.xlane.xlu1 %2728 }
 0xc73   :  { %14064 = vrcp.f32 %v2729_v62 }
 0xc76   :  { %v2732_v63 = vpop.xlane.xlu0 %2731 }
 0xc77   :  { %14066 = vrcp.f32 %v2732_v63  ;;  %v2735_v0 = vpop.xlane.xlu1 %2734 }
 0xc78   :  { %14068 = vrcp.f32 %v2735_v0 }
 0xc7a   :  { %v2973_v43 = vpop.permute.xlu0 %2972 }
 0xc7b   :  { %v2897_v1 = vpop.permute.xlu1 %2896 }
 0xc7c   :  { %13644 = vmatpush3.msra.mxu0 %v2897_v1 }
 0xc7d   :  { %13653 = vmatprep.subr.mxu0 %v14178_v27 }
 0xc7e   :  { %v14785_v52 = vpop.permute.xlu0 %3357 }
 0xc7f   :  { %v14783_v48 = vpop.permute.xlu1 %3355 }
 0xc80   :  { %v14065_v40 = vpop.eup %14064 }
 0xc81   :  { %v2741_v4 = vmul.f32 %v14065_v40, %v14057_v10 }
 0xc82   :  { %v14796_v24 = vpop.permute.xlu0 %3359 }
 0xc83   :  { %13641 = vmatmul.mubr.msk.f32.vlgmr.msra.gmra.mxu1 %vm331_vm2, %v2741_v4  ;;  %v3349_v51 = vpop.permute.xlu1 %3348 }
 0xc84   :  { %v14067_v2 = vpop.eup %14066  ;;  %13649 = vmatpush3.msra.mxu1 %v2973_v43  ;;  %13650 = vmatprep.mubr.msk.f32.mxu1 %vm14179_vm1, %v14178_v27 }
 0xc85   :  { %v14069_v6 = vpop.eup %14068  ;;  %v2742_v7 = vmul.f32 %v14067_v2, %v14059_v39  ;;  %13658 = vmatprep.subr.mxu1 %v14178_v27 }
 0xc86   :  { %v2743_v13 = vmul.f32 %v14069_v6, %v14061_v56  ;;  %v3353_v31 = vpop.permute.xlu0 %3352 }
 0xc87   :  { %13646 = vmatmul.mubr.msk.f32.vlgmr.msra.gmra.mxu0 %vm331_vm2, %v2742_v7  ;;  %v3351_v26 = vpop.permute.xlu1 %3350 }
 0xc88   :  { %13651 = vmatmul.mubr.msk.f32.vlgmr.msra.gmra.mxu1 %vm331_vm2, %v2743_v13  ;;  %13654 = vmatpush3.msra.mxu0 %v14750_v8 }
 0xc89   :  { %13655 = vmatprep.mubr.msk.f32.mxu0 %vm14179_vm1, %v14178_v27  ;;  %13659 = vmatpush3.msra.mxu1 %v14756_v14 }
 0xc8a   :  { %13660 = vmatprep.mubr.msk.f32.mxu1 %vm14179_vm1, %v14178_v27  ;;  %13663 = vmatprep.subr.mxu0 %v14178_v27 }
 0xc8b   :  { %13668 = vmatprep.subr.mxu1 %v14178_v27 }
 0xcdf   :  { %v2816_v17 = vpop.f32.mrf.mxu0 }
 0xce0   :  { %13656 = vmatmul.mubr.msk.f32.vlgmr.msra.gmra.mxu0 %vm331_vm2, %v2816_v17 }
 0xce1   :  { %v13637_v47 = vpop.f32.mrf.mxu0  ;;  %13664 = vmatpush3.msra.mxu0 %v14771_v16  ;;  %13665 = vmatprep.mubr.msk.f32.mxu0 %vm14179_vm1, %v14178_v27 }
 0xce2   :  { %13673 = vmatprep.subr.mxu0 %v14178_v27 }
 0xd43   :  { %v2892_v12 = vpop.f32.mrf.mxu1 }
 0xd44   :  { %13661 = vmatmul.mubr.msk.f32.vlgmr.msra.gmra.mxu1 %vm331_vm2, %v2892_v12 }
 0xd45   :  { %v13642_v21 = vpop.f32.mrf.mxu1  ;;  %13669 = vmatpush3.msra.mxu1 %v14781_v19  ;;  %13670 = vmatprep.mubr.msk.f32.mxu1 %vm14179_vm1, %v14178_v27 }
 0xd46   :  { %13678 = vmatprep.subr.mxu1 %v14178_v27 }
 0xd47   :  { %v2968_v22 = vpop.f32.mrf.mxu0 }
 0xd48   :  { %v3044_v23 = vpop.f32.mrf.mxu1  ;;  %13666 = vmatmul.mubr.msk.f32.vlgmr.msra.gmra.mxu0 %vm331_vm2, %v2968_v22 }
 0xd49   :  { %13671 = vmatmul.mubr.msk.f32.vlgmr.msra.gmra.mxu1 %vm331_vm2, %v3044_v23  ;;  %13674 = vmatpush3.xpose.msk.msra.mxu0 %vm331_vm2, %v14439_v53  ;;  %v13647_v54 = vpop.f32.mrf.mxu0 }
 0xd4a   :  { %13679 = vmatpush3.xpose.msk.msra.mxu1 %vm331_vm2, %v14783_v48  ;;  %v13652_v25 = vpop.f32.mrf.mxu1  ;;  %13675 = vmatprep.mubr.msk.f32.mxu0 %vm14179_vm1, %v14178_v27 }
 0xd4b   :  { %13680 = vmatprep.mubr.msk.f32.mxu1 %vm14179_vm1, %v14178_v27  ;;  %13683 = vmatprep.subr.mxu0 %v14178_v27 }
 0xd4c   :  { %13688 = vmatprep.subr.mxu1 %v14178_v27  ;;  %13676 = vmatmul.mubr.msk.f32.vlgmr.msra.gmra.mxu0 %vm331_vm2, %v14683_v15 }
 0xd4d   :  { %13681 = vmatmul.mubr.msk.f32.vlgmr.msra.gmra.mxu1 %vm331_vm2, %v3349_v51  ;;  %13684 = vmatpush3.xpose.msk.msra.mxu0 %vm331_vm2, %v14785_v52 }
 0xd4e   :  { %13689 = vmatpush3.xpose.msk.msra.mxu1 %vm331_vm2, %v14796_v24  ;;  %13685 = vmatprep.mubr.msk.f32.mxu0 %vm14179_vm1, %v14178_v27 }
 0xd4f   :  { %13690 = vmatprep.mubr.msk.f32.mxu1 %vm14179_vm1, %v14178_v27  ;;  %13693 = vmatprep.subr.mxu0 %v14178_v27 }
 0xd50   :  { %13686 = vmatmul.mubr.msk.f32.vlgmr.msra.gmra.mxu0 %vm331_vm2, %v3351_v26  ;;  %13698 = vmatprep.subr.mxu1 %v14178_v27 }
 0xd51   :  { %13691 = vmatmul.mubr.msk.f32.vlgmr.msra.gmra.mxu1 %vm331_vm2, %v3353_v31  ;;  %13695 = vmatprep.mubr.msk.f32.mxu0 %vm14179_vm1, %v14178_v27 }
 0xd52   :  { %13700 = vmatprep.mubr.msk.f32.mxu1 %vm14179_vm1, %v14178_v27 }
 0xda0   :  { %v3117_v15 = vpop.f32.mrf.mxu0 }
 0xda1   :  { %v3340_v30 = vsel %vm90_vm0, %v3117_v15, 0.0 }
 0xda2   :  { %v13657_v29 = vpop.f32.mrf.mxu0 }
 0xda3   :  { %v14851_v29 = vld [vmem:[%s17715_s12] ss:$0 sm:$0xff] }
 0xe04   :  { %v3190_v32 = vpop.f32.mrf.mxu1 }
 0xe05   :  { %v3341_v28 = vsel %vm90_vm0, %v3190_v32, 0.0 }
 0xe06   :  { %v3342_v33 = vadd.f32 %v3341_v28, %v3340_v30  ;;  %v13662_v34 = vpop.f32.mrf.mxu1 }
 0xe08   :  { %v3263_v35 = vpop.f32.mrf.mxu0 }
 0xe09   :  { %v3343_v36 = vsel %vm90_vm0, %v3263_v35, 0.0  ;;  %v3336_v37 = vpop.f32.mrf.mxu1 }
 0xe0a   :  { %v3344_v38 = vadd.f32 %v3343_v36, %v3342_v33  ;;  %v13667_v41 = vpop.f32.mrf.mxu0  ;;  %v3345_v42 = vsel %vm90_vm0, %v3336_v37, 0.0 }
 0xe0b   :  { %v13672_v44 = vpop.f32.mrf.mxu1 }
 0xe0c   :  { %v3346_v45 = vadd.f32 %v3345_v42, %v3344_v38  ;;  %v3431_v49 = vpop.f32.mrf.mxu0 }
 0xe0d   :  { %v3505_v50 = vpop.f32.mrf.mxu1  ;;  %v3657_v55 = vsel %vm331_vm2, %v3431_v49, -inf }
 0xe0e   :  { %3658 = vmax.xlane.f32.xlu1 %v3657_v55  ;;  %v13677_v10 = vpop.f32.mrf.mxu0  ;;  %v3660_v5 = vsel %vm331_vm2, %v3505_v50, -inf  ;;  %v4304_v15 = vadd.f32 %v3346_v45, %v14661_v3 }
 0xe0f   :  { %3661 = vmax.xlane.f32.xlu0 %v3660_v5  ;;  %v13682_v39 = vpop.f32.mrf.mxu1 }
 0xe10   :  { %v3579_v56 = vpop.f32.mrf.mxu0  ;;  %v14854_v32 = vadd.f32 %v14851_v29, %v4304_v15  ;;  %v4391_v15 = vld [vmem:[%s17716_s13 + $0x100] sm:$0xff] }
 0xe11   :  { %v3653_v57 = vpop.f32.mrf.mxu1  ;;  %v3663_v58 = vsel %vm331_vm2, %v3579_v56, -inf }
 0xe12   :  { %v13687_v59 = vpop.f32.mrf.mxu0  ;;  %v3666_v60 = vsel %vm331_vm2, %v3653_v57, -inf  ;;  %v4317_v30 = vsel %vm90_vm0, %v14854_v32, 0.0 }
 0xe13   :  { %3664 = vmax.xlane.f32.xlu0 %v3663_v58  ;;  %3667 = vmax.xlane.f32.xlu1 %v3666_v60  ;;  %v13692_v61 = vpop.f32.mrf.mxu1 }
 0xe24   :  { %3777 = vrot.lane.b32.xlu1 %v14783_v48, %s17784_s5 }
 0xe29   :  { %3701 = vrot.lane.b32.xlu0 %v14439_v53, %s17784_s5 }
 0xe97   :  { %v3659_v62 = vpop.xlane.xlu1 %3658 }
 0xe98   :  { %v3669_v63 = vsub.f32 %v3431_v49, %v3659_v62  ;;  %v3662_v0 = vpop.xlane.xlu0 %3661 }
 0xe99   :  { %v3670_v1 = vsub.f32 %v3505_v50, %v3662_v0 }
 0xe9a   :  { %v3673_v40 = vmul.f32 1.442695, %v3669_v63 }
 0xe9b   :  { %v3675_v4 = vmul.f32 1.442695, %v3670_v1 }
 0xe9c   :  { %14070 = vpow2.f32 %v3673_v40  ;;  %v3665_v43 = vpop.xlane.xlu0 %3664  ;;  %v3668_v2 = vpop.xlane.xlu1 %3667 }
 0xe9d   :  { %14072 = vpow2.f32 %v3675_v4  ;;  %v3671_v6 = vsub.f32 %v3579_v56, %v3665_v43  ;;  %v3672_v7 = vsub.f32 %v3653_v57, %v3668_v2 }
 0xe9f   :  { %v3677_v13 = vmul.f32 1.442695, %v3671_v6  ;;  %v3679_v17 = vmul.f32 1.442695, %v3672_v7 }
 0xea0   :  { %v3702_v47 = vpop.permute.xlu0 %3701  ;;  %v3778_v12 = vpop.permute.xlu1 %3777 }
 0xea1   :  { %14074 = vpow2.f32 %v3677_v13  ;;  %13694 = vmatpush3.msra.mxu0 %v3702_v47  ;;  %13699 = vmatpush3.msra.mxu1 %v3778_v12 }
 0xea2   :  { %14076 = vpow2.f32 %v3679_v17  ;;  %13703 = vmatprep.subr.mxu0 %v14178_v27  ;;  %13708 = vmatprep.subr.mxu1 %v14178_v27 }
 0xea9   :  { %v14071_v21 = vpop.eup %14070 }
 0xeaa   :  { %v14073_v22 = vpop.eup %14072  ;;  %v3681_v23 = vsel %vm331_vm2, %v14071_v21, 0.0 }
 0xeab   :  { %3682 = vadd.xlane.f32.xlu0 %v3681_v23  ;;  %v3684_v51 = vsel %vm331_vm2, %v14073_v22, 0.0 }
 0xeac   :  { %3685 = vadd.xlane.f32.xlu1 %v3684_v51  ;;  %v4408_v51 = vld [vmem:[%s17716_s13 + $0x188] sm:$0xff] }
 0xeae   :  { %v14075_v54 = vpop.eup %14074 }
 0xeaf   :  { %v14077_v25 = vpop.eup %14076  ;;  %v3687_v26 = vsel %vm331_vm2, %v14075_v54, 0.0 }
 0xeb0   :  { %3688 = vadd.xlane.f32.xlu0 %v3687_v26  ;;  %v3690_v31 = vsel %vm331_vm2, %v14077_v25, 0.0  ;;  %v4392_v26 = vld [vmem:[%s17716_s13 + $0x108] sm:$0xff] }
 0xeb1   :  { %3691 = vadd.xlane.f32.xlu1 %v3690_v31  ;;  %v4394_v31 = vld [vmem:[%s17716_s13 + $0x118] sm:$0xff] }
 0xec2   :  { %3853 = vrot.lane.b32.xlu1 %v14785_v52, %s17784_s5 }
 0xec6   :  { %3929 = vrot.lane.b32.xlu0 %v14796_v24, %s17784_s5 }
 0xee6   :  { %4318 = vadd.xlane.f32.xlu1 %v4317_v30  ;;  %v4378_v30 = vld [vmem:[%s17716_s13 + $0x98] sm:$0xff] }
 0xf34   :  { %v3683_v28 = vpop.xlane.xlu0 %3682 }
 0xf35   :  { %14078 = vrcp.f32 %v3683_v28  ;;  %v3686_v33 = vpop.xlane.xlu1 %3685  ;;  %v4375_v28 = vld [vmem:[%s17716_s13 + $0x80] sm:$0xff] }
 0xf36   :  { %14080 = vrcp.f32 %v3686_v33  ;;  %v4377_v33 = vld [vmem:[%s17716_s13 + $0x90] sm:$0xff] }
 0xf39   :  { %v3689_v34 = vpop.xlane.xlu0 %3688 }
 0xf3a   :  { %14082 = vrcp.f32 %v3689_v34  ;;  %v3692_v35 = vpop.xlane.xlu1 %3691  ;;  %v4360_v34 = vld [vmem:[%s17716_s13 + $0x8] sm:$0xff] }
 0xf3b   :  { %14084 = vrcp.f32 %v3692_v35  ;;  %v4362_v35 = vld [vmem:[%s17716_s13 + $0x18] sm:$0xff] }
 0xf3d   :  { %v3930_v42 = vpop.permute.xlu0 %3929 }
 0xf3e   :  { %v3854_v41 = vpop.permute.xlu1 %3853 }
 0xf42   :  { %v14079_v3 = vpop.eup %14078 }
 0xf43   :  { %v14081_v36 = vpop.eup %14080  ;;  %v3697_v37 = vmul.f32 %v14079_v3, %v14071_v21  ;;  %v4359_v3 = vld [vmem:[%s17716_s13] sm:$0xff] }
 0xf44   :  { %v3698_v38 = vmul.f32 %v14081_v36, %v14073_v22  ;;  %v4361_v36 = vld [vmem:[%s17716_s13 + $0x10] sm:$0xff] }
 0xf45   :  { %13696 = vmatmul.mubr.msk.f32.vlgmr.msra.gmra.mxu0 %vm331_vm2, %v3697_v37 }
 0xf46   :  { %13701 = vmatmul.mubr.msk.f32.vlgmr.msra.gmra.mxu1 %vm331_vm2, %v3698_v38  ;;  %13704 = vmatpush3.msra.mxu0 %v3854_v41 }
 0xf47   :  { %v14083_v44 = vpop.eup %14082  ;;  %13709 = vmatpush3.msra.mxu1 %v3930_v42  ;;  %13705 = vmatprep.mubr.msk.f32.mxu0 %vm14179_vm1, %v14178_v27 }
 0xf48   :  { %v14085_v45 = vpop.eup %14084  ;;  %13710 = vmatprep.mubr.msk.f32.mxu1 %vm14179_vm1, %v14178_v27  ;;  %v3699_v49 = vmul.f32 %v14083_v44, %v14075_v54  ;;  %13713 = vmatprep.subr.mxu0 %v14178_v27  ;;  %v4410_v54 = vld [vmem:[%s17716_s13 + $0x198] sm:$0xff] }
 0xf49   :  { %v3700_v50 = vmul.f32 %v14085_v45, %v14077_v25  ;;  %13718 = vmatprep.subr.mxu1 %v14178_v27  ;;  %v4409_v25 = vld [vmem:[%s17716_s13 + $0x190] sm:$0xff] }
 0xf4a   :  { %13706 = vmatmul.mubr.msk.f32.vlgmr.msra.gmra.mxu0 %vm331_vm2, %v3699_v49 }
 0xf4b   :  { %13711 = vmatmul.mubr.msk.f32.vlgmr.msra.gmra.mxu1 %vm331_vm2, %v3700_v50  ;;  %13714 = vmatpush3.msra.mxu0 %v14750_v8 }
 0xf4c   :  { %13715 = vmatprep.mubr.msk.f32.mxu0 %vm14179_vm1, %v14178_v27  ;;  %13719 = vmatpush3.msra.mxu1 %v14756_v14 }
 0xf4d   :  { %13720 = vmatprep.mubr.msk.f32.mxu1 %vm14179_vm1, %v14178_v27  ;;  %13723 = vmatprep.subr.mxu0 %v14178_v27 }
 0xf4e   :  { %13728 = vmatprep.subr.mxu1 %v14178_v27 }
 0xf6f   :  { %v4319_v62 = vpop.xlane.xlu1 %4318 }
 0xf70   :  { %v4323_v4 = vmul.f32 0.03125, %v4319_v62  ;;  %v4380_v62 = vld [vmem:[%s17716_s13 + $0xa8] sm:$0xff] }
 0xf72   :  { %v4325_v17 = vsub.f32 %v14854_v32, %v4323_v4  ;;  %v4376_v32 = vld [vmem:[%s17716_s13 + $0x88] sm:$0xff]  ;;  %v4366_v4 = vld [vmem:[%s17716_s13 + $0x38] sm:$0xff] }
 0xf74   :  { %v4327_v22 = vmul.f32 %v4325_v17, %v4325_v17 }
 0xf76   :  { %v4329_v23 = vsel %vm90_vm0, %v4327_v22, 0.0 }
0x1005   :  { %v3773_v55 = vpop.f32.mrf.mxu0 }
0x1006   :  { %v3849_v10 = vpop.f32.mrf.mxu1  ;;  %13716 = vmatmul.mubr.msk.f32.vlgmr.msra.gmra.mxu0 %vm331_vm2, %v3773_v55 }
0x1007   :  { %13721 = vmatmul.mubr.msk.f32.vlgmr.msra.gmra.mxu1 %vm331_vm2, %v3849_v10  ;;  %v13697_v5 = vpop.f32.mrf.mxu0  ;;  %13724 = vmatpush3.msra.mxu0 %v14771_v16  ;;  %v12154_v10 = vld [vmem:[%s17717_s19] ss:$0 sm:$0xff] }
0x1008   :  { %v13702_v8 = vpop.f32.mrf.mxu1  ;;  %13725 = vmatprep.mubr.msk.f32.mxu0 %vm14179_vm1, %v14178_v27  ;;  %13729 = vmatpush3.msra.mxu1 %v14781_v19 }
0x1009   :  { %13730 = vmatprep.mubr.msk.f32.mxu1 %vm14179_vm1, %v14178_v27  ;;  %4537 = vmatprep.subr.mxu0 %v4408_v51  ;;  %v12155_v8 = vld [vmem:[%s17718_s20] ss:$0 sm:$0xff] }
0x100a   :  { %v3925_v14 = vpop.f32.mrf.mxu0  ;;  %4614 = vmatprep.subr.mxu1 %v4410_v54  ;;  %v4415_v51 = vld [vmem:[%s17716_s13 + $0x1c0] sm:$0xff]  ;;  %v4417_v54 = vld [vmem:[%s17716_s13 + $0x1d0] sm:$0xff] }
0x100b   :  { %v4001_v39 = vpop.f32.mrf.mxu1  ;;  %13726 = vmatmul.mubr.msk.f32.vlgmr.msra.gmra.mxu0 %vm331_vm2, %v3925_v14 }
0x100c   :  { %13731 = vmatmul.mubr.msk.f32.vlgmr.msra.gmra.mxu1 %vm331_vm2, %v4001_v39  ;;  %v13707_v56 = vpop.f32.mrf.mxu0  ;;  %4577 = vmatprep.mubr.f32.mxu0 %v14178_v27 }
0x100d   :  { %v13712_v57 = vpop.f32.mrf.mxu1  ;;  %4654 = vmatprep.mubr.f32.mxu1 %v14178_v27  ;;  %4615 = vmatpush1.msra.mxu1 %v4409_v25  ;;  %v4412_v56 = vld [vmem:[%s17716_s13 + $0x1a8] sm:$0xff]  ;;  %v4402_v25 = vld [vmem:[%s17716_s13 + $0x158] sm:$0xff] }
0x100e   :  { %4616 = vmatprep.subr.mxu1 %v4394_v31  ;;  %v4414_v57 = vld [vmem:[%s17716_s13 + $0x1b8] sm:$0xff]  ;;  %v4401_v31 = vld [vmem:[%s17716_s13 + $0x150] sm:$0xff] }
0x10c6   :  { %v4074_v16 = vpop.f32.mrf.mxu0 }
0x10c7   :  { %v4147_v58 = vpop.f32.mrf.mxu1  ;;  %v4297_v59 = vsel %vm90_vm0, %v4074_v16, 0.0  ;;  %v4411_v16 = vld [vmem:[%s17716_s13 + $0x1a0] sm:$0xff] }
0x10c8   :  { %v4298_v19 = vsel %vm90_vm0, %v4147_v58, 0.0  ;;  %v13717_v60 = vpop.f32.mrf.mxu0  ;;  %v4413_v58 = vld [vmem:[%s17716_s13 + $0x1b0] sm:$0xff] }
0x10c9   :  { %v13722_v61 = vpop.f32.mrf.mxu1  ;;  %v4299_v63 = vadd.f32 %v4298_v19, %v4297_v59  ;;  %v4396_v59 = vld [vmem:[%s17716_s13 + $0x128] sm:$0xff]  ;;  %v4398_v19 = vld [vmem:[%s17716_s13 + $0x138] sm:$0xff]  ;;  %v4395_v60 = vld [vmem:[%s17716_s13 + $0x120] sm:$0xff] }
0x10ca   :  { %v4397_v61 = vld [vmem:[%s17716_s13 + $0x130] sm:$0xff] }
0x10cb   :  { %v4220_v0 = vpop.f32.mrf.mxu0 }
0x10cc   :  { %v4300_v1 = vsel %vm90_vm0, %v4220_v0, 0.0  ;;  %v4293_v40 = vpop.f32.mrf.mxu1  ;;  %v4379_v0 = vld [vmem:[%s17716_s13 + $0xa0] sm:$0xff] }
0x10cd   :  { %v4301_v43 = vadd.f32 %v4300_v1, %v4299_v63  ;;  %v13727_v2 = vpop.f32.mrf.mxu0  ;;  %v4302_v6 = vsel %vm90_vm0, %v4293_v40, 0.0  ;;  %v4382_v63 = vld [vmem:[%s17716_s13 + $0xb8] sm:$0xff]  ;;  %v4381_v1 = vld [vmem:[%s17716_s13 + $0xb0] sm:$0xff]  ;;  %v4364_v40 = vld [vmem:[%s17716_s13 + $0x28] sm:$0xff] }
0x10ce   :  { %v13732_v7 = vpop.f32.mrf.mxu1  ;;  %v4365_v2 = vld [vmem:[%s17716_s13 + $0x30] sm:$0xff] }
0x10cf   :  { %v4303_v13 = vadd.f32 %v4302_v6, %v4301_v43  ;;  %v4363_v43 = vld [vmem:[%s17716_s13 + $0x20] sm:$0xff]  ;;  %v4416_v6 = vld [vmem:[%s17716_s13 + $0x1c8] sm:$0xff]  ;;  %v4418_v7 = vld [vmem:[%s17716_s13 + $0x1d8] sm:$0xff] }
0x10d1   :  { %v4305_v47 = vadd.f32 %v4303_v13, %v14669_v9  ;;  %v4407_v9 = vld [vmem:[%s17716_s13 + $0x180] sm:$0xff] }
0x10d2   :  { %4538 = vmatpush1.msra.mxu0 %v4407_v9  ;;  %v4400_v9 = vld [vmem:[%s17716_s13 + $0x148] sm:$0xff] }
0x10d3   :  { %v4314_v12 = vadd.f32 %v14851_v29, %v4305_v47  ;;  %4539 = vmatprep.subr.mxu0 %v4392_v26  ;;  %v4393_v29 = vld [vmem:[%s17716_s13 + $0x110] sm:$0xff]  ;;  %v4399_v26 = vld [vmem:[%s17716_s13 + $0x140] sm:$0xff] }
0x10d4   :  { %4540 = vmatpush1.msra.mxu0 %v4391_v15  ;;  %4617 = vmatpush1.msra.mxu1 %v4393_v29  ;;  %v4384_v15 = vld [vmem:[%s17716_s13 + $0xc8] sm:$0xff]  ;;  %v4386_v29 = vld [vmem:[%s17716_s13 + $0xd8] sm:$0xff] }
0x10d5   :  { %v4320_v21 = vsel %vm90_vm0, %v4314_v12, 0.0  ;;  %4541 = vmatprep.subr.mxu0 %v4376_v32  ;;  %4618 = vmatprep.subr.mxu1 %v4378_v30  ;;  %v4383_v32 = vld [vmem:[%s17716_s13 + $0xc0] sm:$0xff]  ;;  %v4385_v30 = vld [vmem:[%s17716_s13 + $0xd0] sm:$0xff] }
0x10d6   :  { %4321 = vadd.xlane.f32.xlu0 %v4320_v21  ;;  %4542 = vmatpush1.msra.mxu0 %v4375_v28  ;;  %v4368_v28 = vld [vmem:[%s17716_s13 + $0x48] sm:$0xff] }
0x10d7   :  { %4619 = vmatpush1.msra.mxu1 %v4377_v33  ;;  %4543 = vmatprep.subr.mxu0 %v4360_v34  ;;  %v4370_v33 = vld [vmem:[%s17716_s13 + $0x58] sm:$0xff]  ;;  %v4367_v34 = vld [vmem:[%s17716_s13 + $0x40] sm:$0xff] }
0x10d8   :  { %4620 = vmatprep.subr.mxu1 %v4362_v35  ;;  %4544 = vmatpush1.msra.mxu0 %v4359_v3  ;;  %v4369_v35 = vld [vmem:[%s17716_s13 + $0x50] sm:$0xff]  ;;  %v4420_v3 = vld [vmem:[%s17716_s13 + $0x1e8] sm:$0xff] }
0x10d9   :  { %4621 = vmatpush1.msra.mxu1 %v4361_v36  ;;  %4691 = vmatprep.subr.mxu0 %v4412_v56  ;;  %v4422_v36 = vld [vmem:[%s17716_s13 + $0x1f8] sm:$0xff]  ;;  %v4373_v56 = vld [vmem:[%s17716_s13 + $0x70] sm:$0xff] }
0x10da   :  { %4330 = vadd.xlane.f32.xlu0 %v4329_v23  ;;  %4768 = vmatprep.subr.mxu1 %v4414_v57  ;;  %v5192_v57 = vld [vmem:[%s17719_s15 + $0xf8] sm:$0xff] }
0x115f   :  { %v4322_v37 = vpop.xlane.xlu0 %4321 }
0x1160   :  { %v4324_v38 = vmul.f32 0.03125, %v4322_v37  ;;  %v4419_v37 = vld [vmem:[%s17716_s13 + $0x1e0] sm:$0xff] }
0x1162   :  { %v4326_v41 = vsub.f32 %v4314_v12, %v4324_v38  ;;  %v4421_v38 = vld [vmem:[%s17716_s13 + $0x1f0] sm:$0xff] }
0x1163   :  { %v4331_v42 = vpop.xlane.xlu0 %4330 }
0x1164   :  { %v4335_v44 = vmul.f32 0.03125, %v4331_v42  ;;  %v4328_v45 = vmul.f32 %v4326_v41, %v4326_v41  ;;  %v4406_v42 = vld [vmem:[%s17716_s13 + $0x178] sm:$0xff] }
0x1166   :  { %v4337_v49 = vadd.f32 1e-05, %v4335_v44  ;;  %v4332_v50 = vsel %vm90_vm0, %v4328_v45, 0.0  ;;  %v4403_v44 = vld [vmem:[%s17716_s13 + $0x160] sm:$0xff]  ;;  %v4405_v45 = vld [vmem:[%s17716_s13 + $0x170] sm:$0xff] }
0x1167   :  { %4333 = vadd.xlane.f32.xlu1 %v4332_v50  ;;  %v4390_v50 = vld [vmem:[%s17716_s13 + $0xf8] sm:$0xff] }
0x1168   :  { %14086 = vrsqrt.f32 %v4337_v49  ;;  %v4388_v49 = vld [vmem:[%s17716_s13 + $0xe8] sm:$0xff] }
0x1175   :  { %v14087_v55 = vpop.eup %14086 }
0x1176   :  { %v4341_v5 = vmul.f32 %v14087_v55, %v4325_v17  ;;  %v4387_v55 = vld [vmem:[%s17716_s13 + $0xe0] sm:$0xff] }
0x1178   :  { %v4349_v14 = vmul.f32 %v12154_v10, %v4341_v5  ;;  %v4372_v5 = vld [vmem:[%s17716_s13 + $0x68] sm:$0xff] }
0x117a   :  { %v14952_v39 = vadd.f32 %v12155_v8, %v4349_v14  ;;  %v4371_v14 = vld [vmem:[%s17716_s13 + $0x60] sm:$0xff] }
0x117c   :  { %12156 = vmatmul.mubr.msk.f32.vlgmr.msra.gmra.mxu0 %vm90_vm0, %v14952_v39  ;;  %12158 = vmatmul.mubr.msk.f32.vlgmr.msra.gmra.mxu1 %vm90_vm0, %v14952_v39 }
0x117d   :  { %4583 = vmatprep.mubr.f32.mxu0 %v14178_v27  ;;  %4660 = vmatprep.mubr.f32.mxu1 %v14178_v27 }
0x117e   :  { %4692 = vmatpush1.msra.mxu0 %v4411_v16  ;;  %4769 = vmatpush1.msra.mxu1 %v4413_v58  ;;  %v5224_v16 = vld [vmem:[%s17719_s15 + $0x1f8] sm:$0xff] }
0x117f   :  { %4693 = vmatprep.subr.mxu0 %v4396_v59  ;;  %4770 = vmatprep.subr.mxu1 %v4398_v19  ;;  %v5176_v58 = vld [vmem:[%s17719_s15 + $0x78] sm:$0xff]  ;;  %v5191_v19 = vld [vmem:[%s17719_s15 + $0xf0] sm:$0xff] }
0x1180   :  { %4694 = vmatpush1.msra.mxu0 %v4395_v60  ;;  %4771 = vmatpush1.msra.mxu1 %v4397_v61  ;;  %v5208_v59 = vld [vmem:[%s17719_s15 + $0x178] sm:$0xff]  ;;  %v5223_v60 = vld [vmem:[%s17719_s15 + $0x1f0] sm:$0xff] }
0x1181   :  { %4695 = vmatprep.subr.mxu0 %v4380_v62  ;;  %4772 = vmatprep.subr.mxu1 %v4382_v63  ;;  %v5175_v61 = vld [vmem:[%s17719_s15 + $0x70] sm:$0xff]  ;;  %v5190_v63 = vld [vmem:[%s17719_s15 + $0xe8] sm:$0xff] }
0x1182   :  { %4696 = vmatpush1.msra.mxu0 %v4379_v0  ;;  %4773 = vmatpush1.msra.mxu1 %v4381_v1  ;;  %v5207_v62 = vld [vmem:[%s17719_s15 + $0x170] sm:$0xff]  ;;  %v5222_v0 = vld [vmem:[%s17719_s15 + $0x1e8] sm:$0xff] }
0x1183   :  { %4697 = vmatprep.subr.mxu0 %v4364_v40  ;;  %4774 = vmatprep.subr.mxu1 %v4366_v4  ;;  %v5174_v1 = vld [vmem:[%s17719_s15 + $0x68] sm:$0xff]  ;;  %v5189_v4 = vld [vmem:[%s17719_s15 + $0xe0] sm:$0xff] }
0x1184   :  { %4698 = vmatpush1.msra.mxu0 %v4363_v43  ;;  %4775 = vmatpush1.msra.mxu1 %v4365_v2  ;;  %v5206_v40 = vld [vmem:[%s17719_s15 + $0x168] sm:$0xff]  ;;  %v5221_v43 = vld [vmem:[%s17719_s15 + $0x1e0] sm:$0xff] }
0x1185   :  { %4845 = vmatprep.subr.mxu0 %v4416_v6  ;;  %4922 = vmatprep.subr.mxu1 %v4418_v7  ;;  %v5173_v2 = vld [vmem:[%s17719_s15 + $0x60] sm:$0xff]  ;;  %v5188_v7 = vld [vmem:[%s17719_s15 + $0xd8] sm:$0xff] }
0x1186   :  { %v5205_v6 = vld [vmem:[%s17719_s15 + $0x160] sm:$0xff] }
0x11f0   :  { %v4334_v13 = vpop.xlane.xlu1 %4333 }
0x11f1   :  { %v4336_v17 = vmul.f32 0.03125, %v4334_v13  ;;  %v5220_v13 = vld [vmem:[%s17719_s15 + $0x1d8] sm:$0xff] }
0x11f3   :  { %v4338_v47 = vadd.f32 1e-05, %v4336_v17  ;;  %v5172_v17 = vld [vmem:[%s17719_s15 + $0x58] sm:$0xff] }
0x11f5   :  { %14088 = vrsqrt.f32 %v4338_v47  ;;  %v5204_v47 = vld [vmem:[%s17719_s15 + $0x158] sm:$0xff] }
0x1202   :  { %v14089_v12 = vpop.eup %14088 }
0x1203   :  { %v4342_v21 = vmul.f32 %v14089_v12, %v4326_v41  ;;  %v4404_v41 = vld [vmem:[%s17716_s13 + $0x168] sm:$0xff]  ;;  %v5187_v12 = vld [vmem:[%s17719_s15 + $0xd0] sm:$0xff] }
0x1205   :  { %v4350_v22 = vmul.f32 %v12154_v10, %v4342_v21  ;;  %v4389_v10 = vld [vmem:[%s17716_s13 + $0xf0] sm:$0xff] }
0x1206   :  { %v5219_v21 = vld [vmem:[%s17719_s15 + $0x1d0] sm:$0xff] }
0x1207   :  { %v15014_v23 = vadd.f32 %v12155_v8, %v4350_v22  ;;  %v4374_v8 = vld [vmem:[%s17716_s13 + $0x78] sm:$0xff]  ;;  %v5171_v22 = vld [vmem:[%s17719_s15 + $0x50] sm:$0xff] }
0x1209   :  { %12157 = vmatmul.mubr.msk.f32.gmra.mxu0 %vm90_vm0, %v15014_v23  ;;  %12159 = vmatmul.mubr.msk.f32.gmra.mxu1 %vm90_vm0, %v15014_v23 }
0x120a   :  { %4731 = vmatprep.mubr.f32.mxu0 %v14178_v27  ;;  %4808 = vmatprep.mubr.f32.mxu1 %v14178_v27 }
0x120d   :  { %12160 = vmatmul.mubr.msk.f32.vlgmr.msra.gmra.mxu0 %vm90_vm0, %v14952_v39  ;;  %12162 = vmatmul.mubr.msk.f32.vlgmr.msra.gmra.mxu1 %vm90_vm0, %v14952_v39 }
0x120e   :  { %4846 = vmatpush1.msra.mxu0 %v4415_v51  ;;  %4923 = vmatpush1.msra.mxu1 %v4417_v54  ;;  %v5203_v51 = vld [vmem:[%s17719_s15 + $0x150] sm:$0xff]  ;;  %v5186_v54 = vld [vmem:[%s17719_s15 + $0xc8] sm:$0xff] }
0x120f   :  { %4847 = vmatprep.subr.mxu0 %v4400_v9  ;;  %4924 = vmatprep.subr.mxu1 %v4402_v25  ;;  %v5218_v9 = vld [vmem:[%s17719_s15 + $0x1c8] sm:$0xff] }
0x1210   :  { %4737 = vmatprep.mubr.f32.mxu0 %v14178_v27  ;;  %4814 = vmatprep.mubr.f32.mxu1 %v14178_v27  ;;  %v5170_v25 = vld [vmem:[%s17719_s15 + $0x48] sm:$0xff] }
0x1211   :  { %4848 = vmatpush1.msra.mxu0 %v4399_v26  ;;  %4925 = vmatpush1.msra.mxu1 %v4401_v31  ;;  %v5202_v26 = vld [vmem:[%s17719_s15 + $0x148] sm:$0xff]  ;;  %v4427_v31 = vlaneseq }
0x1212   :  { %12161 = vmatmul.mubr.msk.f32.gmra.mxu0 %vm90_vm0, %v15014_v23  ;;  %12163 = vmatmul.mubr.msk.f32.gmra.mxu1 %vm90_vm0, %v15014_v23 }
0x1213   :  { %4849 = vmatprep.subr.mxu0 %v4384_v15  ;;  %4926 = vmatprep.subr.mxu1 %v4386_v29  ;;  %v5185_v15 = vld [vmem:[%s17719_s15 + $0xc0] sm:$0xff] }
0x1214   :  { %4850 = vmatpush1.msra.mxu0 %v4383_v32  ;;  %4927 = vmatpush1.msra.mxu1 %v4385_v30  ;;  %v5217_v29 = vld [vmem:[%s17719_s15 + $0x1c0] sm:$0xff] }
0x1215   :  { %4851 = vmatprep.subr.mxu0 %v4368_v28  ;;  %4928 = vmatprep.subr.mxu1 %v4370_v33  ;;  %v5169_v32 = vld [vmem:[%s17719_s15 + $0x40] sm:$0xff]  ;;  %v5184_v28 = vld [vmem:[%s17719_s15 + $0xb8] sm:$0xff] }
0x1216   :  { %4852 = vmatpush1.msra.mxu0 %v4367_v34  ;;  %4885 = vmatprep.mubr.f32.mxu0 %v14178_v27  ;;  %v5201_v30 = vld [vmem:[%s17719_s15 + $0x140] sm:$0xff]  ;;  %v5216_v33 = vld [vmem:[%s17719_s15 + $0x1b8] sm:$0xff] }
0x1217   :  { %4929 = vmatpush1.msra.mxu1 %v4369_v35  ;;  %4962 = vmatprep.mubr.f32.mxu1 %v14178_v27  ;;  %v5168_v34 = vld [vmem:[%s17719_s15 + $0x38] sm:$0xff] }
0x1218   :  { %12164 = vmatmul.mubr.msk.f32.vlgmr.msra.gmra.mxu0 %vm90_vm0, %v14952_v39  ;;  %12166 = vmatmul.mubr.msk.f32.vlgmr.msra.gmra.mxu1 %vm90_vm0, %v14952_v39  ;;  %v5200_v35 = vld [vmem:[%s17719_s15 + $0x138] sm:$0xff] }
0x1219   :  { %4999 = vmatprep.subr.mxu0 %v4420_v3  ;;  %5076 = vmatprep.subr.mxu1 %v4422_v36  ;;  %v15254_v3 = vshrl.u32 %v4427_v31, 7  ;;  %v5183_v36 = vld [vmem:[%s17719_s15 + $0xb0] sm:$0xff]  ;;  %v5209_v31 = vld [vmem:[%s17719_s15 + $0x180] sm:$0xff] }
0x121a   :  { %5000 = vmatpush1.msra.mxu0 %v4419_v37  ;;  %5077 = vmatpush1.msra.mxu1 %v4421_v38  ;;  %v5215_v37 = vld [vmem:[%s17719_s15 + $0x1b0] sm:$0xff] }
0x121b   :  { %5001 = vmatprep.subr.mxu0 %v4404_v41  ;;  %5078 = vmatprep.subr.mxu1 %v4406_v42  ;;  %v5167_v38 = vld [vmem:[%s17719_s15 + $0x30] sm:$0xff]  ;;  %v15269_v42 = vsub.s32 1, %v15254_v3 }
0x121c   :  { %4891 = vmatprep.mubr.f32.mxu0 %v14178_v27  ;;  %4968 = vmatprep.mubr.f32.mxu1 %v14178_v27  ;;  %v5199_v41 = vld [vmem:[%s17719_s15 + $0x130] sm:$0xff] }
0x121d   :  { %5002 = vmatpush1.msra.mxu0 %v4403_v44  ;;  %5079 = vmatpush1.msra.mxu1 %v4405_v45  ;;  %v15272_v44 = vsub.s32 3, %v15254_v3  ;;  %v5182_v45 = vld [vmem:[%s17719_s15 + $0xa8] sm:$0xff] }
0x121e   :  { %12165 = vmatmul.mubr.msk.f32.gmra.mxu0 %vm90_vm0, %v15014_v23  ;;  %12167 = vmatmul.mubr.msk.f32.gmra.mxu1 %vm90_vm0, %v15014_v23 }
0x121f   :  { %5003 = vmatprep.subr.mxu0 %v4388_v49  ;;  %5080 = vmatprep.subr.mxu1 %v4390_v50  ;;  %v5214_v49 = vld [vmem:[%s17719_s15 + $0x1a8] sm:$0xff] }
0x1220   :  { %5004 = vmatpush1.msra.mxu0 %v4387_v55  ;;  %5081 = vmatpush1.msra.mxu1 %v4389_v10  ;;  %v5166_v50 = vld [vmem:[%s17719_s15 + $0x28] sm:$0xff]  ;;  %v5181_v10 = vld [vmem:[%s17719_s15 + $0xa0] sm:$0xff] }
0x1221   :  { %5005 = vmatprep.subr.mxu0 %v4372_v5  ;;  %5082 = vmatprep.subr.mxu1 %v4374_v8  ;;  %v5198_v55 = vld [vmem:[%s17719_s15 + $0x128] sm:$0xff]  ;;  %v5213_v5 = vld [vmem:[%s17719_s15 + $0x1a0] sm:$0xff] }
0x1222   :  { %5006 = vmatpush1.msra.mxu0 %v4371_v14  ;;  %5039 = vmatprep.mubr.f32.mxu0 %v14178_v27  ;;  %v15295_v8 = vld [vmem:[%s17720_s14] sm:$0xff]  ;;  %v15298_v14 = vsub.s32 0, %v15254_v3 }
0x1223   :  { %5083 = vmatpush1.msra.mxu1 %v4373_v56  ;;  %5116 = vmatprep.mubr.f32.mxu1 %v14178_v27  ;;  %v15301_v56 = vsub.s32 2, %v15254_v3 }
0x1224   :  { %12168 = vmatmul.mubr.msk.f32.vlgmr.msra.gmra.mxu0 %vm90_vm0, %v14952_v39  ;;  %12170 = vmatmul.mubr.msk.f32.vlgmr.msra.gmra.mxu1 %vm90_vm0, %v14952_v39 }
0x1225   :  { %5045 = vmatprep.mubr.f32.mxu0 %v14178_v27  ;;  %5122 = vmatprep.mubr.f32.mxu1 %v14178_v27 }
0x1226   :  { %12738 = vmatprep.subr.mxu0 %v5192_v57  ;;  %12776 = vmatprep.subr.mxu1 %v5224_v16  ;;  %v5165_v57 = vld [vmem:[%s17719_s15 + $0x20] sm:$0xff] }
0x1227   :  { %12739 = vmatpush3.msra.mxu0 %v5176_v58  ;;  %12777 = vmatpush3.msra.mxu1 %v5208_v59  ;;  %v5197_v16 = vld [vmem:[%s17719_s15 + $0x120] sm:$0xff]  ;;  %v15311_v58 = vrot.slane %v15295_v8, %v15269_v42  ;;  %v15315_v59 = vrot.slane %v15295_v8, %v15272_v44 }
0x1228   :  { %12169 = vmatmul.mubr.msk.f32.gmra.mxu0 %vm90_vm0, %v15014_v23  ;;  %12171 = vmatmul.mubr.msk.f32.gmra.mxu1 %vm90_vm0, %v15014_v23 }
0x1229   :  { %12740 = vmatprep.subr.mxu0 %v5191_v19  ;;  %12778 = vmatprep.subr.mxu1 %v5223_v60 }
0x122a   :  { %12741 = vmatpush3.msra.mxu0 %v5175_v61  ;;  %12779 = vmatpush3.msra.mxu1 %v5207_v62  ;;  %v5180_v61 = vld [vmem:[%s17719_s15 + $0x98] sm:$0xff] }
0x122b   :  { %12742 = vmatprep.subr.mxu0 %v5190_v63  ;;  %12780 = vmatprep.subr.mxu1 %v5222_v0  ;;  %v5212_v62 = vld [vmem:[%s17719_s15 + $0x198] sm:$0xff] }
0x122c   :  { %12743 = vmatpush3.msra.mxu0 %v5174_v1  ;;  %12781 = vmatpush3.msra.mxu1 %v5206_v40  ;;  %v5164_v63 = vld [vmem:[%s17719_s15 + $0x18] sm:$0xff]  ;;  %v15331_v1 = vrot.slane %v15295_v8, %v15298_v14  ;;  %v15335_v40 = vrot.slane %v15295_v8, %v15301_v56 }
0x122d   :  { %12744 = vmatprep.subr.mxu0 %v5189_v4  ;;  %12782 = vmatprep.subr.mxu1 %v5221_v43  ;;  %v5196_v0 = vld [vmem:[%s17719_s15 + $0x118] sm:$0xff] }
0x122e   :  { %12745 = vmatpush3.msra.mxu0 %v5173_v2  ;;  %12783 = vmatpush3.msra.mxu1 %v5205_v6  ;;  %v5179_v2 = vld [vmem:[%s17719_s15 + $0x90] sm:$0xff] }
0x122f   :  { %12746 = vmatprep.subr.mxu0 %v5188_v7  ;;  %12784 = vmatprep.subr.mxu1 %v5220_v13  ;;  %v5211_v6 = vld [vmem:[%s17719_s15 + $0x190] sm:$0xff] }
0x1230   :  { %12747 = vmatpush3.msra.mxu0 %v5172_v17  ;;  %12785 = vmatpush3.msra.mxu1 %v5204_v47  ;;  %v5163_v17 = vld [vmem:[%s17719_s15 + $0x10] sm:$0xff] }
0x1231   :  { %12748 = vmatprep.subr.mxu0 %v5187_v12  ;;  %12786 = vmatprep.subr.mxu1 %v5219_v21  ;;  %v5195_v47 = vld [vmem:[%s17719_s15 + $0x110] sm:$0xff]  ;;  %v5178_v12 = vld [vmem:[%s17719_s15 + $0x88] sm:$0xff] }
0x1232   :  { %12749 = vmatpush3.msra.mxu0 %v5171_v22  ;;  %12787 = vmatpush3.msra.mxu1 %v5203_v51  ;;  %v5210_v21 = vld [vmem:[%s17719_s15 + $0x188] sm:$0xff] }
0x1233   :  { %12750 = vmatprep.subr.mxu0 %v5186_v54  ;;  %12788 = vmatprep.subr.mxu1 %v5218_v9  ;;  %v5162_v22 = vld [vmem:[%s17719_s15 + $0x8] sm:$0xff] }
0x1234   :  { %12751 = vmatpush3.msra.mxu0 %v5170_v25  ;;  %12789 = vmatpush3.msra.mxu1 %v5202_v26  ;;  %v5194_v51 = vld [vmem:[%s17719_s15 + $0x108] sm:$0xff]  ;;  %v5177_v26 = vld [vmem:[%s17719_s15 + $0x80] sm:$0xff] }
0x1235   :  { %12752 = vmatprep.subr.mxu0 %v5185_v15  ;;  %12790 = vmatprep.subr.mxu1 %v5217_v29  ;;  %v5161_v29 = vld [vmem:[%s17719_s15] sm:$0xff] }
0x1236   :  { %12753 = vmatpush3.msra.mxu0 %v5169_v32  ;;  %12791 = vmatpush3.msra.mxu1 %v5201_v30  ;;  %v5193_v32 = vld [vmem:[%s17719_s15 + $0x100] sm:$0xff] }
0x1237   :  { %12754 = vmatprep.subr.mxu0 %v5184_v28  ;;  %12792 = vmatprep.subr.mxu1 %v5216_v33  ;;  %v5256_v33 = vld [vmem:[%s17719_s15 + $0x2f8] sm:$0xff] }
0x1238   :  { %12755 = vmatpush3.msra.mxu0 %v5168_v34  ;;  %12793 = vmatpush3.msra.mxu1 %v5200_v35  ;;  %v5288_v34 = vld [vmem:[%s17719_s15 + $0x3f8] sm:$0xff] }
0x1239   :  { %12756 = vmatprep.subr.mxu0 %v5183_v36  ;;  %12794 = vmatprep.subr.mxu1 %v5215_v37  ;;  %v5240_v35 = vld [vmem:[%s17719_s15 + $0x278] sm:$0xff]  ;;  %v5255_v37 = vld [vmem:[%s17719_s15 + $0x2f0] sm:$0xff] }
0x123a   :  { %12757 = vmatpush3.msra.mxu0 %v5167_v38  ;;  %12795 = vmatpush3.msra.mxu1 %v5199_v41  ;;  %v5272_v36 = vld [vmem:[%s17719_s15 + $0x378] sm:$0xff]  ;;  %v5287_v38 = vld [vmem:[%s17719_s15 + $0x3f0] sm:$0xff] }
0x123b   :  { %12758 = vmatprep.subr.mxu0 %v5182_v45  ;;  %12796 = vmatprep.subr.mxu1 %v5214_v49  ;;  %v5239_v41 = vld [vmem:[%s17719_s15 + $0x270] sm:$0xff]  ;;  %v5254_v49 = vld [vmem:[%s17719_s15 + $0x2e8] sm:$0xff] }
0x123c   :  { %12759 = vmatpush3.msra.mxu0 %v5166_v50  ;;  %12797 = vmatpush3.msra.mxu1 %v5198_v55  ;;  %v4579_v19 = vpop.f32.mrf.mxu0  ;;  %v4656_v60 = vpop.f32.mrf.mxu1  ;;  %v5271_v45 = vld [vmem:[%s17719_s15 + $0x370] sm:$0xff]  ;;  %v5286_v50 = vld [vmem:[%s17719_s15 + $0x3e8] sm:$0xff] }
0x123d   :  { %12760 = vmatprep.subr.mxu0 %v5181_v10  ;;  %12798 = vmatprep.subr.mxu1 %v5213_v5  ;;  %v4580_v54 = vadd.f32 %v4579_v19, %v15331_v1  ;;  %v4657_v9 = vadd.f32 %v4656_v60, %v15335_v40  ;;  %v5238_v55 = vld [vmem:[%s17719_s15 + $0x268] sm:$0xff]  ;;  %v5253_v5 = vld [vmem:[%s17719_s15 + $0x2e0] sm:$0xff]  ;;  %v5252_v60 = vld [vmem:[%s17719_s15 + $0x2d8] sm:$0xff] }
0x123e   :  { %12761 = vmatpush3.msra.mxu0 %v5165_v57  ;;  %12799 = vmatpush3.msra.mxu1 %v5197_v16  ;;  %v4581_v4 = vpop.f32.mrf.mxu0  ;;  %v4658_v43 = vpop.f32.mrf.mxu1  ;;  %v5270_v10 = vld [vmem:[%s17719_s15 + $0x368] sm:$0xff]  ;;  %v5285_v57 = vld [vmem:[%s17719_s15 + $0x3e0] sm:$0xff] }
0x123f   :  { %12762 = vmatprep.subr.mxu0 %v5180_v61  ;;  %12800 = vmatprep.subr.mxu1 %v5212_v62  ;;  %v4582_v7 = vadd.f32 %v4581_v4, %v15311_v58  ;;  %v4659_v13 = vadd.f32 %v4658_v43, %v15315_v59  ;;  %v5129_v30 = vmax.f32 %v4580_v54, 0.0  ;;  %v5131_v28 = vmax.f32 %v4657_v9, 0.0  ;;  %v5237_v16 = vld [vmem:[%s17719_s15 + $0x260] sm:$0xff]  ;;  %v5284_v61 = vld [vmem:[%s17719_s15 + $0x3d8] sm:$0xff]  ;;  %v5283_v4 = vld [vmem:[%s17719_s15 + $0x3d0] sm:$0xff] }
0x1240   :  { %12763 = vmatpush3.msra.mxu0 %v5164_v63  ;;  %12801 = vmatpush3.msra.mxu1 %v5196_v0  ;;  %v5269_v19 = vld [vmem:[%s17719_s15 + $0x360] sm:$0xff]  ;;  %v5236_v62 = vld [vmem:[%s17719_s15 + $0x258] sm:$0xff]  ;;  %v5251_v0 = vld [vmem:[%s17719_s15 + $0x2d0] sm:$0xff] }
0x1241   :  { %12764 = vmatprep.subr.mxu0 %v5179_v2  ;;  %12802 = vmatprep.subr.mxu1 %v5211_v6  ;;  %v5130_v25 = vmax.f32 %v4582_v7, 0.0  ;;  %v5132_v15 = vmax.f32 %v4659_v13, 0.0  ;;  %v5268_v63 = vld [vmem:[%s17719_s15 + $0x358] sm:$0xff]  ;;  %v5235_v43 = vld [vmem:[%s17719_s15 + $0x250] sm:$0xff]  ;;  %v5250_v6 = vld [vmem:[%s17719_s15 + $0x2c8] sm:$0xff] }
0x1242   :  { %12765 = vmatpush3.msra.mxu0 %v5163_v17  ;;  %12803 = vmatpush3.msra.mxu1 %v5195_v47  ;;  %v5267_v2 = vld [vmem:[%s17719_s15 + $0x350] sm:$0xff]  ;;  %v5282_v7 = vld [vmem:[%s17719_s15 + $0x3c8] sm:$0xff]  ;;  %v5249_v47 = vld [vmem:[%s17719_s15 + $0x2c0] sm:$0xff] }
0x1243   :  { %12766 = vmatprep.subr.mxu0 %v5178_v12  ;;  %12804 = vmatprep.subr.mxu1 %v5210_v21  ;;  %v5234_v13 = vld [vmem:[%s17719_s15 + $0x248] sm:$0xff]  ;;  %v5281_v12 = vld [vmem:[%s17719_s15 + $0x3c0] sm:$0xff]  ;;  %v5280_v54 = vld [vmem:[%s17719_s15 + $0x3b8] sm:$0xff] }
0x1244   :  { %12767 = vmatpush3.msra.mxu0 %v5162_v22  ;;  %12805 = vmatpush3.msra.mxu1 %v5194_v51  ;;  %v5266_v17 = vld [vmem:[%s17719_s15 + $0x348] sm:$0xff]  ;;  %v5233_v21 = vld [vmem:[%s17719_s15 + $0x240] sm:$0xff]  ;;  %v5248_v51 = vld [vmem:[%s17719_s15 + $0x2b8] sm:$0xff] }
0x1245   :  { %12768 = vmatprep.subr.mxu0 %v5177_v26  ;;  %12806 = vmatprep.subr.mxu1 %v5209_v31  ;;  %v5265_v22 = vld [vmem:[%s17719_s15 + $0x340] sm:$0xff]  ;;  %v5232_v9 = vld [vmem:[%s17719_s15 + $0x238] sm:$0xff]  ;;  %v5247_v26 = vld [vmem:[%s17719_s15 + $0x2b0] sm:$0xff] }
0x1246   :  { %12769 = vmatpush3.msra.mxu0 %v5161_v29  ;;  %5488 = vmatprep.mubr.f32.mxu0 %v5130_v25  ;;  %v5264_v25 = vld [vmem:[%s17719_s15 + $0x338] sm:$0xff]  ;;  %v5279_v31 = vld [vmem:[%s17719_s15 + $0x3b0] sm:$0xff] }
0x1247   :  { %12807 = vmatpush3.msra.mxu1 %v5193_v32  ;;  %5563 = vmatprep.mubr.f32.mxu1 %v5132_v15  ;;  %v5231_v15 = vld [vmem:[%s17719_s15 + $0x230] sm:$0xff]  ;;  %v5246_v32 = vld [vmem:[%s17719_s15 + $0x2a8] sm:$0xff] }
0x1248   :  { %5489 = vmatmul.mubr.f32.vlgmr.msra.gmra.mxu0 %v5129_v30  ;;  %5564 = vmatmul.mubr.f32.vlgmr.msra.gmra.mxu1 %v5131_v28  ;;  %v5263_v29 = vld [vmem:[%s17719_s15 + $0x330] sm:$0xff]  ;;  %v5278_v30 = vld [vmem:[%s17719_s15 + $0x3a8] sm:$0xff] }
0x1249   :  { %12814 = vmatprep.subr.mxu0 %v5256_v33  ;;  %12852 = vmatprep.subr.mxu1 %v5288_v34  ;;  %v5230_v28 = vld [vmem:[%s17719_s15 + $0x228] sm:$0xff]  ;;  %v5245_v34 = vld [vmem:[%s17719_s15 + $0x2a0] sm:$0xff] }
0x124a   :  { %12815 = vmatpush3.msra.mxu0 %v5240_v35  ;;  %12853 = vmatpush3.msra.mxu1 %v5272_v36  ;;  %v5262_v33 = vld [vmem:[%s17719_s15 + $0x328] sm:$0xff]  ;;  %v5277_v35 = vld [vmem:[%s17719_s15 + $0x3a0] sm:$0xff] }
0x124b   :  { %12816 = vmatprep.subr.mxu0 %v5255_v37  ;;  %12854 = vmatprep.subr.mxu1 %v5287_v38  ;;  %v5229_v36 = vld [vmem:[%s17719_s15 + $0x220] sm:$0xff]  ;;  %v5244_v38 = vld [vmem:[%s17719_s15 + $0x298] sm:$0xff] }
0x124c   :  { %12817 = vmatpush3.msra.mxu0 %v5239_v41  ;;  %12855 = vmatpush3.msra.mxu1 %v5271_v45  ;;  %v5261_v37 = vld [vmem:[%s17719_s15 + $0x320] sm:$0xff]  ;;  %v5276_v41 = vld [vmem:[%s17719_s15 + $0x398] sm:$0xff] }
0x124d   :  { %12818 = vmatprep.subr.mxu0 %v5254_v49  ;;  %12856 = vmatprep.subr.mxu1 %v5286_v50  ;;  %v5228_v45 = vld [vmem:[%s17719_s15 + $0x218] sm:$0xff]  ;;  %v5243_v50 = vld [vmem:[%s17719_s15 + $0x290] sm:$0xff] }
0x124e   :  { %12819 = vmatpush3.msra.mxu0 %v5238_v55  ;;  %12857 = vmatpush3.msra.mxu1 %v5270_v10  ;;  %v5260_v49 = vld [vmem:[%s17719_s15 + $0x318] sm:$0xff]  ;;  %v5275_v55 = vld [vmem:[%s17719_s15 + $0x390] sm:$0xff] }
0x124f   :  { %12820 = vmatprep.subr.mxu0 %v5253_v5  ;;  %12858 = vmatprep.subr.mxu1 %v5285_v57  ;;  %v5227_v10 = vld [vmem:[%s17719_s15 + $0x210] sm:$0xff]  ;;  %v5242_v57 = vld [vmem:[%s17719_s15 + $0x288] sm:$0xff] }
0x1250   :  { %12821 = vmatpush3.msra.mxu0 %v5237_v16  ;;  %12859 = vmatpush3.msra.mxu1 %v5269_v19  ;;  %v5259_v5 = vld [vmem:[%s17719_s15 + $0x310] sm:$0xff]  ;;  %v5274_v16 = vld [vmem:[%s17719_s15 + $0x388] sm:$0xff] }
0x1251   :  { %12822 = vmatprep.subr.mxu0 %v5252_v60  ;;  %12860 = vmatprep.subr.mxu1 %v5284_v61  ;;  %v5226_v19 = vld [vmem:[%s17719_s15 + $0x208] sm:$0xff]  ;;  %v5241_v61 = vld [vmem:[%s17719_s15 + $0x280] sm:$0xff] }
0x1252   :  { %12823 = vmatpush3.msra.mxu0 %v5236_v62  ;;  %12861 = vmatpush3.msra.mxu1 %v5268_v63  ;;  %v5258_v60 = vld [vmem:[%s17719_s15 + $0x308] sm:$0xff]  ;;  %v5273_v62 = vld [vmem:[%s17719_s15 + $0x380] sm:$0xff] }
0x1253   :  { %12824 = vmatprep.subr.mxu0 %v5251_v0  ;;  %12862 = vmatprep.subr.mxu1 %v5283_v4  ;;  %v5225_v63 = vld [vmem:[%s17719_s15 + $0x200] sm:$0xff]  ;;  %v5320_v4 = vld [vmem:[%s17719_s15 + $0x4f8] sm:$0xff] }
0x1254   :  { %12825 = vmatpush3.msra.mxu0 %v5235_v43  ;;  %12863 = vmatpush3.msra.mxu1 %v5267_v2  ;;  %v5257_v0 = vld [vmem:[%s17719_s15 + $0x300] sm:$0xff]  ;;  %v5352_v43 = vld [vmem:[%s17719_s15 + $0x5f8] sm:$0xff]  ;;  %v15576_v2 = vsub.s32 4, %v15254_v3 }
0x1255   :  { %12826 = vmatprep.subr.mxu0 %v5250_v6  ;;  %12864 = vmatprep.subr.mxu1 %v5282_v7  ;;  %v15579_v6 = vsub.s32 6, %v15254_v3  ;;  %v15582_v7 = vsub.s32 5, %v15254_v3 }
0x1256   :  { %12827 = vmatpush3.msra.mxu0 %v5234_v13  ;;  %12865 = vmatpush3.msra.mxu1 %v5266_v17  ;;  %v15585_v13 = vsub.s32 7, %v15254_v3 }
0x1257   :  { %12828 = vmatprep.subr.mxu0 %v5249_v47  ;;  %12866 = vmatprep.subr.mxu1 %v5281_v12  ;;  %v4450_v3 = vrot.slane %v15295_v8, %v15582_v7 }
0x1258   :  { %12829 = vmatpush3.msra.mxu0 %v5233_v21  ;;  %12867 = vmatpush3.msra.mxu1 %v5265_v22 }
0x1259   :  { %12830 = vmatprep.subr.mxu0 %v5248_v51  ;;  %12868 = vmatprep.subr.mxu1 %v5280_v54  ;;  %v4446_v54 = vrot.slane %v15295_v8, %v15576_v2 }
0x125a   :  { %12831 = vmatpush3.msra.mxu0 %v5232_v9  ;;  %12869 = vmatpush3.msra.mxu1 %v5264_v25  ;;  %v4454_v9 = vrot.slane %v15295_v8, %v15579_v6 }
0x125b   :  { %12832 = vmatprep.subr.mxu0 %v5247_v26  ;;  %12870 = vmatprep.subr.mxu1 %v5279_v31 }
0x125c   :  { %12833 = vmatpush3.msra.mxu0 %v5231_v15  ;;  %12871 = vmatpush3.msra.mxu1 %v5263_v29 }
0x125d   :  { %12834 = vmatprep.subr.mxu0 %v5246_v32  ;;  %12872 = vmatprep.subr.mxu1 %v5278_v30 }
0x125e   :  { %12835 = vmatpush3.msra.mxu0 %v5230_v28  ;;  %12873 = vmatpush3.msra.mxu1 %v5262_v33 }
0x125f   :  { %12836 = vmatprep.subr.mxu0 %v5245_v34  ;;  %12874 = vmatprep.subr.mxu1 %v5277_v35 }
0x1260   :  { %12837 = vmatpush3.msra.mxu0 %v5229_v36  ;;  %12875 = vmatpush3.msra.mxu1 %v5261_v37 }
0x1261   :  { %12838 = vmatprep.subr.mxu0 %v5244_v38  ;;  %12876 = vmatprep.subr.mxu1 %v5276_v41 }
0x1262   :  { %12839 = vmatpush3.msra.mxu0 %v5228_v45  ;;  %12877 = vmatpush3.msra.mxu1 %v5260_v49  ;;  %v5304_v49 = vld [vmem:[%s17719_s15 + $0x478] sm:$0xff] }
0x1263   :  { %12840 = vmatprep.subr.mxu0 %v5243_v50  ;;  %12878 = vmatprep.subr.mxu1 %v5275_v55  ;;  %v5336_v50 = vld [vmem:[%s17719_s15 + $0x578] sm:$0xff] }
0x1264   :  { %12841 = vmatpush3.msra.mxu0 %v5227_v10  ;;  %12879 = vmatpush3.msra.mxu1 %v5259_v5 }
0x1265   :  { %12842 = vmatprep.subr.mxu0 %v5242_v57  ;;  %12880 = vmatprep.subr.mxu1 %v5274_v16  ;;  %v5319_v57 = vld [vmem:[%s17719_s15 + $0x4f0] sm:$0xff] }
0x1266   :  { %12843 = vmatpush3.msra.mxu0 %v5226_v19  ;;  %12881 = vmatpush3.msra.mxu1 %v5258_v60  ;;  %v5351_v16 = vld [vmem:[%s17719_s15 + $0x5f0] sm:$0xff] }
0x1267   :  { %12844 = vmatprep.subr.mxu0 %v5241_v61  ;;  %12882 = vmatprep.subr.mxu1 %v5273_v62  ;;  %v5303_v62 = vld [vmem:[%s17719_s15 + $0x470] sm:$0xff] }
0x1268   :  { %12845 = vmatpush3.msra.mxu0 %v5225_v63  ;;  %12883 = vmatpush3.msra.mxu1 %v5257_v0  ;;  %v5335_v63 = vld [vmem:[%s17719_s15 + $0x570] sm:$0xff]  ;;  %v15620_v0 = vld [vmem:[%s17720_s14 + $0x8] sm:$0xff] }
0x1269   :  { %12890 = vmatprep.subr.mxu0 %v5320_v4  ;;  %12928 = vmatprep.subr.mxu1 %v5352_v43 }
0x12c9   :  { %v4585_v17 = vpop.f32.mrf.mxu0  ;;  %v4662_v47 = vpop.f32.mrf.mxu1 }
0x12ca   :  { %v4586_v12 = vadd.f32 %v4585_v17, %v15331_v1  ;;  %v4663_v21 = vadd.f32 %v4662_v47, %v15335_v40  ;;  %v4458_v1 = vrot.slane %v15295_v8, %v15585_v13  ;;  %v15624_v17 = vrot.slane %v15620_v0, %v15269_v42 }
0x12cb   :  { %v4587_v22 = vpop.f32.mrf.mxu0  ;;  %v4664_v51 = vpop.f32.mrf.mxu1  ;;  %v15628_v47 = vrot.slane %v15620_v0, %v15272_v44 }
0x12cc   :  { %v4588_v25 = vadd.f32 %v4587_v22, %v15311_v58  ;;  %v4665_v26 = vadd.f32 %v4664_v51, %v15315_v59  ;;  %v5145_v32 = vmax.f32 %v4586_v12, 0.0  ;;  %v5147_v30 = vmax.f32 %v4663_v21, 0.0  ;;  %v5318_v12 = vld [vmem:[%s17719_s15 + $0x4e8] sm:$0xff] }
0x12cd   :  { %v4733_v31 = vpop.f32.mrf.mxu0  ;;  %v4810_v40 = vpop.f32.mrf.mxu1  ;;  %v5350_v21 = vld [vmem:[%s17719_s15 + $0x5e8] sm:$0xff] }
0x12ce   :  { %v5146_v15 = vmax.f32 %v4588_v25, 0.0  ;;  %v5148_v29 = vmax.f32 %v4665_v26, 0.0  ;;  %v4734_v28 = vadd.f32 %v4733_v31, %v4446_v54  ;;  %v4811_v33 = vadd.f32 %v4810_v40, %v4454_v9  ;;  %v5302_v25 = vld [vmem:[%s17719_s15 + $0x468] sm:$0xff]  ;;  %v5317_v31 = vld [vmem:[%s17719_s15 + $0x4e0] sm:$0xff] }
0x12cf   :  { %v4735_v34 = vpop.f32.mrf.mxu0  ;;  %v4812_v35 = vpop.f32.mrf.mxu1  ;;  %v5334_v26 = vld [vmem:[%s17719_s15 + $0x568] sm:$0xff]  ;;  %v5349_v40 = vld [vmem:[%s17719_s15 + $0x5e0] sm:$0xff] }
0x12d0   :  { %v4736_v36 = vadd.f32 %v4735_v34, %v4450_v3  ;;  %v4813_v58 = vadd.f32 %v4812_v35, %v4458_v1  ;;  %5493 = vmatprep.mubr.f32.mxu0 %v5146_v15  ;;  %5568 = vmatprep.mubr.f32.mxu1 %v5148_v29  ;;  %v5133_v41 = vmax.f32 %v4734_v28, 0.0  ;;  %v5135_v45 = vmax.f32 %v4811_v33, 0.0  ;;  %v5316_v28 = vld [vmem:[%s17719_s15 + $0x4d8] sm:$0xff] }
0x12d1   :  { %5494 = vmatmul.mubr.f32.gmra.mxu0 %v5145_v32  ;;  %5569 = vmatmul.mubr.f32.gmra.mxu1 %v5147_v30  ;;  %v5301_v32 = vld [vmem:[%s17719_s15 + $0x460] sm:$0xff]  ;;  %v5348_v35 = vld [vmem:[%s17719_s15 + $0x5d8] sm:$0xff] }
0x12d2   :  { %v5134_v59 = vmax.f32 %v4736_v36, 0.0  ;;  %v5136_v37 = vmax.f32 %v4813_v58, 0.0  ;;  %v4739_v38 = vpop.f32.mrf.mxu0  ;;  %v4816_v8 = vpop.f32.mrf.mxu1  ;;  %v5333_v30 = vld [vmem:[%s17719_s15 + $0x560] sm:$0xff]  ;;  %v5300_v36 = vld [vmem:[%s17719_s15 + $0x458] sm:$0xff] }
0x12d3   :  { %v4740_v55 = vadd.f32 %v4739_v38, %v4446_v54  ;;  %v4817_v19 = vadd.f32 %v4816_v8, %v4454_v9  ;;  %v5332_v58 = vld [vmem:[%s17719_s15 + $0x558] sm:$0xff]  ;;  %v5299_v38 = vld [vmem:[%s17719_s15 + $0x450] sm:$0xff] }
0x12d4   :  { %v4741_v10 = vpop.f32.mrf.mxu0  ;;  %v4818_v5 = vpop.f32.mrf.mxu1  ;;  %5638 = vmatprep.mubr.f32.mxu0 %v5134_v59  ;;  %5713 = vmatprep.mubr.f32.mxu1 %v5136_v37  ;;  %v5315_v59 = vld [vmem:[%s17719_s15 + $0x4d0] sm:$0xff] }
0x12d5   :  { %v4742_v60 = vadd.f32 %v4741_v10, %v4450_v3  ;;  %v4819_v61 = vadd.f32 %v4818_v5, %v4458_v1  ;;  %5639 = vmatmul.mubr.f32.vlgmr.msra.gmra.mxu0 %v5133_v41  ;;  %5714 = vmatmul.mubr.f32.vlgmr.msra.gmra.mxu1 %v5135_v45  ;;  %v5149_v54 = vmax.f32 %v4740_v55, 0.0  ;;  %v5151_v9 = vmax.f32 %v4817_v19, 0.0  ;;  %v5347_v37 = vld [vmem:[%s17719_s15 + $0x5d0] sm:$0xff]  ;;  %v5314_v41 = vld [vmem:[%s17719_s15 + $0x4c8] sm:$0xff]  ;;  %v5313_v55 = vld [vmem:[%s17719_s15 + $0x4c0] sm:$0xff] }
0x12d6   :  { %12891 = vmatpush3.msra.mxu0 %v5304_v49  ;;  %12929 = vmatpush3.msra.mxu1 %v5336_v50  ;;  %v5331_v8 = vld [vmem:[%s17719_s15 + $0x550] sm:$0xff]  ;;  %v5346_v45 = vld [vmem:[%s17719_s15 + $0x5c8] sm:$0xff]  ;;  %v5345_v10 = vld [vmem:[%s17719_s15 + $0x5c0] sm:$0xff] }
0x12d7   :  { %v5150_v4 = vmax.f32 %v4742_v60, 0.0  ;;  %v5152_v43 = vmax.f32 %v4819_v61, 0.0  ;;  %12892 = vmatprep.subr.mxu0 %v5319_v57  ;;  %12930 = vmatprep.subr.mxu1 %v5351_v16  ;;  %v5298_v49 = vld [vmem:[%s17719_s15 + $0x448] sm:$0xff]  ;;  %v5297_v5 = vld [vmem:[%s17719_s15 + $0x440] sm:$0xff]  ;;  %v5312_v16 = vld [vmem:[%s17719_s15 + $0x4b8] sm:$0xff] }
0x12d8   :  { %v15636_v22 = vpop.f32.mrf.mxu0  ;;  %v15638_v51 = vpop.f32.mrf.mxu1  ;;  %12893 = vmatpush3.msra.mxu0 %v5303_v62  ;;  %12931 = vmatpush3.msra.mxu1 %v5335_v63  ;;  %v5330_v50 = vld [vmem:[%s17719_s15 + $0x548] sm:$0xff]  ;;  %v5329_v57 = vld [vmem:[%s17719_s15 + $0x540] sm:$0xff]  ;;  %v5344_v19 = vld [vmem:[%s17719_s15 + $0x5b8] sm:$0xff] }
0x12d9   :  { %5643 = vmatprep.mubr.f32.mxu0 %v5150_v4  ;;  %5718 = vmatprep.mubr.f32.mxu1 %v5152_v43  ;;  %v5296_v60 = vld [vmem:[%s17719_s15 + $0x438] sm:$0xff]  ;;  %v5311_v62 = vld [vmem:[%s17719_s15 + $0x4b0] sm:$0xff] }
0x12da   :  { %v4889_v3 = vpop.f32.mrf.mxu0  ;;  %v4966_v1 = vpop.f32.mrf.mxu1  ;;  %12894 = vmatprep.subr.mxu0 %v5318_v12  ;;  %12932 = vmatprep.subr.mxu1 %v5350_v21  ;;  %v5328_v61 = vld [vmem:[%s17719_s15 + $0x538] sm:$0xff]  ;;  %v5343_v63 = vld [vmem:[%s17719_s15 + $0x5b0] sm:$0xff]  ;;  %v5310_v12 = vld [vmem:[%s17719_s15 + $0x4a8] sm:$0xff] }
0x12db   :  { %v4890_v15 = vadd.f32 %v4889_v3, %v15624_v17  ;;  %v4967_v29 = vadd.f32 %v4966_v1, %v15628_v47  ;;  %5644 = vmatmul.mubr.f32.gmra.mxu0 %v5149_v54  ;;  %5719 = vmatmul.mubr.f32.gmra.mxu1 %v5151_v9  ;;  %v5295_v4 = vld [vmem:[%s17719_s15 + $0x430] sm:$0xff]  ;;  %v5342_v21 = vld [vmem:[%s17719_s15 + $0x5a8] sm:$0xff]  ;;  %v5341_v3 = vld [vmem:[%s17719_s15 + $0x5a0] sm:$0xff] }
0x12dc   :  { %12895 = vmatpush3.msra.mxu0 %v5302_v25  ;;  %12933 = vmatpush3.msra.mxu1 %v5334_v26  ;;  %v5327_v43 = vld [vmem:[%s17719_s15 + $0x530] sm:$0xff]  ;;  %v5294_v54 = vld [vmem:[%s17719_s15 + $0x428] sm:$0xff]  ;;  %v5309_v26 = vld [vmem:[%s17719_s15 + $0x4a0] sm:$0xff] }
0x12dd   :  { %v5138_v33 = vmax.f32 %v4890_v15, 0.0  ;;  %v5140_v34 = vmax.f32 %v4967_v29, 0.0  ;;  %12896 = vmatprep.subr.mxu0 %v5317_v31  ;;  %12934 = vmatprep.subr.mxu1 %v5349_v40  ;;  %v5326_v9 = vld [vmem:[%s17719_s15 + $0x528] sm:$0xff]  ;;  %v5293_v31 = vld [vmem:[%s17719_s15 + $0x420] sm:$0xff]  ;;  %v5308_v15 = vld [vmem:[%s17719_s15 + $0x498] sm:$0xff] }
0x12de   :  { %12897 = vmatpush3.msra.mxu0 %v5301_v32  ;;  %12935 = vmatpush3.msra.mxu1 %v5333_v30  ;;  %v15744_v25 = vpop.f32.mrf.mxu0  ;;  %v4970_v1 = vpop.f32.mrf.mxu1  ;;  %v5325_v40 = vld [vmem:[%s17719_s15 + $0x520] sm:$0xff]  ;;  %v5340_v29 = vld [vmem:[%s17719_s15 + $0x598] sm:$0xff]  ;;  %v4462_v32 = vrot.slane %v15620_v0, %v15298_v14  ;;  %v4470_v30 = vrot.slane %v15620_v0, %v15301_v56 }
0x12df   :  { %12898 = vmatprep.subr.mxu0 %v5316_v28  ;;  %5788 = vmatprep.mubr.f32.mxu0 %v5138_v33  ;;  %v5292_v28 = vld [vmem:[%s17719_s15 + $0x418] sm:$0xff] }
0x12e0   :  { %12936 = vmatprep.subr.mxu1 %v5348_v35  ;;  %5863 = vmatprep.mubr.f32.mxu1 %v5140_v34  ;;  %v5324_v33 = vld [vmem:[%s17719_s15 + $0x518] sm:$0xff]  ;;  %v4895_v34 = vpop.f32.mrf.mxu0  ;;  %v5307_v35 = vld [vmem:[%s17719_s15 + $0x490] sm:$0xff] }
0x12e1   :  { %12899 = vmatpush3.msra.mxu0 %v5300_v36  ;;  %12937 = vmatpush3.msra.mxu1 %v5332_v58  ;;  %v5339_v36 = vld [vmem:[%s17719_s15 + $0x590] sm:$0xff]  ;;  %v4972_v58 = vpop.f32.mrf.mxu1 }
0x12e2   :  { %12900 = vmatprep.subr.mxu0 %v5315_v59  ;;  %12938 = vmatprep.subr.mxu1 %v5347_v37  ;;  %v5291_v59 = vld [vmem:[%s17719_s15 + $0x410] sm:$0xff] }
0x12e3   :  { %12901 = vmatpush3.msra.mxu0 %v5299_v38  ;;  %12939 = vmatpush3.msra.mxu1 %v5331_v8  ;;  %v5323_v37 = vld [vmem:[%s17719_s15 + $0x510] sm:$0xff]  ;;  %v5306_v38 = vld [vmem:[%s17719_s15 + $0x488] sm:$0xff] }
0x12e4   :  { %12902 = vmatprep.subr.mxu0 %v5314_v41  ;;  %12940 = vmatprep.subr.mxu1 %v5346_v45  ;;  %v5338_v8 = vld [vmem:[%s17719_s15 + $0x588] sm:$0xff]  ;;  %v4888_v41 = vadd.f32 %v15636_v22, %v4462_v32  ;;  %v4965_v45 = vadd.f32 %v15638_v51, %v4470_v30  ;;  %v5305_v22 = vld [vmem:[%s17719_s15 + $0x480] sm:$0xff] }
0x12e5   :  { %12903 = vmatpush3.msra.mxu0 %v5298_v49  ;;  %12941 = vmatpush3.msra.mxu1 %v5330_v50  ;;  %v5290_v49 = vld [vmem:[%s17719_s15 + $0x408] sm:$0xff]  ;;  %v5337_v51 = vld [vmem:[%s17719_s15 + $0x580] sm:$0xff] }
0x12e6   :  { %12904 = vmatprep.subr.mxu0 %v5313_v55  ;;  %12942 = vmatprep.subr.mxu1 %v5345_v10  ;;  %v5322_v50 = vld [vmem:[%s17719_s15 + $0x508] sm:$0xff]  ;;  %v15800_v55 = vpop.f32.mrf.mxu0  ;;  %v4896_v10 = vadd.f32 %v4895_v34, %v15624_v17  ;;  %v15820_v17 = vrot.slane %v15620_v0, %v15582_v7 }
0x12e7   :  { %12905 = vmatpush3.msra.mxu0 %v5297_v5  ;;  %12943 = vmatpush3.msra.mxu1 %v5329_v57  ;;  %v4973_v5 = vadd.f32 %v4972_v58, %v15628_v47  ;;  %v15810_v57 = vpop.f32.mrf.mxu1  ;;  %v5384_v47 = vld [vmem:[%s17719_s15 + $0x6f8] sm:$0xff]  ;;  %v5366_v34 = vld [vmem:[%s17719_s15 + $0x668] sm:$0xff] }
0x12e8   :  { %12906 = vmatprep.subr.mxu0 %v5312_v16  ;;  %12944 = vmatprep.subr.mxu1 %v5344_v19  ;;  %v5289_v16 = vld [vmem:[%s17719_s15 + $0x400] sm:$0xff] }
0x12e9   :  { %12907 = vmatpush3.msra.mxu0 %v5296_v60  ;;  %12945 = vmatpush3.msra.mxu1 %v5328_v61  ;;  %v5321_v19 = vld [vmem:[%s17719_s15 + $0x500] sm:$0xff]  ;;  %v5137_v60 = vmax.f32 %v4888_v41, 0.0  ;;  %v5139_v61 = vmax.f32 %v4965_v45, 0.0  ;;  %v5380_v41 = vld [vmem:[%s17719_s15 + $0x6d8] sm:$0xff] }
0x12ea   :  { %12908 = vmatprep.subr.mxu0 %v5311_v62  ;;  %12946 = vmatprep.subr.mxu1 %v5343_v63  ;;  %v5416_v62 = vld [vmem:[%s17719_s15 + $0x7f8] sm:$0xff]  ;;  %v5043_v63 = vpop.f32.mrf.mxu0 }
0x12eb   :  { %12909 = vmatpush3.msra.mxu0 %v5295_v4  ;;  %12947 = vmatpush3.msra.mxu1 %v5327_v43  ;;  %v15830_v4 = vrot.slane %v15620_v0, %v15585_v13  ;;  %v4894_v43 = vadd.f32 %v15744_v25, %v4462_v32  ;;  %v5383_v25 = vld [vmem:[%s17719_s15 + $0x6f0] sm:$0xff]  ;;  %v5412_v45 = vld [vmem:[%s17719_s15 + $0x7d8] sm:$0xff] }
0x12ec   :  { %12910 = vmatprep.subr.mxu0 %v5310_v12  ;;  %12948 = vmatprep.subr.mxu1 %v5342_v21  ;;  %v4971_v12 = vadd.f32 %v4970_v1, %v4470_v30  ;;  %v5154_v21 = vmax.f32 %v4896_v10, 0.0  ;;  %v5415_v1 = vld [vmem:[%s17719_s15 + $0x7f0] sm:$0xff] }
0x12ed   :  { %12911 = vmatpush3.msra.mxu0 %v5294_v54  ;;  %12949 = vmatpush3.msra.mxu1 %v5326_v9  ;;  %v5156_v54 = vmax.f32 %v4973_v5, 0.0  ;;  %v5120_v9 = vpop.f32.mrf.mxu1  ;;  %v5153_v32 = vmax.f32 %v4894_v43, 0.0  ;;  %v5363_v10 = vld [vmem:[%s17719_s15 + $0x650] sm:$0xff]  ;;  %v5393_v43 = vld [vmem:[%s17719_s15 + $0x740] sm:$0xff] }
0x12ee   :  { %12912 = vmatprep.subr.mxu0 %v5309_v26  ;;  %12950 = vmatprep.subr.mxu1 %v5341_v3  ;;  %v5368_v26 = vld [vmem:[%s17719_s15 + $0x678] sm:$0xff]  ;;  %v5155_v30 = vmax.f32 %v4971_v12, 0.0  ;;  %v5395_v5 = vld [vmem:[%s17719_s15 + $0x750] sm:$0xff] }
0x12ef   :  { %12913 = vmatpush3.msra.mxu0 %v5293_v31  ;;  %12951 = vmatpush3.msra.mxu1 %v5325_v40  ;;  %v5400_v3 = vld [vmem:[%s17719_s15 + $0x778] sm:$0xff]  ;;  %v5044_v31 = vadd.f32 %v5043_v63, %v15820_v17  ;;  %v5367_v40 = vld [vmem:[%s17719_s15 + $0x670] sm:$0xff]  ;;  %v5361_v63 = vld [vmem:[%s17719_s15 + $0x640] sm:$0xff] }
0x12f0   :  { %12914 = vmatprep.subr.mxu0 %v5308_v15  ;;  %12952 = vmatprep.subr.mxu1 %v5340_v29  ;;  %v5399_v15 = vld [vmem:[%s17719_s15 + $0x770] sm:$0xff]  ;;  %v5121_v29 = vadd.f32 %v5120_v9, %v15830_v4  ;;  %v5376_v12 = vld [vmem:[%s17719_s15 + $0x6b8] sm:$0xff] }
0x12f1   :  { %12915 = vmatpush3.msra.mxu0 %v5292_v28  ;;  %12953 = vmatpush3.msra.mxu1 %v5324_v33  ;;  %v5382_v28 = vld [vmem:[%s17719_s15 + $0x6e8] sm:$0xff]  ;;  %v5392_v9 = vld [vmem:[%s17719_s15 + $0x738] sm:$0xff] }
0x12f2   :  { %12916 = vmatprep.subr.mxu0 %v5307_v35  ;;  %12954 = vmatprep.subr.mxu1 %v5339_v36  ;;  %v5414_v33 = vld [vmem:[%s17719_s15 + $0x7e8] sm:$0xff]  ;;  %v5142_v35 = vmax.f32 %v5044_v31, 0.0  ;;  %v5144_v58 = vmax.f32 %v5121_v29, 0.0 }
0x12f3   :  { %12917 = vmatpush3.msra.mxu0 %v5291_v59  ;;  %12955 = vmatpush3.msra.mxu1 %v5323_v37  ;;  %v5398_v36 = vld [vmem:[%s17719_s15 + $0x768] sm:$0xff]  ;;  %v5381_v59 = vld [vmem:[%s17719_s15 + $0x6e0] sm:$0xff] }
0x12f4   :  { %12918 = vmatprep.subr.mxu0 %v5306_v38  ;;  %12956 = vmatprep.subr.mxu1 %v5338_v8  ;;  %v5413_v37 = vld [vmem:[%s17719_s15 + $0x7e0] sm:$0xff]  ;;  %v5374_v31 = vld [vmem:[%s17719_s15 + $0x6a8] sm:$0xff] }
0x12f5   :  { %12919 = vmatpush3.msra.mxu0 %v5290_v49  ;;  %12957 = vmatpush3.msra.mxu1 %v5322_v50  ;;  %v5365_v38 = vld [vmem:[%s17719_s15 + $0x660] sm:$0xff]  ;;  %v5364_v49 = vld [vmem:[%s17719_s15 + $0x658] sm:$0xff]  ;;  %v5390_v29 = vld [vmem:[%s17719_s15 + $0x728] sm:$0xff] }
0x12f6   :  { %12920 = vmatprep.subr.mxu0 %v5305_v22  ;;  %12958 = vmatprep.subr.mxu1 %v5337_v51  ;;  %v5397_v8 = vld [vmem:[%s17719_s15 + $0x760] sm:$0xff]  ;;  %v5396_v50 = vld [vmem:[%s17719_s15 + $0x758] sm:$0xff]  ;;  %v5379_v22 = vld [vmem:[%s17719_s15 + $0x6d0] sm:$0xff] }
0x12f7   :  { %12921 = vmatpush3.msra.mxu0 %v5289_v16  ;;  %12959 = vmatpush3.msra.mxu1 %v5321_v19  ;;  %v5411_v51 = vld [vmem:[%s17719_s15 + $0x7d0] sm:$0xff]  ;;  %v5378_v16 = vld [vmem:[%s17719_s15 + $0x6c8] sm:$0xff] }
0x12f8   :  { %5789 = vmatmul.mubr.f32.vlgmr.msra.gmra.mxu0 %v5137_v60  ;;  %5864 = vmatmul.mubr.f32.vlgmr.msra.gmra.mxu1 %v5139_v61  ;;  %v5410_v19 = vld [vmem:[%s17719_s15 + $0x7c8] sm:$0xff] }
0x12f9   :  { %12966 = vmatprep.subr.mxu0 %v5384_v47  ;;  %13004 = vmatprep.subr.mxu1 %v5416_v62  ;;  %v5362_v60 = vld [vmem:[%s17719_s15 + $0x648] sm:$0xff]  ;;  %v5377_v47 = vld [vmem:[%s17719_s15 + $0x6c0] sm:$0xff] }
0x12fa   :  { %5793 = vmatprep.mubr.f32.mxu0 %v5154_v21  ;;  %5868 = vmatprep.mubr.f32.mxu1 %v5156_v54  ;;  %v5394_v61 = vld [vmem:[%s17719_s15 + $0x748] sm:$0xff]  ;;  %v5409_v62 = vld [vmem:[%s17719_s15 + $0x7c0] sm:$0xff]  ;;  %v5408_v21 = vld [vmem:[%s17719_s15 + $0x7b8] sm:$0xff] }
0x12fb   :  { %12967 = vmatpush3.msra.mxu0 %v5368_v26  ;;  %13005 = vmatpush3.msra.mxu1 %v5400_v3  ;;  %v5360_v54 = vld [vmem:[%s17719_s15 + $0x638] sm:$0xff]  ;;  %v5375_v26 = vld [vmem:[%s17719_s15 + $0x6b0] sm:$0xff] }
0x12fc   :  { %12968 = vmatprep.subr.mxu0 %v5383_v25  ;;  %13006 = vmatprep.subr.mxu1 %v5415_v1  ;;  %v5407_v3 = vld [vmem:[%s17719_s15 + $0x7b0] sm:$0xff] }
0x12fd   :  { %12969 = vmatpush3.msra.mxu0 %v5367_v40  ;;  %13007 = vmatpush3.msra.mxu1 %v5399_v15  ;;  %v5359_v25 = vld [vmem:[%s17719_s15 + $0x630] sm:$0xff]  ;;  %v5406_v40 = vld [vmem:[%s17719_s15 + $0x7a8] sm:$0xff] }
0x12fe   :  { %5794 = vmatmul.mubr.f32.gmra.mxu0 %v5153_v32  ;;  %5869 = vmatmul.mubr.f32.gmra.mxu1 %v5155_v30  ;;  %v5391_v1 = vld [vmem:[%s17719_s15 + $0x730] sm:$0xff]  ;;  %v5358_v15 = vld [vmem:[%s17719_s15 + $0x628] sm:$0xff]  ;;  %v5373_v32 = vld [vmem:[%s17719_s15 + $0x6a0] sm:$0xff] }
0x12ff   :  { %12970 = vmatprep.subr.mxu0 %v5382_v28  ;;  %13008 = vmatprep.subr.mxu1 %v5414_v33  ;;  %v5405_v30 = vld [vmem:[%s17719_s15 + $0x7a0] sm:$0xff]  ;;  %v5047_v28 = vpop.f32.mrf.mxu0  ;;  %v5124_v33 = vpop.f32.mrf.mxu1 }
0x1300   :  { %12971 = vmatpush3.msra.mxu0 %v5366_v34  ;;  %5938 = vmatprep.mubr.f32.mxu0 %v5142_v35  ;;  %v5357_v34 = vld [vmem:[%s17719_s15 + $0x620] sm:$0xff] }
0x1301   :  { %13009 = vmatpush3.msra.mxu1 %v5398_v36  ;;  %6013 = vmatprep.mubr.f32.mxu1 %v5144_v58  ;;  %v5389_v35 = vld [vmem:[%s17719_s15 + $0x720] sm:$0xff]  ;;  %v5372_v36 = vld [vmem:[%s17719_s15 + $0x698] sm:$0xff] }
0x1302   :  { %12972 = vmatprep.subr.mxu0 %v5381_v59  ;;  %13010 = vmatprep.subr.mxu1 %v5413_v37  ;;  %v5404_v58 = vld [vmem:[%s17719_s15 + $0x798] sm:$0xff]  ;;  %v4478_v59 = vrot.slane %v15620_v0, %v15576_v2  ;;  %v4486_v37 = vrot.slane %v15620_v0, %v15579_v6  ;;  %v5403_v0 = vld [vmem:[%s17719_s15 + $0x790] sm:$0xff] }
0x1303   :  { %12973 = vmatpush3.msra.mxu0 %v5365_v38  ;;  %13011 = vmatpush3.msra.mxu1 %v5397_v8  ;;  %v5356_v38 = vld [vmem:[%s17719_s15 + $0x618] sm:$0xff] }
0x1304   :  { %12974 = vmatprep.subr.mxu0 %v5380_v41  ;;  %13012 = vmatprep.subr.mxu1 %v5412_v45  ;;  %v5388_v8 = vld [vmem:[%s17719_s15 + $0x718] sm:$0xff]  ;;  %v5371_v41 = vld [vmem:[%s17719_s15 + $0x690] sm:$0xff]  ;;  %v5049_v45 = vpop.f32.mrf.mxu0 }
0x1305   :  { %12975 = vmatpush3.msra.mxu0 %v5364_v49  ;;  %13013 = vmatpush3.msra.mxu1 %v5396_v50  ;;  %v5126_v49 = vpop.f32.mrf.mxu1  ;;  %v5355_v50 = vld [vmem:[%s17719_s15 + $0x610] sm:$0xff] }
0x1306   :  { %12976 = vmatprep.subr.mxu0 %v5379_v22  ;;  %13014 = vmatprep.subr.mxu1 %v5411_v51  ;;  %v5387_v22 = vld [vmem:[%s17719_s15 + $0x710] sm:$0xff]  ;;  %v5370_v51 = vld [vmem:[%s17719_s15 + $0x688] sm:$0xff] }
0x1307   :  { %12977 = vmatpush3.msra.mxu0 %v5363_v10  ;;  %13015 = vmatpush3.msra.mxu1 %v5395_v5  ;;  %v5402_v10 = vld [vmem:[%s17719_s15 + $0x788] sm:$0xff]  ;;  %v5042_v5 = vadd.f32 %v15800_v55, %v4478_v59  ;;  %v5369_v55 = vld [vmem:[%s17719_s15 + $0x680] sm:$0xff] }
0x1308   :  { %12978 = vmatprep.subr.mxu0 %v5378_v16  ;;  %13016 = vmatprep.subr.mxu1 %v5410_v19  ;;  %v5119_v16 = vadd.f32 %v15810_v57, %v4486_v37  ;;  %v5354_v19 = vld [vmem:[%s17719_s15 + $0x608] sm:$0xff]  ;;  %v5401_v57 = vld [vmem:[%s17719_s15 + $0x780] sm:$0xff] }
0x1309   :  { %12979 = vmatpush3.msra.mxu0 %v5362_v60  ;;  %13017 = vmatpush3.msra.mxu1 %v5394_v61  ;;  %v5386_v60 = vld [vmem:[%s17719_s15 + $0x708] sm:$0xff]  ;;  %v5050_v61 = vadd.f32 %v5049_v45, %v15820_v17  ;;  %v5385_v17 = vld [vmem:[%s17719_s15 + $0x700] sm:$0xff] }
0x130a   :  { %12980 = vmatprep.subr.mxu0 %v5377_v47  ;;  %13018 = vmatprep.subr.mxu1 %v5409_v62  ;;  %v5127_v47 = vadd.f32 %v5126_v49, %v15830_v4  ;;  %v5353_v62 = vld [vmem:[%s17719_s15 + $0x600] sm:$0xff]  ;;  %v5141_v4 = vmax.f32 %v5042_v5, 0.0 }
0x130b   :  { %12981 = vmatpush3.msra.mxu0 %v5361_v63  ;;  %13019 = vmatpush3.msra.mxu1 %v5393_v43  ;;  %v5143_v63 = vmax.f32 %v5119_v16, 0.0  ;;  %v5048_v43 = vadd.f32 %v5047_v28, %v4478_v59 }
0x130c   :  { %12982 = vmatprep.subr.mxu0 %v5376_v12  ;;  %13020 = vmatprep.subr.mxu1 %v5408_v21  ;;  %v5125_v12 = vadd.f32 %v5124_v33, %v4486_v37  ;;  %v5158_v21 = vmax.f32 %v5050_v61, 0.0  ;;  %v12172_v37 = vld [vmem:[%s17721_s16] ss:$0 sm:$0xff] }
0x130d   :  { %12983 = vmatpush3.msra.mxu0 %v5360_v54  ;;  %13021 = vmatpush3.msra.mxu1 %v5392_v9  ;;  %v5160_v54 = vmax.f32 %v5127_v47, 0.0  ;;  %v5157_v9 = vmax.f32 %v5048_v43, 0.0 }
0x130e   :  { %12984 = vmatprep.subr.mxu0 %v5375_v26  ;;  %13022 = vmatprep.subr.mxu1 %v5407_v3  ;;  %v5159_v26 = vmax.f32 %v5125_v12, 0.0  ;;  %v12770_v3 = vpop.f32.mrf.mxu0 }
0x130f   :  { %12985 = vmatpush3.msra.mxu0 %v5359_v25  ;;  %13023 = vmatpush3.msra.mxu1 %v5391_v1  ;;  %v12808_v25 = vpop.f32.mrf.mxu1 }
0x1310   :  { %12986 = vmatprep.subr.mxu0 %v5374_v31  ;;  %13024 = vmatprep.subr.mxu1 %v5406_v40  ;;  %v12771_v1 = vpop.f32.mrf.mxu0 }
0x1311   :  { %12987 = vmatpush3.msra.mxu0 %v5358_v15  ;;  %13025 = vmatpush3.msra.mxu1 %v5390_v29  ;;  %v12809_v31 = vpop.f32.mrf.mxu1  ;;  %v12772_v59 = vadd.f32 %v12771_v1, %v12770_v3 }
0x1312   :  { %12988 = vmatprep.subr.mxu0 %v5373_v32  ;;  %13026 = vmatprep.subr.mxu1 %v5405_v30 }
0x1313   :  { %12989 = vmatpush3.msra.mxu0 %v5357_v34  ;;  %13027 = vmatpush3.msra.mxu1 %v5389_v35 }
0x1314   :  { %12990 = vmatprep.subr.mxu0 %v5372_v36  ;;  %13028 = vmatprep.subr.mxu1 %v5404_v58 }
0x1315   :  { %12991 = vmatpush3.msra.mxu0 %v5356_v38  ;;  %13029 = vmatpush3.msra.mxu1 %v5388_v8 }
0x1316   :  { %12992 = vmatprep.subr.mxu0 %v5371_v41  ;;  %13030 = vmatprep.subr.mxu1 %v5403_v0  ;;  %v5491_v0 = vadd.f32 %v12772_v59, %v12172_v37 }
0x1317   :  { %12993 = vmatpush3.msra.mxu0 %v5355_v50  ;;  %13031 = vmatpush3.msra.mxu1 %v5387_v22  ;;  %v12810_v50 = vadd.f32 %v12809_v31, %v12808_v25 }
0x1318   :  { %12994 = vmatprep.subr.mxu0 %v5370_v51  ;;  %13032 = vmatprep.subr.mxu1 %v5402_v10 }
0x1319   :  { %12995 = vmatpush3.msra.mxu0 %v5354_v19  ;;  %13033 = vmatpush3.msra.mxu1 %v5386_v60  ;;  %v5566_v10 = vadd.f32 %v12810_v50, %v5491_v0 }
0x131a   :  { %12996 = vmatprep.subr.mxu0 %v5369_v55  ;;  %13034 = vmatprep.subr.mxu1 %v5401_v57 }
0x131b   :  { %12997 = vmatpush3.msra.mxu0 %v5353_v62  ;;  %13035 = vmatpush3.msra.mxu1 %v5385_v17 }
0x131c   :  { %5939 = vmatmul.mubr.f32.vlgmr.msra.gmra.mxu0 %v5141_v4  ;;  %6014 = vmatmul.mubr.f32.vlgmr.msra.gmra.mxu1 %v5143_v63 }
0x131d   :  { %5943 = vmatprep.mubr.f32.mxu0 %v5158_v21  ;;  %6018 = vmatprep.mubr.f32.mxu1 %v5160_v54 }
0x131e   :  { %13744 = vmatprep.subr.mxu1 %v14178_v27 }
0x1320   :  { %5944 = vmatmul.mubr.f32.gmra.mxu0 %v5157_v9  ;;  %6019 = vmatmul.mubr.f32.gmra.mxu1 %v5159_v26 }
0x1321   :  { %13746 = vmatprep.mubr.msk.f32.mxu1 %vm14179_vm1, %v14178_v27 }
0x1391   :  { %v12773_v40 = vpop.f32.mrf.mxu0  ;;  %v12811_v15 = vpop.f32.mrf.mxu1 }
0x1393   :  { %v12774_v29 = vpop.f32.mrf.mxu0  ;;  %v12812_v32 = vpop.f32.mrf.mxu1 }
0x1394   :  { %v12775_v45 = vadd.f32 %v12774_v29, %v12773_v40  ;;  %v12813_v19 = vadd.f32 %v12812_v32, %v12811_v15 }
0x1395   :  { %v12846_v30 = vpop.f32.mrf.mxu0  ;;  %v12884_v28 = vpop.f32.mrf.mxu1 }
0x1396   :  { %v5496_v5 = vadd.f32 %v12775_v45, %v12172_v37 }
0x1397   :  { %v12847_v33 = vpop.f32.mrf.mxu0  ;;  %v12885_v34 = vpop.f32.mrf.mxu1 }
0x1398   :  { %v12848_v22 = vadd.f32 %v12847_v33, %v12846_v30  ;;  %v5571_v55 = vadd.f32 %v12813_v19, %v5496_v5  ;;  %v12886_v57 = vadd.f32 %v12885_v34, %v12884_v28 }
0x139a   :  { %v5641_v60 = vadd.f32 %v12848_v22, %v5566_v10 }
0x139b   :  { %v12849_v35 = vpop.f32.mrf.mxu0  ;;  %v12887_v36 = vpop.f32.mrf.mxu1 }
0x139c   :  { %v5716_v4 = vadd.f32 %v12886_v57, %v5641_v60  ;;  %v12176_v57 = vld [vmem:[%s17769_s6 + $0x28] sm:$0xff] }
0x139d   :  { %v12850_v58 = vpop.f32.mrf.mxu0  ;;  %v12888_v38 = vpop.f32.mrf.mxu1 }
0x139e   :  { %v12851_v61 = vadd.f32 %v12850_v58, %v12849_v35  ;;  %v12889_v12 = vadd.f32 %v12888_v38, %v12887_v36 }
0x13a0   :  { %v5646_v63 = vadd.f32 %v12851_v61, %v5571_v55  ;;  %v12177_v55 = vld [vmem:[%s17769_s6 + $0x30] sm:$0xff] }
0x13a2   :  { %v5721_v3 = vadd.f32 %v12889_v12, %v5646_v63 }
0x13b8   :  { %v12922_v8 = vpop.f32.mrf.mxu0  ;;  %v12960_v41 = vpop.f32.mrf.mxu1 }
0x13ba   :  { %v12923_v49 = vpop.f32.mrf.mxu0  ;;  %v12961_v51 = vpop.f32.mrf.mxu1 }
0x13bb   :  { %v12924_v62 = vadd.f32 %v12923_v49, %v12922_v8  ;;  %v12962_v25 = vadd.f32 %v12961_v51, %v12960_v41 }
0x13bd   :  { %v5791_v21 = vadd.f32 %v12924_v62, %v5716_v4  ;;  %v12175_v62 = vld [vmem:[%s17769_s6 + $0x20] sm:$0xff] }
0x13be   :  { %v12925_v16 = vpop.f32.mrf.mxu0  ;;  %v12963_v47 = vpop.f32.mrf.mxu1 }
0x13bf   :  { %v5866_v40 = vadd.f32 %v12962_v25, %v5791_v21 }
0x13c0   :  { %v12926_v17 = vpop.f32.mrf.mxu0  ;;  %v12964_v43 = vpop.f32.mrf.mxu1 }
0x13c1   :  { %v12927_v54 = vadd.f32 %v12926_v17, %v12925_v16  ;;  %v12965_v28 = vadd.f32 %v12964_v43, %v12963_v47 }
0x13c3   :  { %v5796_v15 = vadd.f32 %v12927_v54, %v5721_v3  ;;  %v12174_v3 = vld [vmem:[%s17723_s22] ss:$0 sm:$0xff] }
0x13c5   :  { %v5871_v59 = vadd.f32 %v12965_v28, %v5796_v15 }
0x13dc   :  { %v12998_v9 = vpop.f32.mrf.mxu0  ;;  %v13036_v26 = vpop.f32.mrf.mxu1 }
0x13de   :  { %v12999_v1 = vpop.f32.mrf.mxu0  ;;  %v13037_v31 = vpop.f32.mrf.mxu1 }
0x13df   :  { %v13000_v29 = vadd.f32 %v12999_v1, %v12998_v9  ;;  %v13038_v34 = vadd.f32 %v13037_v31, %v13036_v26  ;;  %v12173_v9 = vld [vmem:[%s17722_s21] ss:$0 sm:$0xff] }
0x13e0   :  { %v13001_v32 = vpop.f32.mrf.mxu0  ;;  %v13039_v30 = vpop.f32.mrf.mxu1 }
0x13e1   :  { %v5941_v33 = vadd.f32 %v13000_v29, %v5866_v40 }
0x13e2   :  { %v13002_v35 = vpop.f32.mrf.mxu0  ;;  %v13040_v58 = vpop.f32.mrf.mxu1 }
0x13e3   :  { %v6016_v36 = vadd.f32 %v13038_v34, %v5941_v33  ;;  %v13003_v37 = vadd.f32 %v13002_v35, %v13001_v32  ;;  %v13041_v8 = vadd.f32 %v13040_v58, %v13039_v30  ;;  %v12180_v32 = vld [vmem:[%s17771_s4 + $0x1] ss:$0 sm:$0xff]  ;;  %s17785_s4 = smov 64  }
0x13e5   :  { %v5946_v38 = vadd.f32 %v13003_v37, %v5871_v59  ;;  %v6024_v0 = vadd.f32 %v6016_v36, %v14952_v39 }
0x13e7   :  { %v6021_v41 = vadd.f32 %v13041_v8, %v5946_v38  ;;  %v6028_v45 = vsel %vm90_vm0, %v6024_v0, 0.0 }
0x13e8   :  { %6029 = vadd.xlane.f32.xlu0 %v6028_v45 }
0x13e9   :  { %v6025_v49 = vadd.f32 %v6021_v41, %v15014_v23  ;;  %v12178_v23 = vld [vmem:[%s17769_s6 + $0x38] sm:$0xff] }
0x13ea   :  { %13733 = vmatprep.subr.mxu0 %v12178_v23 }
0x13eb   :  { %v6031_v50 = vsel %vm90_vm0, %v6025_v49, 0.0  ;;  %13734 = vmatpush3.msra.mxu0 %v12178_v23 }
0x13ec   :  { %6032 = vadd.xlane.f32.xlu1 %v6031_v50  ;;  %13735 = vmatprep.subr.mxu0 %v12177_v55 }
0x13ed   :  { %13736 = vmatpush3.msra.mxu0 %v12177_v55 }
0x13ee   :  { %13737 = vmatprep.subr.mxu0 %v12176_v57 }
0x13ef   :  { %13738 = vmatpush3.msra.mxu0 %v12176_v57 }
0x13f0   :  { %13739 = vmatprep.subr.mxu0 %v12175_v62 }
0x13f1   :  { %13740 = vmatpush3.msra.mxu0 %v12175_v62 }
0x13f2   :  { %13749 = vmatprep.subr.mxu0 %v14178_v27 }
0x1471   :  { %v6030_v22 = vpop.xlane.xlu0 %6029 }
0x1472   :  { %v6034_v51 = vmul.f32 0.03125, %v6030_v22 }
0x1474   :  { %v6036_v10 = vsub.f32 %v6024_v0, %v6034_v51 }
0x1475   :  { %v6033_v5 = vpop.xlane.xlu1 %6032 }
0x1476   :  { %v6035_v16 = vmul.f32 0.03125, %v6033_v5  ;;  %v6038_v19 = vmul.f32 %v6036_v10, %v6036_v10 }
0x1478   :  { %v6037_v60 = vsub.f32 %v6025_v49, %v6035_v16  ;;  %v6040_v61 = vsel %vm90_vm0, %v6038_v19, 0.0 }
0x1479   :  { %6041 = vadd.xlane.f32.xlu0 %v6040_v61 }
0x147a   :  { %v6039_v39 = vmul.f32 %v6037_v60, %v6037_v60 }
0x147c   :  { %v6043_v47 = vsel %vm90_vm0, %v6039_v39, 0.0 }
0x147d   :  { %6044 = vadd.xlane.f32.xlu1 %v6043_v47 }
0x1502   :  { %v6042_v17 = vpop.xlane.xlu0 %6041 }
0x1503   :  { %v6046_v4 = vmul.f32 0.03125, %v6042_v17 }
0x1505   :  { %v6048_v63 = vadd.f32 1e-05, %v6046_v4 }
0x1506   :  { %v6045_v43 = vpop.xlane.xlu1 %6044 }
0x1507   :  { %14090 = vrsqrt.f32 %v6048_v63  ;;  %v6047_v12 = vmul.f32 0.03125, %v6045_v43 }
0x1509   :  { %v6049_v21 = vadd.f32 1e-05, %v6047_v12 }
0x150b   :  { %14092 = vrsqrt.f32 %v6049_v21 }
0x1514   :  { %v14091_v54 = vpop.eup %14090 }
0x1515   :  { %v6052_v26 = vmul.f32 %v14091_v54, %v6036_v10 }
0x1517   :  { %v6060_v25 = vmul.f32 %v12173_v9, %v6052_v26 }
0x1518   :  { %v14093_v1 = vpop.eup %14092 }
0x1519   :  { %v6053_v31 = vmul.f32 %v14093_v1, %v6037_v60  ;;  %v16060_v40 = vadd.f32 %v12174_v3, %v6060_v25 }
0x151b   :  { %v6061_v15 = vmul.f32 %v12173_v9, %v6053_v31  ;;  %13741 = vmatprep.mubr.msk.f32.mxu0 %vm90_vm0, %v16060_v40 }
0x151d   :  { %v16064_v29 = vadd.f32 %v12174_v3, %v6061_v15 }
0x151f   :  { %13742 = vmatmul.mubr.msk.f32.vlgmr.msra.gmra.mxu0 %vm90_vm0, %v16064_v29 }
0x1520   :  { %13751 = vmatprep.mubr.msk.f32.mxu0 %vm14179_vm1, %v14178_v27 }
0x15df   :  { %v13743_v30 = vpop.f32.mrf.mxu0 }
0x15e0   :  { %v16073_v28 = vadd.f32 %v13743_v30, %v12180_v32 }
0x15e1   :  { %v6155_v33 = vpop.f32.mrf.mxu0 }
0x15e2   :  { %v6156_v34 = vadd.f32 %v12180_v32, %v6155_v33 }
0x15e4   :  { %6172 = vrot.lane.b32.xlu1 %v6156_v34, %s17781_s27  ;;  %6170 = vrot.lane.b32.xlu0 %v6156_v34, %s17783_s18 }
0x15e8   :  { %6174 = vrot.lane.b32.xlu1 %v6156_v34, %s17782_s0  ;;  %6176 = vrot.lane.b32.xlu0 %v6156_v34, %s17784_s5 }
0x1656   :  { %v16079_v35 = vpop.permute.xlu1 %6172  ;;  %v16081_v58 = vpop.permute.xlu0 %6170 }
0x1657   :  { %6328 = vrot.lane.b32.xlu0 %v16079_v35, %s17784_s5  ;;  %6252 = vrot.lane.b32.xlu1 %v16081_v58, %s17784_s5 }
0x165a   :  { %v16087_v59 = vpop.permute.xlu1 %6174  ;;  %v6177_v36 = vpop.permute.xlu0 %6176 }
0x165b   :  { %6404 = vrot.lane.b32.xlu1 %v16087_v59, %s17784_s5  ;;  %13745 = vmatpush3.xpose.msk.msra.mxu1 %vm331_vm2, %v6177_v36 }
0x165c   :  { %13754 = vmatprep.subr.mxu1 %v14178_v27 }
0x165e   :  { %13747 = vmatmul.mubr.msk.f32.vlgmr.msra.gmra.mxu1 %vm331_vm2, %v6156_v34 }
0x165f   :  { %13756 = vmatprep.mubr.msk.f32.mxu1 %vm14179_vm1, %v14178_v27 }
0x16c9   :  { %v6253_v37 = vpop.permute.xlu1 %6252  ;;  %v6329_v38 = vpop.permute.xlu0 %6328 }
0x16ca   :  { %13750 = vmatpush3.xpose.msk.msra.mxu0 %vm331_vm2, %v6253_v37  ;;  %13755 = vmatpush3.xpose.msk.msra.mxu1 %vm331_vm2, %v6329_v38 }
0x16cb   :  { %13759 = vmatprep.subr.mxu0 %v14178_v27  ;;  %13764 = vmatprep.subr.mxu1 %v14178_v27 }
0x16cd   :  { %13752 = vmatmul.mubr.msk.f32.vlgmr.msra.gmra.mxu0 %vm331_vm2, %v16081_v58  ;;  %v6405_v8 = vpop.permute.xlu1 %6404  ;;  %13757 = vmatmul.mubr.msk.f32.vlgmr.msra.gmra.mxu1 %vm331_vm2, %v16079_v35 }
0x16ce   :  { %13760 = vmatpush3.xpose.msk.msra.mxu0 %vm331_vm2, %v6405_v8  ;;  %13761 = vmatprep.mubr.msk.f32.mxu0 %vm14179_vm1, %v14178_v27 }
0x16cf   :  { %13766 = vmatprep.mubr.msk.f32.mxu1 %vm14179_vm1, %v14178_v27  ;;  %13769 = vmatprep.subr.mxu0 %v14178_v27 }
0x16d1   :  { %13762 = vmatmul.mubr.msk.f32.vlgmr.msra.gmra.mxu0 %vm331_vm2, %v16087_v59 }
0x16d2   :  { %13771 = vmatprep.mubr.msk.f32.mxu0 %vm14179_vm1, %v14178_v27 }
0x171e   :  { %v6248_v0 = vpop.f32.mrf.mxu1 }
0x171f   :  { %v6480_v41 = vsel %vm331_vm2, %v6248_v0, -inf }
0x1720   :  { %6481 = vmax.xlane.f32.xlu0 %v6480_v41  ;;  %v13748_v45 = vpop.f32.mrf.mxu1 }
0x178d   :  { %v6324_v49 = vpop.f32.mrf.mxu0  ;;  %v6400_v50 = vpop.f32.mrf.mxu1 }
0x178e   :  { %v6483_v22 = vsel %vm331_vm2, %v6324_v49, -inf  ;;  %v6486_v51 = vsel %vm331_vm2, %v6400_v50, -inf }
0x178f   :  { %6484 = vmax.xlane.f32.xlu1 %v6483_v22  ;;  %v13753_v10 = vpop.f32.mrf.mxu0  ;;  %6487 = vmax.xlane.f32.xlu0 %v6486_v51  ;;  %v13758_v5 = vpop.f32.mrf.mxu1  ;;  %v16156_v22 = vld [vmem:[%s17776_s29 + $0x20] sm:$0xff] }
0x1790   :  { %v16168_v5 = vld [vmem:[%s17776_s29 + $0x28] sm:$0xff] }
0x1791   :  { %v6476_v16 = vpop.f32.mrf.mxu0 }
0x1792   :  { %v6489_v19 = vsel %vm331_vm2, %v6476_v16, -inf }
0x1793   :  { %v13763_v60 = vpop.f32.mrf.mxu0  ;;  %6490 = vmax.xlane.f32.xlu0 %v6489_v19 }
0x17a0   :  { %6524 = vrot.lane.b32.xlu1 %v6156_v34, %s17785_s4 }
0x17a9   :  { %v6482_v61 = vpop.xlane.xlu0 %6481 }
0x17aa   :  { %v6492_v39 = vsub.f32 %v6248_v0, %v6482_v61  ;;  %v16192_v61 = vld [vmem:[%s17776_s29 + $0x38] sm:$0xff] }
0x17ac   :  { %v6496_v47 = vmul.f32 1.442695, %v6492_v39 }
0x17ae   :  { %14094 = vpow2.f32 %v6496_v47 }
0x17bb   :  { %v14095_v23 = vpop.eup %14094 }
0x17bc   :  { %v6504_v55 = vsel %vm331_vm2, %v14095_v23, 0.0 }
0x17c4   :  { %6505 = vadd.xlane.f32.xlu1 %v6504_v55 }
0x1818   :  { %v6485_v57 = vpop.xlane.xlu1 %6484  ;;  %v6488_v62 = vpop.xlane.xlu0 %6487 }
0x1819   :  { %v6493_v17 = vsub.f32 %v6324_v49, %v6485_v57  ;;  %v6494_v4 = vsub.f32 %v6400_v50, %v6488_v62 }
0x181b   :  { %v6498_v63 = vmul.f32 1.442695, %v6493_v17  ;;  %v6500_v43 = vmul.f32 1.442695, %v6494_v4 }
0x181c   :  { %v6525_v12 = vpop.permute.xlu1 %6524  ;;  %v6491_v21 = vpop.xlane.xlu0 %6490 }
0x181d   :  { %14096 = vpow2.f32 %v6498_v63  ;;  %v6495_v54 = vsub.f32 %v6476_v16, %v6491_v21  ;;  %13765 = vmatpush3.msra.mxu1 %v6525_v12  ;;  %v16182_v16 = vld [vmem:[%s17776_s29 + $0x30] sm:$0xff] }
0x181e   :  { %14098 = vpow2.f32 %v6500_v43  ;;  %13774 = vmatprep.subr.mxu1 %v14178_v27 }
0x181f   :  { %v6502_v9 = vmul.f32 1.442695, %v6495_v54 }
0x1821   :  { %14100 = vpow2.f32 %v6502_v9 }
0x182a   :  { %v14097_v26 = vpop.eup %14096 }
0x182b   :  { %v14099_v3 = vpop.eup %14098  ;;  %v6507_v25 = vsel %vm331_vm2, %v14097_v26, 0.0 }
0x182c   :  { %6508 = vadd.xlane.f32.xlu0 %v6507_v25  ;;  %v6510_v1 = vsel %vm331_vm2, %v14099_v3, 0.0 }
0x182d   :  { %6511 = vadd.xlane.f32.xlu1 %v6510_v1 }
0x182e   :  { %v14101_v31 = vpop.eup %14100 }
0x182f   :  { %v6513_v15 = vsel %vm331_vm2, %v14101_v31, 0.0 }
0x1830   :  { %6514 = vadd.xlane.f32.xlu0 %v6513_v15 }
0x183e   :  { %6676 = vrot.lane.b32.xlu1 %v16079_v35, %s17785_s4 }
0x1842   :  { %6752 = vrot.lane.b32.xlu1 %v16087_v59, %s17785_s4 }
0x1846   :  { %7130 = vrot.lane.b32.xlu1 %v16073_v28, %s17781_s27  ;;  %6600 = vrot.lane.b32.xlu0 %v16081_v58, %s17785_s4 }
0x184a   :  { %7134 = vrot.lane.b32.xlu1 %v16073_v28, %s17784_s5  ;;  %7128 = vrot.lane.b32.xlu0 %v16073_v28, %s17783_s18 }
0x184d   :  { %v6506_v32 = vpop.xlane.xlu1 %6505 }
0x184e   :  { %14102 = vrcp.f32 %v6506_v32  ;;  %7132 = vrot.lane.b32.xlu0 %v16073_v28, %s17782_s0 }
0x185b   :  { %v14103_v30 = vpop.eup %14102 }
0x185c   :  { %v6520_v33 = vmul.f32 %v14103_v30, %v14095_v23 }
0x185e   :  { %13767 = vmatmul.mubr.msk.f32.vlgmr.msra.gmra.mxu1 %vm331_vm2, %v6520_v33 }
0x185f   :  { %13776 = vmatprep.mubr.msk.f32.mxu1 %vm14179_vm1, %v14178_v27 }
0x18b5   :  { %v6509_v34 = vpop.xlane.xlu0 %6508 }
0x18b6   :  { %v6512_v35 = vpop.xlane.xlu1 %6511  ;;  %14104 = vrcp.f32 %v6509_v34 }
0x18b7   :  { %14106 = vrcp.f32 %v6512_v35 }
0x18b9   :  { %v6515_v58 = vpop.xlane.xlu0 %6514 }
0x18ba   :  { %v6677_v59 = vpop.permute.xlu1 %6676  ;;  %14108 = vrcp.f32 %v6515_v58 }
0x18bb   :  { %13775 = vmatpush3.msra.mxu1 %v6677_v59 }
0x18bc   :  { %13784 = vmatprep.subr.mxu1 %v14178_v27 }
0x18bd   :  { %v6601_v36 = vpop.permute.xlu0 %6600 }
0x18be   :  { %v6753_v37 = vpop.permute.xlu1 %6752  ;;  %13770 = vmatpush3.msra.mxu0 %v6601_v36 }
0x18bf   :  { %13779 = vmatprep.subr.mxu0 %v14178_v27 }
0x18c1   :  { %v16143_v38 = vpop.permute.xlu0 %7128 }
0x18c2   :  { %v16145_v8 = vpop.permute.xlu1 %7130  ;;  %7210 = vrot.lane.b32.xlu0 %v16143_v38, %s17784_s5 }
0x18c3   :  { %v14105_v0 = vpop.eup %14104  ;;  %7286 = vrot.lane.b32.xlu1 %v16145_v8, %s17784_s5 }
0x18c4   :  { %v14107_v41 = vpop.eup %14106  ;;  %v6521_v45 = vmul.f32 %v14105_v0, %v14097_v26 }
0x18c5   :  { %v16151_v49 = vpop.permute.xlu0 %7132  ;;  %v6522_v50 = vmul.f32 %v14107_v41, %v14099_v3 }
0x18c6   :  { %13772 = vmatmul.mubr.msk.f32.vlgmr.msra.gmra.mxu0 %vm331_vm2, %v6521_v45  ;;  %7362 = vrot.lane.b32.xlu0 %v16151_v49, %s17784_s5  ;;  %v7135_v23 = vpop.permute.xlu1 %7134 }
0x18c7   :  { %v14109_v51 = vpop.eup %14108  ;;  %13777 = vmatmul.mubr.msk.f32.vlgmr.msra.gmra.mxu1 %vm331_vm2, %v6522_v50  ;;  %13780 = vmatpush3.msra.mxu0 %v6753_v37 }
0x18c8   :  { %13781 = vmatprep.mubr.msk.f32.mxu0 %vm14179_vm1, %v14178_v27  ;;  %v6523_v10 = vmul.f32 %v14109_v51, %v14101_v31  ;;  %13785 = vmatpush3.msra.mxu1 %v16156_v22 }
0x18c9   :  { %13786 = vmatprep.mubr.msk.f32.mxu1 %vm14179_vm1, %v14178_v27  ;;  %13789 = vmatprep.subr.mxu0 %v14178_v27 }
0x18ca   :  { %13782 = vmatmul.mubr.msk.f32.vlgmr.msra.gmra.mxu0 %vm331_vm2, %v6523_v10  ;;  %13794 = vmatprep.subr.mxu1 %v14178_v27 }
0x18cb   :  { %13790 = vmatpush3.msra.mxu0 %v16168_v5  ;;  %13791 = vmatprep.mubr.msk.f32.mxu0 %vm14179_vm1, %v14178_v27 }
0x18cc   :  { %13799 = vmatprep.subr.mxu0 %v14178_v27 }
0x191e   :  { %v6596_v19 = vpop.f32.mrf.mxu1 }
0x191f   :  { %13787 = vmatmul.mubr.msk.f32.vlgmr.msra.gmra.mxu1 %vm331_vm2, %v6596_v19 }
0x1920   :  { %v13768_v60 = vpop.f32.mrf.mxu1  ;;  %13795 = vmatpush3.msra.mxu1 %v16182_v16  ;;  %13796 = vmatprep.mubr.msk.f32.mxu1 %vm14179_vm1, %v14178_v27 }
0x1921   :  { %13804 = vmatprep.subr.mxu1 %v14178_v27 }
0x1934   :  { %v7211_v57 = vpop.permute.xlu0 %7210 }
0x1935   :  { %v7287_v4 = vpop.permute.xlu1 %7286 }
0x1938   :  { %v7363_v43 = vpop.permute.xlu0 %7362 }
0x1986   :  { %v6672_v39 = vpop.f32.mrf.mxu0 }
0x1987   :  { %v6748_v47 = vpop.f32.mrf.mxu1  ;;  %13792 = vmatmul.mubr.msk.f32.vlgmr.msra.gmra.mxu0 %vm331_vm2, %v6672_v39 }
0x1988   :  { %13797 = vmatmul.mubr.msk.f32.vlgmr.msra.gmra.mxu1 %vm331_vm2, %v6748_v47  ;;  %v13773_v55 = vpop.f32.mrf.mxu0  ;;  %13800 = vmatpush3.msra.mxu0 %v16192_v61 }
0x1989   :  { %13805 = vmatpush3.xpose.msk.msra.mxu1 %vm331_vm2, %v7135_v23  ;;  %v13778_v62 = vpop.f32.mrf.mxu1  ;;  %13801 = vmatprep.mubr.msk.f32.mxu0 %vm14179_vm1, %v14178_v27 }
0x198a   :  { %v6824_v17 = vpop.f32.mrf.mxu0  ;;  %13806 = vmatprep.mubr.msk.f32.mxu1 %vm14179_vm1, %v14178_v27  ;;  %13809 = vmatprep.subr.mxu0 %v14178_v27 }
0x198b   :  { %13814 = vmatprep.subr.mxu1 %v14178_v27  ;;  %13802 = vmatmul.mubr.msk.f32.vlgmr.msra.gmra.mxu0 %vm331_vm2, %v6824_v17 }
0x198c   :  { %13807 = vmatmul.mubr.msk.f32.vlgmr.msra.gmra.mxu1 %vm331_vm2, %v16073_v28  ;;  %13810 = vmatpush3.xpose.msk.msra.mxu0 %vm331_vm2, %v7211_v57  ;;  %v13783_v63 = vpop.f32.mrf.mxu0 }
0x198d   :  { %13815 = vmatpush3.xpose.msk.msra.mxu1 %vm331_vm2, %v7287_v4  ;;  %13811 = vmatprep.mubr.msk.f32.mxu0 %vm14179_vm1, %v14178_v27 }
0x198e   :  { %13816 = vmatprep.mubr.msk.f32.mxu1 %vm14179_vm1, %v14178_v27  ;;  %13819 = vmatprep.subr.mxu0 %v14178_v27 }
0x198f   :  { %13812 = vmatmul.mubr.msk.f32.vlgmr.msra.gmra.mxu0 %vm331_vm2, %v16143_v38  ;;  %13824 = vmatprep.subr.mxu1 %v14178_v27 }
0x1990   :  { %13817 = vmatmul.mubr.msk.f32.vlgmr.msra.gmra.mxu1 %vm331_vm2, %v16145_v8  ;;  %13820 = vmatpush3.xpose.msk.msra.mxu0 %vm331_vm2, %v7363_v43 }
0x1991   :  { %13821 = vmatprep.mubr.msk.f32.mxu0 %vm14179_vm1, %v14178_v27  ;;  %13829 = vmatprep.subr.mxu0 %v14178_v27 }
0x1992   :  { %13826 = vmatprep.mubr.msk.f32.mxu1 %vm14179_vm1, %v14178_v27 }
0x1993   :  { %13822 = vmatmul.mubr.msk.f32.vlgmr.msra.gmra.mxu0 %vm331_vm2, %v16151_v49 }
0x1994   :  { %13831 = vmatprep.mubr.msk.f32.mxu0 %vm14179_vm1, %v14178_v27 }
0x19df   :  { %v6897_v12 = vpop.f32.mrf.mxu1 }
0x19e0   :  { %v7120_v9 = vsel %vm90_vm0, %v6897_v12, 0.0 }
0x19e1   :  { %v13788_v21 = vpop.f32.mrf.mxu1 }
0x1a47   :  { %v6970_v54 = vpop.f32.mrf.mxu0 }
0x1a48   :  { %v7121_v26 = vsel %vm90_vm0, %v6970_v54, 0.0  ;;  %v7043_v3 = vpop.f32.mrf.mxu1 }
0x1a49   :  { %v7122_v25 = vadd.f32 %v7121_v26, %v7120_v9  ;;  %v13793_v1 = vpop.f32.mrf.mxu0  ;;  %v7123_v31 = vsel %vm90_vm0, %v7043_v3, 0.0 }
0x1a4a   :  { %v13798_v15 = vpop.f32.mrf.mxu1 }
0x1a4b   :  { %v7124_v32 = vadd.f32 %v7123_v31, %v7122_v25  ;;  %v7116_v30 = vpop.f32.mrf.mxu0 }
0x1a4c   :  { %v7125_v33 = vsel %vm90_vm0, %v7116_v30, 0.0  ;;  %v7206_v34 = vpop.f32.mrf.mxu1  ;;  %v16255_v30 = vld [vmem:[%s17777_s7 + $0x1] ss:$0 sm:$0xff] }
0x1a4d   :  { %v7126_v35 = vadd.f32 %v7125_v33, %v7124_v32  ;;  %v7438_v58 = vsel %vm331_vm2, %v7206_v34, -inf  ;;  %v13803_v59 = vpop.f32.mrf.mxu0 }
0x1a4e   :  { %7439 = vmax.xlane.f32.xlu1 %v7438_v58  ;;  %v13808_v36 = vpop.f32.mrf.mxu1 }
0x1a4f   :  { %v7282_v37 = vpop.f32.mrf.mxu0  ;;  %v8085_v32 = vadd.f32 %v7126_v35, %v16060_v40 }
0x1a50   :  { %v7358_v0 = vpop.f32.mrf.mxu1  ;;  %v7441_v41 = vsel %vm331_vm2, %v7282_v37, -inf }
0x1a51   :  { %7442 = vmax.xlane.f32.xlu0 %v7441_v41  ;;  %v13813_v45 = vpop.f32.mrf.mxu0  ;;  %v7444_v10 = vsel %vm331_vm2, %v7358_v0, -inf  ;;  %v16258_v33 = vadd.f32 %v16255_v30, %v8085_v32 }
0x1a52   :  { %v13818_v50 = vpop.f32.mrf.mxu1 }
0x1a53   :  { %v7434_v51 = vpop.f32.mrf.mxu0 }
0x1a54   :  { %v7447_v19 = vsel %vm331_vm2, %v7434_v51, -inf }
0x1a55   :  { %7445 = vmax.xlane.f32.xlu0 %v7444_v10  ;;  %7448 = vmax.xlane.f32.xlu1 %v7447_v19  ;;  %v13823_v60 = vpop.f32.mrf.mxu0 }
0x1a66   :  { %7558 = vrot.lane.b32.xlu1 %v16143_v38, %s17785_s4 }
0x1a6b   :  { %7482 = vrot.lane.b32.xlu0 %v16073_v28, %s17785_s4 }
0x1ad7   :  { %v7440_v39 = vpop.xlane.xlu1 %7439 }
0x1ad8   :  { %v7450_v47 = vsub.f32 %v7206_v34, %v7440_v39  ;;  %v8101_v34 = vsel %vm90_vm0, %v16258_v33, 0.0 }
0x1ada   :  { %v7454_v23 = vmul.f32 1.442695, %v7450_v47  ;;  %v7443_v55 = vpop.xlane.xlu0 %7442 }
0x1adb   :  { %v7451_v57 = vsub.f32 %v7282_v37, %v7443_v55 }
0x1adc   :  { %14110 = vpow2.f32 %v7454_v23 }
0x1add   :  { %v7456_v62 = vmul.f32 1.442695, %v7451_v57 }
0x1ade   :  { %v7449_v17 = vpop.xlane.xlu1 %7448  ;;  %v7446_v4 = vpop.xlane.xlu0 %7445 }
0x1adf   :  { %14112 = vpow2.f32 %v7456_v62  ;;  %v7453_v63 = vsub.f32 %v7434_v51, %v7449_v17  ;;  %v7452_v43 = vsub.f32 %v7358_v0, %v7446_v4 }
0x1ae1   :  { %v7460_v12 = vmul.f32 1.442695, %v7453_v63  ;;  %v7458_v21 = vmul.f32 1.442695, %v7452_v43 }
0x1ae2   :  { %v7559_v54 = vpop.permute.xlu1 %7558  ;;  %v7483_v9 = vpop.permute.xlu0 %7482 }
0x1ae3   :  { %14114 = vpow2.f32 %v7460_v12  ;;  %13825 = vmatpush3.msra.mxu1 %v7483_v9  ;;  %13830 = vmatpush3.msra.mxu0 %v7559_v54 }
0x1ae4   :  { %14116 = vpow2.f32 %v7458_v21  ;;  %13834 = vmatprep.subr.mxu1 %v14178_v27  ;;  %13839 = vmatprep.subr.mxu0 %v14178_v27 }
0x1ae9   :  { %v14111_v28 = vpop.eup %14110 }
0x1aea   :  { %v7462_v38 = vsel %vm331_vm2, %v14111_v28, 0.0 }
0x1aeb   :  { %7463 = vadd.xlane.f32.xlu0 %v7462_v38 }
0x1aec   :  { %v14113_v26 = vpop.eup %14112 }
0x1aed   :  { %v7465_v3 = vsel %vm331_vm2, %v14113_v26, 0.0 }
0x1aee   :  { %7466 = vadd.xlane.f32.xlu1 %v7465_v3 }
0x1af0   :  { %v14115_v25 = vpop.eup %14114 }
0x1af1   :  { %v14117_v1 = vpop.eup %14116  ;;  %v7471_v31 = vsel %vm331_vm2, %v14115_v25, 0.0 }
0x1af2   :  { %7472 = vadd.xlane.f32.xlu1 %v7471_v31  ;;  %v7468_v15 = vsel %vm331_vm2, %v14117_v1, 0.0 }
0x1af3   :  { %7469 = vadd.xlane.f32.xlu0 %v7468_v15 }
0x1b03   :  { %7634 = vrot.lane.b32.xlu1 %v16145_v8, %s17785_s4 }
0x1b09   :  { %7710 = vrot.lane.b32.xlu0 %v16151_v49, %s17785_s4 }
0x1b27   :  { %8102 = vadd.xlane.f32.xlu1 %v8101_v34 }
0x1b74   :  { %v7464_v58 = vpop.xlane.xlu0 %7463 }
0x1b75   :  { %14118 = vrcp.f32 %v7464_v58 }
0x1b77   :  { %v7467_v8 = vpop.xlane.xlu1 %7466 }
0x1b78   :  { %14120 = vrcp.f32 %v7467_v8 }
0x1b7b   :  { %v7473_v59 = vpop.xlane.xlu1 %7472 }
0x1b7c   :  { %14122 = vrcp.f32 %v7473_v59  ;;  %v7470_v49 = vpop.xlane.xlu0 %7469 }
0x1b7d   :  { %14124 = vrcp.f32 %v7470_v49 }
0x1b7f   :  { %v7635_v37 = vpop.permute.xlu1 %7634 }
0x1b80   :  { %v7711_v41 = vpop.permute.xlu0 %7710 }
0x1b82   :  { %v14119_v40 = vpop.eup %14118 }
0x1b83   :  { %v7478_v35 = vmul.f32 %v14119_v40, %v14111_v28 }
0x1b85   :  { %v14121_v36 = vpop.eup %14120  ;;  %13827 = vmatmul.mubr.msk.f32.vlgmr.msra.gmra.mxu1 %vm331_vm2, %v7478_v35 }
0x1b86   :  { %13835 = vmatpush3.msra.mxu1 %v7635_v37  ;;  %v7479_v0 = vmul.f32 %v14121_v36, %v14113_v26  ;;  %13836 = vmatprep.mubr.msk.f32.mxu1 %vm14179_vm1, %v14178_v27 }
0x1b87   :  { %13844 = vmatprep.subr.mxu1 %v14178_v27 }
0x1b88   :  { %13832 = vmatmul.mubr.msk.f32.vlgmr.msra.gmra.mxu0 %vm331_vm2, %v7479_v0  ;;  %v12223_v0 = vld [vmem:[%s17778_s9 + $0x1] ss:$0 sm:$0xff] }
0x1b89   :  { %v14123_v45 = vpop.eup %14122  ;;  %13840 = vmatpush3.msra.mxu0 %v7711_v41  ;;  %13841 = vmatprep.mubr.msk.f32.mxu0 %vm14179_vm1, %v14178_v27 }
0x1b8a   :  { %v14125_v50 = vpop.eup %14124  ;;  %v7481_v51 = vmul.f32 %v14123_v45, %v14115_v25  ;;  %13849 = vmatprep.subr.mxu0 %v14178_v27  ;;  %v12224_v45 = vld [vmem:[%s17780_s2 + $0x1] ss:$0 sm:$0xff] }
0x1b8b   :  { %v7480_v10 = vmul.f32 %v14125_v50, %v14117_v1 }
0x1b8c   :  { %13842 = vmatmul.mubr.msk.f32.vlgmr.msra.gmra.mxu0 %vm331_vm2, %v7481_v51 }
0x1b8d   :  { %13837 = vmatmul.mubr.msk.f32.vlgmr.msra.gmra.mxu1 %vm331_vm2, %v7480_v10  ;;  %13850 = vmatpush3.msra.mxu0 %v16168_v5  ;;  %v12228_v10 = vld [vmem:[%s17779_s3 + $0x38] sm:$0xff] }
0x1b8e   :  { %13845 = vmatpush3.msra.mxu1 %v16156_v22  ;;  %13846 = vmatprep.mubr.msk.f32.mxu1 %vm14179_vm1, %v14178_v27 }
0x1b8f   :  { %13851 = vmatprep.mubr.msk.f32.mxu0 %vm14179_vm1, %v14178_v27  ;;  %13854 = vmatprep.subr.mxu1 %v14178_v27 }
0x1b90   :  { %13859 = vmatprep.subr.mxu0 %v14178_v27 }
0x1bb0   :  { %v8103_v4 = vpop.xlane.xlu1 %8102 }
0x1bb1   :  { %v8107_v28 = vmul.f32 0.03125, %v8103_v4 }
0x1bb3   :  { %v8109_v1 = vsub.f32 %v16258_v33, %v8107_v28 }
0x1bb5   :  { %v8111_v34 = vmul.f32 %v8109_v1, %v8109_v1 }
0x1bb7   :  { %v8113_v58 = vsel %vm90_vm0, %v8111_v34, 0.0 }
0x1c45   :  { %v7554_v19 = vpop.f32.mrf.mxu1 }
0x1c46   :  { %13847 = vmatmul.mubr.msk.f32.vlgmr.msra.gmra.mxu1 %vm331_vm2, %v7554_v19  ;;  %v12227_v19 = vld [vmem:[%s17779_s3 + $0x30] sm:$0xff] }
0x1c47   :  { %v13828_v60 = vpop.f32.mrf.mxu1  ;;  %13855 = vmatpush3.msra.mxu1 %v16182_v16  ;;  %13856 = vmatprep.mubr.msk.f32.mxu1 %vm14179_vm1, %v14178_v27 }
0x1c48   :  { %v7630_v22 = vpop.f32.mrf.mxu0  ;;  %13864 = vmatprep.subr.mxu1 %v12228_v10  ;;  %v12226_v60 = vld [vmem:[%s17779_s3 + $0x28] sm:$0xff] }
0x1c49   :  { %13852 = vmatmul.mubr.msk.f32.vlgmr.msra.gmra.mxu0 %vm331_vm2, %v7630_v22  ;;  %v12225_v22 = vld [vmem:[%s17779_s3 + $0x20] sm:$0xff] }
0x1c4a   :  { %v13833_v5 = vpop.f32.mrf.mxu0  ;;  %13860 = vmatpush3.msra.mxu0 %v16192_v61  ;;  %13861 = vmatprep.mubr.msk.f32.mxu0 %vm14179_vm1, %v14178_v27 }
0x1c4b   :  { %13875 = vmatprep.subr.mxu0 %v14178_v27 }
0x1c4c   :  { %v7782_v39 = vpop.f32.mrf.mxu0 }
0x1c4d   :  { %v7706_v47 = vpop.f32.mrf.mxu1  ;;  %13862 = vmatmul.mubr.msk.f32.vlgmr.msra.gmra.mxu0 %vm331_vm2, %v7782_v39 }
0x1c4e   :  { %13857 = vmatmul.mubr.msk.f32.vlgmr.msra.gmra.mxu1 %vm331_vm2, %v7706_v47  ;;  %v13843_v16 = vpop.f32.mrf.mxu0  ;;  %13877 = vmatprep.mubr.msk.f32.mxu0 %vm14179_vm1, %v14178_v27 }
0x1c4f   :  { %v13838_v23 = vpop.f32.mrf.mxu1  ;;  %13865 = vmatpush3.msra.mxu1 %v12228_v10 }
0x1c50   :  { %13866 = vmatprep.subr.mxu1 %v12227_v19 }
0x1c51   :  { %13867 = vmatpush3.msra.mxu1 %v12227_v19 }
0x1c52   :  { %13868 = vmatprep.subr.mxu1 %v12226_v60 }
0x1c53   :  { %13869 = vmatpush3.msra.mxu1 %v12226_v60 }
0x1c54   :  { %13870 = vmatprep.subr.mxu1 %v12225_v22 }
0x1c55   :  { %13871 = vmatpush3.msra.mxu1 %v12225_v22 }
0x1c56   :  { %13885 = vmatprep.subr.mxu1 %v14178_v27 }
0x1d06   :  { %v7855_v55 = vpop.f32.mrf.mxu1 }
0x1d07   :  { %v8078_v63 = vsel %vm90_vm0, %v7855_v55, 0.0 }
0x1d08   :  { %v13848_v57 = vpop.f32.mrf.mxu1 }
0x1d09   :  { %v7928_v62 = vpop.f32.mrf.mxu0 }
0x1d0a   :  { %v8079_v61 = vsel %vm90_vm0, %v7928_v62, 0.0 }
0x1d0b   :  { %v13853_v17 = vpop.f32.mrf.mxu0  ;;  %v8080_v12 = vadd.f32 %v8079_v61, %v8078_v63 }
0x1d0c   :  { %v12230_v17 = vld [vmem:[%s17713_s8 + $0x1] ss:$0 sm:$0xff]  ;;  %s14181_s8 = smov 32  }
0x1d0d   :  { %v8074_v43 = vpop.f32.mrf.mxu0 }
0x1d0e   :  { %v8001_v21 = vpop.f32.mrf.mxu1  ;;  %v8083_v3 = vsel %vm90_vm0, %v8074_v43, 0.0 }
0x1d0f   :  { %v8081_v54 = vsel %vm90_vm0, %v8001_v21, 0.0  ;;  %v13863_v9 = vpop.f32.mrf.mxu0 }
0x1d10   :  { %v8082_v38 = vadd.f32 %v8081_v54, %v8080_v12  ;;  %v13858_v26 = vpop.f32.mrf.mxu1 }
0x1d12   :  { %v8084_v25 = vadd.f32 %v8083_v3, %v8082_v38 }
0x1d14   :  { %v8086_v31 = vadd.f32 %v8084_v25, %v16064_v29 }
0x1d16   :  { %v8096_v15 = vadd.f32 %v16255_v30, %v8086_v31 }
0x1d18   :  { %v8104_v32 = vsel %vm90_vm0, %v8096_v15, 0.0 }
0x1d19   :  { %8105 = vadd.xlane.f32.xlu0 %v8104_v32 }
0x1d1d   :  { %8114 = vadd.xlane.f32.xlu0 %v8113_v58 }
0x1d33   :  { %8249 = vrot.lane.b32.xlu0 %v14621_v20, %s17785_s4 }
0x1da2   :  { %v8106_v8 = vpop.xlane.xlu0 %8105 }
0x1da3   :  { %v8108_v59 = vmul.f32 0.03125, %v8106_v8 }
0x1da5   :  { %v8110_v49 = vsub.f32 %v8096_v15, %v8108_v59 }
0x1da6   :  { %v8115_v40 = vpop.xlane.xlu0 %8114 }
0x1da7   :  { %v8119_v35 = vmul.f32 0.03125, %v8115_v40  ;;  %v8112_v33 = vmul.f32 %v8110_v49, %v8110_v49 }
0x1da9   :  { %v8121_v36 = vadd.f32 1e-05, %v8119_v35  ;;  %v8116_v29 = vsel %vm90_vm0, %v8112_v33, 0.0 }
0x1daa   :  { %8117 = vadd.xlane.f32.xlu1 %v8116_v29  ;;  %v8250_v30 = vpop.permute.xlu0 %8249 }
0x1dab   :  { %14126 = vrsqrt.f32 %v8121_v36  ;;  %13876 = vmatpush3.xpose.msk.msra.mxu0 %vm331_vm2, %v8250_v30 }
0x1dac   :  { %13880 = vmatprep.subr.mxu0 %v14178_v27 }
0x1db8   :  { %v14127_v37 = vpop.eup %14126 }
0x1db9   :  { %v8125_v41 = vmul.f32 %v14127_v37, %v8109_v1 }
0x1dbb   :  { %8325 = vrot.lane.b32.xlu1 %v14687_v18, %s17785_s4  ;;  %v8133_v50 = vmul.f32 %v12223_v0, %v8125_v41 }
0x1dbd   :  { %v16315_v51 = vadd.f32 %v12224_v45, %v8133_v50 }
0x1dbf   :  { %8401 = vrot.lane.b32.xlu1 %v14671_v11, %s17785_s4  ;;  %13872 = vmatprep.mubr.msk.f32.mxu1 %vm90_vm0, %v16315_v51 }
0x1dc3   :  { %8477 = vrot.lane.b32.xlu1 %v14696_v46, %s17785_s4 }
0x1e33   :  { %v8118_v5 = vpop.xlane.xlu1 %8117 }
0x1e34   :  { %v8120_v39 = vmul.f32 0.03125, %v8118_v5 }
0x1e36   :  { %v8122_v47 = vadd.f32 1e-05, %v8120_v39 }
0x1e37   :  { %v8326_v55 = vpop.permute.xlu1 %8325 }
0x1e38   :  { %14128 = vrsqrt.f32 %v8122_v47 }
0x1e3b   :  { %v8402_v61 = vpop.permute.xlu1 %8401 }
0x1e3f   :  { %v8478_v21 = vpop.permute.xlu1 %8477 }
0x1e45   :  { %v14129_v16 = vpop.eup %14128 }
0x1e46   :  { %v8126_v23 = vmul.f32 %v14129_v16, %v8110_v49 }
0x1e48   :  { %v8134_v57 = vmul.f32 %v12223_v0, %v8126_v23 }
0x1e4a   :  { %v16336_v62 = vadd.f32 %v12224_v45, %v8134_v57 }
0x1e4c   :  { %13873 = vmatmul.mubr.msk.f32.vlgmr.msra.gmra.mxu1 %vm90_vm0, %v16336_v62 }
0x1e4d   :  { %13886 = vmatpush3.xpose.msk.msra.mxu1 %vm331_vm2, %v8402_v61  ;;  %13887 = vmatprep.mubr.msk.f32.mxu1 %vm14179_vm1, %v14178_v27 }
0x1e4e   :  { %13895 = vmatprep.subr.mxu1 %v14178_v27 }
0x1f0c   :  { %v13874_v4 = vpop.f32.mrf.mxu1 }
0x1f0d   :  { %v16347_v63 = vadd.f32 %v13874_v4, %v12230_v17 }
0x1f0e   :  { %v8228_v43 = vpop.f32.mrf.mxu1 }
0x1f0f   :  { %v8229_v12 = vadd.f32 %v12230_v17, %v8228_v43 }
0x1f11   :  { %8247 = vrot.lane.b32.xlu1 %v8229_v12, %s17782_s0  ;;  %8243 = vrot.lane.b32.xlu0 %v8229_v12, %s17783_s18 }
0x1f12   :  { %13878 = vmatmul.mubr.msk.f32.vlgmr.msra.gmra.mxu0 %vm331_vm2, %v8229_v12 }
0x1f13   :  { %13881 = vmatpush3.xpose.msk.msra.mxu0 %vm331_vm2, %v8326_v55  ;;  %13882 = vmatprep.mubr.msk.f32.mxu0 %vm14179_vm1, %v14178_v27 }
0x1f14   :  { %13890 = vmatprep.subr.mxu0 %v14178_v27 }
0x1f15   :  { %8245 = vrot.lane.b32.xlu0 %v8229_v12, %s17781_s27 }
0x1f83   :  { %v8244_v54 = vpop.permute.xlu0 %8243  ;;  %v8248_v9 = vpop.permute.xlu1 %8247 }
0x1f84   :  { %13883 = vmatmul.mubr.msk.f32.vlgmr.msra.gmra.mxu0 %vm331_vm2, %v8244_v54 }
0x1f85   :  { %13891 = vmatpush3.xpose.msk.msra.mxu0 %vm331_vm2, %v8478_v21  ;;  %13892 = vmatprep.mubr.msk.f32.mxu0 %vm14179_vm1, %v14178_v27 }
0x1f86   :  { %13900 = vmatprep.subr.mxu0 %v14178_v27 }
0x1f87   :  { %v8246_v28 = vpop.permute.xlu0 %8245 }
0x1f88   :  { %13888 = vmatmul.mubr.msk.f32.vlgmr.msra.gmra.mxu1 %vm331_vm2, %v8246_v28  ;;  %13893 = vmatmul.mubr.msk.f32.vlgmr.msra.gmra.mxu0 %vm331_vm2, %v8248_v9  ;;  %v16410_v9 = vld [vmem:[%s17714_s11 + $0x20] sm:$0xff] }
0x1f89   :  { %13897 = vmatprep.mubr.msk.f32.mxu1 %vm14179_vm1, %v14178_v27  ;;  %13902 = vmatprep.mubr.msk.f32.mxu0 %vm14179_vm1, %v14178_v27 }
0x1fd2   :  { %v8321_v38 = vpop.f32.mrf.mxu0 }
0x1fd3   :  { %v8553_v26 = vsel %vm331_vm2, %v8321_v38, -inf }
0x1fd4   :  { %8554 = vmax.xlane.f32.xlu0 %v8553_v26  ;;  %v13879_v3 = vpop.f32.mrf.mxu0  ;;  %v16424_v26 = vld [vmem:[%s17714_s11 + $0x28] sm:$0xff] }
0x1fd5   :  { %v16431_v3 = vld [vmem:[%s17714_s11 + $0x30] sm:$0xff] }
0x2044   :  { %v8397_v25 = vpop.f32.mrf.mxu0 }
0x2045   :  { %v8556_v1 = vsel %vm331_vm2, %v8397_v25, -inf }
0x2046   :  { %8557 = vmax.xlane.f32.xlu1 %v8556_v1  ;;  %v13884_v31 = vpop.f32.mrf.mxu0 }
0x2048   :  { %v8473_v15 = vpop.f32.mrf.mxu1  ;;  %v8549_v32 = vpop.f32.mrf.mxu0 }
0x2049   :  { %v8559_v34 = vsel %vm331_vm2, %v8473_v15, -inf  ;;  %v8562_v59 = vsel %vm331_vm2, %v8549_v32, -inf }
0x204a   :  { %v13889_v58 = vpop.f32.mrf.mxu1  ;;  %8560 = vmax.xlane.f32.xlu0 %v8559_v34  ;;  %v13894_v8 = vpop.f32.mrf.mxu0 }
0x204e   :  { %8563 = vmax.xlane.f32.xlu0 %v8562_v59 }
0x2057   :  { %8597 = vrot.lane.b32.xlu1 %v14621_v20, %s14181_s8 }
0x205d   :  { %v8555_v49 = vpop.xlane.xlu0 %8554 }
0x205e   :  { %v8565_v40 = vsub.f32 %v8321_v38, %v8555_v49 }
0x2060   :  { %v8569_v35 = vmul.f32 1.442695, %v8565_v40 }
0x2062   :  { %14130 = vpow2.f32 %v8569_v35 }
0x206f   :  { %v14131_v33 = vpop.eup %14130 }
0x2070   :  { %v8577_v36 = vsel %vm331_vm2, %v14131_v33, 0.0 }
0x207b   :  { %8578 = vadd.xlane.f32.xlu1 %v8577_v36 }
0x20cf   :  { %v8558_v29 = vpop.xlane.xlu1 %8557 }
0x20d0   :  { %v8566_v30 = vsub.f32 %v8397_v25, %v8558_v29 }
0x20d2   :  { %v8571_v37 = vmul.f32 1.442695, %v8566_v30 }
0x20d3   :  { %v8561_v0 = vpop.xlane.xlu0 %8560  ;;  %v8598_v41 = vpop.permute.xlu1 %8597 }
0x20d4   :  { %14132 = vpow2.f32 %v8571_v37  ;;  %v8567_v45 = vsub.f32 %v8473_v15, %v8561_v0  ;;  %13896 = vmatpush3.msra.mxu1 %v8598_v41  ;;  %v16441_v15 = vld [vmem:[%s17714_s11 + $0x38] sm:$0xff] }
0x20d5   :  { %13905 = vmatprep.subr.mxu1 %v14178_v27 }
0x20d6   :  { %v8573_v50 = vmul.f32 1.442695, %v8567_v45 }
0x20d7   :  { %v8564_v20 = vpop.xlane.xlu0 %8563 }
0x20d8   :  { %14134 = vpow2.f32 %v8573_v50  ;;  %v8568_v10 = vsub.f32 %v8549_v32, %v8564_v20 }
0x20da   :  { %v8575_v19 = vmul.f32 1.442695, %v8568_v10 }
0x20dc   :  { %14136 = vpow2.f32 %v8575_v19 }
0x20e1   :  { %v14133_v60 = vpop.eup %14132 }
0x20e2   :  { %v8580_v22 = vsel %vm331_vm2, %v14133_v60, 0.0 }
0x20e3   :  { %8581 = vadd.xlane.f32.xlu0 %v8580_v22 }
0x20e5   :  { %v14135_v5 = vpop.eup %14134 }
0x20e6   :  { %v8583_v39 = vsel %vm331_vm2, %v14135_v5, 0.0 }
0x20e7   :  { %8584 = vadd.xlane.f32.xlu1 %v8583_v39 }
0x20e9   :  { %v14137_v47 = vpop.eup %14136 }
0x20ea   :  { %v8586_v16 = vsel %vm331_vm2, %v14137_v47, 0.0 }
0x20eb   :  { %8587 = vadd.xlane.f32.xlu0 %v8586_v16 }
0x20f8   :  { %8749 = vrot.lane.b32.xlu1 %v14671_v11, %s14181_s8 }
0x20fc   :  { %8825 = vrot.lane.b32.xlu1 %v14696_v46, %s14181_s8 }
0x2100   :  { %9283 = vrot.lane.b32.xlu1 %v14783_v48, %s17785_s4 }
0x2101   :  { %8673 = vrot.lane.b32.xlu0 %v14687_v18, %s14181_s8 }
0x2104   :  { %9201 = vrot.lane.b32.xlu1 %v16347_v63, %s17783_s18  ;;  %v8579_v23 = vpop.xlane.xlu1 %8578 }
0x2105   :  { %14138 = vrcp.f32 %v8579_v23  ;;  %9207 = vrot.lane.b32.xlu0 %v14439_v53, %s17785_s4 }
0x2108   :  { %9203 = vrot.lane.b32.xlu1 %v16347_v63, %s17781_s27 }
0x2109   :  { %9359 = vrot.lane.b32.xlu0 %v14785_v52, %s17785_s4 }
0x210d   :  { %9435 = vrot.lane.b32.xlu0 %v14796_v24, %s17785_s4  ;;  %s17791_s4 = sld [smem:[#allocation19_spill]] }
0x2111   :  { %9205 = vrot.lane.b32.xlu0 %v16347_v63, %s17782_s0  ;;  %s17790_s0 = sld [smem:[#allocation18_spill]] }
0x2112   :  { %v14139_v11 = vpop.eup %14138 }
0x2113   :  { %v8593_v18 = vmul.f32 %v14139_v11, %v14131_v33 }
0x2115   :  { %13898 = vmatmul.mubr.msk.f32.vlgmr.msra.gmra.mxu1 %vm331_vm2, %v8593_v18 }
0x2116   :  { %13907 = vmatprep.mubr.msk.f32.mxu1 %vm14179_vm1, %v14178_v27 }
0x216c   :  { %v8582_v46 = vpop.xlane.xlu0 %8581 }
0x216d   :  { %14140 = vrcp.f32 %v8582_v46 }
0x2170   :  { %v8585_v55 = vpop.xlane.xlu1 %8584 }
0x2171   :  { %14142 = vrcp.f32 %v8585_v55 }
0x2174   :  { %v8750_v57 = vpop.permute.xlu1 %8749  ;;  %v8588_v61 = vpop.xlane.xlu0 %8587 }
0x2175   :  { %14144 = vrcp.f32 %v8588_v61  ;;  %13906 = vmatpush3.msra.mxu1 %v8750_v57 }
0x2176   :  { %13915 = vmatprep.subr.mxu1 %v14178_v27 }
0x2178   :  { %v8674_v17 = vpop.permute.xlu0 %8673  ;;  %v8826_v12 = vpop.permute.xlu1 %8825 }
0x2179   :  { %13901 = vmatpush3.msra.mxu0 %v8674_v17 }
0x217a   :  { %v14141_v4 = vpop.eup %14140  ;;  %13910 = vmatprep.subr.mxu0 %v14178_v27 }
0x217b   :  { %v8594_v43 = vmul.f32 %v14141_v4, %v14133_v60 }
0x217c   :  { %v9208_v31 = vpop.permute.xlu0 %9207  ;;  %v9284_v32 = vpop.permute.xlu1 %9283 }
0x217d   :  { %13903 = vmatmul.mubr.msk.f32.vlgmr.msra.gmra.mxu0 %vm331_vm2, %v8594_v43 }
0x217e   :  { %v14143_v21 = vpop.eup %14142  ;;  %13911 = vmatpush3.msra.mxu0 %v8826_v12  ;;  %13912 = vmatprep.mubr.msk.f32.mxu0 %vm14179_vm1, %v14178_v27 }
0x217f   :  { %v8595_v54 = vmul.f32 %v14143_v21, %v14135_v5  ;;  %13920 = vmatprep.subr.mxu0 %v14178_v27 }
0x2180   :  { %v9360_v8 = vpop.permute.xlu0 %9359  ;;  %v9202_v49 = vpop.permute.xlu1 %9201 }
0x2181   :  { %13908 = vmatmul.mubr.msk.f32.vlgmr.msra.gmra.mxu1 %vm331_vm2, %v8595_v54 }
0x2182   :  { %v14145_v28 = vpop.eup %14144  ;;  %13916 = vmatpush3.msra.mxu1 %v16410_v9  ;;  %13917 = vmatprep.mubr.msk.f32.mxu1 %vm14179_vm1, %v14178_v27 }
0x2183   :  { %v8596_v38 = vmul.f32 %v14145_v28, %v14137_v47  ;;  %13925 = vmatprep.subr.mxu1 %v14178_v27 }
0x2184   :  { %v9436_v33 = vpop.permute.xlu0 %9435  ;;  %v9204_v29 = vpop.permute.xlu1 %9203 }
0x2185   :  { %13913 = vmatmul.mubr.msk.f32.vlgmr.msra.gmra.mxu0 %vm331_vm2, %v8596_v38 }
0x2186   :  { %13922 = vmatprep.mubr.msk.f32.mxu0 %vm14179_vm1, %v14178_v27  ;;  %13921 = vmatpush3.msra.mxu0 %v16424_v26 }
0x2187   :  { %13930 = vmatprep.subr.mxu0 %v14178_v27 }
0x21d5   :  { %v8669_v25 = vpop.f32.mrf.mxu1 }
0x21d6   :  { %13918 = vmatmul.mubr.msk.f32.vlgmr.msra.gmra.mxu1 %vm331_vm2, %v8669_v25 }
0x21d7   :  { %v13899_v1 = vpop.f32.mrf.mxu1  ;;  %13926 = vmatpush3.msra.mxu1 %v16431_v3  ;;  %13927 = vmatprep.mubr.msk.f32.mxu1 %vm14179_vm1, %v14178_v27 }
0x21d8   :  { %13935 = vmatprep.subr.mxu1 %v14178_v27 }
0x223d   :  { %v8745_v34 = vpop.f32.mrf.mxu0 }
0x223e   :  { %13923 = vmatmul.mubr.msk.f32.vlgmr.msra.gmra.mxu0 %vm331_vm2, %v8745_v34 }
0x223f   :  { %v13904_v58 = vpop.f32.mrf.mxu0  ;;  %13931 = vmatpush3.msra.mxu0 %v16441_v15  ;;  %13932 = vmatprep.mubr.msk.f32.mxu0 %vm14179_vm1, %v14178_v27 }
0x2240   :  { %13940 = vmatprep.subr.mxu0 %v14178_v27 }
0x2241   :  { %v8821_v59 = vpop.f32.mrf.mxu1 }
0x2242   :  { %13928 = vmatmul.mubr.msk.f32.vlgmr.msra.gmra.mxu1 %vm331_vm2, %v8821_v59 }
0x2243   :  { %13936 = vmatpush3.xpose.msk.msra.mxu1 %vm331_vm2, %v9208_v31  ;;  %v13909_v40 = vpop.f32.mrf.mxu1  ;;  %13937 = vmatprep.mubr.msk.f32.mxu1 %vm14179_vm1, %v14178_v27 }
0x2244   :  { %13945 = vmatprep.subr.mxu1 %v14178_v27 }
0x2245   :  { %v8897_v35 = vpop.f32.mrf.mxu0 }
0x2246   :  { %13933 = vmatmul.mubr.msk.f32.vlgmr.msra.gmra.mxu0 %vm331_vm2, %v8897_v35  ;;  %13938 = vmatmul.mubr.msk.f32.vlgmr.msra.gmra.mxu1 %vm331_vm2, %v16347_v63  ;;  %v9206_v63 = vpop.permute.xlu0 %9205 }
0x2247   :  { %13941 = vmatpush3.xpose.msk.msra.mxu0 %vm331_vm2, %v9284_v32  ;;  %13946 = vmatpush3.xpose.msk.msra.mxu1 %vm331_vm2, %v9360_v8  ;;  %v13914_v36 = vpop.f32.mrf.mxu0 }
0x2248   :  { %13942 = vmatprep.mubr.msk.f32.mxu0 %vm14179_vm1, %v14178_v27  ;;  %13947 = vmatprep.mubr.msk.f32.mxu1 %vm14179_vm1, %v14178_v27 }
0x2249   :  { %13950 = vmatprep.subr.mxu0 %v14178_v27  ;;  %13955 = vmatprep.subr.mxu1 %v14178_v27 }
0x224a   :  { %13943 = vmatmul.mubr.msk.f32.vlgmr.msra.gmra.mxu0 %vm331_vm2, %v9202_v49  ;;  %13948 = vmatmul.mubr.msk.f32.vlgmr.msra.gmra.mxu1 %vm331_vm2, %v9204_v29 }
0x224b   :  { %13951 = vmatpush3.xpose.msk.msra.mxu0 %vm331_vm2, %v9436_v33  ;;  %13952 = vmatprep.mubr.msk.f32.mxu0 %vm14179_vm1, %v14178_v27 }
0x224c   :  { %13960 = vmatprep.subr.mxu0 %v14178_v27  ;;  %13957 = vmatprep.mubr.msk.f32.mxu1 %vm14179_vm1, %v14178_v27 }
0x224e   :  { %13953 = vmatmul.mubr.msk.f32.vlgmr.msra.gmra.mxu0 %vm331_vm2, %v9206_v63 }
0x224f   :  { %13962 = vmatprep.mubr.msk.f32.mxu0 %vm14179_vm1, %v14178_v27 }
0x2296   :  { %v8970_v30 = vpop.f32.mrf.mxu1 }
0x2297   :  { %v9193_v41 = vsel %vm90_vm0, %v8970_v30, 0.0 }
0x2298   :  { %v13919_v37 = vpop.f32.mrf.mxu1 }
0x22fe   :  { %v9043_v0 = vpop.f32.mrf.mxu0 }
0x22ff   :  { %v9194_v45 = vsel %vm90_vm0, %v9043_v0, 0.0 }
0x2300   :  { %v9195_v50 = vadd.f32 %v9194_v45, %v9193_v41  ;;  %v13924_v20 = vpop.f32.mrf.mxu0  ;;  %v16501_v41 = vld [vmem:[%s17786_s10 + $0x1] ss:$0 sm:$0xff] }
0x2302   :  { %v9116_v10 = vpop.f32.mrf.mxu1 }
0x2303   :  { %v9196_v19 = vsel %vm90_vm0, %v9116_v10, 0.0 }
0x2304   :  { %v9197_v60 = vadd.f32 %v9196_v19, %v9195_v50  ;;  %v13929_v22 = vpop.f32.mrf.mxu1 }
0x2306   :  { %v9189_v5 = vpop.f32.mrf.mxu0  ;;  %v9279_v39 = vpop.f32.mrf.mxu1 }
0x2307   :  { %v9198_v47 = vsel %vm90_vm0, %v9189_v5, 0.0  ;;  %v9511_v16 = vsel %vm331_vm2, %v9279_v39, -inf }
0x2308   :  { %v9199_v23 = vadd.f32 %v9198_v47, %v9197_v60  ;;  %9512 = vmax.xlane.f32.xlu1 %v9511_v16  ;;  %v13934_v11 = vpop.f32.mrf.mxu0  ;;  %v13939_v18 = vpop.f32.mrf.mxu1 }
0x230a   :  { %v9355_v46 = vpop.f32.mrf.mxu0  ;;  %v9431_v55 = vpop.f32.mrf.mxu1  ;;  %v10158_v0 = vadd.f32 %v9199_v23, %v16315_v51 }
0x230b   :  { %v9514_v57 = vsel %vm331_vm2, %v9355_v46, -inf  ;;  %v9517_v43 = vsel %vm331_vm2, %v9431_v55, -inf }
0x230c   :  { %v13949_v61 = vpop.f32.mrf.mxu1  ;;  %9515 = vmax.xlane.f32.xlu0 %v9514_v57  ;;  %v13944_v17 = vpop.f32.mrf.mxu0  ;;  %v16504_v45 = vadd.f32 %v16501_v41, %v10158_v0  ;;  %v12307_v0 = vld [vmem:[%s17716_s13 + $0x300] sm:$0xff] }
0x230e   :  { %v9507_v4 = vpop.f32.mrf.mxu0  ;;  %v10174_v50 = vsel %vm90_vm0, %v16504_v45, 0.0 }
0x230f   :  { %v9520_v12 = vsel %vm331_vm2, %v9507_v4, -inf }
0x2310   :  { %9518 = vmax.xlane.f32.xlu0 %v9517_v43  ;;  %9521 = vmax.xlane.f32.xlu1 %v9520_v12  ;;  %v13954_v21 = vpop.f32.mrf.mxu0 }
0x2321   :  { %9631 = vrot.lane.b32.xlu1 %v14783_v48, %s14181_s8 }
0x2326   :  { %9555 = vrot.lane.b32.xlu0 %v14439_v53, %s14181_s8 }
0x2391   :  { %v9513_v54 = vpop.xlane.xlu1 %9512 }
0x2392   :  { %v9523_v28 = vsub.f32 %v9279_v39, %v9513_v54 }
0x2394   :  { %v9527_v38 = vmul.f32 1.442695, %v9523_v28 }
0x2395   :  { %v9516_v25 = vpop.xlane.xlu0 %9515 }
0x2396   :  { %14146 = vpow2.f32 %v9527_v38  ;;  %v9524_v1 = vsub.f32 %v9355_v46, %v9516_v25 }
0x2398   :  { %v9529_v31 = vmul.f32 1.442695, %v9524_v1 }
0x2399   :  { %v9519_v32 = vpop.xlane.xlu0 %9518  ;;  %v9522_v34 = vpop.xlane.xlu1 %9521 }
0x239a   :  { %14148 = vpow2.f32 %v9529_v31  ;;  %v9525_v58 = vsub.f32 %v9431_v55, %v9519_v32  ;;  %v9526_v8 = vsub.f32 %v9507_v4, %v9522_v34 }
0x239c   :  { %v9531_v59 = vmul.f32 1.442695, %v9525_v58  ;;  %v9533_v49 = vmul.f32 1.442695, %v9526_v8 }
0x239d   :  { %v9556_v40 = vpop.permute.xlu0 %9555  ;;  %v9632_v35 = vpop.permute.xlu1 %9631 }
0x239e   :  { %14150 = vpow2.f32 %v9531_v59  ;;  %13956 = vmatpush3.msra.mxu1 %v9556_v40  ;;  %13961 = vmatpush3.msra.mxu0 %v9632_v35 }
0x239f   :  { %14152 = vpow2.f32 %v9533_v49  ;;  %13965 = vmatprep.subr.mxu1 %v14178_v27  ;;  %13970 = vmatprep.subr.mxu0 %v14178_v27 }
0x23a3   :  { %v14147_v53 = vpop.eup %14146 }
0x23a4   :  { %v9535_v48 = vsel %vm331_vm2, %v14147_v53, 0.0 }
0x23a5   :  { %9536 = vadd.xlane.f32.xlu0 %v9535_v48 }
0x23a7   :  { %v14149_v33 = vpop.eup %14148 }
0x23a8   :  { %v9538_v36 = vsel %vm331_vm2, %v14149_v33, 0.0 }
0x23a9   :  { %9539 = vadd.xlane.f32.xlu1 %v9538_v36  ;;  %v12324_v36 = vld [vmem:[%s17716_s13 + $0x388] sm:$0xff] }
0x23ab   :  { %v14151_v29 = vpop.eup %14150 }
0x23ac   :  { %v14153_v63 = vpop.eup %14152  ;;  %v9541_v30 = vsel %vm331_vm2, %v14151_v29, 0.0 }
0x23ad   :  { %9542 = vadd.xlane.f32.xlu0 %v9541_v30  ;;  %v9544_v37 = vsel %vm331_vm2, %v14153_v63, 0.0  ;;  %v12308_v30 = vld [vmem:[%s17716_s13 + $0x308] sm:$0xff] }
0x23ae   :  { %9545 = vadd.xlane.f32.xlu1 %v9544_v37  ;;  %v12310_v37 = vld [vmem:[%s17716_s13 + $0x318] sm:$0xff] }
0x23bf   :  { %9707 = vrot.lane.b32.xlu1 %v14785_v52, %s14181_s8 }
0x23c3   :  { %9783 = vrot.lane.b32.xlu0 %v14796_v24, %s14181_s8  ;;  %s17789_s8 = sld [smem:[#allocation17_spill]] }
0x23e3   :  { %10175 = vadd.xlane.f32.xlu1 %v10174_v50  ;;  %v12294_v50 = vld [vmem:[%s17716_s13 + $0x298] sm:$0xff] }
0x242e   :  { %v9537_v20 = vpop.xlane.xlu0 %9536 }
0x242f   :  { %14154 = vrcp.f32 %v9537_v20  ;;  %v12291_v20 = vld [vmem:[%s17716_s13 + $0x280] sm:$0xff] }
0x2432   :  { %v9540_v52 = vpop.xlane.xlu1 %9539 }
0x2433   :  { %14156 = vrcp.f32 %v9540_v52  ;;  %v12293_v52 = vld [vmem:[%s17716_s13 + $0x290] sm:$0xff] }
0x2436   :  { %v9543_v10 = vpop.xlane.xlu0 %9542 }
0x2437   :  { %14158 = vrcp.f32 %v9543_v10  ;;  %v9546_v24 = vpop.xlane.xlu1 %9545  ;;  %v12276_v10 = vld [vmem:[%s17716_s13 + $0x208] sm:$0xff] }
0x2438   :  { %14160 = vrcp.f32 %v9546_v24  ;;  %v12278_v24 = vld [vmem:[%s17716_s13 + $0x218] sm:$0xff] }
0x243a   :  { %v9784_v39 = vpop.permute.xlu0 %9783 }
0x243b   :  { %v9708_v60 = vpop.permute.xlu1 %9707 }
0x243c   :  { %v14155_v51 = vpop.eup %14154 }
0x243d   :  { %v9551_v19 = vmul.f32 %v14155_v51, %v14147_v53  ;;  %v12275_v51 = vld [vmem:[%s17716_s13 + $0x200] sm:$0xff] }
0x243f   :  { %13958 = vmatmul.mubr.msk.f32.vlgmr.msra.gmra.mxu1 %vm331_vm2, %v9551_v19  ;;  %v12277_v19 = vld [vmem:[%s17716_s13 + $0x210] sm:$0xff] }
0x2440   :  { %v14157_v22 = vpop.eup %14156  ;;  %13966 = vmatpush3.msra.mxu1 %v9708_v60  ;;  %13967 = vmatprep.mubr.msk.f32.mxu1 %vm14179_vm1, %v14178_v27 }
0x2441   :  { %v9552_v5 = vmul.f32 %v14157_v22, %v14149_v33  ;;  %13975 = vmatprep.subr.mxu1 %v14178_v27 }
0x2443   :  { %13963 = vmatmul.mubr.msk.f32.vlgmr.msra.gmra.mxu0 %vm331_vm2, %v9552_v5 }
0x2444   :  { %v14159_v47 = vpop.eup %14158  ;;  %13971 = vmatpush3.msra.mxu0 %v9784_v39  ;;  %13972 = vmatprep.mubr.msk.f32.mxu0 %vm14179_vm1, %v14178_v27 }
0x2445   :  { %v14161_v16 = vpop.eup %14160  ;;  %v9553_v23 = vmul.f32 %v14159_v47, %v14151_v29  ;;  %13980 = vmatprep.subr.mxu0 %v14178_v27  ;;  %v12326_v29 = vld [vmem:[%s17716_s13 + $0x398] sm:$0xff] }
0x2446   :  { %v9554_v11 = vmul.f32 %v14161_v16, %v14153_v63  ;;  %v12325_v63 = vld [vmem:[%s17716_s13 + $0x390] sm:$0xff] }
0x2447   :  { %13968 = vmatmul.mubr.msk.f32.vlgmr.msra.gmra.mxu1 %vm331_vm2, %v9553_v23 }
0x2448   :  { %13973 = vmatmul.mubr.msk.f32.vlgmr.msra.gmra.mxu0 %vm331_vm2, %v9554_v11  ;;  %13976 = vmatpush3.msra.mxu1 %v16410_v9 }
0x2449   :  { %13977 = vmatprep.mubr.msk.f32.mxu1 %vm14179_vm1, %v14178_v27  ;;  %13981 = vmatpush3.msra.mxu0 %v16424_v26 }
0x244a   :  { %13982 = vmatprep.mubr.msk.f32.mxu0 %vm14179_vm1, %v14178_v27  ;;  %13985 = vmatprep.subr.mxu1 %v14178_v27 }
0x244b   :  { %13990 = vmatprep.subr.mxu0 %v14178_v27 }
0x246c   :  { %v10176_v21 = vpop.xlane.xlu1 %10175 }
0x246d   :  { %v10180_v31 = vmul.f32 0.03125, %v10176_v21  ;;  %v12313_v21 = vld [vmem:[%s17716_s13 + $0x330] sm:$0xff] }
0x246f   :  { %v10182_v49 = vsub.f32 %v16504_v45, %v10180_v31  ;;  %v12292_v45 = vld [vmem:[%s17716_s13 + $0x288] sm:$0xff]  ;;  %v12282_v31 = vld [vmem:[%s17716_s13 + $0x238] sm:$0xff] }
0x2471   :  { %v10184_v48 = vmul.f32 %v10182_v49, %v10182_v49 }
0x2473   :  { %v10186_v33 = vsel %vm90_vm0, %v10184_v48, 0.0 }
0x24ff   :  { %v9627_v18 = vpop.f32.mrf.mxu1 }
0x2500   :  { %13978 = vmatmul.mubr.msk.f32.vlgmr.msra.gmra.mxu1 %vm331_vm2, %v9627_v18 }
0x2501   :  { %v13959_v46 = vpop.f32.mrf.mxu1  ;;  %13986 = vmatpush3.msra.mxu1 %v16431_v3  ;;  %13987 = vmatprep.mubr.msk.f32.mxu1 %vm14179_vm1, %v14178_v27 }
0x2502   :  { %10396 = vmatprep.subr.mxu1 %v12324_v36  ;;  %v12273_v46 = vld [vmem:[%s17717_s19 + $0x1] ss:$0 sm:$0xff] }
0x2503   :  { %v9703_v9 = vpop.f32.mrf.mxu0  ;;  %v12331_v36 = vld [vmem:[%s17716_s13 + $0x3c0] sm:$0xff] }
0x2504   :  { %13983 = vmatmul.mubr.msk.f32.vlgmr.msra.gmra.mxu0 %vm331_vm2, %v9703_v9 }
0x2505   :  { %v13964_v26 = vpop.f32.mrf.mxu0  ;;  %13991 = vmatpush3.msra.mxu0 %v16441_v15  ;;  %13992 = vmatprep.mubr.msk.f32.mxu0 %vm14179_vm1, %v14178_v27 }
0x2506   :  { %10473 = vmatprep.subr.mxu0 %v12326_v29  ;;  %v12274_v26 = vld [vmem:[%s17718_s20 + $0x1] ss:$0 sm:$0xff]  ;;  %v12333_v29 = vld [vmem:[%s17716_s13 + $0x3d0] sm:$0xff] }
0x2507   :  { %v9779_v55 = vpop.f32.mrf.mxu1 }
0x2508   :  { %v9855_v57 = vpop.f32.mrf.mxu0  ;;  %13988 = vmatmul.mubr.msk.f32.vlgmr.msra.gmra.mxu1 %vm331_vm2, %v9779_v55 }
0x2509   :  { %13993 = vmatmul.mubr.msk.f32.vlgmr.msra.gmra.mxu0 %vm331_vm2, %v9855_v57  ;;  %v13969_v61 = vpop.f32.mrf.mxu1  ;;  %10436 = vmatprep.mubr.f32.mxu1 %v14178_v27 }
0x250a   :  { %v13974_v3 = vpop.f32.mrf.mxu0  ;;  %10513 = vmatprep.mubr.f32.mxu0 %v14178_v27  ;;  %10474 = vmatpush1.msra.mxu0 %v12325_v63  ;;  %v12328_v61 = vld [vmem:[%s17716_s13 + $0x3a8] sm:$0xff]  ;;  %v12318_v63 = vld [vmem:[%s17716_s13 + $0x358] sm:$0xff] }
0x250b   :  { %10475 = vmatprep.subr.mxu0 %v12310_v37  ;;  %v12330_v3 = vld [vmem:[%s17716_s13 + $0x3b8] sm:$0xff]  ;;  %v12317_v37 = vld [vmem:[%s17716_s13 + $0x350] sm:$0xff] }
0x25c0   :  { %v9928_v17 = vpop.f32.mrf.mxu1 }
0x25c1   :  { %v10151_v54 = vsel %vm90_vm0, %v9928_v17, 0.0  ;;  %v12327_v17 = vld [vmem:[%s17716_s13 + $0x3a0] sm:$0xff] }
0x25c2   :  { %v13979_v4 = vpop.f32.mrf.mxu1 }
0x25c3   :  { %v12329_v4 = vld [vmem:[%s17716_s13 + $0x3b0] sm:$0xff] }
0x25c4   :  { %v10001_v43 = vpop.f32.mrf.mxu0 }
0x25c5   :  { %v10152_v15 = vsel %vm90_vm0, %v10001_v43, 0.0  ;;  %v12312_v43 = vld [vmem:[%s17716_s13 + $0x328] sm:$0xff] }
0x25c6   :  { %v13984_v12 = vpop.f32.mrf.mxu0  ;;  %v10153_v28 = vadd.f32 %v10152_v15, %v10151_v54  ;;  %v12314_v15 = vld [vmem:[%s17716_s13 + $0x338] sm:$0xff]  ;;  %v12296_v54 = vld [vmem:[%s17716_s13 + $0x2a8] sm:$0xff] }
0x25c7   :  { %v12311_v12 = vld [vmem:[%s17716_s13 + $0x320] sm:$0xff] }
0x25c8   :  { %v10074_v38 = vpop.f32.mrf.mxu1 }
0x25c9   :  { %v10154_v25 = vsel %vm90_vm0, %v10074_v38, 0.0  ;;  %v10147_v1 = vpop.f32.mrf.mxu0  ;;  %v12295_v38 = vld [vmem:[%s17716_s13 + $0x2a0] sm:$0xff] }
0x25ca   :  { %v10155_v32 = vadd.f32 %v10154_v25, %v10153_v28  ;;  %v13989_v34 = vpop.f32.mrf.mxu1  ;;  %v10156_v58 = vsel %vm90_vm0, %v10147_v1, 0.0  ;;  %v12298_v28 = vld [vmem:[%s17716_s13 + $0x2b8] sm:$0xff]  ;;  %v12297_v25 = vld [vmem:[%s17716_s13 + $0x2b0] sm:$0xff]  ;;  %v12280_v1 = vld [vmem:[%s17716_s13 + $0x228] sm:$0xff] }
0x25cb   :  { %v13994_v8 = vpop.f32.mrf.mxu0  ;;  %v12281_v34 = vld [vmem:[%s17716_s13 + $0x230] sm:$0xff] }
0x25cc   :  { %v10157_v59 = vadd.f32 %v10156_v58, %v10155_v32  ;;  %v12279_v32 = vld [vmem:[%s17716_s13 + $0x220] sm:$0xff]  ;;  %v12332_v58 = vld [vmem:[%s17716_s13 + $0x3c8] sm:$0xff]  ;;  %v12334_v8 = vld [vmem:[%s17716_s13 + $0x3d8] sm:$0xff] }
0x25ce   :  { %v10159_v40 = vadd.f32 %v10157_v59, %v16336_v62  ;;  %v12323_v62 = vld [vmem:[%s17716_s13 + $0x380] sm:$0xff] }
0x25cf   :  { %10397 = vmatpush1.msra.mxu1 %v12323_v62  ;;  %v12316_v62 = vld [vmem:[%s17716_s13 + $0x348] sm:$0xff] }
0x25d0   :  { %v10169_v35 = vadd.f32 %v16501_v41, %v10159_v40  ;;  %10398 = vmatprep.subr.mxu1 %v12308_v30  ;;  %v12309_v41 = vld [vmem:[%s17716_s13 + $0x310] sm:$0xff]  ;;  %v12315_v30 = vld [vmem:[%s17716_s13 + $0x340] sm:$0xff] }
0x25d1   :  { %10399 = vmatpush1.msra.mxu1 %v12307_v0  ;;  %10476 = vmatpush1.msra.mxu0 %v12309_v41  ;;  %v12300_v0 = vld [vmem:[%s17716_s13 + $0x2c8] sm:$0xff]  ;;  %v12302_v41 = vld [vmem:[%s17716_s13 + $0x2d8] sm:$0xff] }
0x25d2   :  { %v10177_v53 = vsel %vm90_vm0, %v10169_v35, 0.0  ;;  %10400 = vmatprep.subr.mxu1 %v12292_v45  ;;  %10477 = vmatprep.subr.mxu0 %v12294_v50  ;;  %v12299_v45 = vld [vmem:[%s17716_s13 + $0x2c0] sm:$0xff]  ;;  %v12301_v50 = vld [vmem:[%s17716_s13 + $0x2d0] sm:$0xff] }
0x25d3   :  { %10178 = vadd.xlane.f32.xlu0 %v10177_v53  ;;  %10401 = vmatpush1.msra.mxu1 %v12291_v20  ;;  %v12284_v20 = vld [vmem:[%s17716_s13 + $0x248] sm:$0xff] }
0x25d4   :  { %10478 = vmatpush1.msra.mxu0 %v12293_v52  ;;  %10402 = vmatprep.subr.mxu1 %v12276_v10  ;;  %v12286_v52 = vld [vmem:[%s17716_s13 + $0x258] sm:$0xff]  ;;  %v12283_v10 = vld [vmem:[%s17716_s13 + $0x240] sm:$0xff] }
0x25d5   :  { %10479 = vmatprep.subr.mxu0 %v12278_v24  ;;  %10403 = vmatpush1.msra.mxu1 %v12275_v51  ;;  %v12285_v24 = vld [vmem:[%s17716_s13 + $0x250] sm:$0xff]  ;;  %v12336_v51 = vld [vmem:[%s17716_s13 + $0x3e8] sm:$0xff] }
0x25d6   :  { %10480 = vmatpush1.msra.mxu0 %v12277_v19  ;;  %10550 = vmatprep.subr.mxu1 %v12328_v61  ;;  %v12338_v19 = vld [vmem:[%s17716_s13 + $0x3f8] sm:$0xff]  ;;  %v12289_v61 = vld [vmem:[%s17716_s13 + $0x270] sm:$0xff] }
0x25d7   :  { %10187 = vadd.xlane.f32.xlu0 %v10186_v33  ;;  %10627 = vmatprep.subr.mxu0 %v12330_v3  ;;  %v12388_v3 = vld [vmem:[%s17719_s15 + $0x8f8] sm:$0xff] }
0x265c   :  { %v10179_v60 = vpop.xlane.xlu0 %10178 }
0x265d   :  { %v10181_v22 = vmul.f32 0.03125, %v10179_v60  ;;  %v12335_v60 = vld [vmem:[%s17716_s13 + $0x3e0] sm:$0xff] }
0x265f   :  { %v10183_v5 = vsub.f32 %v10169_v35, %v10181_v22  ;;  %v12337_v22 = vld [vmem:[%s17716_s13 + $0x3f0] sm:$0xff] }
0x2660   :  { %v10188_v39 = vpop.xlane.xlu0 %10187 }
0x2661   :  { %v10192_v47 = vmul.f32 0.03125, %v10188_v39  ;;  %v10185_v16 = vmul.f32 %v10183_v5, %v10183_v5  ;;  %v12322_v39 = vld [vmem:[%s17716_s13 + $0x378] sm:$0xff] }
0x2663   :  { %v10194_v23 = vadd.f32 1e-05, %v10192_v47  ;;  %v10189_v11 = vsel %vm90_vm0, %v10185_v16, 0.0  ;;  %v12319_v47 = vld [vmem:[%s17716_s13 + $0x360] sm:$0xff]  ;;  %v12321_v16 = vld [vmem:[%s17716_s13 + $0x370] sm:$0xff] }
0x2664   :  { %10190 = vadd.xlane.f32.xlu1 %v10189_v11  ;;  %v12306_v11 = vld [vmem:[%s17716_s13 + $0x2f8] sm:$0xff] }
0x2665   :  { %14162 = vrsqrt.f32 %v10194_v23  ;;  %v12304_v23 = vld [vmem:[%s17716_s13 + $0x2e8] sm:$0xff] }
0x2672   :  { %v14163_v18 = vpop.eup %14162 }
0x2673   :  { %v10198_v9 = vmul.f32 %v14163_v18, %v10182_v49  ;;  %v12303_v18 = vld [vmem:[%s17716_s13 + $0x2e0] sm:$0xff] }
0x2675   :  { %v10206_v55 = vmul.f32 %v12273_v46, %v10198_v9  ;;  %v12288_v9 = vld [vmem:[%s17716_s13 + $0x268] sm:$0xff] }
0x2677   :  { %v16602_v57 = vadd.f32 %v12274_v26, %v10206_v55  ;;  %v12287_v55 = vld [vmem:[%s17716_s13 + $0x260] sm:$0xff] }
0x2679   :  { %12341 = vmatmul.mubr.msk.f32.vlgmr.msra.gmra.mxu1 %vm90_vm0, %v16602_v57  ;;  %12343 = vmatmul.mubr.msk.f32.vlgmr.msra.gmra.mxu0 %vm90_vm0, %v16602_v57 }
0x267a   :  { %10442 = vmatprep.mubr.f32.mxu1 %v14178_v27  ;;  %10519 = vmatprep.mubr.f32.mxu0 %v14178_v27 }
0x267b   :  { %10551 = vmatpush1.msra.mxu1 %v12327_v17  ;;  %10628 = vmatpush1.msra.mxu0 %v12329_v4  ;;  %v12420_v17 = vld [vmem:[%s17719_s15 + $0x9f8] sm:$0xff] }
0x267c   :  { %10552 = vmatprep.subr.mxu1 %v12312_v43  ;;  %10629 = vmatprep.subr.mxu0 %v12314_v15  ;;  %v12372_v4 = vld [vmem:[%s17719_s15 + $0x878] sm:$0xff]  ;;  %v12387_v15 = vld [vmem:[%s17719_s15 + $0x8f0] sm:$0xff] }
0x267d   :  { %10553 = vmatpush1.msra.mxu1 %v12311_v12  ;;  %10630 = vmatpush1.msra.mxu0 %v12313_v21  ;;  %v12404_v43 = vld [vmem:[%s17719_s15 + $0x978] sm:$0xff]  ;;  %v12419_v12 = vld [vmem:[%s17719_s15 + $0x9f0] sm:$0xff] }
0x267e   :  { %10554 = vmatprep.subr.mxu1 %v12296_v54  ;;  %10631 = vmatprep.subr.mxu0 %v12298_v28  ;;  %v12371_v21 = vld [vmem:[%s17719_s15 + $0x870] sm:$0xff]  ;;  %v12386_v54 = vld [vmem:[%s17719_s15 + $0x8e8] sm:$0xff] }
0x267f   :  { %10555 = vmatpush1.msra.mxu1 %v12295_v38  ;;  %10632 = vmatpush1.msra.mxu0 %v12297_v25  ;;  %v12418_v28 = vld [vmem:[%s17719_s15 + $0x9e8] sm:$0xff] }
0x2680   :  { %10556 = vmatprep.subr.mxu1 %v12280_v1  ;;  %10633 = vmatprep.subr.mxu0 %v12282_v31  ;;  %v12370_v38 = vld [vmem:[%s17719_s15 + $0x868] sm:$0xff]  ;;  %v12385_v1 = vld [vmem:[%s17719_s15 + $0x8e0] sm:$0xff] }
0x2681   :  { %10557 = vmatpush1.msra.mxu1 %v12279_v32  ;;  %10634 = vmatpush1.msra.mxu0 %v12281_v34  ;;  %v12402_v25 = vld [vmem:[%s17719_s15 + $0x968] sm:$0xff]  ;;  %v12417_v31 = vld [vmem:[%s17719_s15 + $0x9e0] sm:$0xff] }
0x2682   :  { %10704 = vmatprep.subr.mxu1 %v12332_v58  ;;  %10781 = vmatprep.subr.mxu0 %v12334_v8  ;;  %v12369_v32 = vld [vmem:[%s17719_s15 + $0x860] sm:$0xff]  ;;  %v12384_v58 = vld [vmem:[%s17719_s15 + $0x8d8] sm:$0xff] }
0x2683   :  { %v12401_v34 = vld [vmem:[%s17719_s15 + $0x960] sm:$0xff]  ;;  %v12416_v8 = vld [vmem:[%s17719_s15 + $0x9d8] sm:$0xff] }
0x26ed   :  { %v10191_v59 = vpop.xlane.xlu1 %10190 }
0x26ee   :  { %v10193_v49 = vmul.f32 0.03125, %v10191_v59  ;;  %v12368_v59 = vld [vmem:[%s17719_s15 + $0x858] sm:$0xff] }
0x26f0   :  { %v10195_v40 = vadd.f32 1e-05, %v10193_v49  ;;  %v12400_v49 = vld [vmem:[%s17719_s15 + $0x958] sm:$0xff] }
0x26f2   :  { %14164 = vrsqrt.f32 %v10195_v40  ;;  %v12383_v40 = vld [vmem:[%s17719_s15 + $0x8d0] sm:$0xff] }
0x26ff   :  { %v14165_v35 = vpop.eup %14164 }
0x2700   :  { %v10199_v53 = vmul.f32 %v14165_v35, %v10183_v5  ;;  %v12320_v5 = vld [vmem:[%s17716_s13 + $0x368] sm:$0xff]  ;;  %v12415_v35 = vld [vmem:[%s17719_s15 + $0x9d0] sm:$0xff] }
0x2702   :  { %v10207_v48 = vmul.f32 %v12273_v46, %v10199_v53  ;;  %v12305_v46 = vld [vmem:[%s17716_s13 + $0x2f0] sm:$0xff] }
0x2703   :  { %v12367_v53 = vld [vmem:[%s17719_s15 + $0x850] sm:$0xff] }
0x2704   :  { %v16664_v33 = vadd.f32 %v12274_v26, %v10207_v48  ;;  %v12290_v26 = vld [vmem:[%s17716_s13 + $0x278] sm:$0xff]  ;;  %v12399_v48 = vld [vmem:[%s17719_s15 + $0x950] sm:$0xff] }
0x2706   :  { %12342 = vmatmul.mubr.msk.f32.gmra.mxu1 %vm90_vm0, %v16664_v33  ;;  %12344 = vmatmul.mubr.msk.f32.gmra.mxu0 %vm90_vm0, %v16664_v33 }
0x2707   :  { %10590 = vmatprep.mubr.f32.mxu1 %v14178_v27  ;;  %10667 = vmatprep.mubr.f32.mxu0 %v14178_v27 }
0x270a   :  { %12345 = vmatmul.mubr.msk.f32.vlgmr.msra.gmra.mxu1 %vm90_vm0, %v16602_v57  ;;  %12347 = vmatmul.mubr.msk.f32.vlgmr.msra.gmra.mxu0 %vm90_vm0, %v16602_v57 }
0x270b   :  { %10705 = vmatpush1.msra.mxu1 %v12331_v36  ;;  %10782 = vmatpush1.msra.mxu0 %v12333_v29  ;;  %v12382_v36 = vld [vmem:[%s17719_s15 + $0x8c8] sm:$0xff] }
0x270c   :  { %10706 = vmatprep.subr.mxu1 %v12316_v62  ;;  %10783 = vmatprep.subr.mxu0 %v12318_v63  ;;  %v12414_v29 = vld [vmem:[%s17719_s15 + $0x9c8] sm:$0xff] }
0x270d   :  { %10596 = vmatprep.mubr.f32.mxu1 %v14178_v27  ;;  %10673 = vmatprep.mubr.f32.mxu0 %v14178_v27  ;;  %v12366_v62 = vld [vmem:[%s17719_s15 + $0x848] sm:$0xff] }
0x270e   :  { %10707 = vmatpush1.msra.mxu1 %v12315_v30  ;;  %10784 = vmatpush1.msra.mxu0 %v12317_v37  ;;  %v12398_v63 = vld [vmem:[%s17719_s15 + $0x948] sm:$0xff]  ;;  %v12381_v30 = vld [vmem:[%s17719_s15 + $0x8c0] sm:$0xff] }
0x270f   :  { %12346 = vmatmul.mubr.msk.f32.gmra.mxu1 %vm90_vm0, %v16664_v33  ;;  %12348 = vmatmul.mubr.msk.f32.gmra.mxu0 %vm90_vm0, %v16664_v33  ;;  %v12413_v37 = vld [vmem:[%s17719_s15 + $0x9c0] sm:$0xff] }
0x2710   :  { %10708 = vmatprep.subr.mxu1 %v12300_v0  ;;  %10785 = vmatprep.subr.mxu0 %v12302_v41  ;;  %v12365_v0 = vld [vmem:[%s17719_s15 + $0x840] sm:$0xff] }
0x2711   :  { %10709 = vmatpush1.msra.mxu1 %v12299_v45  ;;  %10786 = vmatpush1.msra.mxu0 %v12301_v50  ;;  %v12397_v41 = vld [vmem:[%s17719_s15 + $0x940] sm:$0xff]  ;;  %v12380_v45 = vld [vmem:[%s17719_s15 + $0x8b8] sm:$0xff] }
0x2712   :  { %10710 = vmatprep.subr.mxu1 %v12284_v20  ;;  %10787 = vmatprep.subr.mxu0 %v12286_v52  ;;  %v12412_v50 = vld [vmem:[%s17719_s15 + $0x9b8] sm:$0xff] }
0x2713   :  { %10711 = vmatpush1.msra.mxu1 %v12283_v10  ;;  %10744 = vmatprep.mubr.f32.mxu1 %v14178_v27  ;;  %v12364_v20 = vld [vmem:[%s17719_s15 + $0x838] sm:$0xff]  ;;  %v12379_v10 = vld [vmem:[%s17719_s15 + $0x8b0] sm:$0xff] }
0x2714   :  { %10788 = vmatpush1.msra.mxu0 %v12285_v24  ;;  %10821 = vmatprep.mubr.f32.mxu0 %v14178_v27  ;;  %v12396_v52 = vld [vmem:[%s17719_s15 + $0x938] sm:$0xff]  ;;  %v12411_v24 = vld [vmem:[%s17719_s15 + $0x9b0] sm:$0xff] }
0x2715   :  { %12349 = vmatmul.mubr.msk.f32.vlgmr.msra.gmra.mxu1 %vm90_vm0, %v16602_v57  ;;  %12351 = vmatmul.mubr.msk.f32.vlgmr.msra.gmra.mxu0 %vm90_vm0, %v16602_v57 }
0x2716   :  { %10858 = vmatprep.subr.mxu1 %v12336_v51  ;;  %10935 = vmatprep.subr.mxu0 %v12338_v19  ;;  %v12363_v51 = vld [vmem:[%s17719_s15 + $0x830] sm:$0xff] }
0x2717   :  { %10859 = vmatpush1.msra.mxu1 %v12335_v60  ;;  %10936 = vmatpush1.msra.mxu0 %v12337_v22  ;;  %v12395_v19 = vld [vmem:[%s17719_s15 + $0x930] sm:$0xff]  ;;  %v12378_v60 = vld [vmem:[%s17719_s15 + $0x8a8] sm:$0xff] }
0x2718   :  { %10860 = vmatprep.subr.mxu1 %v12320_v5  ;;  %10937 = vmatprep.subr.mxu0 %v12322_v39  ;;  %v12410_v22 = vld [vmem:[%s17719_s15 + $0x9a8] sm:$0xff] }
0x2719   :  { %10750 = vmatprep.mubr.f32.mxu1 %v14178_v27  ;;  %10827 = vmatprep.mubr.f32.mxu0 %v14178_v27  ;;  %v12362_v5 = vld [vmem:[%s17719_s15 + $0x828] sm:$0xff] }
0x271a   :  { %10861 = vmatpush1.msra.mxu1 %v12319_v47  ;;  %10938 = vmatpush1.msra.mxu0 %v12321_v16  ;;  %v12394_v39 = vld [vmem:[%s17719_s15 + $0x928] sm:$0xff]  ;;  %v12377_v47 = vld [vmem:[%s17719_s15 + $0x8a0] sm:$0xff] }
0x271b   :  { %12350 = vmatmul.mubr.msk.f32.gmra.mxu1 %vm90_vm0, %v16664_v33  ;;  %12352 = vmatmul.mubr.msk.f32.gmra.mxu0 %vm90_vm0, %v16664_v33  ;;  %v12409_v16 = vld [vmem:[%s17719_s15 + $0x9a0] sm:$0xff] }
0x271c   :  { %10862 = vmatprep.subr.mxu1 %v12304_v23  ;;  %10939 = vmatprep.subr.mxu0 %v12306_v11  ;;  %v16937_v23 = vld [vmem:[%s17720_s14 + $0x10] sm:$0xff]  ;;  %v12361_v11 = vld [vmem:[%s17719_s15 + $0x820] sm:$0xff] }
0x271d   :  { %10863 = vmatpush1.msra.mxu1 %v12303_v18  ;;  %10940 = vmatpush1.msra.mxu0 %v12305_v46  ;;  %v12393_v18 = vld [vmem:[%s17719_s15 + $0x920] sm:$0xff]  ;;  %v16947_v46 = vrot.slane %v16937_v23, %v15269_v42 }
0x271e   :  { %10864 = vmatprep.subr.mxu1 %v12288_v9  ;;  %10941 = vmatprep.subr.mxu0 %v12290_v26  ;;  %v16951_v9 = vrot.slane %v16937_v23, %v15272_v44 }
0x271f   :  { %10865 = vmatpush1.msra.mxu1 %v12287_v55  ;;  %10898 = vmatprep.mubr.f32.mxu1 %v14178_v27 }
0x2720   :  { %10942 = vmatpush1.msra.mxu0 %v12289_v61  ;;  %10975 = vmatprep.mubr.f32.mxu0 %v14178_v27  ;;  %v12376_v61 = vld [vmem:[%s17719_s15 + $0x898] sm:$0xff] }
0x2721   :  { %12353 = vmatmul.mubr.msk.f32.vlgmr.msra.gmra.mxu1 %vm90_vm0, %v16602_v57  ;;  %12355 = vmatmul.mubr.msk.f32.vlgmr.msra.gmra.mxu0 %vm90_vm0, %v16602_v57 }
0x2722   :  { %10904 = vmatprep.mubr.f32.mxu1 %v14178_v27  ;;  %10981 = vmatprep.mubr.f32.mxu0 %v14178_v27  ;;  %v12403_v27 = vld [vmem:[%s17719_s15 + $0x970] sm:$0xff] }
0x2723   :  { %13150 = vmatprep.subr.mxu1 %v12388_v3  ;;  %13188 = vmatprep.subr.mxu0 %v12420_v17  ;;  %v12408_v3 = vld [vmem:[%s17719_s15 + $0x998] sm:$0xff] }
0x2724   :  { %13151 = vmatpush3.msra.mxu1 %v12372_v4  ;;  %13189 = vmatpush3.msra.mxu0 %v12404_v43  ;;  %v12360_v17 = vld [vmem:[%s17719_s15 + $0x818] sm:$0xff]  ;;  %v16967_v43 = vrot.slane %v16937_v23, %v15298_v14 }
0x2725   :  { %12354 = vmatmul.mubr.msk.f32.gmra.mxu1 %vm90_vm0, %v16664_v33  ;;  %12356 = vmatmul.mubr.msk.f32.gmra.mxu0 %vm90_vm0, %v16664_v33  ;;  %v12392_v4 = vld [vmem:[%s17719_s15 + $0x918] sm:$0xff] }
0x2726   :  { %13152 = vmatprep.subr.mxu1 %v12387_v15  ;;  %13190 = vmatprep.subr.mxu0 %v12419_v12  ;;  %v16971_v15 = vrot.slane %v16937_v23, %v15301_v56 }
0x2727   :  { %13153 = vmatpush3.msra.mxu1 %v12371_v21  ;;  %13191 = vmatpush3.msra.mxu0 %v12403_v27  ;;  %v12375_v27 = vld [vmem:[%s17719_s15 + $0x890] sm:$0xff] }
0x2728   :  { %13154 = vmatprep.subr.mxu1 %v12386_v54  ;;  %13192 = vmatprep.subr.mxu0 %v12418_v28  ;;  %v12407_v54 = vld [vmem:[%s17719_s15 + $0x990] sm:$0xff] }
0x2729   :  { %13155 = vmatpush3.msra.mxu1 %v12370_v38  ;;  %13193 = vmatpush3.msra.mxu0 %v12402_v25  ;;  %v12359_v25 = vld [vmem:[%s17719_s15 + $0x810] sm:$0xff] }
0x272a   :  { %13156 = vmatprep.subr.mxu1 %v12385_v1  ;;  %13194 = vmatprep.subr.mxu0 %v12417_v31  ;;  %v12391_v1 = vld [vmem:[%s17719_s15 + $0x910] sm:$0xff]  ;;  %v12374_v31 = vld [vmem:[%s17719_s15 + $0x888] sm:$0xff] }
0x272b   :  { %13157 = vmatpush3.msra.mxu1 %v12369_v32  ;;  %13195 = vmatpush3.msra.mxu0 %v12401_v34  ;;  %v12406_v32 = vld [vmem:[%s17719_s15 + $0x988] sm:$0xff] }
0x272c   :  { %13158 = vmatprep.subr.mxu1 %v12384_v58  ;;  %13196 = vmatprep.subr.mxu0 %v12416_v8  ;;  %v12358_v34 = vld [vmem:[%s17719_s15 + $0x808] sm:$0xff] }
0x272d   :  { %13159 = vmatpush3.msra.mxu1 %v12368_v59  ;;  %13197 = vmatpush3.msra.mxu0 %v12400_v49  ;;  %v12390_v58 = vld [vmem:[%s17719_s15 + $0x908] sm:$0xff] }
0x272e   :  { %13160 = vmatprep.subr.mxu1 %v12383_v40  ;;  %13198 = vmatprep.subr.mxu0 %v12415_v35  ;;  %v12373_v40 = vld [vmem:[%s17719_s15 + $0x880] sm:$0xff] }
0x272f   :  { %13161 = vmatpush3.msra.mxu1 %v12367_v53  ;;  %13199 = vmatpush3.msra.mxu0 %v12399_v48  ;;  %v12405_v35 = vld [vmem:[%s17719_s15 + $0x980] sm:$0xff] }
0x2730   :  { %13162 = vmatprep.subr.mxu1 %v12382_v36  ;;  %13200 = vmatprep.subr.mxu0 %v12414_v29  ;;  %v12357_v48 = vld [vmem:[%s17719_s15 + $0x800] sm:$0xff] }
0x2731   :  { %13163 = vmatpush3.msra.mxu1 %v12366_v62  ;;  %13201 = vmatpush3.msra.mxu0 %v12398_v63  ;;  %v12389_v36 = vld [vmem:[%s17719_s15 + $0x900] sm:$0xff]  ;;  %v12452_v63 = vld [vmem:[%s17719_s15 + $0xaf8] sm:$0xff] }
0x2732   :  { %13164 = vmatprep.subr.mxu1 %v12381_v30  ;;  %13202 = vmatprep.subr.mxu0 %v12413_v37  ;;  %v12484_v30 = vld [vmem:[%s17719_s15 + $0xbf8] sm:$0xff] }
0x2733   :  { %13165 = vmatpush3.msra.mxu1 %v12365_v0  ;;  %13203 = vmatpush3.msra.mxu0 %v12397_v41  ;;  %v12436_v37 = vld [vmem:[%s17719_s15 + $0xa78] sm:$0xff]  ;;  %v12451_v41 = vld [vmem:[%s17719_s15 + $0xaf0] sm:$0xff] }
0x2734   :  { %13166 = vmatprep.subr.mxu1 %v12380_v45  ;;  %13204 = vmatprep.subr.mxu0 %v12412_v50  ;;  %v12468_v0 = vld [vmem:[%s17719_s15 + $0xb78] sm:$0xff]  ;;  %v12483_v45 = vld [vmem:[%s17719_s15 + $0xbf0] sm:$0xff] }
0x2735   :  { %13167 = vmatpush3.msra.mxu1 %v12364_v20  ;;  %13205 = vmatpush3.msra.mxu0 %v12396_v52  ;;  %v12435_v50 = vld [vmem:[%s17719_s15 + $0xa70] sm:$0xff]  ;;  %v12450_v52 = vld [vmem:[%s17719_s15 + $0xae8] sm:$0xff] }
0x2736   :  { %13168 = vmatprep.subr.mxu1 %v12379_v10  ;;  %13206 = vmatprep.subr.mxu0 %v12411_v24  ;;  %v12467_v20 = vld [vmem:[%s17719_s15 + $0xb70] sm:$0xff]  ;;  %v12482_v10 = vld [vmem:[%s17719_s15 + $0xbe8] sm:$0xff] }
0x2737   :  { %13169 = vmatpush3.msra.mxu1 %v12363_v51  ;;  %13207 = vmatpush3.msra.mxu0 %v12395_v19  ;;  %v12434_v24 = vld [vmem:[%s17719_s15 + $0xa68] sm:$0xff]  ;;  %v12449_v19 = vld [vmem:[%s17719_s15 + $0xae0] sm:$0xff] }
0x2738   :  { %13170 = vmatprep.subr.mxu1 %v12378_v60  ;;  %13208 = vmatprep.subr.mxu0 %v12410_v22  ;;  %v12466_v51 = vld [vmem:[%s17719_s15 + $0xb68] sm:$0xff]  ;;  %v12481_v60 = vld [vmem:[%s17719_s15 + $0xbe0] sm:$0xff] }
0x2739   :  { %13171 = vmatpush3.msra.mxu1 %v12362_v5  ;;  %13209 = vmatpush3.msra.mxu0 %v12394_v39  ;;  %v10438_v26 = vpop.f32.mrf.mxu1  ;;  %v10515_v55 = vpop.f32.mrf.mxu0  ;;  %v12433_v22 = vld [vmem:[%s17719_s15 + $0xa60] sm:$0xff]  ;;  %v12448_v39 = vld [vmem:[%s17719_s15 + $0xad8] sm:$0xff] }
0x273a   :  { %13172 = vmatprep.subr.mxu1 %v12377_v47  ;;  %13210 = vmatprep.subr.mxu0 %v12409_v16  ;;  %v10439_v8 = vadd.f32 %v10438_v26, %v16967_v43  ;;  %v10516_v59 = vadd.f32 %v10515_v55, %v16971_v15  ;;  %v12465_v5 = vld [vmem:[%s17719_s15 + $0xb60] sm:$0xff]  ;;  %v12480_v47 = vld [vmem:[%s17719_s15 + $0xbd8] sm:$0xff]  ;;  %v12479_v26 = vld [vmem:[%s17719_s15 + $0xbd0] sm:$0xff] }
0x273b   :  { %13173 = vmatpush3.msra.mxu1 %v12361_v11  ;;  %13211 = vmatpush3.msra.mxu0 %v12393_v18  ;;  %v10440_v12 = vpop.f32.mrf.mxu1  ;;  %v10517_v21 = vpop.f32.mrf.mxu0  ;;  %v12432_v16 = vld [vmem:[%s17719_s15 + $0xa58] sm:$0xff]  ;;  %v12447_v18 = vld [vmem:[%s17719_s15 + $0xad0] sm:$0xff] }
0x273c   :  { %13174 = vmatprep.subr.mxu1 %v12376_v61  ;;  %13212 = vmatprep.subr.mxu0 %v12408_v3  ;;  %v10441_v28 = vadd.f32 %v10440_v12, %v16947_v46  ;;  %v10518_v38 = vadd.f32 %v10517_v21, %v16951_v9  ;;  %v10988_v29 = vmax.f32 %v10439_v8, 0.0  ;;  %v10990_v62 = vmax.f32 %v10516_v59, 0.0  ;;  %v12464_v11 = vld [vmem:[%s17719_s15 + $0xb58] sm:$0xff]  ;;  %v12431_v55 = vld [vmem:[%s17719_s15 + $0xa50] sm:$0xff]  ;;  %v12446_v3 = vld [vmem:[%s17719_s15 + $0xac8] sm:$0xff] }
0x273d   :  { %13175 = vmatpush3.msra.mxu1 %v12360_v17  ;;  %13213 = vmatpush3.msra.mxu0 %v12392_v4  ;;  %v12463_v61 = vld [vmem:[%s17719_s15 + $0xb50] sm:$0xff]  ;;  %v12478_v17 = vld [vmem:[%s17719_s15 + $0xbc8] sm:$0xff]  ;;  %v12445_v21 = vld [vmem:[%s17719_s15 + $0xac0] sm:$0xff] }
0x273e   :  { %13176 = vmatprep.subr.mxu1 %v12375_v27  ;;  %13214 = vmatprep.subr.mxu0 %v12407_v54  ;;  %v10989_v49 = vmax.f32 %v10441_v28, 0.0  ;;  %v10991_v53 = vmax.f32 %v10518_v38, 0.0  ;;  %v12430_v4 = vld [vmem:[%s17719_s15 + $0xa48] sm:$0xff]  ;;  %v12477_v27 = vld [vmem:[%s17719_s15 + $0xbc0] sm:$0xff]  ;;  %v12444_v38 = vld [vmem:[%s17719_s15 + $0xab8] sm:$0xff] }
0x273f   :  { %13177 = vmatpush3.msra.mxu1 %v12359_v25  ;;  %13215 = vmatpush3.msra.mxu0 %v12391_v1  ;;  %v12462_v12 = vld [vmem:[%s17719_s15 + $0xb48] sm:$0xff]  ;;  %v12429_v54 = vld [vmem:[%s17719_s15 + $0xa40] sm:$0xff]  ;;  %v12476_v25 = vld [vmem:[%s17719_s15 + $0xbb8] sm:$0xff] }
0x2740   :  { %13178 = vmatprep.subr.mxu1 %v12374_v31  ;;  %13216 = vmatprep.subr.mxu0 %v12406_v32  ;;  %v12461_v28 = vld [vmem:[%s17719_s15 + $0xb40] sm:$0xff]  ;;  %v12428_v1 = vld [vmem:[%s17719_s15 + $0xa38] sm:$0xff]  ;;  %v12443_v32 = vld [vmem:[%s17719_s15 + $0xab0] sm:$0xff] }
0x2741   :  { %13179 = vmatpush3.msra.mxu1 %v12358_v34  ;;  %13217 = vmatpush3.msra.mxu0 %v12390_v58  ;;  %v12460_v31 = vld [vmem:[%s17719_s15 + $0xb38] sm:$0xff]  ;;  %v12475_v34 = vld [vmem:[%s17719_s15 + $0xbb0] sm:$0xff]  ;;  %v12442_v59 = vld [vmem:[%s17719_s15 + $0xaa8] sm:$0xff] }
0x2742   :  { %13180 = vmatprep.subr.mxu1 %v12373_v40  ;;  %13218 = vmatprep.subr.mxu0 %v12405_v35  ;;  %v12427_v58 = vld [vmem:[%s17719_s15 + $0xa30] sm:$0xff]  ;;  %v12426_v40 = vld [vmem:[%s17719_s15 + $0xa28] sm:$0xff] }
0x2743   :  { %13181 = vmatpush3.msra.mxu1 %v12357_v48  ;;  %11349 = vmatprep.mubr.f32.mxu1 %v10989_v49  ;;  %v12459_v8 = vld [vmem:[%s17719_s15 + $0xb30] sm:$0xff]  ;;  %v12474_v49 = vld [vmem:[%s17719_s15 + $0xba8] sm:$0xff]  ;;  %v12473_v48 = vld [vmem:[%s17719_s15 + $0xba0] sm:$0xff] }
0x2744   :  { %13219 = vmatpush3.msra.mxu0 %v12389_v36  ;;  %11424 = vmatprep.mubr.f32.mxu0 %v10991_v53  ;;  %v12458_v35 = vld [vmem:[%s17719_s15 + $0xb28] sm:$0xff]  ;;  %v12441_v53 = vld [vmem:[%s17719_s15 + $0xaa0] sm:$0xff] }
0x2745   :  { %11350 = vmatmul.mubr.f32.vlgmr.msra.gmra.mxu1 %v10988_v29  ;;  %11425 = vmatmul.mubr.f32.vlgmr.msra.gmra.mxu0 %v10990_v62  ;;  %v12425_v36 = vld [vmem:[%s17719_s15 + $0xa20] sm:$0xff]  ;;  %v12440_v62 = vld [vmem:[%s17719_s15 + $0xa98] sm:$0xff] }
0x2746   :  { %13226 = vmatprep.subr.mxu1 %v12452_v63  ;;  %13264 = vmatprep.subr.mxu0 %v12484_v30  ;;  %v12457_v29 = vld [vmem:[%s17719_s15 + $0xb20] sm:$0xff]  ;;  %v12472_v63 = vld [vmem:[%s17719_s15 + $0xb98] sm:$0xff] }
0x2747   :  { %13227 = vmatpush3.msra.mxu1 %v12436_v37  ;;  %13265 = vmatpush3.msra.mxu0 %v12468_v0  ;;  %v12424_v30 = vld [vmem:[%s17719_s15 + $0xa18] sm:$0xff]  ;;  %v12439_v0 = vld [vmem:[%s17719_s15 + $0xa90] sm:$0xff] }
0x2748   :  { %13228 = vmatprep.subr.mxu1 %v12451_v41  ;;  %13266 = vmatprep.subr.mxu0 %v12483_v45  ;;  %v12456_v37 = vld [vmem:[%s17719_s15 + $0xb18] sm:$0xff]  ;;  %v12471_v41 = vld [vmem:[%s17719_s15 + $0xb90] sm:$0xff] }
0x2749   :  { %13229 = vmatpush3.msra.mxu1 %v12435_v50  ;;  %13267 = vmatpush3.msra.mxu0 %v12467_v20  ;;  %v12423_v45 = vld [vmem:[%s17719_s15 + $0xa10] sm:$0xff]  ;;  %v12438_v20 = vld [vmem:[%s17719_s15 + $0xa88] sm:$0xff] }
0x274a   :  { %13230 = vmatprep.subr.mxu1 %v12450_v52  ;;  %13268 = vmatprep.subr.mxu0 %v12482_v10  ;;  %v12455_v50 = vld [vmem:[%s17719_s15 + $0xb10] sm:$0xff]  ;;  %v12470_v52 = vld [vmem:[%s17719_s15 + $0xb88] sm:$0xff] }
0x274b   :  { %13231 = vmatpush3.msra.mxu1 %v12434_v24  ;;  %13269 = vmatpush3.msra.mxu0 %v12466_v51  ;;  %v12422_v10 = vld [vmem:[%s17719_s15 + $0xa08] sm:$0xff]  ;;  %v12437_v51 = vld [vmem:[%s17719_s15 + $0xa80] sm:$0xff] }
0x274c   :  { %13232 = vmatprep.subr.mxu1 %v12449_v19  ;;  %13270 = vmatprep.subr.mxu0 %v12481_v60  ;;  %v12454_v24 = vld [vmem:[%s17719_s15 + $0xb08] sm:$0xff]  ;;  %v12469_v19 = vld [vmem:[%s17719_s15 + $0xb80] sm:$0xff] }
0x274d   :  { %13233 = vmatpush3.msra.mxu1 %v12433_v22  ;;  %13271 = vmatpush3.msra.mxu0 %v12465_v5  ;;  %v12421_v60 = vld [vmem:[%s17719_s15 + $0xa00] sm:$0xff]  ;;  %v12516_v5 = vld [vmem:[%s17719_s15 + $0xcf8] sm:$0xff] }
0x274e   :  { %13234 = vmatprep.subr.mxu1 %v12448_v39  ;;  %13272 = vmatprep.subr.mxu0 %v12480_v47  ;;  %v12453_v22 = vld [vmem:[%s17719_s15 + $0xb00] sm:$0xff]  ;;  %v12548_v39 = vld [vmem:[%s17719_s15 + $0xdf8] sm:$0xff] }
0x274f   :  { %13235 = vmatpush3.msra.mxu1 %v12432_v16  ;;  %13273 = vmatpush3.msra.mxu0 %v12464_v11 }
0x2750   :  { %13236 = vmatprep.subr.mxu1 %v12447_v18  ;;  %13274 = vmatprep.subr.mxu0 %v12479_v26 }
0x2751   :  { %13237 = vmatpush3.msra.mxu1 %v12431_v55  ;;  %13275 = vmatpush3.msra.mxu0 %v12463_v61  ;;  %v10305_v61 = vrot.slane %v16937_v23, %v15576_v2 }
0x2752   :  { %13238 = vmatprep.subr.mxu1 %v12446_v3  ;;  %13276 = vmatprep.subr.mxu0 %v12478_v17  ;;  %v10313_v3 = vrot.slane %v16937_v23, %v15579_v6 }
0x2753   :  { %13239 = vmatpush3.msra.mxu1 %v12430_v4  ;;  %13277 = vmatpush3.msra.mxu0 %v12462_v12  ;;  %v10309_v12 = vrot.slane %v16937_v23, %v15582_v7 }
0x2754   :  { %13240 = vmatprep.subr.mxu1 %v12445_v21  ;;  %13278 = vmatprep.subr.mxu0 %v12477_v27 }
0x2755   :  { %13241 = vmatpush3.msra.mxu1 %v12429_v54  ;;  %13279 = vmatpush3.msra.mxu0 %v12461_v28 }
0x2756   :  { %13242 = vmatprep.subr.mxu1 %v12444_v38  ;;  %13280 = vmatprep.subr.mxu0 %v12476_v25 }
0x2757   :  { %13243 = vmatpush3.msra.mxu1 %v12428_v1  ;;  %13281 = vmatpush3.msra.mxu0 %v12460_v31 }
0x2758   :  { %13244 = vmatprep.subr.mxu1 %v12443_v32  ;;  %13282 = vmatprep.subr.mxu0 %v12475_v34 }
0x2759   :  { %13245 = vmatpush3.msra.mxu1 %v12427_v58  ;;  %13283 = vmatpush3.msra.mxu0 %v12459_v8 }
0x275a   :  { %13246 = vmatprep.subr.mxu1 %v12442_v59  ;;  %13284 = vmatprep.subr.mxu0 %v12474_v49 }
0x275b   :  { %13247 = vmatpush3.msra.mxu1 %v12426_v40  ;;  %13285 = vmatpush3.msra.mxu0 %v12458_v35  ;;  %v12500_v40 = vld [vmem:[%s17719_s15 + $0xc78] sm:$0xff] }
0x275c   :  { %13248 = vmatprep.subr.mxu1 %v12441_v53  ;;  %13286 = vmatprep.subr.mxu0 %v12473_v48  ;;  %v12532_v35 = vld [vmem:[%s17719_s15 + $0xd78] sm:$0xff] }
0x275d   :  { %13249 = vmatpush3.msra.mxu1 %v12425_v36  ;;  %13287 = vmatpush3.msra.mxu0 %v12457_v29  ;;  %v12515_v29 = vld [vmem:[%s17719_s15 + $0xcf0] sm:$0xff] }
0x275e   :  { %13250 = vmatprep.subr.mxu1 %v12440_v62  ;;  %13288 = vmatprep.subr.mxu0 %v12472_v63  ;;  %v12547_v62 = vld [vmem:[%s17719_s15 + $0xdf0] sm:$0xff] }
0x275f   :  { %13251 = vmatpush3.msra.mxu1 %v12424_v30  ;;  %13289 = vmatpush3.msra.mxu0 %v12456_v37 }
0x2760   :  { %13252 = vmatprep.subr.mxu1 %v12439_v0  ;;  %13290 = vmatprep.subr.mxu0 %v12471_v41  ;;  %v12499_v0 = vld [vmem:[%s17719_s15 + $0xc70] sm:$0xff] }
0x2761   :  { %13253 = vmatpush3.msra.mxu1 %v12423_v45  ;;  %13291 = vmatpush3.msra.mxu0 %v12455_v50  ;;  %v12531_v41 = vld [vmem:[%s17719_s15 + $0xd70] sm:$0xff]  ;;  %v17244_v45 = vld [vmem:[%s17720_s14 + $0x18] sm:$0xff] }
0x2762   :  { %13254 = vmatprep.subr.mxu1 %v12438_v20  ;;  %13292 = vmatprep.subr.mxu0 %v12470_v52  ;;  %v17248_v52 = vrot.slane %v17244_v45, %v15269_v42 }
0x2763   :  { %13255 = vmatpush3.msra.mxu1 %v12422_v10  ;;  %13293 = vmatpush3.msra.mxu0 %v12454_v24  ;;  %v17252_v10 = vrot.slane %v17244_v45, %v15272_v44  ;;  %v12514_v24 = vld [vmem:[%s17719_s15 + $0xce8] sm:$0xff] }
0x2764   :  { %13256 = vmatprep.subr.mxu1 %v12437_v51  ;;  %13294 = vmatprep.subr.mxu0 %v12469_v19  ;;  %v12546_v51 = vld [vmem:[%s17719_s15 + $0xde8] sm:$0xff] }
0x2765   :  { %13257 = vmatpush3.msra.mxu1 %v12421_v60  ;;  %13295 = vmatpush3.msra.mxu0 %v12453_v22  ;;  %v12498_v44 = vld [vmem:[%s17719_s15 + $0xc68] sm:$0xff] }
0x2766   :  { %13302 = vmatprep.subr.mxu1 %v12516_v5  ;;  %13340 = vmatprep.subr.mxu0 %v12548_v39  ;;  %v12530_v5 = vld [vmem:[%s17719_s15 + $0xd68] sm:$0xff] }
0x27c6   :  { %v10444_v47 = vpop.f32.mrf.mxu1  ;;  %v10521_v16 = vpop.f32.mrf.mxu0 }
0x27c7   :  { %v10445_v11 = vadd.f32 %v10444_v47, %v16967_v43  ;;  %v10522_v18 = vadd.f32 %v10521_v16, %v16971_v15  ;;  %v10317_v43 = vrot.slane %v16937_v23, %v15585_v13  ;;  %v12513_v16 = vld [vmem:[%s17719_s15 + $0xce0] sm:$0xff] }
0x27c8   :  { %v10446_v26 = vpop.f32.mrf.mxu1  ;;  %v10523_v55 = vpop.f32.mrf.mxu0 }
0x27c9   :  { %v10447_v17 = vadd.f32 %v10446_v26, %v16947_v46  ;;  %v10524_v4 = vadd.f32 %v10523_v55, %v16951_v9  ;;  %v11004_v28 = vmax.f32 %v10445_v11, 0.0  ;;  %v11006_v38 = vmax.f32 %v10522_v18, 0.0  ;;  %v12545_v11 = vld [vmem:[%s17719_s15 + $0xde0] sm:$0xff] }
0x27ca   :  { %v10592_v21 = vpop.f32.mrf.mxu1  ;;  %v10669_v15 = vpop.f32.mrf.mxu0  ;;  %v12497_v55 = vld [vmem:[%s17719_s15 + $0xc60] sm:$0xff] }
0x27cb   :  { %v11005_v27 = vmax.f32 %v10447_v17, 0.0  ;;  %v11007_v54 = vmax.f32 %v10524_v4, 0.0  ;;  %v10593_v25 = vadd.f32 %v10592_v21, %v10305_v61  ;;  %v10670_v1 = vadd.f32 %v10669_v15, %v10313_v3  ;;  %v12528_v21 = vld [vmem:[%s17719_s15 + $0xd58] sm:$0xff]  ;;  %v12511_v15 = vld [vmem:[%s17719_s15 + $0xcd0] sm:$0xff] }
0x27cc   :  { %v10594_v31 = vpop.f32.mrf.mxu1  ;;  %v10671_v32 = vpop.f32.mrf.mxu0 }
0x27cd   :  { %v10595_v34 = vadd.f32 %v10594_v31, %v10309_v12  ;;  %v10672_v46 = vadd.f32 %v10671_v32, %v10317_v43  ;;  %11354 = vmatprep.mubr.f32.mxu1 %v11005_v27  ;;  %11429 = vmatprep.mubr.f32.mxu0 %v11007_v54  ;;  %v10992_v59 = vmax.f32 %v10593_v25, 0.0  ;;  %v10994_v49 = vmax.f32 %v10670_v1, 0.0  ;;  %v12543_v27 = vld [vmem:[%s17719_s15 + $0xdd0] sm:$0xff]  ;;  %v12542_v25 = vld [vmem:[%s17719_s15 + $0xdc8] sm:$0xff]  ;;  %v12509_v32 = vld [vmem:[%s17719_s15 + $0xcc0] sm:$0xff] }
0x27ce   :  { %11355 = vmatmul.mubr.f32.gmra.mxu1 %v11004_v28  ;;  %11430 = vmatmul.mubr.f32.gmra.mxu0 %v11006_v38  ;;  %v12495_v54 = vld [vmem:[%s17719_s15 + $0xc50] sm:$0xff]  ;;  %v12510_v38 = vld [vmem:[%s17719_s15 + $0xcc8] sm:$0xff] }
0x27cf   :  { %v10993_v9 = vmax.f32 %v10595_v34, 0.0  ;;  %v10995_v58 = vmax.f32 %v10672_v46, 0.0  ;;  %v10598_v8 = vpop.f32.mrf.mxu1  ;;  %v10675_v23 = vpop.f32.mrf.mxu0  ;;  %v12527_v28 = vld [vmem:[%s17719_s15 + $0xd50] sm:$0xff]  ;;  %v12494_v1 = vld [vmem:[%s17719_s15 + $0xc48] sm:$0xff]  ;;  %v12541_v34 = vld [vmem:[%s17719_s15 + $0xdc0] sm:$0xff] }
0x27d0   :  { %v10599_v53 = vadd.f32 %v10598_v8, %v10305_v61  ;;  %v10676_v63 = vadd.f32 %v10675_v23, %v10313_v3  ;;  %v12529_v61 = vld [vmem:[%s17719_s15 + $0xd60] sm:$0xff]  ;;  %v12512_v3 = vld [vmem:[%s17719_s15 + $0xcd8] sm:$0xff]  ;;  %v12526_v31 = vld [vmem:[%s17719_s15 + $0xd48] sm:$0xff] }
0x27d1   :  { %v10600_v48 = vpop.f32.mrf.mxu1  ;;  %v10677_v36 = vpop.f32.mrf.mxu0  ;;  %11499 = vmatprep.mubr.f32.mxu1 %v10993_v9  ;;  %11574 = vmatprep.mubr.f32.mxu0 %v10995_v58  ;;  %v12493_v46 = vld [vmem:[%s17719_s15 + $0xc40] sm:$0xff]  ;;  %v12508_v58 = vld [vmem:[%s17719_s15 + $0xcb8] sm:$0xff] }
0x27d2   :  { %v10601_v30 = vadd.f32 %v10600_v48, %v10309_v12  ;;  %v10678_v37 = vadd.f32 %v10677_v36, %v10317_v43  ;;  %11500 = vmatmul.mubr.f32.vlgmr.msra.gmra.mxu1 %v10992_v59  ;;  %11575 = vmatmul.mubr.f32.vlgmr.msra.gmra.mxu0 %v10994_v49  ;;  %v11008_v42 = vmax.f32 %v10599_v53, 0.0  ;;  %v11010_v22 = vmax.f32 %v10676_v63, 0.0  ;;  %v12544_v12 = vld [vmem:[%s17719_s15 + $0xdd8] sm:$0xff]  ;;  %v12525_v9 = vld [vmem:[%s17719_s15 + $0xd40] sm:$0xff]  ;;  %v12507_v49 = vld [vmem:[%s17719_s15 + $0xcb0] sm:$0xff] }
0x27d3   :  { %13303 = vmatpush3.msra.mxu1 %v12500_v40  ;;  %13341 = vmatpush3.msra.mxu0 %v12532_v35  ;;  %v12496_v43 = vld [vmem:[%s17719_s15 + $0xc58] sm:$0xff]  ;;  %v12539_v40 = vld [vmem:[%s17719_s15 + $0xdb0] sm:$0xff]  ;;  %v12506_v48 = vld [vmem:[%s17719_s15 + $0xca8] sm:$0xff] }
0x27d4   :  { %v11009_v50 = vmax.f32 %v10601_v30, 0.0  ;;  %v11011_v20 = vmax.f32 %v10678_v37, 0.0  ;;  %13304 = vmatprep.subr.mxu1 %v12515_v29  ;;  %13342 = vmatprep.subr.mxu0 %v12547_v62  ;;  %v12540_v8 = vld [vmem:[%s17719_s15 + $0xdb8] sm:$0xff]  ;;  %v12491_v35 = vld [vmem:[%s17719_s15 + $0xc30] sm:$0xff]  ;;  %v12538_v36 = vld [vmem:[%s17719_s15 + $0xda8] sm:$0xff] }
0x27d5   :  { %v17260_v19 = vpop.f32.mrf.mxu1  ;;  %v17262_v60 = vpop.f32.mrf.mxu0  ;;  %13305 = vmatpush3.msra.mxu1 %v12499_v0  ;;  %13343 = vmatpush3.msra.mxu0 %v12531_v41  ;;  %v12492_v23 = vld [vmem:[%s17719_s15 + $0xc38] sm:$0xff]  ;;  %v12523_v53 = vld [vmem:[%s17719_s15 + $0xd30] sm:$0xff]  ;;  %v12490_v29 = vld [vmem:[%s17719_s15 + $0xc28] sm:$0xff] }
0x27d6   :  { %11504 = vmatprep.mubr.f32.mxu1 %v11009_v50  ;;  %11579 = vmatprep.mubr.f32.mxu0 %v11011_v20  ;;  %v12524_v59 = vld [vmem:[%s17719_s15 + $0xd38] sm:$0xff]  ;;  %v12522_v62 = vld [vmem:[%s17719_s15 + $0xd28] sm:$0xff]  ;;  %v12505_v30 = vld [vmem:[%s17719_s15 + $0xca0] sm:$0xff] }
0x27d7   :  { %v10748_v39 = vpop.f32.mrf.mxu1  ;;  %v10825_v47 = vpop.f32.mrf.mxu0  ;;  %13306 = vmatprep.subr.mxu1 %v12514_v24  ;;  %13344 = vmatprep.subr.mxu0 %v12546_v51  ;;  %v12537_v37 = vld [vmem:[%s17719_s15 + $0xda0] sm:$0xff]  ;;  %v12504_v20 = vld [vmem:[%s17719_s15 + $0xc98] sm:$0xff]  ;;  %v10321_v51 = vrot.slane %v17244_v45, %v15298_v14  ;;  %v12503_v14 = vld [vmem:[%s17719_s15 + $0xc90] sm:$0xff] }
0x27d8   :  { %v10749_v18 = vadd.f32 %v10748_v39, %v17248_v52  ;;  %v10826_v26 = vadd.f32 %v10825_v47, %v17252_v10  ;;  %11505 = vmatmul.mubr.f32.gmra.mxu1 %v11008_v42  ;;  %11580 = vmatmul.mubr.f32.gmra.mxu0 %v11010_v22  ;;  %v12489_v41 = vld [vmem:[%s17719_s15 + $0xc20] sm:$0xff]  ;;  %v12536_v24 = vld [vmem:[%s17719_s15 + $0xd98] sm:$0xff]  ;;  %v10329_v42 = vrot.slane %v17244_v45, %v15301_v56  ;;  %v12535_v56 = vld [vmem:[%s17719_s15 + $0xd90] sm:$0xff] }
0x27d9   :  { %13307 = vmatpush3.msra.mxu1 %v12498_v44  ;;  %13345 = vmatpush3.msra.mxu0 %v12530_v5  ;;  %v12521_v50 = vld [vmem:[%s17719_s15 + $0xd20] sm:$0xff]  ;;  %v12488_v22 = vld [vmem:[%s17719_s15 + $0xc18] sm:$0xff]  ;;  %v12487_v47 = vld [vmem:[%s17719_s15 + $0xc10] sm:$0xff] }
0x27da   :  { %v10997_v17 = vmax.f32 %v10749_v18, 0.0  ;;  %v10999_v4 = vmax.f32 %v10826_v26, 0.0  ;;  %13308 = vmatprep.subr.mxu1 %v12513_v16  ;;  %13346 = vmatprep.subr.mxu0 %v12545_v11  ;;  %v12520_v44 = vld [vmem:[%s17719_s15 + $0xd18] sm:$0xff]  ;;  %v12519_v16 = vld [vmem:[%s17719_s15 + $0xd10] sm:$0xff]  ;;  %v12502_v11 = vld [vmem:[%s17719_s15 + $0xc88] sm:$0xff]  ;;  %v10747_v26 = vadd.f32 %v17260_v19, %v10321_v51 }
0x27db   :  { %13309 = vmatpush3.msra.mxu1 %v12497_v55  ;;  %13347 = vmatpush3.msra.mxu0 %v12529_v61  ;;  %v17368_v63 = vpop.f32.mrf.mxu1  ;;  %v10829_v0 = vpop.f32.mrf.mxu0  ;;  %v12534_v18 = vld [vmem:[%s17719_s15 + $0xd88] sm:$0xff]  ;;  %v10824_v55 = vadd.f32 %v17262_v60, %v10329_v42  ;;  %v12501_v19 = vld [vmem:[%s17719_s15 + $0xc80] sm:$0xff] }
0x27dc   :  { %13310 = vmatprep.subr.mxu1 %v12512_v3  ;;  %11649 = vmatprep.mubr.f32.mxu1 %v10997_v17  ;;  %v12486_v61 = vld [vmem:[%s17719_s15 + $0xc08] sm:$0xff]  ;;  %v12533_v60 = vld [vmem:[%s17719_s15 + $0xd80] sm:$0xff] }
0x27dd   :  { %13348 = vmatprep.subr.mxu0 %v12544_v12  ;;  %11724 = vmatprep.mubr.f32.mxu0 %v10999_v4  ;;  %v10754_v5 = vpop.f32.mrf.mxu1  ;;  %v10831_v39 = vpop.f32.mrf.mxu0  ;;  %v12518_v3 = vld [vmem:[%s17719_s15 + $0xd08] sm:$0xff] }
0x27de   :  { %13311 = vmatpush3.msra.mxu1 %v12496_v43  ;;  %13349 = vmatpush3.msra.mxu0 %v12528_v21  ;;  %v10755_v4 = vadd.f32 %v10754_v5, %v17248_v52  ;;  %v10832_v12 = vadd.f32 %v10831_v39, %v17252_v10  ;;  %v12485_v21 = vld [vmem:[%s17719_s15 + $0xc00] sm:$0xff]  ;;  %v17444_v52 = vrot.slane %v17244_v45, %v15582_v7  ;;  %v12580_v10 = vld [vmem:[%s17719_s15 + $0xef8] sm:$0xff]  ;;  %v12591_v5 = vld [vmem:[%s17719_s15 + $0xf50] sm:$0xff] }
0x27df   :  { %13312 = vmatprep.subr.mxu1 %v12511_v15  ;;  %13350 = vmatprep.subr.mxu0 %v12543_v27  ;;  %v12517_v15 = vld [vmem:[%s17719_s15 + $0xd00] sm:$0xff]  ;;  %v10996_v27 = vmax.f32 %v10747_v26, 0.0  ;;  %v10753_v7 = vadd.f32 %v17368_v63, %v10321_v51  ;;  %v12592_v51 = vld [vmem:[%s17719_s15 + $0xf58] sm:$0xff]  ;;  %v12558_v39 = vld [vmem:[%s17719_s15 + $0xe48] sm:$0xff] }
0x27e0   :  { %13313 = vmatpush3.msra.mxu1 %v12495_v54  ;;  %13351 = vmatpush3.msra.mxu0 %v12527_v28  ;;  %v10998_v54 = vmax.f32 %v10824_v55, 0.0  ;;  %v12612_v28 = vld [vmem:[%s17719_s15 + $0xff8] sm:$0xff]  ;;  %v12589_v26 = vld [vmem:[%s17719_s15 + $0xf40] sm:$0xff] }
0x27e1   :  { %13314 = vmatprep.subr.mxu1 %v12510_v38  ;;  %13352 = vmatprep.subr.mxu0 %v12542_v25  ;;  %v17424_v17 = vpop.f32.mrf.mxu1  ;;  %v17434_v43 = vpop.f32.mrf.mxu0  ;;  %v17454_v25 = vrot.slane %v17244_v45, %v15585_v13  ;;  %v12579_v13 = vld [vmem:[%s17719_s15 + $0xef0] sm:$0xff]  ;;  %v12572_v55 = vld [vmem:[%s17719_s15 + $0xeb8] sm:$0xff] }
0x27e2   :  { %13315 = vmatpush3.msra.mxu1 %v12494_v1  ;;  %13353 = vmatpush3.msra.mxu0 %v12526_v31  ;;  %v10830_v1 = vadd.f32 %v10829_v0, %v10329_v42  ;;  %v11013_v31 = vmax.f32 %v10755_v4, 0.0  ;;  %v12561_v0 = vld [vmem:[%s17719_s15 + $0xe60] sm:$0xff]  ;;  %v12575_v42 = vld [vmem:[%s17719_s15 + $0xed0] sm:$0xff] }
0x27e3   :  { %13316 = vmatprep.subr.mxu1 %v12509_v32  ;;  %13354 = vmatprep.subr.mxu0 %v12541_v34  ;;  %v10902_v38 = vpop.f32.mrf.mxu1  ;;  %v11015_v32 = vmax.f32 %v10832_v12, 0.0  ;;  %v10979_v34 = vpop.f32.mrf.mxu0  ;;  %v12603_v4 = vld [vmem:[%s17719_s15 + $0xfb0] sm:$0xff] }
0x27e4   :  { %13317 = vmatpush3.msra.mxu1 %v12493_v46  ;;  %13355 = vmatpush3.msra.mxu0 %v12525_v9  ;;  %v12564_v46 = vld [vmem:[%s17719_s15 + $0xe78] sm:$0xff]  ;;  %v12555_v12 = vld [vmem:[%s17719_s15 + $0xe30] sm:$0xff] }
0x27e5   :  { %13318 = vmatprep.subr.mxu1 %v12508_v58  ;;  %13356 = vmatprep.subr.mxu0 %v12540_v8  ;;  %v12596_v9 = vld [vmem:[%s17719_s15 + $0xf78] sm:$0xff]  ;;  %v12611_v58 = vld [vmem:[%s17719_s15 + $0xff0] sm:$0xff]  ;;  %v10903_v8 = vadd.f32 %v10902_v38, %v17444_v52  ;;  %v12601_v38 = vld [vmem:[%s17719_s15 + $0xfa0] sm:$0xff] }
0x27e6   :  { %13319 = vmatpush3.msra.mxu1 %v12492_v23  ;;  %13357 = vmatpush3.msra.mxu0 %v12524_v59  ;;  %v12563_v23 = vld [vmem:[%s17719_s15 + $0xe70] sm:$0xff] }
0x27e7   :  { %13320 = vmatprep.subr.mxu1 %v12507_v49  ;;  %13358 = vmatprep.subr.mxu0 %v12539_v40  ;;  %v12595_v59 = vld [vmem:[%s17719_s15 + $0xf70] sm:$0xff]  ;;  %v10980_v49 = vadd.f32 %v10979_v34, %v17454_v25  ;;  %v11012_v40 = vmax.f32 %v10753_v7, 0.0  ;;  %v10906_v7 = vpop.f32.mrf.mxu1  ;;  %v12568_v34 = vld [vmem:[%s17719_s15 + $0xe98] sm:$0xff] }
0x27e8   :  { %13321 = vmatpush3.msra.mxu1 %v12491_v35  ;;  %13359 = vmatpush3.msra.mxu0 %v12523_v53  ;;  %v11014_v35 = vmax.f32 %v10830_v1, 0.0  ;;  %v12578_v53 = vld [vmem:[%s17719_s15 + $0xee8] sm:$0xff]  ;;  %v10983_v1 = vpop.f32.mrf.mxu0 }
0x27e9   :  { %13322 = vmatprep.subr.mxu1 %v12506_v48  ;;  %13360 = vmatprep.subr.mxu0 %v12538_v36  ;;  %v12610_v48 = vld [vmem:[%s17719_s15 + $0xfe8] sm:$0xff]  ;;  %v11003_v63 = vmax.f32 %v10980_v49, 0.0  ;;  %v12583_v49 = vld [vmem:[%s17719_s15 + $0xf10] sm:$0xff] }
0x27ea   :  { %13323 = vmatpush3.msra.mxu1 %v12490_v29  ;;  %13361 = vmatpush3.msra.mxu0 %v12522_v62  ;;  %v12562_v36 = vld [vmem:[%s17719_s15 + $0xe68] sm:$0xff]  ;;  %v11001_v29 = vmax.f32 %v10903_v8, 0.0  ;;  %v12584_v8 = vld [vmem:[%s17719_s15 + $0xf18] sm:$0xff] }
0x27eb   :  { %13324 = vmatprep.subr.mxu1 %v12505_v30  ;;  %13362 = vmatprep.subr.mxu0 %v12537_v37  ;;  %v12594_v62 = vld [vmem:[%s17719_s15 + $0xf68] sm:$0xff]  ;;  %v12577_v30 = vld [vmem:[%s17719_s15 + $0xee0] sm:$0xff] }
0x27ec   :  { %13325 = vmatpush3.msra.mxu1 %v12489_v41  ;;  %13363 = vmatpush3.msra.mxu0 %v12521_v50  ;;  %v12609_v37 = vld [vmem:[%s17719_s15 + $0xfe0] sm:$0xff]  ;;  %v12576_v50 = vld [vmem:[%s17719_s15 + $0xed8] sm:$0xff] }
0x27ed   :  { %13326 = vmatprep.subr.mxu1 %v12504_v20  ;;  %13364 = vmatprep.subr.mxu0 %v12536_v24  ;;  %v12593_v41 = vld [vmem:[%s17719_s15 + $0xf60] sm:$0xff]  ;;  %v12608_v20 = vld [vmem:[%s17719_s15 + $0xfd8] sm:$0xff] }
0x27ee   :  { %13327 = vmatpush3.msra.mxu1 %v12488_v22  ;;  %13365 = vmatpush3.msra.mxu0 %v12520_v44  ;;  %v12560_v24 = vld [vmem:[%s17719_s15 + $0xe58] sm:$0xff]  ;;  %v12607_v22 = vld [vmem:[%s17719_s15 + $0xfd0] sm:$0xff] }
0x27ef   :  { %13328 = vmatprep.subr.mxu1 %v12503_v14  ;;  %13366 = vmatprep.subr.mxu0 %v12535_v56  ;;  %v12559_v44 = vld [vmem:[%s17719_s15 + $0xe50] sm:$0xff]  ;;  %v12574_v14 = vld [vmem:[%s17719_s15 + $0xec8] sm:$0xff] }
0x27f0   :  { %13329 = vmatpush3.msra.mxu1 %v12487_v47  ;;  %13367 = vmatpush3.msra.mxu0 %v12519_v16  ;;  %v12606_v56 = vld [vmem:[%s17719_s15 + $0xfc8] sm:$0xff]  ;;  %v12573_v16 = vld [vmem:[%s17719_s15 + $0xec0] sm:$0xff] }
0x27f1   :  { %13330 = vmatprep.subr.mxu1 %v12502_v11  ;;  %13368 = vmatprep.subr.mxu0 %v12534_v18  ;;  %v12590_v47 = vld [vmem:[%s17719_s15 + $0xf48] sm:$0xff]  ;;  %v12605_v11 = vld [vmem:[%s17719_s15 + $0xfc0] sm:$0xff] }
0x27f2   :  { %13331 = vmatpush3.msra.mxu1 %v12486_v61  ;;  %13369 = vmatpush3.msra.mxu0 %v12518_v3  ;;  %v12557_v18 = vld [vmem:[%s17719_s15 + $0xe40] sm:$0xff]  ;;  %v12604_v61 = vld [vmem:[%s17719_s15 + $0xfb8] sm:$0xff] }
0x27f3   :  { %13332 = vmatprep.subr.mxu1 %v12501_v19  ;;  %13370 = vmatprep.subr.mxu0 %v12533_v60  ;;  %v12556_v3 = vld [vmem:[%s17719_s15 + $0xe38] sm:$0xff]  ;;  %v12571_v60 = vld [vmem:[%s17719_s15 + $0xeb0] sm:$0xff] }
0x27f4   :  { %13333 = vmatpush3.msra.mxu1 %v12485_v21  ;;  %13371 = vmatpush3.msra.mxu0 %v12517_v15  ;;  %v12588_v19 = vld [vmem:[%s17719_s15 + $0xf38] sm:$0xff]  ;;  %v12587_v21 = vld [vmem:[%s17719_s15 + $0xf30] sm:$0xff]  ;;  %v12570_v15 = vld [vmem:[%s17719_s15 + $0xea8] sm:$0xff] }
0x27f5   :  { %11650 = vmatmul.mubr.f32.vlgmr.msra.gmra.mxu1 %v10996_v27  ;;  %11725 = vmatmul.mubr.f32.vlgmr.msra.gmra.mxu0 %v10998_v54  ;;  %v12602_v27 = vld [vmem:[%s17719_s15 + $0xfa8] sm:$0xff] }
0x27f6   :  { %13378 = vmatprep.subr.mxu1 %v12580_v10  ;;  %13416 = vmatprep.subr.mxu0 %v12612_v28  ;;  %v12554_v54 = vld [vmem:[%s17719_s15 + $0xe28] sm:$0xff]  ;;  %v12569_v28 = vld [vmem:[%s17719_s15 + $0xea0] sm:$0xff] }
0x27f7   :  { %11654 = vmatprep.mubr.f32.mxu1 %v11013_v31  ;;  %11729 = vmatprep.mubr.f32.mxu0 %v11015_v32  ;;  %v12586_v10 = vld [vmem:[%s17719_s15 + $0xf28] sm:$0xff]  ;;  %v12553_v31 = vld [vmem:[%s17719_s15 + $0xe20] sm:$0xff] }
0x27f8   :  { %13379 = vmatpush3.msra.mxu1 %v12564_v46  ;;  %13417 = vmatpush3.msra.mxu0 %v12596_v9  ;;  %v12585_v32 = vld [vmem:[%s17719_s15 + $0xf20] sm:$0xff]  ;;  %v12600_v46 = vld [vmem:[%s17719_s15 + $0xf98] sm:$0xff]  ;;  %v10337_v9 = vrot.slane %v17244_v45, %v15576_v2  ;;  %v12599_v2 = vld [vmem:[%s17719_s15 + $0xf90] sm:$0xff] }
0x27f9   :  { %13380 = vmatprep.subr.mxu1 %v12579_v13  ;;  %13418 = vmatprep.subr.mxu0 %v12611_v58  ;;  %v10345_v13 = vrot.slane %v17244_v45, %v15579_v6  ;;  %v12552_v58 = vld [vmem:[%s17719_s15 + $0xe18] sm:$0xff]  ;;  %v10908_v6 = vpop.f32.mrf.mxu1  ;;  %v10985_v45 = vpop.f32.mrf.mxu0 }
0x27fa   :  { %13381 = vmatpush3.msra.mxu1 %v12563_v23  ;;  %13419 = vmatpush3.msra.mxu0 %v12595_v59  ;;  %v12567_v23 = vld [vmem:[%s17719_s15 + $0xe90] sm:$0xff] }
0x27fb   :  { %11655 = vmatmul.mubr.f32.gmra.mxu1 %v11012_v40  ;;  %11730 = vmatmul.mubr.f32.gmra.mxu0 %v11014_v35  ;;  %v12551_v59 = vld [vmem:[%s17719_s15 + $0xe10] sm:$0xff]  ;;  %v12566_v40 = vld [vmem:[%s17719_s15 + $0xe88] sm:$0xff] }
0x27fc   :  { %13382 = vmatprep.subr.mxu1 %v12578_v53  ;;  %13420 = vmatprep.subr.mxu0 %v12610_v48  ;;  %v12598_v35 = vld [vmem:[%s17719_s15 + $0xf88] sm:$0xff]  ;;  %v10901_v53 = vadd.f32 %v17424_v17, %v10337_v9  ;;  %v10978_v48 = vadd.f32 %v17434_v43, %v10345_v13  ;;  %v12565_v17 = vld [vmem:[%s17719_s15 + $0xe80] sm:$0xff] }
0x27fd   :  { %13383 = vmatpush3.msra.mxu1 %v12562_v36  ;;  %11799 = vmatprep.mubr.f32.mxu1 %v11001_v29  ;;  %v12550_v36 = vld [vmem:[%s17719_s15 + $0xe08] sm:$0xff]  ;;  %v12597_v43 = vld [vmem:[%s17719_s15 + $0xf80] sm:$0xff] }
0x27fe   :  { %13421 = vmatpush3.msra.mxu0 %v12594_v62  ;;  %11874 = vmatprep.mubr.f32.mxu0 %v11003_v63  ;;  %v12582_v29 = vld [vmem:[%s17719_s15 + $0xf08] sm:$0xff]  ;;  %v10909_v62 = vadd.f32 %v10908_v6, %v17444_v52  ;;  %v10986_v63 = vadd.f32 %v10985_v45, %v17454_v25  ;;  %v12581_v52 = vld [vmem:[%s17719_s15 + $0xf00] sm:$0xff]  ;;  %v11000_v25 = vmax.f32 %v10901_v53, 0.0 }
0x27ff   :  { %13384 = vmatprep.subr.mxu1 %v12577_v30  ;;  %13422 = vmatprep.subr.mxu0 %v12609_v37  ;;  %v12549_v30 = vld [vmem:[%s17719_s15 + $0xe00] sm:$0xff]  ;;  %v11002_v37 = vmax.f32 %v10978_v48, 0.0 }
0x2800   :  { %13385 = vmatpush3.msra.mxu1 %v12561_v0  ;;  %13423 = vmatpush3.msra.mxu0 %v12593_v41  ;;  %v10907_v0 = vadd.f32 %v10906_v7, %v10337_v9  ;;  %v10984_v41 = vadd.f32 %v10983_v1, %v10345_v13 }
0x2801   :  { %13386 = vmatprep.subr.mxu1 %v12576_v50  ;;  %13424 = vmatprep.subr.mxu0 %v12608_v20  ;;  %v11017_v50 = vmax.f32 %v10909_v62, 0.0  ;;  %v11019_v20 = vmax.f32 %v10986_v63, 0.0 }
0x2802   :  { %13387 = vmatpush3.msra.mxu1 %v12560_v24  ;;  %13425 = vmatpush3.msra.mxu0 %v12592_v51  ;;  %v11016_v24 = vmax.f32 %v10907_v0, 0.0  ;;  %v11018_v51 = vmax.f32 %v10984_v41, 0.0 }
0x2803   :  { %13388 = vmatprep.subr.mxu1 %v12575_v42  ;;  %13426 = vmatprep.subr.mxu0 %v12607_v22 }
0x2804   :  { %13389 = vmatpush3.msra.mxu1 %v12559_v44  ;;  %13427 = vmatpush3.msra.mxu0 %v12591_v5 }
0x2805   :  { %13390 = vmatprep.subr.mxu1 %v12574_v14  ;;  %13428 = vmatprep.subr.mxu0 %v12606_v56  ;;  %v13182_v42 = vpop.f32.mrf.mxu1  ;;  %v13220_v22 = vpop.f32.mrf.mxu0 }
0x2806   :  { %13391 = vmatpush3.msra.mxu1 %v12558_v39  ;;  %13429 = vmatpush3.msra.mxu0 %v12590_v47 }
0x2807   :  { %13392 = vmatprep.subr.mxu1 %v12573_v16  ;;  %13430 = vmatprep.subr.mxu0 %v12605_v11  ;;  %v13183_v44 = vpop.f32.mrf.mxu1  ;;  %v13221_v5 = vpop.f32.mrf.mxu0 }
0x2808   :  { %13393 = vmatpush3.msra.mxu1 %v12557_v18  ;;  %13431 = vmatpush3.msra.mxu0 %v12589_v26 }
0x2809   :  { %13394 = vmatprep.subr.mxu1 %v12572_v55  ;;  %13432 = vmatprep.subr.mxu0 %v12604_v61 }
0x280a   :  { %13395 = vmatpush3.msra.mxu1 %v12556_v3  ;;  %13433 = vmatpush3.msra.mxu0 %v12588_v19  ;;  %v13184_v19 = vadd.f32 %v13183_v44, %v13182_v42 }
0x280b   :  { %13396 = vmatprep.subr.mxu1 %v12571_v60  ;;  %13434 = vmatprep.subr.mxu0 %v12603_v4  ;;  %v12614_v60 = vld [vmem:[%s17721_s16 + $0x1] ss:$0 sm:$0xff] }
0x280c   :  { %13397 = vmatpush3.msra.mxu1 %v12555_v12  ;;  %13435 = vmatpush3.msra.mxu0 %v12587_v21 }
0x280d   :  { %13398 = vmatprep.subr.mxu1 %v12570_v15  ;;  %13436 = vmatprep.subr.mxu0 %v12602_v27  ;;  %v11352_v15 = vadd.f32 %v13184_v19, %v12614_v60 }
0x280e   :  { %13399 = vmatpush3.msra.mxu1 %v12554_v54  ;;  %13437 = vmatpush3.msra.mxu0 %v12586_v10  ;;  %v13222_v10 = vadd.f32 %v13221_v5, %v13220_v22 }
0x280f   :  { %13400 = vmatprep.subr.mxu1 %v12569_v28  ;;  %13438 = vmatprep.subr.mxu0 %v12601_v38 }
0x2810   :  { %13401 = vmatpush3.msra.mxu1 %v12553_v31  ;;  %13439 = vmatpush3.msra.mxu0 %v12585_v32  ;;  %v11427_v7 = vadd.f32 %v13222_v10, %v11352_v15 }
0x2811   :  { %13402 = vmatprep.subr.mxu1 %v12568_v34  ;;  %13440 = vmatprep.subr.mxu0 %v12600_v46 }
0x2812   :  { %13403 = vmatpush3.msra.mxu1 %v12552_v58  ;;  %13441 = vmatpush3.msra.mxu0 %v12584_v8 }
0x2813   :  { %13404 = vmatprep.subr.mxu1 %v12567_v23  ;;  %13442 = vmatprep.subr.mxu0 %v12599_v2 }
0x2814   :  { %13405 = vmatpush3.msra.mxu1 %v12551_v59  ;;  %13443 = vmatpush3.msra.mxu0 %v12583_v49 }
0x2815   :  { %13406 = vmatprep.subr.mxu1 %v12566_v40  ;;  %13444 = vmatprep.subr.mxu0 %v12598_v35 }
0x2816   :  { %13407 = vmatpush3.msra.mxu1 %v12550_v36  ;;  %13445 = vmatpush3.msra.mxu0 %v12582_v29 }
0x2817   :  { %13408 = vmatprep.subr.mxu1 %v12565_v17  ;;  %13446 = vmatprep.subr.mxu0 %v12597_v43 }
0x2818   :  { %13409 = vmatpush3.msra.mxu1 %v12549_v30  ;;  %13447 = vmatpush3.msra.mxu0 %v12581_v52 }
0x2819   :  { %11800 = vmatmul.mubr.f32.vlgmr.msra.gmra.mxu1 %v11000_v25  ;;  %11875 = vmatmul.mubr.f32.vlgmr.msra.gmra.mxu0 %v11002_v37 }
0x281a   :  { %11804 = vmatprep.mubr.f32.mxu1 %v11017_v50  ;;  %11879 = vmatprep.mubr.f32.mxu0 %v11019_v20 }
0x281d   :  { %11805 = vmatmul.mubr.f32.gmra.mxu1 %v11016_v24  ;;  %11880 = vmatmul.mubr.f32.gmra.mxu0 %v11018_v51 }
0x288e   :  { %v13185_v14 = vpop.f32.mrf.mxu1  ;;  %v13223_v56 = vpop.f32.mrf.mxu0 }
0x2890   :  { %v13186_v39 = vpop.f32.mrf.mxu1  ;;  %v13224_v47 = vpop.f32.mrf.mxu0 }
0x2891   :  { %v13187_v27 = vadd.f32 %v13186_v39, %v13185_v14  ;;  %v13225_v32 = vadd.f32 %v13224_v47, %v13223_v56 }
0x2892   :  { %v13258_v16 = vpop.f32.mrf.mxu1  ;;  %v13296_v11 = vpop.f32.mrf.mxu0 }
0x2893   :  { %v11357_v1 = vadd.f32 %v13187_v27, %v12614_v60 }
0x2894   :  { %v13259_v18 = vpop.f32.mrf.mxu1  ;;  %v13297_v26 = vpop.f32.mrf.mxu0 }
0x2895   :  { %v13260_v28 = vadd.f32 %v13259_v18, %v13258_v16  ;;  %v11432_v13 = vadd.f32 %v13225_v32, %v11357_v1  ;;  %v13298_v58 = vadd.f32 %v13297_v26, %v13296_v11 }
0x2897   :  { %v11502_v34 = vadd.f32 %v13260_v28, %v11427_v7  ;;  %v12618_v28 = vld [vmem:[%s17723_s22 + $0x1] ss:$0 sm:$0xff] }
0x2898   :  { %v13261_v55 = vpop.f32.mrf.mxu1  ;;  %v13299_v61 = vpop.f32.mrf.mxu0 }
0x2899   :  { %v11577_v2 = vadd.f32 %v13298_v58, %v11502_v34 }
0x289a   :  { %v13262_v3 = vpop.f32.mrf.mxu1  ;;  %v13300_v4 = vpop.f32.mrf.mxu0 }
0x289b   :  { %v13263_v46 = vadd.f32 %v13262_v3, %v13261_v55  ;;  %v13301_v59 = vadd.f32 %v13300_v4, %v13299_v61 }
0x289d   :  { %v11507_v6 = vadd.f32 %v13263_v46, %v11432_v13 }
0x289f   :  { %v11582_v48 = vadd.f32 %v13301_v59, %v11507_v6 }
0x28b5   :  { %v13334_v12 = vpop.f32.mrf.mxu1  ;;  %v13372_v21 = vpop.f32.mrf.mxu0 }
0x28b7   :  { %v13335_v54 = vpop.f32.mrf.mxu1  ;;  %v13373_v38 = vpop.f32.mrf.mxu0 }
0x28b8   :  { %v13336_v8 = vadd.f32 %v13335_v54, %v13334_v12  ;;  %v13374_v36 = vadd.f32 %v13373_v38, %v13372_v21  ;;  %v12617_v54 = vld [vmem:[%s17722_s21 + $0x1] ss:$0 sm:$0xff] }
0x28ba   :  { %v11652_v49 = vadd.f32 %v13336_v8, %v11577_v2 }
0x28bb   :  { %v13337_v31 = vpop.f32.mrf.mxu1  ;;  %v13375_v9 = vpop.f32.mrf.mxu0 }
0x28bc   :  { %v11727_v63 = vadd.f32 %v13374_v36, %v11652_v49  ;;  %v11977_v36 = vld [vmem:[%s17787_s28] sm:$0xff] }
0x28bd   :  { %v13338_v23 = vpop.f32.mrf.mxu1  ;;  %v13376_v45 = vpop.f32.mrf.mxu0 }
0x28be   :  { %v13339_v40 = vadd.f32 %v13338_v23, %v13337_v31  ;;  %v13377_v25 = vadd.f32 %v13376_v45, %v13375_v9 }
0x28c0   :  { %v11657_v17 = vadd.f32 %v13339_v40, %v11582_v48  ;;  %v11978_v48 = vld [vmem:[%s17787_s28 + $0x8] sm:$0xff] }
0x28c2   :  { %v11732_v20 = vadd.f32 %v13377_v25, %v11657_v17  ;;  %v12619_v25 = vld [vmem:[%s17788_s24] ss:$0 sm:$0xff] }
0x28d9   :  { %v13410_v35 = vpop.f32.mrf.mxu1  ;;  %v13448_v53 = vpop.f32.mrf.mxu0 }
0x28db   :  { %v13411_v29 = vpop.f32.mrf.mxu1  ;;  %v13449_v62 = vpop.f32.mrf.mxu0 }
0x28dc   :  { %v13412_v43 = vadd.f32 %v13411_v29, %v13410_v35  ;;  %v13450_v0 = vadd.f32 %v13449_v62, %v13448_v53  ;;  %v11980_v35 = vld [vmem:[%s17787_s28 + $0x18] sm:$0xff]  ;;  %v11979_v53 = vld [vmem:[%s17787_s28 + $0x10] sm:$0xff] }
0x28dd   :  { %v13413_v30 = vpop.f32.mrf.mxu1  ;;  %v13451_v52 = vpop.f32.mrf.mxu0  ;;  %13995 = vmatprep.subr.mxu1 %v11980_v35 }
0x28de   :  { %v11802_v37 = vadd.f32 %v13412_v43, %v11727_v63  ;;  %13996 = vmatpush3.msra.mxu1 %v11980_v35 }
0x28df   :  { %v13414_v41 = vpop.f32.mrf.mxu1  ;;  %v13452_v50 = vpop.f32.mrf.mxu0  ;;  %13997 = vmatprep.subr.mxu1 %v11979_v53 }
0x28e0   :  { %v11877_v24 = vadd.f32 %v13450_v0, %v11802_v37  ;;  %v13415_v51 = vadd.f32 %v13414_v41, %v13413_v30  ;;  %v13453_v22 = vadd.f32 %v13452_v50, %v13451_v52  ;;  %13998 = vmatpush3.msra.mxu1 %v11979_v53  ;;  %v12620_v0 = vld [vmem:[%s17789_s8] ss:$0 sm:$0xff] }
0x28e1   :  { %13999 = vmatprep.subr.mxu1 %v11978_v48 }
0x28e2   :  { %v11807_v42 = vadd.f32 %v13415_v51, %v11732_v20  ;;  %v11885_v44 = vadd.f32 %v11877_v24, %v16602_v57  ;;  %14000 = vmatpush3.msra.mxu1 %v11978_v48 }
0x28e3   :  { %14001 = vmatprep.subr.mxu1 %v11977_v36 }
0x28e4   :  { %v11882_v5 = vadd.f32 %v13453_v22, %v11807_v42  ;;  %v11891_v14 = vsel %vm90_vm0, %v11885_v44, 0.0  ;;  %14002 = vmatpush3.msra.mxu1 %v11977_v36  ;;  %v12621_v22 = vld [vmem:[%s17790_s0] ss:$0 sm:$0xff] }
0x28e5   :  { %11892 = vadd.xlane.f32.xlu0 %v11891_v14 }
0x28e6   :  { %v11886_v56 = vadd.f32 %v11882_v5, %v16664_v33 }
0x28e8   :  { %v11894_v39 = vsel %vm90_vm0, %v11886_v56, 0.0 }
0x28e9   :  { %11895 = vadd.xlane.f32.xlu1 %v11894_v39 }
0x296e   :  { %v11893_v47 = vpop.xlane.xlu0 %11892 }
0x296f   :  { %v11897_v16 = vmul.f32 0.03125, %v11893_v47 }
0x2971   :  { %v11899_v11 = vsub.f32 %v11885_v44, %v11897_v16 }
0x2972   :  { %v11896_v18 = vpop.xlane.xlu1 %11895 }
0x2973   :  { %v11898_v26 = vmul.f32 0.03125, %v11896_v18  ;;  %v11901_v55 = vmul.f32 %v11899_v11, %v11899_v11 }
0x2975   :  { %v11900_v61 = vsub.f32 %v11886_v56, %v11898_v26  ;;  %v11903_v3 = vsel %vm90_vm0, %v11901_v55, 0.0 }
0x2976   :  { %11904 = vadd.xlane.f32.xlu0 %v11903_v3 }
0x2977   :  { %v11902_v57 = vmul.f32 %v11900_v61, %v11900_v61 }
0x2979   :  { %v11906_v19 = vsel %vm90_vm0, %v11902_v57, 0.0 }
0x297a   :  { %11907 = vadd.xlane.f32.xlu1 %v11906_v19 }
0x29ff   :  { %v11905_v60 = vpop.xlane.xlu0 %11904 }
0x2a00   :  { %v11909_v4 = vmul.f32 0.03125, %v11905_v60 }
0x2a02   :  { %v11911_v33 = vadd.f32 1e-05, %v11909_v4 }
0x2a03   :  { %v11908_v12 = vpop.xlane.xlu1 %11907 }
0x2a04   :  { %14166 = vrsqrt.f32 %v11911_v33  ;;  %v11910_v21 = vmul.f32 0.03125, %v11908_v12 }
0x2a06   :  { %v11912_v15 = vadd.f32 1e-05, %v11910_v21 }
0x2a08   :  { %14168 = vrsqrt.f32 %v11912_v15 }
0x2a11   :  { %v14167_v27 = vpop.eup %14166 }
0x2a12   :  { %v11915_v10 = vmul.f32 %v14167_v27, %v11899_v11 }
0x2a14   :  { %v11923_v38 = vmul.f32 %v12617_v54, %v11915_v10 }
0x2a15   :  { %v14169_v7 = vpop.eup %14168 }
0x2a16   :  { %v11931_v1 = vadd.f32 %v12618_v28, %v11923_v38  ;;  %v11916_v31 = vmul.f32 %v14169_v7, %v11900_v61 }
0x2a18   :  { %v11935_v32 = vsel %vm90_vm0, %v11931_v1, 0.0  ;;  %v11924_v34 = vmul.f32 %v12617_v54, %v11916_v31 }
0x2a19   :  { %11936 = vadd.xlane.f32.xlu0 %v11935_v32 }
0x2a1a   :  { %v11932_v46 = vadd.f32 %v12618_v28, %v11924_v34 }
0x2a1c   :  { %v11938_v9 = vsel %vm90_vm0, %v11932_v46, 0.0 }
0x2a1d   :  { %11939 = vadd.xlane.f32.xlu1 %v11938_v9 }
0x2aa2   :  { %v11937_v13 = vpop.xlane.xlu0 %11936 }
0x2aa3   :  { %v11941_v58 = vmul.f32 0.03125, %v11937_v13 }
0x2aa5   :  { %v11943_v8 = vsub.f32 %v11931_v1, %v11941_v58 }
0x2aa6   :  { %v11940_v23 = vpop.xlane.xlu1 %11939 }
0x2aa7   :  { %v11942_v2 = vmul.f32 0.03125, %v11940_v23  ;;  %v11945_v6 = vmul.f32 %v11943_v8, %v11943_v8 }
0x2aa9   :  { %v11944_v45 = vsub.f32 %v11932_v46, %v11942_v2  ;;  %v11947_v59 = vsel %vm90_vm0, %v11945_v6, 0.0 }
0x2aaa   :  { %11948 = vadd.xlane.f32.xlu0 %v11947_v59 }
0x2aab   :  { %v11946_v49 = vmul.f32 %v11944_v45, %v11944_v45 }
0x2aad   :  { %v11950_v40 = vsel %vm90_vm0, %v11946_v49, 0.0 }
0x2aae   :  { %11951 = vadd.xlane.f32.xlu1 %v11950_v40 }
0x2b33   :  { %v11949_v29 = vpop.xlane.xlu0 %11948 }
0x2b34   :  { %v11953_v62 = vmul.f32 0.03125, %v11949_v29 }
0x2b36   :  { %v11955_v63 = vadd.f32 1e-05, %v11953_v62 }
0x2b37   :  { %v11952_v17 = vpop.xlane.xlu1 %11951 }
0x2b38   :  { %14170 = vrsqrt.f32 %v11955_v63  ;;  %v11954_v43 = vmul.f32 0.03125, %v11952_v17 }
0x2b3a   :  { %v11956_v30 = vadd.f32 1e-05, %v11954_v43 }
0x2b3c   :  { %14172 = vrsqrt.f32 %v11956_v30 }
0x2b45   :  { %v14171_v52 = vpop.eup %14170 }
0x2b46   :  { %v11959_v37 = vmul.f32 %v14171_v52, %v11943_v8 }
0x2b48   :  { %v11967_v41 = vmul.f32 %v12619_v25, %v11959_v37 }
0x2b49   :  { %v14173_v50 = vpop.eup %14172 }
0x2b4a   :  { %v11960_v20 = vmul.f32 %v14173_v50, %v11944_v45  ;;  %v11975_v24 = vadd.f32 %v12620_v0, %v11967_v41 }
0x2b4c   :  { %v11968_v51 = vmul.f32 %v12619_v25, %v11960_v20  ;;  %14003 = vmatprep.mubr.msk.f32.mxu1 %vm90_vm0, %v11975_v24 }
0x2b4e   :  { %v11976_v42 = vadd.f32 %v12620_v0, %v11968_v51 }
0x2b50   :  { %14004 = vmatmul.mubr.msk.f32.vlgmr.msra.gmra.mxu1 %vm90_vm0, %v11976_v42 }
0x2c10   :  { %v14005_v44 = vpop.f32.mrf.mxu1 }
0x2c11   :  { %v12066_v5 = vadd.f32 %v14005_v44, %v12621_v22 }
0x2c12   :  { %v12060_v14 = vpop.f32.mrf.mxu1 }
0x2c13   :  { %12070 = vst [vmem:[%s17791_s4 + $0x8] sm:$0xff] %v12066_v5  ;;  %v12061_v56 = vadd.f32 %v12621_v22, %v12060_v14 }
0x2c15   :  { %12069 = vst [vmem:[%s17791_s4] sm:$0xff] %v12061_v56 }

</bundles_post_ra>
